<compile_context>
chip_gen: v6e
topology: v6e:2x2x1
jax: 0.10.0
libtpu: 0.0.40
codegen_flags: <defaults>
</compile_context>

<pallas_src>
import functools
import math

import jax
import jax.numpy as jnp
from jax.experimental import pallas as pl
from jax.experimental.pallas import tpu as pltpu

DIM = 128            # hardcoded in the reference
THIN_FACTOR = 2
LAMBDA_DISTIL = 1.0  # opt.lambda_distil comes from argparse; fixed here
LEAKY_SLOPE = 0.01   # nn.LeakyReLU() default negative_slope


# ---------------------------------------------------------------------------
# Pallas kernels
# ---------------------------------------------------------------------------
def _conv_mm_leaky_kernel(a_ref, b_ref, bias_ref, pre_ref, act_ref):
    """pre = a @ b + bias (f32); act = leaky_relu(pre) cast to bf16.

    a/b are bf16 (native MXU fast path on v5e/v6e/v7x); accumulation, bias and
    the LeakyReLU select stay in f32 (v5e VPU has no bf16)."""
    acc = jnp.dot(a_ref[...], b_ref[...], preferred_element_type=jnp.float32)
    acc = acc + bias_ref[...]
    pre_ref[...] = acc
    act_ref[...] = jnp.where(acc >= 0, acc, LEAKY_SLOPE * acc).astype(act_ref.dtype)


def conv_matmul_leaky(a, b, bias):
    """Fused conv-as-matmul: returns (pre_activation f32 [M,N], leaky bf16 [M,N]).

    a: [M,K] bf16 im2col patches, b: [K,N] bf16 weights, bias: [1,N] f32.
    Small matmuls run as a single grid step; the larger ones (M>=256) get two
    independent "parallel" M-tiles so a 2-TC chip (v7x) can split the work
    (neutral on single-TC v5e/v6e)."""
    M, K = a.shape
    K2, N = b.shape
    assert K == K2
    tm = M // 2 if (M >= 256 and (M // 2) % 8 == 0) else M
    gm = M // tm
    return pl.pallas_call(
        _conv_mm_leaky_kernel,
        out_shape=(jax.ShapeDtypeStruct((M, N), jnp.float32),
                   jax.ShapeDtypeStruct((M, N), jnp.bfloat16)),
        grid_spec=pltpu.PrefetchScalarGridSpec(
            num_scalar_prefetch=0,
            grid=(gm,),
            in_specs=[
                pl.BlockSpec((tm, K), lambda i: (i, 0)),
                pl.BlockSpec((K, N), lambda i: (0, 0)),
                pl.BlockSpec((1, N), lambda i: (0, 0)),
            ],
            out_specs=[pl.BlockSpec((tm, N), lambda i: (i, 0)),
                       pl.BlockSpec((tm, N), lambda i: (i, 0))],
        ),
        compiler_params=pltpu.CompilerParams(
            dimension_semantics=("parallel",),
        ),
    )(a, b, bias)


def _vid_criterion_kernel(s_ref, t_ref, w_ref, b_ref, alpha_ref, o_ref, *, scale):
    """Fused VID criterion: mu = s @ w + b (bf16 MXU operands, f32 accumulate)
    immediately followed by the Gaussian-NLL reduction -> one scalar.
    Per-channel 1/var and log(var) are computed once on the (1, Ct) row."""
    mu = jnp.dot(s_ref[...].astype(jnp.bfloat16),
                 w_ref[...].astype(jnp.bfloat16),
                 preferred_element_type=jnp.float32)
    mu = mu + b_ref[...]
    alpha = alpha_ref[...]                                     # (1, Ct)
    # stable softplus(alpha) + 1e-5
    var = jnp.maximum(alpha, 0.0) + jnp.log(1.0 + jnp.exp(-jnp.abs(alpha))) + 1e-5
    inv_var = pl.reciprocal(var)                               # hoisted, per-channel
    log_var = jnp.log(var)
    diff = mu - t_ref[...]
    nll = 0.5 * (diff * diff * inv_var + log_var)
    o_ref[...] = (jnp.sum(nll) * scale).reshape(1, 1)


def vid_criterion(s_feat_2d, t_feat_2d, cparams):
    # TODO(synk): the real criterion is injected into VID.__init__; this is a
    # standard VID Gaussian-NLL (1x1-conv regressor + learned variance,
    # normalize=False) stand-in with deterministic parameters.
    M, Cs = s_feat_2d.shape
    Ct = t_feat_2d.shape[-1]
    scale = LAMBDA_DISTIL / float(M * Ct)
    kernel = functools.partial(_vid_criterion_kernel, scale=scale)
    out = pl.pallas_call(
        kernel,
        out_shape=jax.ShapeDtypeStruct((1, 1), jnp.float32),
        grid=(1,),
        in_specs=[
            pl.BlockSpec((M, Cs), lambda i: (0, 0)),
            pl.BlockSpec((M, Ct), lambda i: (0, 0)),
            pl.BlockSpec((Cs, Ct), lambda i: (0, 0)),
            pl.BlockSpec((1, Ct), lambda i: (0, 0)),
            pl.BlockSpec((1, Ct), lambda i: (0, 0)),
        ],
        out_specs=pl.BlockSpec((1, 1), lambda i: (0, 0)),
    )(s_feat_2d, t_feat_2d, cparams["w"], cparams["b"], cparams["alpha"])
    return out[0, 0]


def _linear_matvec_kernel(x_ref, w_ref, b_ref, o_ref):
    """1-output-column Linear as a VPU multiply + cross-lane reduction
    (avoids a 1/128-lane MXU pass and its masked 1-wide result store)."""
    x = x_ref[...].astype(jnp.float32)
    o_ref[...] = jnp.sum(x * w_ref[...], axis=1, keepdims=True) + b_ref[...]


def linear_1out(x, w_row, b):
    """x: [M,K] (bf16 or f32), w_row: [1,K] f32, b: [1,1] f32 -> [M,1] f32."""
    M, K = x.shape
    return pl.pallas_call(
        _linear_matvec_kernel,
        out_shape=jax.ShapeDtypeStruct((M, 1), jnp.float32),
        grid=(1,),
        in_specs=[
            pl.BlockSpec((M, K), lambda i: (0, 0)),
            pl.BlockSpec((1, K), lambda i: (0, 0)),
            pl.BlockSpec((1, 1), lambda i: (0, 0)),
        ],
        out_specs=pl.BlockSpec((M, 1), lambda i: (0, 0)),
    )(x, w_row, b)


# ---------------------------------------------------------------------------
# Model pieces (cheap glue in JAX, math in Pallas)
# ---------------------------------------------------------------------------
def im2col_3x3_s2(x):
    """3x3 / stride-2 / pad-1 patch extraction.

    Kept on the XLA side (fused under jit): at these shapes the bf16
    intermediate is < 0.5 MiB per layer, while an in-kernel 9-tap gather would
    require sublane-hostile strided slices / reshapes on TPU tiles."""
    N, H, W, C = x.shape
    Ho, Wo = H // 2, W // 2
    xp = jnp.pad(x, ((0, 0), (1, 1), (1, 1), (0, 0)))
    cols = [xp[:, ky:ky + 2 * Ho:2, kx:kx + 2 * Wo:2, :]
            for ky in range(3) for kx in range(3)]
    patches = jnp.stack(cols, axis=3)                  # [N,Ho,Wo,9,C]
    return patches.reshape(N * Ho * Wo, 9 * C), (N, Ho, Wo)


def _wmat(w_hwio):
    """HWIO conv weight -> bf16 [9*Cin, Cout]; (ky,kx,cin) order matches im2col."""
    return w_hwio.astype(jnp.bfloat16).reshape(-1, w_hwio.shape[-1])


@jax.jit
def vid_forward(images_nchw, params):
    """Mirror of VID.forward: returns (student logits [N,1], [3 distill losses]).

    Layer-0 student+teacher convs share the input image and run as one kernel
    with concatenated output channels.  The teacher's Linear head is skipped:
    the reference discards its output (only the conv-hook features are used)."""
    x = jnp.transpose(images_nchw, (0, 2, 3, 1)).astype(jnp.bfloat16)  # NCHW->NHWC
    sp, tp = params["student"], params["teacher"]
    nh_s = sp["conv0_w"].shape[-1]

    # ---- layer 0: combined student|teacher conv (shared input) ----
    a0, (N, H1, W1) = im2col_3x3_s2(x)
    w0 = jnp.concatenate(
        [sp["conv0_w"].reshape(-1, nh_s),
         tp["conv0_w"].reshape(-1, tp["conv0_w"].shape[-1])], axis=1
    ).astype(jnp.bfloat16)
    b0 = jnp.concatenate([sp["conv0_b"], tp["conv0_b"]], axis=1)
    pre0, act0 = conv_matmul_leaky(a0, w0, b0)
    s_pre = [pre0[:, :nh_s]]                    # forward-hook equivalents (pre-act)
    t_pre = [pre0[:, nh_s:]]
    s_act = act0[:, :nh_s].reshape(N, H1, W1, nh_s)
    t_act = act0[:, nh_s:].reshape(N, H1, W1, -1)

    # ---- layers 1 and 2 ----
    for li in (1, 2):
        a_s, (N, Hs, Ws) = im2col_3x3_s2(s_act)
        pre_s, act_s2d = conv_matmul_leaky(a_s, _wmat(sp[f"conv{li}_w"]),
                                           sp[f"conv{li}_b"])
        a_t, _ = im2col_3x3_s2(t_act)
        pre_t, act_t2d = conv_matmul_leaky(a_t, _wmat(tp[f"conv{li}_w"]),
                                           tp[f"conv{li}_b"])
        s_pre.append(pre_s)
        t_pre.append(pre_t)
        s_act = act_s2d.reshape(N, Hs, Ws, -1)
        t_act = act_t2d.reshape(N, Hs, Ws, -1)   # teacher act2 is never consumed

    # ---- student Linear head (flatten in (C,H,W) order like PyTorch) ----
    h_nchw = jnp.transpose(s_act, (0, 3, 1, 2))
    flat = h_nchw.reshape(N, -1)
    s_out = linear_1out(flat, sp["lin_w"].reshape(1, -1), sp["lin_b"])

    # ---- fused VID criterions on the hooked (pre-activation) features ----
    reg_loss = [vid_criterion(s_pre[i], t_pre[i], params[f"criterion{i}"])
                for i in range(3)]
    return s_out, reg_loss


# ---------------------------------------------------------------------------
# Deterministic parameter init (same shapes as the PyTorch module)
# ---------------------------------------------------------------------------
def init_discriminator_params(key, nh):
    params = {}
    cins = [3, nh, 2 * nh]
    couts = [nh, 2 * nh, 4 * nh]
    for li, (ci, co) in enumerate(zip(cins, couts)):
        key, k1, k2 = jax.random.split(key, 3)
        bound = 1.0 / math.sqrt(9 * ci)
        params[f"conv{li}_w"] = jax.random.uniform(
            k1, (3, 3, ci, co), jnp.float32, -bound, bound)
        params[f"conv{li}_b"] = jax.random.uniform(
            k2, (1, co), jnp.float32, -bound, bound)
    key, k1, k2 = jax.random.split(key, 3)
    fin = 4 * 4 * 4 * nh
    bound = 1.0 / math.sqrt(fin)
    params["lin_w"] = jax.random.uniform(k1, (fin, 1), jnp.float32, -bound, bound)
    params["lin_b"] = jax.random.uniform(k2, (1, 1), jnp.float32, -bound, bound)
    return params


def init_criterion_params(key, sc, tc):
    k1, k2 = jax.random.split(key, 2)
    bound = 1.0 / math.sqrt(sc)
    return {
        "w": jax.random.uniform(k1, (sc, tc), jnp.float32, -bound, bound),
        "b": jax.random.uniform(k2, (1, tc), jnp.float32, -bound, bound),
        "alpha": jnp.full((1, tc), 5.0, jnp.float32),
    }


if __name__ == "__main__":
    key = jax.random.PRNGKey(0)
    k_img, k_t, k_s, kc0, kc1, kc2 = jax.random.split(key, 6)

    # Input implied by the module: 3-channel 32x32 images (3 stride-2 convs
    # -> 4x4 spatial, matching the 4*4*4*nh Linear).  Small batch = 2.
    images = jax.random.normal(k_img, (2, 3, 32, 32), jnp.float32)

    nh_t = DIM
    nh_s = DIM // THIN_FACTOR
    params = {
        "teacher": init_discriminator_params(k_t, nh_t),
        "student": init_discriminator_params(k_s, nh_s),
        "criterion0": init_criterion_params(kc0, nh_s, nh_t),
        "criterion1": init_criterion_params(kc1, 2 * nh_s, 2 * nh_t),
        "criterion2": init_criterion_params(kc2, 4 * nh_s, 4 * nh_t),
    }

    out, reg_loss = vid_forward(images, params)
    out = jax.block_until_ready(out)
    reg_loss = [jax.block_until_ready(r) for r in reg_loss]

    assert out.shape == (2, 1)
    assert len(reg_loss) == 3
    assert all(bool(jnp.isfinite(r)) for r in reg_loss)
    print("KERNEL_OK")
</pallas_src>

<mosaic_0001>
module attributes {stable_mosaic.version = 11 : i64} {
  func.func @_conv_mm_leaky_kernel(%arg0: i32, %arg1: memref<256x27xbf16, #tpu.memory_space<vmem>>, %arg2: memref<27x192xbf16, #tpu.memory_space<vmem>>, %arg3: memref<1x192xf32, #tpu.memory_space<vmem>>, %arg4: memref<256x192xf32, #tpu.memory_space<vmem>>, %arg5: memref<256x192xbf16, #tpu.memory_space<vmem>>) attributes {dimension_semantics = [#tpu.dimension_semantics<parallel>], iteration_bounds = array<i64: 2>, scalar_prefetch = 0 : i64, scratch_operands = 0 : i64, tpu.core_type = #tpu.core_type<tc>, window_params = [{transform_indices = @transform_0, window_bounds = array<i64: 256, 27>}, {pipeline_mode = #tpu.pipeline_mode<synchronous>, transform_indices = @transform_1, window_bounds = array<i64: 27, 192>}, {pipeline_mode = #tpu.pipeline_mode<synchronous>, transform_indices = @transform_2, window_bounds = array<i64: 1, 192>}, {transform_indices = @transform_3, window_bounds = array<i64: 256, 192>}, {transform_indices = @transform_4, window_bounds = array<i64: 256, 192>}]} {
    %c0 = arith.constant 0 : index
    %c0_0 = arith.constant 0 : index
    %0 = vector.load %arg1[%c0, %c0_0] : memref<256x27xbf16, #tpu.memory_space<vmem>>, vector<256x27xbf16>
    %c0_1 = arith.constant 0 : index
    %c0_2 = arith.constant 0 : index
    %1 = vector.load %arg2[%c0_1, %c0_2] : memref<27x192xbf16, #tpu.memory_space<vmem>>, vector<27x192xbf16>
    %cst = arith.constant dense<0.000000e+00> : vector<256x192xf32>
    %2 = tpu.matmul %0, %1, %cst {dimension_numbers = #tpu.dot_dimension_numbers<[1], [0], [0], [1], [0, 0, 1, 1], [], []>} : vector<256x27xbf16>, vector<27x192xbf16>, vector<256x192xf32> -> vector<256x192xf32>
    %c0_3 = arith.constant 0 : index
    %c0_4 = arith.constant 0 : index
    %3 = vector.load %arg3[%c0_3, %c0_4] : memref<1x192xf32, #tpu.memory_space<vmem>>, vector<1x192xf32>
    %4 = vector.broadcast %3 : vector<1x192xf32> to vector<256x192xf32>
    %5 = arith.addf %2, %4 : vector<256x192xf32>
    %c0_5 = arith.constant 0 : index
    %c0_6 = arith.constant 0 : index
    %6 = vector.load %arg4[%c0_5, %c0_6] : memref<256x192xf32, #tpu.memory_space<vmem>>, vector<256x192xf32>
    tpu.vector_store %arg4[%c0_5, %c0_6], %5 {strides = array<i32>} : memref<256x192xf32, #tpu.memory_space<vmem>>, vector<256x192xf32>,
    %cst_7 = arith.constant 0.000000e+00 : f32
    %7 = vector.broadcast %cst_7 : f32 to vector<256x192xf32>
    %8 = arith.cmpf oge, %5, %7 : vector<256x192xf32>
    %cst_8 = arith.constant 0.00999999977 : f32
    %9 = vector.broadcast %cst_8 : f32 to vector<256x192xf32>
    %10 = arith.mulf %9, %5 : vector<256x192xf32>
    %11 = arith.select %8, %5, %10 : vector<256x192xi1>, vector<256x192xf32>
    %12 = arith.truncf %11 : vector<256x192xf32> to vector<256x192xbf16>
    %c0_9 = arith.constant 0 : index
    %c0_10 = arith.constant 0 : index
    %13 = vector.load %arg5[%c0_9, %c0_10] : memref<256x192xbf16, #tpu.memory_space<vmem>>, vector<256x192xbf16>
    tpu.vector_store %arg5[%c0_9, %c0_10], %12 {strides = array<i32>} : memref<256x192xbf16, #tpu.memory_space<vmem>>, vector<256x192xbf16>,
    return
  }
  func.func @transform_0(%arg0: i32) -> (i32, i32) {
    %c0_i32 = arith.constant 0 : i32
    %c0_i32_0 = arith.constant 0 : i32
    return %arg0, %c0_i32 : i32, i32
  }
  func.func @transform_1(%arg0: i32) -> (i32, i32) {
    %c0_i32 = arith.constant 0 : i32
    %c0_i32_0 = arith.constant 0 : i32
    %c0_i32_1 = arith.constant 0 : i32
    return %c0_i32, %c0_i32_0 : i32, i32
  }
  func.func @transform_2(%arg0: i32) -> (i32, i32) {
    %c0_i32 = arith.constant 0 : i32
    %c0_i32_0 = arith.constant 0 : i32
    %c0_i32_1 = arith.constant 0 : i32
    return %c0_i32, %c0_i32_0 : i32, i32
  }
  func.func @transform_3(%arg0: i32) -> (i32, i32) {
    %c0_i32 = arith.constant 0 : i32
    %c0_i32_0 = arith.constant 0 : i32
    return %arg0, %c0_i32 : i32, i32
  }
  func.func @transform_4(%arg0: i32) -> (i32, i32) {
    %c0_i32 = arith.constant 0 : i32
    %c0_i32_0 = arith.constant 0 : i32
    return %arg0, %c0_i32 : i32, i32
  }
}

module attributes {stable_mosaic.version = 11 : i64} {
  func.func @_conv_mm_leaky_kernel(%arg0: i32, %arg1: memref<128x576xbf16, #tpu.memory_space<vmem>>, %arg2: memref<576x128xbf16, #tpu.memory_space<vmem>>, %arg3: memref<1x128xf32, #tpu.memory_space<vmem>>, %arg4: memref<128x128xf32, #tpu.memory_space<vmem>>, %arg5: memref<128x128xbf16, #tpu.memory_space<vmem>>) attributes {dimension_semantics = [#tpu.dimension_semantics<parallel>], iteration_bounds = array<i64: 1>, scalar_prefetch = 0 : i64, scratch_operands = 0 : i64, tpu.core_type = #tpu.core_type<tc>, window_params = [{transform_indices = @transform_0, window_bounds = array<i64: 128, 576>}, {pipeline_mode = #tpu.pipeline_mode<synchronous>, transform_indices = @transform_1, window_bounds = array<i64: 576, 128>}, {pipeline_mode = #tpu.pipeline_mode<synchronous>, transform_indices = @transform_2, window_bounds = array<i64: 1, 128>}, {transform_indices = @transform_3, window_bounds = array<i64: 128, 128>}, {transform_indices = @transform_4, window_bounds = array<i64: 128, 128>}]} {
    %c0 = arith.constant 0 : index
    %c0_0 = arith.constant 0 : index
    %0 = vector.load %arg1[%c0, %c0_0] : memref<128x576xbf16, #tpu.memory_space<vmem>>, vector<128x576xbf16>
    %c0_1 = arith.constant 0 : index
    %c0_2 = arith.constant 0 : index
    %1 = vector.load %arg2[%c0_1, %c0_2] : memref<576x128xbf16, #tpu.memory_space<vmem>>, vector<576x128xbf16>
    %cst = arith.constant dense<0.000000e+00> : vector<128x128xf32>
    %2 = tpu.matmul %0, %1, %cst {dimension_numbers = #tpu.dot_dimension_numbers<[1], [0], [0], [1], [0, 0, 1, 1], [], []>} : vector<128x576xbf16>, vector<576x128xbf16>, vector<128x128xf32> -> vector<128x128xf32>
    %c0_3 = arith.constant 0 : index
    %c0_4 = arith.constant 0 : index
    %3 = vector.load %arg3[%c0_3, %c0_4] : memref<1x128xf32, #tpu.memory_space<vmem>>, vector<1x128xf32>
    %4 = vector.broadcast %3 : vector<1x128xf32> to vector<128x128xf32>
    %5 = arith.addf %2, %4 : vector<128x128xf32>
    %c0_5 = arith.constant 0 : index
    %c0_6 = arith.constant 0 : index
    %6 = vector.load %arg4[%c0_5, %c0_6] : memref<128x128xf32, #tpu.memory_space<vmem>>, vector<128x128xf32>
    tpu.vector_store %arg4[%c0_5, %c0_6], %5 {strides = array<i32>} : memref<128x128xf32, #tpu.memory_space<vmem>>, vector<128x128xf32>,
    %cst_7 = arith.constant 0.000000e+00 : f32
    %7 = vector.broadcast %cst_7 : f32 to vector<128x128xf32>
    %8 = arith.cmpf oge, %5, %7 : vector<128x128xf32>
    %cst_8 = arith.constant 0.00999999977 : f32
    %9 = vector.broadcast %cst_8 : f32 to vector<128x128xf32>
    %10 = arith.mulf %9, %5 : vector<128x128xf32>
    %11 = arith.select %8, %5, %10 : vector<128x128xi1>, vector<128x128xf32>
    %12 = arith.truncf %11 : vector<128x128xf32> to vector<128x128xbf16>
    %c0_9 = arith.constant 0 : index
    %c0_10 = arith.constant 0 : index
    %13 = vector.load %arg5[%c0_9, %c0_10] : memref<128x128xbf16, #tpu.memory_space<vmem>>, vector<128x128xbf16>
    tpu.vector_store %arg5[%c0_9, %c0_10], %12 {strides = array<i32>} : memref<128x128xbf16, #tpu.memory_space<vmem>>, vector<128x128xbf16>,
    return
  }
  func.func @transform_0(%arg0: i32) -> (i32, i32) {
    %c0_i32 = arith.constant 0 : i32
    %c0_i32_0 = arith.constant 0 : i32
    return %arg0, %c0_i32 : i32, i32
  }
  func.func @transform_1(%arg0: i32) -> (i32, i32) {
    %c0_i32 = arith.constant 0 : i32
    %c0_i32_0 = arith.constant 0 : i32
    %c0_i32_1 = arith.constant 0 : i32
    return %c0_i32, %c0_i32_0 : i32, i32
  }
  func.func @transform_2(%arg0: i32) -> (i32, i32) {
    %c0_i32 = arith.constant 0 : i32
    %c0_i32_0 = arith.constant 0 : i32
    %c0_i32_1 = arith.constant 0 : i32
    return %c0_i32, %c0_i32_0 : i32, i32
  }
  func.func @transform_3(%arg0: i32) -> (i32, i32) {
    %c0_i32 = arith.constant 0 : i32
    %c0_i32_0 = arith.constant 0 : i32
    return %arg0, %c0_i32 : i32, i32
  }
  func.func @transform_4(%arg0: i32) -> (i32, i32) {
    %c0_i32 = arith.constant 0 : i32
    %c0_i32_0 = arith.constant 0 : i32
    return %arg0, %c0_i32 : i32, i32
  }
}

module attributes {stable_mosaic.version = 11 : i64} {
  func.func @_conv_mm_leaky_kernel(%arg0: i32, %arg1: memref<32x1152xbf16, #tpu.memory_space<vmem>>, %arg2: memref<1152x256xbf16, #tpu.memory_space<vmem>>, %arg3: memref<1x256xf32, #tpu.memory_space<vmem>>, %arg4: memref<32x256xf32, #tpu.memory_space<vmem>>, %arg5: memref<32x256xbf16, #tpu.memory_space<vmem>>) attributes {dimension_semantics = [#tpu.dimension_semantics<parallel>], iteration_bounds = array<i64: 1>, scalar_prefetch = 0 : i64, scratch_operands = 0 : i64, tpu.core_type = #tpu.core_type<tc>, window_params = [{transform_indices = @transform_0, window_bounds = array<i64: 32, 1152>}, {pipeline_mode = #tpu.pipeline_mode<synchronous>, transform_indices = @transform_1, window_bounds = array<i64: 1152, 256>}, {pipeline_mode = #tpu.pipeline_mode<synchronous>, transform_indices = @transform_2, window_bounds = array<i64: 1, 256>}, {transform_indices = @transform_3, window_bounds = array<i64: 32, 256>}, {transform_indices = @transform_4, window_bounds = array<i64: 32, 256>}]} {
    %c0 = arith.constant 0 : index
    %c0_0 = arith.constant 0 : index
    %0 = vector.load %arg1[%c0, %c0_0] : memref<32x1152xbf16, #tpu.memory_space<vmem>>, vector<32x1152xbf16>
    %c0_1 = arith.constant 0 : index
    %c0_2 = arith.constant 0 : index
    %1 = vector.load %arg2[%c0_1, %c0_2] : memref<1152x256xbf16, #tpu.memory_space<vmem>>, vector<1152x256xbf16>
    %cst = arith.constant dense<0.000000e+00> : vector<32x256xf32>
    %2 = tpu.matmul %0, %1, %cst {dimension_numbers = #tpu.dot_dimension_numbers<[1], [0], [0], [1], [0, 0, 1, 1], [], []>} : vector<32x1152xbf16>, vector<1152x256xbf16>, vector<32x256xf32> -> vector<32x256xf32>
    %c0_3 = arith.constant 0 : index
    %c0_4 = arith.constant 0 : index
    %3 = vector.load %arg3[%c0_3, %c0_4] : memref<1x256xf32, #tpu.memory_space<vmem>>, vector<1x256xf32>
    %4 = vector.broadcast %3 : vector<1x256xf32> to vector<32x256xf32>
    %5 = arith.addf %2, %4 : vector<32x256xf32>
    %c0_5 = arith.constant 0 : index
    %c0_6 = arith.constant 0 : index
    %6 = vector.load %arg4[%c0_5, %c0_6] : memref<32x256xf32, #tpu.memory_space<vmem>>, vector<32x256xf32>
    tpu.vector_store %arg4[%c0_5, %c0_6], %5 {strides = array<i32>} : memref<32x256xf32, #tpu.memory_space<vmem>>, vector<32x256xf32>,
    %cst_7 = arith.constant 0.000000e+00 : f32
    %7 = vector.broadcast %cst_7 : f32 to vector<32x256xf32>
    %8 = arith.cmpf oge, %5, %7 : vector<32x256xf32>
    %cst_8 = arith.constant 0.00999999977 : f32
    %9 = vector.broadcast %cst_8 : f32 to vector<32x256xf32>
    %10 = arith.mulf %9, %5 : vector<32x256xf32>
    %11 = arith.select %8, %5, %10 : vector<32x256xi1>, vector<32x256xf32>
    %12 = arith.truncf %11 : vector<32x256xf32> to vector<32x256xbf16>
    %c0_9 = arith.constant 0 : index
    %c0_10 = arith.constant 0 : index
    %13 = vector.load %arg5[%c0_9, %c0_10] : memref<32x256xbf16, #tpu.memory_space<vmem>>, vector<32x256xbf16>
    tpu.vector_store %arg5[%c0_9, %c0_10], %12 {strides = array<i32>} : memref<32x256xbf16, #tpu.memory_space<vmem>>, vector<32x256xbf16>,
    return
  }
  func.func @transform_0(%arg0: i32) -> (i32, i32) {
    %c0_i32 = arith.constant 0 : i32
    %c0_i32_0 = arith.constant 0 : i32
    return %arg0, %c0_i32 : i32, i32
  }
  func.func @transform_1(%arg0: i32) -> (i32, i32) {
    %c0_i32 = arith.constant 0 : i32
    %c0_i32_0 = arith.constant 0 : i32
    %c0_i32_1 = arith.constant 0 : i32
    return %c0_i32, %c0_i32_0 : i32, i32
  }
  func.func @transform_2(%arg0: i32) -> (i32, i32) {
    %c0_i32 = arith.constant 0 : i32
    %c0_i32_0 = arith.constant 0 : i32
    %c0_i32_1 = arith.constant 0 : i32
    return %c0_i32, %c0_i32_0 : i32, i32
  }
  func.func @transform_3(%arg0: i32) -> (i32, i32) {
    %c0_i32 = arith.constant 0 : i32
    %c0_i32_0 = arith.constant 0 : i32
    return %arg0, %c0_i32 : i32, i32
  }
  func.func @transform_4(%arg0: i32) -> (i32, i32) {
    %c0_i32 = arith.constant 0 : i32
    %c0_i32_0 = arith.constant 0 : i32
    return %arg0, %c0_i32 : i32, i32
  }
}

module attributes {stable_mosaic.version = 11 : i64} {
  func.func @_linear_matvec_kernel(%arg0: i32, %arg1: memref<2x4096xbf16, #tpu.memory_space<vmem>>, %arg2: memref<1x4096xf32, #tpu.memory_space<vmem>>, %arg3: memref<1x1xf32, #tpu.memory_space<vmem>>, %arg4: memref<2x1xf32, #tpu.memory_space<vmem>>) attributes {dimension_semantics = [#tpu.dimension_semantics<arbitrary>], iteration_bounds = array<i64: 1>, scalar_prefetch = 0 : i64, scratch_operands = 0 : i64, tpu.core_type = #tpu.core_type<tc>, window_params = [{pipeline_mode = #tpu.pipeline_mode<synchronous>, transform_indices = @transform_0, window_bounds = array<i64: 2, 4096>}, {pipeline_mode = #tpu.pipeline_mode<synchronous>, transform_indices = @transform_1, window_bounds = array<i64: 1, 4096>}, {pipeline_mode = #tpu.pipeline_mode<synchronous>, transform_indices = @transform_2, window_bounds = array<i64: 1, 1>}, {pipeline_mode = #tpu.pipeline_mode<synchronous>, transform_indices = @transform_3, window_bounds = array<i64: 2, 1>}]} {
    %c0 = arith.constant 0 : index
    %c0_0 = arith.constant 0 : index
    %0 = vector.load %arg1[%c0, %c0_0] : memref<2x4096xbf16, #tpu.memory_space<vmem>>, vector<2x4096xbf16>
    %1 = arith.extf %0 : vector<2x4096xbf16> to vector<2x4096xf32>
    %c0_1 = arith.constant 0 : index
    %c0_2 = arith.constant 0 : index
    %2 = vector.load %arg2[%c0_1, %c0_2] : memref<1x4096xf32, #tpu.memory_space<vmem>>, vector<1x4096xf32>
    %3 = vector.broadcast %2 : vector<1x4096xf32> to vector<2x4096xf32>
    %4 = arith.mulf %1, %3 : vector<2x4096xf32>
    %cst = arith.constant dense<0.000000e+00> : vector<2xf32>
    %5 = vector.multi_reduction <add>, %4, %cst [1] : vector<2x4096xf32> to vector<2xf32>
    %6 = vector.shape_cast %5 : vector<2xf32> to vector<2x1xf32>
    %c0_3 = arith.constant 0 : index
    %c0_4 = arith.constant 0 : index
    %7 = vector.load %arg3[%c0_3, %c0_4] : memref<1x1xf32, #tpu.memory_space<vmem>>, vector<1x1xf32>
    %8 = vector.broadcast %7 : vector<1x1xf32> to vector<2x1xf32>
    %9 = arith.addf %6, %8 : vector<2x1xf32>
    %c0_5 = arith.constant 0 : index
    %c0_6 = arith.constant 0 : index
    %10 = vector.load %arg4[%c0_5, %c0_6] : memref<2x1xf32, #tpu.memory_space<vmem>>, vector<2x1xf32>
    tpu.vector_store %arg4[%c0_5, %c0_6], %9 {strides = array<i32>} : memref<2x1xf32, #tpu.memory_space<vmem>>, vector<2x1xf32>,
    return
  }
  func.func @transform_0(%arg0: i32) -> (i32, i32) {
    %c0_i32 = arith.constant 0 : i32
    %c0_i32_0 = arith.constant 0 : i32
    %c0_i32_1 = arith.constant 0 : i32
    return %c0_i32, %c0_i32_0 : i32, i32
  }
  func.func @transform_1(%arg0: i32) -> (i32, i32) {
    %c0_i32 = arith.constant 0 : i32
    %c0_i32_0 = arith.constant 0 : i32
    %c0_i32_1 = arith.constant 0 : i32
    return %c0_i32, %c0_i32_0 : i32, i32
  }
  func.func @transform_2(%arg0: i32) -> (i32, i32) {
    %c0_i32 = arith.constant 0 : i32
    %c0_i32_0 = arith.constant 0 : i32
    %c0_i32_1 = arith.constant 0 : i32
    return %c0_i32, %c0_i32_0 : i32, i32
  }
  func.func @transform_3(%arg0: i32) -> (i32, i32) {
    %c0_i32 = arith.constant 0 : i32
    %c0_i32_0 = arith.constant 0 : i32
    %c0_i32_1 = arith.constant 0 : i32
    return %c0_i32, %c0_i32_0 : i32, i32
  }
}

module attributes {stable_mosaic.version = 11 : i64} {
  func.func @_vid_criterion_kernel(%arg0: i32, %arg1: memref<512x64xf32, #tpu.memory_space<vmem>>, %arg2: memref<512x128xf32, #tpu.memory_space<vmem>>, %arg3: memref<64x128xf32, #tpu.memory_space<vmem>>, %arg4: memref<1x128xf32, #tpu.memory_space<vmem>>, %arg5: memref<1x128xf32, #tpu.memory_space<vmem>>, %arg6: memref<1x1xf32, #tpu.memory_space<vmem>>) attributes {dimension_semantics = [#tpu.dimension_semantics<arbitrary>], iteration_bounds = array<i64: 1>, scalar_prefetch = 0 : i64, scratch_operands = 0 : i64, tpu.core_type = #tpu.core_type<tc>, window_params = [{pipeline_mode = #tpu.pipeline_mode<synchronous>, transform_indices = @transform_0, window_bounds = array<i64: 512, 64>}, {pipeline_mode = #tpu.pipeline_mode<synchronous>, transform_indices = @transform_1, window_bounds = array<i64: 512, 128>}, {pipeline_mode = #tpu.pipeline_mode<synchronous>, transform_indices = @transform_2, window_bounds = array<i64: 64, 128>}, {pipeline_mode = #tpu.pipeline_mode<synchronous>, transform_indices = @transform_3, window_bounds = array<i64: 1, 128>}, {pipeline_mode = #tpu.pipeline_mode<synchronous>, transform_indices = @transform_4, window_bounds = array<i64: 1, 128>}, {pipeline_mode = #tpu.pipeline_mode<synchronous>, transform_indices = @transform_5, window_bounds = array<i64: 1, 1>}]} {
    %c0 = arith.constant 0 : index
    %c0_0 = arith.constant 0 : index
    %0 = vector.load %arg1[%c0, %c0_0] : memref<512x64xf32, #tpu.memory_space<vmem>>, vector<512x64xf32>
    %1 = arith.truncf %0 : vector<512x64xf32> to vector<512x64xbf16>
    %c0_1 = arith.constant 0 : index
    %c0_2 = arith.constant 0 : index
    %2 = vector.load %arg3[%c0_1, %c0_2] : memref<64x128xf32, #tpu.memory_space<vmem>>, vector<64x128xf32>
    %3 = arith.truncf %2 : vector<64x128xf32> to vector<64x128xbf16>
    %cst = arith.constant dense<0.000000e+00> : vector<512x128xf32>
    %4 = tpu.matmul %1, %3, %cst {dimension_numbers = #tpu.dot_dimension_numbers<[1], [0], [0], [1], [0, 0, 1, 1], [], []>} : vector<512x64xbf16>, vector<64x128xbf16>, vector<512x128xf32> -> vector<512x128xf32>
    %c0_3 = arith.constant 0 : index
    %c0_4 = arith.constant 0 : index
    %5 = vector.load %arg4[%c0_3, %c0_4] : memref<1x128xf32, #tpu.memory_space<vmem>>, vector<1x128xf32>
    %6 = vector.broadcast %5 : vector<1x128xf32> to vector<512x128xf32>
    %7 = arith.addf %4, %6 : vector<512x128xf32>
    %c0_5 = arith.constant 0 : index
    %c0_6 = arith.constant 0 : index
    %8 = vector.load %arg5[%c0_5, %c0_6] : memref<1x128xf32, #tpu.memory_space<vmem>>, vector<1x128xf32>
    %cst_7 = arith.constant 0.000000e+00 : f32
    %9 = vector.broadcast %cst_7 : f32 to vector<1x128xf32>
    %10 = arith.maximumf %8, %9 : vector<1x128xf32>
    %11 = math.absf %8 : vector<1x128xf32>
    %cst_8 = arith.constant 0.000000e+00 : f32
    %12 = vector.broadcast %cst_8 : f32 to vector<1x128xf32>
    %13 = arith.subf %12, %11 : vector<1x128xf32>
    %14 = math.exp %13 : vector<1x128xf32>
    %cst_9 = arith.constant 1.000000e+00 : f32
    %15 = vector.broadcast %cst_9 : f32 to vector<1x128xf32>
    %16 = arith.addf %15, %14 : vector<1x128xf32>
    %17 = math.log %16 : vector<1x128xf32>
    %18 = arith.addf %10, %17 : vector<1x128xf32>
    %cst_10 = arith.constant 9.99999974E-6 : f32
    %19 = vector.broadcast %cst_10 : f32 to vector<1x128xf32>
    %20 = arith.addf %18, %19 : vector<1x128xf32>
    %21 = tpu.reciprocal %20 : vector<1x128xf32> -> vector<1x128xf32>
    %22 = math.log %20 : vector<1x128xf32>
    %c0_11 = arith.constant 0 : index
    %c0_12 = arith.constant 0 : index
    %23 = vector.load %arg2[%c0_11, %c0_12] : memref<512x128xf32, #tpu.memory_space<vmem>>, vector<512x128xf32>
    %24 = arith.subf %7, %23 : vector<512x128xf32>
    %25 = arith.mulf %24, %24 : vector<512x128xf32>
    %26 = vector.broadcast %21 : vector<1x128xf32> to vector<512x128xf32>
    %27 = arith.mulf %25, %26 : vector<512x128xf32>
    %28 = vector.broadcast %22 : vector<1x128xf32> to vector<512x128xf32>
    %29 = arith.addf %27, %28 : vector<512x128xf32>
    %cst_13 = arith.constant 5.000000e-01 : f32
    %30 = vector.broadcast %cst_13 : f32 to vector<512x128xf32>
    %31 = arith.mulf %30, %29 : vector<512x128xf32>
    %32 = vector.shape_cast %31 : vector<512x128xf32> to vector<1x512x128xf32>
    %cst_14 = arith.constant dense<0.000000e+00> : vector<1xf32>
    %33 = vector.multi_reduction <add>, %32, %cst_14 [1, 2] : vector<1x512x128xf32> to vector<1xf32>
    %34 = vector.shape_cast %33 : vector<1xf32> to vector<1x1x1xf32>
    %35 = vector.extract %34[0, 0, 0] : f32 from vector<1x1x1xf32>
    %cst_15 = arith.constant 1.52587891E-5 : f32
    %36 = arith.mulf %35, %cst_15 : f32
    %37 = vector.broadcast %36 : f32 to vector<1x1xf32>
    %c0_16 = arith.constant 0 : index
    %c0_17 = arith.constant 0 : index
    %38 = vector.load %arg6[%c0_16, %c0_17] : memref<1x1xf32, #tpu.memory_space<vmem>>, vector<1x1xf32>
    tpu.vector_store %arg6[%c0_16, %c0_17], %37 {strides = array<i32>} : memref<1x1xf32, #tpu.memory_space<vmem>>, vector<1x1xf32>,
    return
  }
  func.func @transform_0(%arg0: i32) -> (i32, i32) {
    %c0_i32 = arith.constant 0 : i32
    %c0_i32_0 = arith.constant 0 : i32
    %c0_i32_1 = arith.constant 0 : i32
    return %c0_i32, %c0_i32_0 : i32, i32
  }
  func.func @transform_1(%arg0: i32) -> (i32, i32) {
    %c0_i32 = arith.constant 0 : i32
    %c0_i32_0 = arith.constant 0 : i32
    %c0_i32_1 = arith.constant 0 : i32
    return %c0_i32, %c0_i32_0 : i32, i32
  }
  func.func @transform_2(%arg0: i32) -> (i32, i32) {
    %c0_i32 = arith.constant 0 : i32
    %c0_i32_0 = arith.constant 0 : i32
    %c0_i32_1 = arith.constant 0 : i32
    return %c0_i32, %c0_i32_0 : i32, i32
  }
  func.func @transform_3(%arg0: i32) -> (i32, i32) {
    %c0_i32 = arith.constant 0 : i32
    %c0_i32_0 = arith.constant 0 : i32
    %c0_i32_1 = arith.constant 0 : i32
    return %c0_i32, %c0_i32_0 : i32, i32
  }
  func.func @transform_4(%arg0: i32) -> (i32, i32) {
    %c0_i32 = arith.constant 0 : i32
    %c0_i32_0 = arith.constant 0 : i32
    %c0_i32_1 = arith.constant 0 : i32
    return %c0_i32, %c0_i32_0 : i32, i32
  }
  func.func @transform_5(%arg0: i32) -> (i32, i32) {
    %c0_i32 = arith.constant 0 : i32
    %c0_i32_0 = arith.constant 0 : i32
    %c0_i32_1 = arith.constant 0 : i32
    return %c0_i32, %c0_i32_0 : i32, i32
  }
}

module attributes {stable_mosaic.version = 11 : i64} {
  func.func @_conv_mm_leaky_kernel(%arg0: i32, %arg1: memref<128x1152xbf16, #tpu.memory_space<vmem>>, %arg2: memref<1152x256xbf16, #tpu.memory_space<vmem>>, %arg3: memref<1x256xf32, #tpu.memory_space<vmem>>, %arg4: memref<128x256xf32, #tpu.memory_space<vmem>>, %arg5: memref<128x256xbf16, #tpu.memory_space<vmem>>) attributes {dimension_semantics = [#tpu.dimension_semantics<parallel>], iteration_bounds = array<i64: 1>, scalar_prefetch = 0 : i64, scratch_operands = 0 : i64, tpu.core_type = #tpu.core_type<tc>, window_params = [{transform_indices = @transform_0, window_bounds = array<i64: 128, 1152>}, {pipeline_mode = #tpu.pipeline_mode<synchronous>, transform_indices = @transform_1, window_bounds = array<i64: 1152, 256>}, {pipeline_mode = #tpu.pipeline_mode<synchronous>, transform_indices = @transform_2, window_bounds = array<i64: 1, 256>}, {transform_indices = @transform_3, window_bounds = array<i64: 128, 256>}, {transform_indices = @transform_4, window_bounds = array<i64: 128, 256>}]} {
    %c0 = arith.constant 0 : index
    %c0_0 = arith.constant 0 : index
    %0 = vector.load %arg1[%c0, %c0_0] : memref<128x1152xbf16, #tpu.memory_space<vmem>>, vector<128x1152xbf16>
    %c0_1 = arith.constant 0 : index
    %c0_2 = arith.constant 0 : index
    %1 = vector.load %arg2[%c0_1, %c0_2] : memref<1152x256xbf16, #tpu.memory_space<vmem>>, vector<1152x256xbf16>
    %cst = arith.constant dense<0.000000e+00> : vector<128x256xf32>
    %2 = tpu.matmul %0, %1, %cst {dimension_numbers = #tpu.dot_dimension_numbers<[1], [0], [0], [1], [0, 0, 1, 1], [], []>} : vector<128x1152xbf16>, vector<1152x256xbf16>, vector<128x256xf32> -> vector<128x256xf32>
    %c0_3 = arith.constant 0 : index
    %c0_4 = arith.constant 0 : index
    %3 = vector.load %arg3[%c0_3, %c0_4] : memref<1x256xf32, #tpu.memory_space<vmem>>, vector<1x256xf32>
    %4 = vector.broadcast %3 : vector<1x256xf32> to vector<128x256xf32>
    %5 = arith.addf %2, %4 : vector<128x256xf32>
    %c0_5 = arith.constant 0 : index
    %c0_6 = arith.constant 0 : index
    %6 = vector.load %arg4[%c0_5, %c0_6] : memref<128x256xf32, #tpu.memory_space<vmem>>, vector<128x256xf32>
    tpu.vector_store %arg4[%c0_5, %c0_6], %5 {strides = array<i32>} : memref<128x256xf32, #tpu.memory_space<vmem>>, vector<128x256xf32>,
    %cst_7 = arith.constant 0.000000e+00 : f32
    %7 = vector.broadcast %cst_7 : f32 to vector<128x256xf32>
    %8 = arith.cmpf oge, %5, %7 : vector<128x256xf32>
    %cst_8 = arith.constant 0.00999999977 : f32
    %9 = vector.broadcast %cst_8 : f32 to vector<128x256xf32>
    %10 = arith.mulf %9, %5 : vector<128x256xf32>
    %11 = arith.select %8, %5, %10 : vector<128x256xi1>, vector<128x256xf32>
    %12 = arith.truncf %11 : vector<128x256xf32> to vector<128x256xbf16>
    %c0_9 = arith.constant 0 : index
    %c0_10 = arith.constant 0 : index
    %13 = vector.load %arg5[%c0_9, %c0_10] : memref<128x256xbf16, #tpu.memory_space<vmem>>, vector<128x256xbf16>
    tpu.vector_store %arg5[%c0_9, %c0_10], %12 {strides = array<i32>} : memref<128x256xbf16, #tpu.memory_space<vmem>>, vector<128x256xbf16>,
    return
  }
  func.func @transform_0(%arg0: i32) -> (i32, i32) {
    %c0_i32 = arith.constant 0 : i32
    %c0_i32_0 = arith.constant 0 : i32
    return %arg0, %c0_i32 : i32, i32
  }
  func.func @transform_1(%arg0: i32) -> (i32, i32) {
    %c0_i32 = arith.constant 0 : i32
    %c0_i32_0 = arith.constant 0 : i32
    %c0_i32_1 = arith.constant 0 : i32
    return %c0_i32, %c0_i32_0 : i32, i32
  }
  func.func @transform_2(%arg0: i32) -> (i32, i32) {
    %c0_i32 = arith.constant 0 : i32
    %c0_i32_0 = arith.constant 0 : i32
    %c0_i32_1 = arith.constant 0 : i32
    return %c0_i32, %c0_i32_0 : i32, i32
  }
  func.func @transform_3(%arg0: i32) -> (i32, i32) {
    %c0_i32 = arith.constant 0 : i32
    %c0_i32_0 = arith.constant 0 : i32
    return %arg0, %c0_i32 : i32, i32
  }
  func.func @transform_4(%arg0: i32) -> (i32, i32) {
    %c0_i32 = arith.constant 0 : i32
    %c0_i32_0 = arith.constant 0 : i32
    return %arg0, %c0_i32 : i32, i32
  }
}

module attributes {stable_mosaic.version = 11 : i64} {
  func.func @_vid_criterion_kernel(%arg0: i32, %arg1: memref<128x128xf32, #tpu.memory_space<vmem>>, %arg2: memref<128x256xf32, #tpu.memory_space<vmem>>, %arg3: memref<128x256xf32, #tpu.memory_space<vmem>>, %arg4: memref<1x256xf32, #tpu.memory_space<vmem>>, %arg5: memref<1x256xf32, #tpu.memory_space<vmem>>, %arg6: memref<1x1xf32, #tpu.memory_space<vmem>>) attributes {dimension_semantics = [#tpu.dimension_semantics<arbitrary>], iteration_bounds = array<i64: 1>, scalar_prefetch = 0 : i64, scratch_operands = 0 : i64, tpu.core_type = #tpu.core_type<tc>, window_params = [{pipeline_mode = #tpu.pipeline_mode<synchronous>, transform_indices = @transform_0, window_bounds = array<i64: 128, 128>}, {pipeline_mode = #tpu.pipeline_mode<synchronous>, transform_indices = @transform_1, window_bounds = array<i64: 128, 256>}, {pipeline_mode = #tpu.pipeline_mode<synchronous>, transform_indices = @transform_2, window_bounds = array<i64: 128, 256>}, {pipeline_mode = #tpu.pipeline_mode<synchronous>, transform_indices = @transform_3, window_bounds = array<i64: 1, 256>}, {pipeline_mode = #tpu.pipeline_mode<synchronous>, transform_indices = @transform_4, window_bounds = array<i64: 1, 256>}, {pipeline_mode = #tpu.pipeline_mode<synchronous>, transform_indices = @transform_5, window_bounds = array<i64: 1, 1>}]} {
    %c0 = arith.constant 0 : index
    %c0_0 = arith.constant 0 : index
    %0 = vector.load %arg1[%c0, %c0_0] : memref<128x128xf32, #tpu.memory_space<vmem>>, vector<128x128xf32>
    %1 = arith.truncf %0 : vector<128x128xf32> to vector<128x128xbf16>
    %c0_1 = arith.constant 0 : index
    %c0_2 = arith.constant 0 : index
    %2 = vector.load %arg3[%c0_1, %c0_2] : memref<128x256xf32, #tpu.memory_space<vmem>>, vector<128x256xf32>
    %3 = arith.truncf %2 : vector<128x256xf32> to vector<128x256xbf16>
    %cst = arith.constant dense<0.000000e+00> : vector<128x256xf32>
    %4 = tpu.matmul %1, %3, %cst {dimension_numbers = #tpu.dot_dimension_numbers<[1], [0], [0], [1], [0, 0, 1, 1], [], []>} : vector<128x128xbf16>, vector<128x256xbf16>, vector<128x256xf32> -> vector<128x256xf32>
    %c0_3 = arith.constant 0 : index
    %c0_4 = arith.constant 0 : index
    %5 = vector.load %arg4[%c0_3, %c0_4] : memref<1x256xf32, #tpu.memory_space<vmem>>, vector<1x256xf32>
    %6 = vector.broadcast %5 : vector<1x256xf32> to vector<128x256xf32>
    %7 = arith.addf %4, %6 : vector<128x256xf32>
    %c0_5 = arith.constant 0 : index
    %c0_6 = arith.constant 0 : index
    %8 = vector.load %arg5[%c0_5, %c0_6] : memref<1x256xf32, #tpu.memory_space<vmem>>, vector<1x256xf32>
    %cst_7 = arith.constant 0.000000e+00 : f32
    %9 = vector.broadcast %cst_7 : f32 to vector<1x256xf32>
    %10 = arith.maximumf %8, %9 : vector<1x256xf32>
    %11 = math.absf %8 : vector<1x256xf32>
    %cst_8 = arith.constant 0.000000e+00 : f32
    %12 = vector.broadcast %cst_8 : f32 to vector<1x256xf32>
    %13 = arith.subf %12, %11 : vector<1x256xf32>
    %14 = math.exp %13 : vector<1x256xf32>
    %cst_9 = arith.constant 1.000000e+00 : f32
    %15 = vector.broadcast %cst_9 : f32 to vector<1x256xf32>
    %16 = arith.addf %15, %14 : vector<1x256xf32>
    %17 = math.log %16 : vector<1x256xf32>
    %18 = arith.addf %10, %17 : vector<1x256xf32>
    %cst_10 = arith.constant 9.99999974E-6 : f32
    %19 = vector.broadcast %cst_10 : f32 to vector<1x256xf32>
    %20 = arith.addf %18, %19 : vector<1x256xf32>
    %21 = tpu.reciprocal %20 : vector<1x256xf32> -> vector<1x256xf32>
    %22 = math.log %20 : vector<1x256xf32>
    %c0_11 = arith.constant 0 : index
    %c0_12 = arith.constant 0 : index
    %23 = vector.load %arg2[%c0_11, %c0_12] : memref<128x256xf32, #tpu.memory_space<vmem>>, vector<128x256xf32>
    %24 = arith.subf %7, %23 : vector<128x256xf32>
    %25 = arith.mulf %24, %24 : vector<128x256xf32>
    %26 = vector.broadcast %21 : vector<1x256xf32> to vector<128x256xf32>
    %27 = arith.mulf %25, %26 : vector<128x256xf32>
    %28 = vector.broadcast %22 : vector<1x256xf32> to vector<128x256xf32>
    %29 = arith.addf %27, %28 : vector<128x256xf32>
    %cst_13 = arith.constant 5.000000e-01 : f32
    %30 = vector.broadcast %cst_13 : f32 to vector<128x256xf32>
    %31 = arith.mulf %30, %29 : vector<128x256xf32>
    %32 = vector.shape_cast %31 : vector<128x256xf32> to vector<1x128x256xf32>
    %cst_14 = arith.constant dense<0.000000e+00> : vector<1xf32>
    %33 = vector.multi_reduction <add>, %32, %cst_14 [1, 2] : vector<1x128x256xf32> to vector<1xf32>
    %34 = vector.shape_cast %33 : vector<1xf32> to vector<1x1x1xf32>
    %35 = vector.extract %34[0, 0, 0] : f32 from vector<1x1x1xf32>
    %cst_15 = arith.constant 3.05175781E-5 : f32
    %36 = arith.mulf %35, %cst_15 : f32
    %37 = vector.broadcast %36 : f32 to vector<1x1xf32>
    %c0_16 = arith.constant 0 : index
    %c0_17 = arith.constant 0 : index
    %38 = vector.load %arg6[%c0_16, %c0_17] : memref<1x1xf32, #tpu.memory_space<vmem>>, vector<1x1xf32>
    tpu.vector_store %arg6[%c0_16, %c0_17], %37 {strides = array<i32>} : memref<1x1xf32, #tpu.memory_space<vmem>>, vector<1x1xf32>,
    return
  }
  func.func @transform_0(%arg0: i32) -> (i32, i32) {
    %c0_i32 = arith.constant 0 : i32
    %c0_i32_0 = arith.constant 0 : i32
    %c0_i32_1 = arith.constant 0 : i32
    return %c0_i32, %c0_i32_0 : i32, i32
  }
  func.func @transform_1(%arg0: i32) -> (i32, i32) {
    %c0_i32 = arith.constant 0 : i32
    %c0_i32_0 = arith.constant 0 : i32
    %c0_i32_1 = arith.constant 0 : i32
    return %c0_i32, %c0_i32_0 : i32, i32
  }
  func.func @transform_2(%arg0: i32) -> (i32, i32) {
    %c0_i32 = arith.constant 0 : i32
    %c0_i32_0 = arith.constant 0 : i32
    %c0_i32_1 = arith.constant 0 : i32
    return %c0_i32, %c0_i32_0 : i32, i32
  }
  func.func @transform_3(%arg0: i32) -> (i32, i32) {
    %c0_i32 = arith.constant 0 : i32
    %c0_i32_0 = arith.constant 0 : i32
    %c0_i32_1 = arith.constant 0 : i32
    return %c0_i32, %c0_i32_0 : i32, i32
  }
  func.func @transform_4(%arg0: i32) -> (i32, i32) {
    %c0_i32 = arith.constant 0 : i32
    %c0_i32_0 = arith.constant 0 : i32
    %c0_i32_1 = arith.constant 0 : i32
    return %c0_i32, %c0_i32_0 : i32, i32
  }
  func.func @transform_5(%arg0: i32) -> (i32, i32) {
    %c0_i32 = arith.constant 0 : i32
    %c0_i32_0 = arith.constant 0 : i32
    %c0_i32_1 = arith.constant 0 : i32
    return %c0_i32, %c0_i32_0 : i32, i32
  }
}

module attributes {stable_mosaic.version = 11 : i64} {
  func.func @_vid_criterion_kernel(%arg0: i32, %arg1: memref<32x256xf32, #tpu.memory_space<vmem>>, %arg2: memref<32x512xf32, #tpu.memory_space<vmem>>, %arg3: memref<256x512xf32, #tpu.memory_space<vmem>>, %arg4: memref<1x512xf32, #tpu.memory_space<vmem>>, %arg5: memref<1x512xf32, #tpu.memory_space<vmem>>, %arg6: memref<1x1xf32, #tpu.memory_space<vmem>>) attributes {dimension_semantics = [#tpu.dimension_semantics<arbitrary>], iteration_bounds = array<i64: 1>, scalar_prefetch = 0 : i64, scratch_operands = 0 : i64, tpu.core_type = #tpu.core_type<tc>, window_params = [{pipeline_mode = #tpu.pipeline_mode<synchronous>, transform_indices = @transform_0, window_bounds = array<i64: 32, 256>}, {pipeline_mode = #tpu.pipeline_mode<synchronous>, transform_indices = @transform_1, window_bounds = array<i64: 32, 512>}, {pipeline_mode = #tpu.pipeline_mode<synchronous>, transform_indices = @transform_2, window_bounds = array<i64: 256, 512>}, {pipeline_mode = #tpu.pipeline_mode<synchronous>, transform_indices = @transform_3, window_bounds = array<i64: 1, 512>}, {pipeline_mode = #tpu.pipeline_mode<synchronous>, transform_indices = @transform_4, window_bounds = array<i64: 1, 512>}, {pipeline_mode = #tpu.pipeline_mode<synchronous>, transform_indices = @transform_5, window_bounds = array<i64: 1, 1>}]} {
    %c0 = arith.constant 0 : index
    %c0_0 = arith.constant 0 : index
    %0 = vector.load %arg1[%c0, %c0_0] : memref<32x256xf32, #tpu.memory_space<vmem>>, vector<32x256xf32>
    %1 = arith.truncf %0 : vector<32x256xf32> to vector<32x256xbf16>
    %c0_1 = arith.constant 0 : index
    %c0_2 = arith.constant 0 : index
    %2 = vector.load %arg3[%c0_1, %c0_2] : memref<256x512xf32, #tpu.memory_space<vmem>>, vector<256x512xf32>
    %3 = arith.truncf %2 : vector<256x512xf32> to vector<256x512xbf16>
    %cst = arith.constant dense<0.000000e+00> : vector<32x512xf32>
    %4 = tpu.matmul %1, %3, %cst {dimension_numbers = #tpu.dot_dimension_numbers<[1], [0], [0], [1], [0, 0, 1, 1], [], []>} : vector<32x256xbf16>, vector<256x512xbf16>, vector<32x512xf32> -> vector<32x512xf32>
    %c0_3 = arith.constant 0 : index
    %c0_4 = arith.constant 0 : index
    %5 = vector.load %arg4[%c0_3, %c0_4] : memref<1x512xf32, #tpu.memory_space<vmem>>, vector<1x512xf32>
    %6 = vector.broadcast %5 : vector<1x512xf32> to vector<32x512xf32>
    %7 = arith.addf %4, %6 : vector<32x512xf32>
    %c0_5 = arith.constant 0 : index
    %c0_6 = arith.constant 0 : index
    %8 = vector.load %arg5[%c0_5, %c0_6] : memref<1x512xf32, #tpu.memory_space<vmem>>, vector<1x512xf32>
    %cst_7 = arith.constant 0.000000e+00 : f32
    %9 = vector.broadcast %cst_7 : f32 to vector<1x512xf32>
    %10 = arith.maximumf %8, %9 : vector<1x512xf32>
    %11 = math.absf %8 : vector<1x512xf32>
    %cst_8 = arith.constant 0.000000e+00 : f32
    %12 = vector.broadcast %cst_8 : f32 to vector<1x512xf32>
    %13 = arith.subf %12, %11 : vector<1x512xf32>
    %14 = math.exp %13 : vector<1x512xf32>
    %cst_9 = arith.constant 1.000000e+00 : f32
    %15 = vector.broadcast %cst_9 : f32 to vector<1x512xf32>
    %16 = arith.addf %15, %14 : vector<1x512xf32>
    %17 = math.log %16 : vector<1x512xf32>
    %18 = arith.addf %10, %17 : vector<1x512xf32>
    %cst_10 = arith.constant 9.99999974E-6 : f32
    %19 = vector.broadcast %cst_10 : f32 to vector<1x512xf32>
    %20 = arith.addf %18, %19 : vector<1x512xf32>
    %21 = tpu.reciprocal %20 : vector<1x512xf32> -> vector<1x512xf32>
    %22 = math.log %20 : vector<1x512xf32>
    %c0_11 = arith.constant 0 : index
    %c0_12 = arith.constant 0 : index
    %23 = vector.load %arg2[%c0_11, %c0_12] : memref<32x512xf32, #tpu.memory_space<vmem>>, vector<32x512xf32>
    %24 = arith.subf %7, %23 : vector<32x512xf32>
    %25 = arith.mulf %24, %24 : vector<32x512xf32>
    %26 = vector.broadcast %21 : vector<1x512xf32> to vector<32x512xf32>
    %27 = arith.mulf %25, %26 : vector<32x512xf32>
    %28 = vector.broadcast %22 : vector<1x512xf32> to vector<32x512xf32>
    %29 = arith.addf %27, %28 : vector<32x512xf32>
    %cst_13 = arith.constant 5.000000e-01 : f32
    %30 = vector.broadcast %cst_13 : f32 to vector<32x512xf32>
    %31 = arith.mulf %30, %29 : vector<32x512xf32>
    %32 = vector.shape_cast %31 : vector<32x512xf32> to vector<1x32x512xf32>
    %cst_14 = arith.constant dense<0.000000e+00> : vector<1xf32>
    %33 = vector.multi_reduction <add>, %32, %cst_14 [1, 2] : vector<1x32x512xf32> to vector<1xf32>
    %34 = vector.shape_cast %33 : vector<1xf32> to vector<1x1x1xf32>
    %35 = vector.extract %34[0, 0, 0] : f32 from vector<1x1x1xf32>
    %cst_15 = arith.constant 6.10351563E-5 : f32
    %36 = arith.mulf %35, %cst_15 : f32
    %37 = vector.broadcast %36 : f32 to vector<1x1xf32>
    %c0_16 = arith.constant 0 : index
    %c0_17 = arith.constant 0 : index
    %38 = vector.load %arg6[%c0_16, %c0_17] : memref<1x1xf32, #tpu.memory_space<vmem>>, vector<1x1xf32>
    tpu.vector_store %arg6[%c0_16, %c0_17], %37 {strides = array<i32>} : memref<1x1xf32, #tpu.memory_space<vmem>>, vector<1x1xf32>,
    return
  }
  func.func @transform_0(%arg0: i32) -> (i32, i32) {
    %c0_i32 = arith.constant 0 : i32
    %c0_i32_0 = arith.constant 0 : i32
    %c0_i32_1 = arith.constant 0 : i32
    return %c0_i32, %c0_i32_0 : i32, i32
  }
  func.func @transform_1(%arg0: i32) -> (i32, i32) {
    %c0_i32 = arith.constant 0 : i32
    %c0_i32_0 = arith.constant 0 : i32
    %c0_i32_1 = arith.constant 0 : i32
    return %c0_i32, %c0_i32_0 : i32, i32
  }
  func.func @transform_2(%arg0: i32) -> (i32, i32) {
    %c0_i32 = arith.constant 0 : i32
    %c0_i32_0 = arith.constant 0 : i32
    %c0_i32_1 = arith.constant 0 : i32
    return %c0_i32, %c0_i32_0 : i32, i32
  }
  func.func @transform_3(%arg0: i32) -> (i32, i32) {
    %c0_i32 = arith.constant 0 : i32
    %c0_i32_0 = arith.constant 0 : i32
    %c0_i32_1 = arith.constant 0 : i32
    return %c0_i32, %c0_i32_0 : i32, i32
  }
  func.func @transform_4(%arg0: i32) -> (i32, i32) {
    %c0_i32 = arith.constant 0 : i32
    %c0_i32_0 = arith.constant 0 : i32
    %c0_i32_1 = arith.constant 0 : i32
    return %c0_i32, %c0_i32_0 : i32, i32
  }
  func.func @transform_5(%arg0: i32) -> (i32, i32) {
    %c0_i32 = arith.constant 0 : i32
    %c0_i32_0 = arith.constant 0 : i32
    %c0_i32_1 = arith.constant 0 : i32
    return %c0_i32, %c0_i32_0 : i32, i32
  }
}

module attributes {stable_mosaic.version = 11 : i64} {
  func.func @_conv_mm_leaky_kernel(%arg0: i32, %arg1: memref<32x2304xbf16, #tpu.memory_space<vmem>>, %arg2: memref<2304x512xbf16, #tpu.memory_space<vmem>>, %arg3: memref<1x512xf32, #tpu.memory_space<vmem>>, %arg4: memref<32x512xf32, #tpu.memory_space<vmem>>, %arg5: memref<32x512xbf16, #tpu.memory_space<vmem>>) attributes {dimension_semantics = [#tpu.dimension_semantics<parallel>], iteration_bounds = array<i64: 1>, scalar_prefetch = 0 : i64, scratch_operands = 0 : i64, tpu.core_type = #tpu.core_type<tc>, window_params = [{transform_indices = @transform_0, window_bounds = array<i64: 32, 2304>}, {pipeline_mode = #tpu.pipeline_mode<synchronous>, transform_indices = @transform_1, window_bounds = array<i64: 2304, 512>}, {pipeline_mode = #tpu.pipeline_mode<synchronous>, transform_indices = @transform_2, window_bounds = array<i64: 1, 512>}, {transform_indices = @transform_3, window_bounds = array<i64: 32, 512>}, {transform_indices = @transform_4, window_bounds = array<i64: 32, 512>}]} {
    %c0 = arith.constant 0 : index
    %c0_0 = arith.constant 0 : index
    %0 = vector.load %arg1[%c0, %c0_0] : memref<32x2304xbf16, #tpu.memory_space<vmem>>, vector<32x2304xbf16>
    %c0_1 = arith.constant 0 : index
    %c0_2 = arith.constant 0 : index
    %1 = vector.load %arg2[%c0_1, %c0_2] : memref<2304x512xbf16, #tpu.memory_space<vmem>>, vector<2304x512xbf16>
    %cst = arith.constant dense<0.000000e+00> : vector<32x512xf32>
    %2 = tpu.matmul %0, %1, %cst {dimension_numbers = #tpu.dot_dimension_numbers<[1], [0], [0], [1], [0, 0, 1, 1], [], []>} : vector<32x2304xbf16>, vector<2304x512xbf16>, vector<32x512xf32> -> vector<32x512xf32>
    %c0_3 = arith.constant 0 : index
    %c0_4 = arith.constant 0 : index
    %3 = vector.load %arg3[%c0_3, %c0_4] : memref<1x512xf32, #tpu.memory_space<vmem>>, vector<1x512xf32>
    %4 = vector.broadcast %3 : vector<1x512xf32> to vector<32x512xf32>
    %5 = arith.addf %2, %4 : vector<32x512xf32>
    %c0_5 = arith.constant 0 : index
    %c0_6 = arith.constant 0 : index
    %6 = vector.load %arg4[%c0_5, %c0_6] : memref<32x512xf32, #tpu.memory_space<vmem>>, vector<32x512xf32>
    tpu.vector_store %arg4[%c0_5, %c0_6], %5 {strides = array<i32>} : memref<32x512xf32, #tpu.memory_space<vmem>>, vector<32x512xf32>,
    %cst_7 = arith.constant 0.000000e+00 : f32
    %7 = vector.broadcast %cst_7 : f32 to vector<32x512xf32>
    %8 = arith.cmpf oge, %5, %7 : vector<32x512xf32>
    %cst_8 = arith.constant 0.00999999977 : f32
    %9 = vector.broadcast %cst_8 : f32 to vector<32x512xf32>
    %10 = arith.mulf %9, %5 : vector<32x512xf32>
    %11 = arith.select %8, %5, %10 : vector<32x512xi1>, vector<32x512xf32>
    %12 = arith.truncf %11 : vector<32x512xf32> to vector<32x512xbf16>
    %c0_9 = arith.constant 0 : index
    %c0_10 = arith.constant 0 : index
    %13 = vector.load %arg5[%c0_9, %c0_10] : memref<32x512xbf16, #tpu.memory_space<vmem>>, vector<32x512xbf16>
    tpu.vector_store %arg5[%c0_9, %c0_10], %12 {strides = array<i32>} : memref<32x512xbf16, #tpu.memory_space<vmem>>, vector<32x512xbf16>,
    return
  }
  func.func @transform_0(%arg0: i32) -> (i32, i32) {
    %c0_i32 = arith.constant 0 : i32
    %c0_i32_0 = arith.constant 0 : i32
    return %arg0, %c0_i32 : i32, i32
  }
  func.func @transform_1(%arg0: i32) -> (i32, i32) {
    %c0_i32 = arith.constant 0 : i32
    %c0_i32_0 = arith.constant 0 : i32
    %c0_i32_1 = arith.constant 0 : i32
    return %c0_i32, %c0_i32_0 : i32, i32
  }
  func.func @transform_2(%arg0: i32) -> (i32, i32) {
    %c0_i32 = arith.constant 0 : i32
    %c0_i32_0 = arith.constant 0 : i32
    %c0_i32_1 = arith.constant 0 : i32
    return %c0_i32, %c0_i32_0 : i32, i32
  }
  func.func @transform_3(%arg0: i32) -> (i32, i32) {
    %c0_i32 = arith.constant 0 : i32
    %c0_i32_0 = arith.constant 0 : i32
    return %arg0, %c0_i32 : i32, i32
  }
  func.func @transform_4(%arg0: i32) -> (i32, i32) {
    %c0_i32 = arith.constant 0 : i32
    %c0_i32_0 = arith.constant 0 : i32
    return %arg0, %c0_i32 : i32, i32
  }
}

</mosaic_0001>

<bundles_post_ra>
// kernel: vid_forward.9
= control target key start
LH: loop header
LB: loop body
LE: loop exit
PB: predicated region body
PF: predicated region fallthrough
CT: control target
= control target key end

     0   :  { %s1384_s15 = smov 0   ;;  %s1740_s0 = inlined_call_operand.vmem [shape: bf16[512,27], index: 0, kind: input, shape index: {}]   ;;  %s1741_s1 = inlined_call_operand.vmem [shape: bf16[27,192], index: 1, kind: input, shape index: {}]   ;;  %s1742_s2 = inlined_call_operand.vmem [shape: f32[1,192], index: 2, kind: input, shape index: {}]   ;;  %s1743_s3 = inlined_call_operand.vmem [shape: f32[512,192], index: 3, kind: output, shape index: {0}]   ;;  %s1744_s4 = inlined_call_operand.vmem [shape: bf16[512,192], index: 4, kind: output, shape index: {1}]  }
   0x1 LB: > { %s1196_s16 = sadd.s32 4294967295, %s1355_s15   ;;  %p1200_p0 = scmp.ge.s32.totalorder %s1355_s15, 1  ;;  %s1355_s15 = sphi %s1384_s15, %s15_s15  }
   0x2   : > { %p166_p1 = scmp.lt.s32.totalorder %s1355_s15, 3 }
   0x4   : > { %p167_p2 = pnand %p1200_p0, %p166_p1 }
   0x5   : > { %s1201_s21 = sshll.u32 (!%p167_p2), %s1196_s16, 5 }
   0x6   : > { %170 = sbr.rel (%p167_p2) target bundleno = 295 (0x127), region = 32  ;;  %p200_p3 = scmp.lt.s32.totalorder (!%p167_p2), %s1201_s21, 63 }
   0xb   : > { %v1327_v0 = vld [vmem:[%s1741_s1 + $0x14] ss:$8 sps:$4 sm:$0x3f]   ;;  %vm415_vm0 = vcmask 1044480   ;;  %vm416_vm1 = vcmask 1045504   ;;  %v1357_v2 = vmov 65535   ;;  %v258_v26 = vlaneseq }
   0xc   : > { %v1329_v1 = vld [vmem:[%s1741_s1 + $0x10] ss:$8 sps:$4 sm:$0x3f]   ;;  %v417_v3 = vsel %vm415_vm0, 4294967295, %v1357_v2  ;;  %v1358_v5 = vmov 0   ;;  %s1748_s21 = smov (!%p200_p3, %s1201_s21), 63 }
   0xd   : > { %v418_v4 = vsel %vm416_vm1, %v417_v3, 0  ;;  %457 = vmatprep.mubr.bf16.mxu0 %v1358_v5  ;;  %537 = vmatprep.mubr.bf16.mxu1 %v1358_v5  ;;  %v1330_v8 = vld [vmem:[%s1741_s1 + $0x4] ss:$8 sps:$4 sm:$0xff]   ;;  %v1332_v9 = vld [vmem:[%s1741_s1] ss:$8 sps:$4 sm:$0xff]   ;;  %s1202_s26 = sshll.u32 %s1748_s21, 2 }
   0xe   : > { %v423_v6 = vand.u32 %v1327_v0, %v418_v4  ;;  %v420_v7 = vand.u32 %v1329_v1, %v418_v4  ;;  %s1410_s29 = scalar_lea.vmem %s1740_s0, %s1202_s26  ;;  %vm366_vm2 = vcmask 220160   ;;  %v259_v27 = vshrl.u32 %v258_v26, 7  ;;  %v256_v29 = vld [vmem:[%s1742_s2] sm:$0x3]  ;;  %s1279_s6 = sshll.u32 %s1748_s21, 4 }
   0xf   : > { %v1333_v10 = vld [vmem:[%s1410_s29] sm:$0xff]   ;;  %v1335_v12 = vld [vmem:[%s1410_s29 + $0x8] sm:$0xff]   ;;  %v1337_v14 = vld [vmem:[%s1410_s29 + $0x10] sm:$0xff]   ;;  %s1453_s9 = scalar_lea.vmem %s1743_s3, %s1279_s6  ;;  %vm619_vm3 = vcmask 523264   ;;  %s1280_s10 = sshll.u32 %s1748_s21, 3  ;;  %vm1067_vm6 = vcmask 1043456  }
  0x10   : > { %437 = vmatprep.subr.bf16.mxu0 %v423_v6  ;;  %1313 = vmatprep.subr.bf16.mxu1 %v423_v6  ;;  %v1334_v11 = vld [vmem:[%s1410_s29 + $0x40] sm:$0xff]   ;;  %v1336_v13 = vld [vmem:[%s1410_s29 + $0x48] sm:$0xff]   ;;  %v1338_v15 = vld [vmem:[%s1410_s29 + $0x50] sm:$0xff]   ;;  %v260_v28 = vsub.s32 0, %v259_v27  ;;  %v264_v30 = vsub.s32 1, %v259_v27  ;;  %vm1068_vm7 = vcmask 523268   ;;  %s1477_s13 = scalar_lea.vmem %s1744_s4, %s1280_s10 }
  0x11   : > { %438 = vmatpush1.bf16.msra.mxu0 %v420_v7  ;;  %1315 = vmatpush1.bf16.msra.mxu1 %v420_v7  ;;  %v1339_v16 = vld [vmem:[%s1410_s29 + $0x18] sm:$0xff]   ;;  %v1341_v18 = vld [vmem:[%s1410_s29 + $0x20] sm:$0xff]   ;;  %v1343_v20 = vld [vmem:[%s1410_s29 + $0x28] sm:$0xff]  }
  0x12   : > { %439 = vmatprep.subr.bf16.mxu0 %v1330_v8  ;;  %1314 = vmatprep.subr.bf16.mxu1 %v1330_v8  ;;  %v1340_v17 = vld [vmem:[%s1410_s29 + $0x58] sm:$0xff]   ;;  %v1342_v19 = vld [vmem:[%s1410_s29 + $0x60] sm:$0xff]   ;;  %v1344_v21 = vld [vmem:[%s1410_s29 + $0x68] sm:$0xff]   ;;  %v1448_v31 = vrot.slane %v256_v29, %v260_v28  ;;  %v1455_v34 = vrot.slane %v256_v29, %v264_v30 }
  0x13   : > { %v1345_v22 = vld [vmem:[%s1410_s29 + $0x30] sm:$0xff]   ;;  %v1347_v24 = vld [vmem:[%s1410_s29 + $0x38] sm:$0xff]   ;;  %vm1481_vm10 = vmor %vm1068_vm7, %vm1067_vm6 }
  0x14   : > { %v1346_v23 = vld [vmem:[%s1410_s29 + $0x70] sm:$0xff]   ;;  %v1348_v25 = vld [vmem:[%s1410_s29 + $0x78] sm:$0xff]  }
  0x15   : > { %440 = vmatpush1.bf16.msra.mxu0 %v1332_v9  ;;  %1316 = vmatpush1.bf16.msra.mxu1 %v1332_v9 }
  0x18   : > { %1229 = vmatmul.mubr.msk.bf16.vlgmr.msra.gmra.mxu0 %vm366_vm2, %v1333_v10  ;;  %1237 = vmatmul.mubr.msk.bf16.vlgmr.msra.gmra.mxu1 %vm366_vm2, %v1334_v11 }
  0x19   : > { %467 = vmatprep.mubr.bf16.mxu0 %v1358_v5  ;;  %547 = vmatprep.mubr.bf16.mxu1 %v1358_v5 }
  0x20   : > { %1230 = vmatmul.mubr.msk.bf16.gmra.mxu0 %vm366_vm2, %v1335_v12  ;;  %1238 = vmatmul.mubr.msk.bf16.gmra.mxu1 %vm366_vm2, %v1336_v13 }
  0x21   : > { %477 = vmatprep.mubr.bf16.mxu0 %v1358_v5  ;;  %557 = vmatprep.mubr.bf16.mxu1 %v1358_v5 }
  0x28   : > { %1231 = vmatmul.mubr.msk.bf16.gmra.mxu0 %vm366_vm2, %v1337_v14  ;;  %1239 = vmatmul.mubr.msk.bf16.gmra.mxu1 %vm366_vm2, %v1338_v15 }
  0x29   : > { %487 = vmatprep.mubr.bf16.mxu0 %v1358_v5  ;;  %567 = vmatprep.mubr.bf16.mxu1 %v1358_v5 }
  0x30   : > { %1232 = vmatmul.mubr.msk.bf16.gmra.mxu0 %vm366_vm2, %v1339_v16  ;;  %1240 = vmatmul.mubr.msk.bf16.gmra.mxu1 %vm366_vm2, %v1340_v17 }
  0x31   : > { %497 = vmatprep.mubr.bf16.mxu0 %v1358_v5  ;;  %577 = vmatprep.mubr.bf16.mxu1 %v1358_v5 }
  0x38   : > { %1233 = vmatmul.mubr.msk.bf16.gmra.mxu0 %vm366_vm2, %v1341_v18  ;;  %1241 = vmatmul.mubr.msk.bf16.gmra.mxu1 %vm366_vm2, %v1342_v19 }
  0x39   : > { %507 = vmatprep.mubr.bf16.mxu0 %v1358_v5  ;;  %587 = vmatprep.mubr.bf16.mxu1 %v1358_v5 }
  0x40   : > { %1234 = vmatmul.mubr.msk.bf16.gmra.mxu0 %vm366_vm2, %v1343_v20  ;;  %1242 = vmatmul.mubr.msk.bf16.gmra.mxu1 %vm366_vm2, %v1344_v21 }
  0x41   : > { %517 = vmatprep.mubr.bf16.mxu0 %v1358_v5  ;;  %597 = vmatprep.mubr.bf16.mxu1 %v1358_v5 }
  0x48   : > { %1235 = vmatmul.mubr.msk.bf16.gmra.mxu0 %vm366_vm2, %v1345_v22  ;;  %1243 = vmatmul.mubr.msk.bf16.gmra.mxu1 %vm366_vm2, %v1346_v23 }
  0x49   : > { %527 = vmatprep.mubr.bf16.mxu0 %v1358_v5  ;;  %607 = vmatprep.mubr.bf16.mxu1 %v1358_v5 }
  0x50   : > { %1236 = vmatmul.mubr.msk.bf16.gmra.mxu0 %vm366_vm2, %v1347_v24  ;;  %1244 = vmatmul.mubr.msk.bf16.gmra.mxu1 %vm366_vm2, %v1348_v25 }
  0xd8   : > { %v459_v32 = vpop.f32.mrf.mxu0  ;;  %v539_v33 = vpop.f32.mrf.mxu1 }
  0xd9   : > { %v460_v35 = vadd.f32 %v459_v32, %v1448_v31  ;;  %v540_v36 = vadd.f32 %v539_v33, %v1448_v31 }
  0xda   : > { %v461_v37 = vpop.f32.mrf.mxu0  ;;  %v541_v38 = vpop.f32.mrf.mxu1 }
  0xdb   : > { %618 = vst [vmem:[%s1453_s9] sm:$0xff] %v460_v35  ;;  %v747_v39 = vmul.f32 0.01, %v460_v35  ;;  %651 = vst [vmem:[%s1453_s9 + $0x100] sm:$0xff] %v540_v36  ;;  %v779_v40 = vmul.f32 0.01, %v540_v36  ;;  %vm683_vm4 = vcmp.ge.f32.partialorder %v460_v35, 0.0  ;;  %v462_v41 = vadd.f32 %v461_v37, %v1455_v34 }
  0xdc   : > { %vm715_vm5 = vcmp.ge.f32.partialorder %v540_v36, 0.0  ;;  %v542_v42 = vadd.f32 %v541_v38, %v1455_v34  ;;  %v463_v43 = vpop.f32.mrf.mxu0  ;;  %v543_v44 = vpop.f32.mrf.mxu1 }
  0xdd   : > { %v464_v45 = vadd.f32 %v463_v43, %v1448_v31  ;;  %v544_v46 = vadd.f32 %v543_v44, %v1448_v31  ;;  %620 = vst.msk [vmem:[%s1453_s9 + $0x8] sm:$0xff] %vm619_vm3, %v462_v41  ;;  %vm684_vm8 = vcmp.ge.f32.partialorder %v462_v41, 0.0  ;;  %v748_v47 = vmul.f32 0.01, %v462_v41 }
  0xde   : > { %652 = vst.msk [vmem:[%s1453_s9 + $0x108] sm:$0xff] %vm619_vm3, %v542_v42  ;;  %vm716_vm9 = vcmp.ge.f32.partialorder %v542_v42, 0.0  ;;  %v780_v48 = vmul.f32 0.01, %v542_v42  ;;  %v465_v49 = vpop.f32.mrf.mxu0  ;;  %v545_v50 = vpop.f32.mrf.mxu1  ;;  %v811_v51 = vsel %vm683_vm4, %v460_v35, %v747_v39  ;;  %v843_v52 = vsel %vm715_vm5, %v540_v36, %v779_v40 }
  0xdf   : > { %621 = vst [vmem:[%s1453_s9 + $0x10] sm:$0xff] %v464_v45  ;;  %v749_v53 = vmul.f32 0.01, %v464_v45  ;;  %653 = vst [vmem:[%s1453_s9 + $0x110] sm:$0xff] %v544_v46  ;;  %v781_v54 = vmul.f32 0.01, %v544_v46  ;;  %v812_v55 = vsel %vm684_vm8, %v462_v41, %v748_v47  ;;  %v466_v58 = vadd.f32 %v465_v49, %v1455_v34 }
  0xe0   : > { %v844_v57 = vsel %vm716_vm9, %v542_v42, %v780_v48  ;;  %v546_v59 = vadd.f32 %v545_v50, %v1455_v34  ;;  %v469_v60 = vpop.f32.mrf.mxu0  ;;  %v549_v61 = vpop.f32.mrf.mxu1  ;;  %v1281_v62 = vpack.c.bf16 %v812_v55, %v811_v51  ;;  %vm685_vm11 = vcmp.ge.f32.partialorder %v464_v45, 0.0 }
  0xe1   : > { %v1297_v63 = vpack.c.bf16 %v844_v57, %v843_v52  ;;  %vm717_vm12 = vcmp.ge.f32.partialorder %v544_v46, 0.0  ;;  %622 = vst.msk [vmem:[%s1453_s9 + $0x18] sm:$0xff] %vm619_vm3, %v466_v58  ;;  %vm686_vm13 = vcmp.ge.f32.partialorder %v466_v58, 0.0  ;;  %v750_v0 = vmul.f32 0.01, %v466_v58 }
  0xe2   : > { %654 = vst.msk [vmem:[%s1453_s9 + $0x118] sm:$0xff] %vm619_vm3, %v546_v59  ;;  %vm718_vm14 = vcmp.ge.f32.partialorder %v546_v59, 0.0  ;;  %v782_v1 = vmul.f32 0.01, %v546_v59  ;;  %v471_v2 = vpop.f32.mrf.mxu0  ;;  %v551_v3 = vpop.f32.mrf.mxu1  ;;  %v470_v4 = vadd.f32 %v469_v60, %v1448_v31  ;;  %v550_v5 = vadd.f32 %v549_v61, %v1448_v31 }
  0xe3   : > { %1070 = vst.msk [vmem:[%s1477_s13] sm:$0xff] %vm1481_vm10, %v1281_v62  ;;  %1086 = vst.msk [vmem:[%s1477_s13 + $0x80] sm:$0xff] %vm1481_vm10, %v1297_v63  ;;  %v472_v6 = vadd.f32 %v471_v2, %v1455_v34  ;;  %v552_v7 = vadd.f32 %v551_v3, %v1455_v34  ;;  %v813_v8 = vsel %vm685_vm11, %v464_v45, %v749_v53 }
  0xe4   : > { %v845_v9 = vsel %vm717_vm12, %v544_v46, %v781_v54  ;;  %v814_v10 = vsel %vm686_vm13, %v466_v58, %v750_v0  ;;  %v846_v11 = vsel %vm718_vm14, %v546_v59, %v782_v1  ;;  %v473_v12 = vpop.f32.mrf.mxu0  ;;  %v553_v13 = vpop.f32.mrf.mxu1  ;;  %623 = vst [vmem:[%s1453_s9 + $0x20] sm:$0xff] %v470_v4  ;;  %vm687_vm15 = vcmp.ge.f32.partialorder %v470_v4, 0.0  ;;  %655 = vst [vmem:[%s1453_s9 + $0x120] sm:$0xff] %v550_v5 }
  0xe5   : > { %v1282_v14 = vpack.c.bf16 %v814_v10, %v813_v8  ;;  %v1298_v15 = vpack.c.bf16 %v846_v11, %v845_v9  ;;  %v751_v16 = vmul.f32 0.01, %v470_v4  ;;  %624 = vst.msk [vmem:[%s1453_s9 + $0x28] sm:$0xff] %vm619_vm3, %v472_v6  ;;  %656 = vst.msk [vmem:[%s1453_s9 + $0x128] sm:$0xff] %vm619_vm3, %v552_v7  ;;  %vm719_vm0 = vcmp.ge.f32.partialorder %v550_v5, 0.0 }
  0xe6   : > { %v783_v17 = vmul.f32 0.01, %v550_v5  ;;  %vm688_vm1 = vcmp.ge.f32.partialorder %v472_v6, 0.0  ;;  %v752_v18 = vmul.f32 0.01, %v472_v6  ;;  %v475_v19 = vpop.f32.mrf.mxu0  ;;  %v555_v20 = vpop.f32.mrf.mxu1  ;;  %vm720_vm2 = vcmp.ge.f32.partialorder %v552_v7, 0.0 }
  0xe7   : > { %1071 = vst.msk [vmem:[%s1477_s13 + $0x8] sm:$0xff] %vm1481_vm10, %v1282_v14  ;;  %1087 = vst.msk [vmem:[%s1477_s13 + $0x88] sm:$0xff] %vm1481_vm10, %v1298_v15  ;;  %v815_v21 = vsel %vm687_vm15, %v470_v4, %v751_v16  ;;  %v784_v22 = vmul.f32 0.01, %v552_v7  ;;  %v474_v23 = vadd.f32 %v473_v12, %v1448_v31  ;;  %v554_v26 = vadd.f32 %v553_v13, %v1448_v31 }
  0xe8   : > { %v847_v24 = vsel %vm719_vm0, %v550_v5, %v783_v17  ;;  %v816_v25 = vsel %vm688_vm1, %v472_v6, %v752_v18  ;;  %v476_v27 = vadd.f32 %v475_v19, %v1455_v34  ;;  %v479_v28 = vpop.f32.mrf.mxu0  ;;  %v559_v29 = vpop.f32.mrf.mxu1  ;;  %v556_v41 = vadd.f32 %v555_v20, %v1455_v34 }
  0xe9   : > { %v1283_v30 = vpack.c.bf16 %v816_v25, %v815_v21  ;;  %v848_v32 = vsel %vm720_vm2, %v552_v7, %v784_v22  ;;  %625 = vst [vmem:[%s1453_s9 + $0x30] sm:$0xff] %v474_v23  ;;  %vm689_vm4 = vcmp.ge.f32.partialorder %v474_v23, 0.0  ;;  %v753_v33 = vmul.f32 0.01, %v474_v23  ;;  %657 = vst [vmem:[%s1453_s9 + $0x130] sm:$0xff] %v554_v26 }
  0xea   : > { %v1299_v35 = vpack.c.bf16 %v848_v32, %v847_v24  ;;  %vm721_vm5 = vcmp.ge.f32.partialorder %v554_v26, 0.0  ;;  %v785_v36 = vmul.f32 0.01, %v554_v26  ;;  %626 = vst.msk [vmem:[%s1453_s9 + $0x38] sm:$0xff] %vm619_vm3, %v476_v27  ;;  %vm690_vm6 = vcmp.ge.f32.partialorder %v476_v27, 0.0  ;;  %v481_v37 = vpop.f32.mrf.mxu0  ;;  %v561_v38 = vpop.f32.mrf.mxu1  ;;  %658 = vst.msk [vmem:[%s1453_s9 + $0x138] sm:$0xff] %vm619_vm3, %v556_v41 }
  0xeb   : > { %1072 = vst.msk [vmem:[%s1477_s13 + $0x10] sm:$0xff] %vm1481_vm10, %v1283_v30  ;;  %v817_v39 = vsel %vm689_vm4, %v474_v23, %v753_v33  ;;  %v754_v40 = vmul.f32 0.01, %v476_v27  ;;  %v480_v42 = vadd.f32 %v479_v28, %v1448_v31  ;;  %v560_v44 = vadd.f32 %v559_v29, %v1448_v31 }
  0xec   : > { %1088 = vst.msk [vmem:[%s1477_s13 + $0x90] sm:$0xff] %vm1481_vm10, %v1299_v35  ;;  %v849_v43 = vsel %vm721_vm5, %v554_v26, %v785_v36  ;;  %v482_v45 = vadd.f32 %v481_v37, %v1455_v34  ;;  %v562_v46 = vadd.f32 %v561_v38, %v1455_v34  ;;  %v483_v47 = vpop.f32.mrf.mxu0  ;;  %v563_v48 = vpop.f32.mrf.mxu1  ;;  %vm722_vm7 = vcmp.ge.f32.partialorder %v556_v41, 0.0 }
  0xed   : > { %v818_v49 = vsel %vm690_vm6, %v476_v27, %v754_v40  ;;  %v786_v50 = vmul.f32 0.01, %v556_v41  ;;  %627 = vst [vmem:[%s1453_s9 + $0x40] sm:$0xff] %v480_v42  ;;  %vm691_vm8 = vcmp.ge.f32.partialorder %v480_v42, 0.0  ;;  %v755_v52 = vmul.f32 0.01, %v480_v42 }
  0xee   : > { %v1284_v51 = vpack.c.bf16 %v818_v49, %v817_v39  ;;  %659 = vst [vmem:[%s1453_s9 + $0x140] sm:$0xff] %v560_v44  ;;  %vm723_vm9 = vcmp.ge.f32.partialorder %v560_v44, 0.0  ;;  %v787_v53 = vmul.f32 0.01, %v560_v44  ;;  %628 = vst.msk [vmem:[%s1453_s9 + $0x48] sm:$0xff] %vm619_vm3, %v482_v45  ;;  %v485_v54 = vpop.f32.mrf.mxu0  ;;  %v565_v55 = vpop.f32.mrf.mxu1  ;;  %vm692_vm11 = vcmp.ge.f32.partialorder %v482_v45, 0.0 }
  0xef   : > { %660 = vst.msk [vmem:[%s1453_s9 + $0x148] sm:$0xff] %vm619_vm3, %v562_v46  ;;  %v850_v57 = vsel %vm722_vm7, %v556_v41, %v786_v50  ;;  %v756_v58 = vmul.f32 0.01, %v482_v45  ;;  %vm724_vm12 = vcmp.ge.f32.partialorder %v562_v46, 0.0  ;;  %v819_v60 = vsel %vm691_vm8, %v480_v42, %v755_v52 }
  0xf0   : > { %1073 = vst.msk [vmem:[%s1477_s13 + $0x18] sm:$0xff] %vm1481_vm10, %v1284_v51  ;;  %v1300_v59 = vpack.c.bf16 %v850_v57, %v849_v43  ;;  %v851_v61 = vsel %vm723_vm9, %v560_v44, %v787_v53  ;;  %v788_v62 = vmul.f32 0.01, %v562_v46  ;;  %v489_v63 = vpop.f32.mrf.mxu0  ;;  %v569_v0 = vpop.f32.mrf.mxu1  ;;  %v484_v2 = vadd.f32 %v483_v47, %v1448_v31 }
  0xf1   : > { %v820_v1 = vsel %vm692_vm11, %v482_v45, %v756_v58  ;;  %v564_v3 = vadd.f32 %v563_v48, %v1448_v31  ;;  %v486_v4 = vadd.f32 %v485_v54, %v1455_v34  ;;  %v566_v7 = vadd.f32 %v565_v55, %v1455_v34 }
  0xf2   : > { %1089 = vst.msk [vmem:[%s1477_s13 + $0x98] sm:$0xff] %vm1481_vm10, %v1300_v59  ;;  %v1285_v5 = vpack.c.bf16 %v820_v1, %v819_v60  ;;  %v852_v6 = vsel %vm724_vm12, %v562_v46, %v788_v62  ;;  %v490_v8 = vadd.f32 %v489_v63, %v1448_v31  ;;  %v491_v9 = vpop.f32.mrf.mxu0  ;;  %v571_v10 = vpop.f32.mrf.mxu1  ;;  %629 = vst [vmem:[%s1453_s9 + $0x50] sm:$0xff] %v484_v2  ;;  %vm693_vm13 = vcmp.ge.f32.partialorder %v484_v2, 0.0 }
  0xf3   : > { %v1301_v11 = vpack.c.bf16 %v852_v6, %v851_v61  ;;  %v757_v12 = vmul.f32 0.01, %v484_v2  ;;  %661 = vst [vmem:[%s1453_s9 + $0x150] sm:$0xff] %v564_v3  ;;  %vm725_vm14 = vcmp.ge.f32.partialorder %v564_v3, 0.0  ;;  %630 = vst.msk [vmem:[%s1453_s9 + $0x58] sm:$0xff] %vm619_vm3, %v486_v4  ;;  %vm694_vm15 = vcmp.ge.f32.partialorder %v486_v4, 0.0 }
  0xf4   : > { %1074 = vst.msk [vmem:[%s1477_s13 + $0x20] sm:$0xff] %vm1481_vm10, %v1285_v5  ;;  %v789_v13 = vmul.f32 0.01, %v564_v3  ;;  %v758_v14 = vmul.f32 0.01, %v486_v4  ;;  %vm726_vm0 = vcmp.ge.f32.partialorder %v566_v7, 0.0  ;;  %v493_v15 = vpop.f32.mrf.mxu0  ;;  %v573_v16 = vpop.f32.mrf.mxu1  ;;  %v570_v22 = vadd.f32 %v569_v0, %v1448_v31 }
  0xf5   : > { %662 = vst.msk [vmem:[%s1453_s9 + $0x158] sm:$0xff] %vm619_vm3, %v566_v7  ;;  %631 = vst [vmem:[%s1453_s9 + $0x60] sm:$0xff] %v490_v8  ;;  %v821_v17 = vsel %vm693_vm13, %v484_v2, %v757_v12  ;;  %v790_v18 = vmul.f32 0.01, %v566_v7  ;;  %vm695_vm1 = vcmp.ge.f32.partialorder %v490_v8, 0.0  ;;  %v492_v23 = vadd.f32 %v491_v9, %v1455_v34 }
  0xf6   : > { %1090 = vst.msk [vmem:[%s1477_s13 + $0xa0] sm:$0xff] %vm1481_vm10, %v1301_v11  ;;  %v759_v19 = vmul.f32 0.01, %v490_v8  ;;  %v853_v20 = vsel %vm725_vm14, %v564_v3, %v789_v13  ;;  %v822_v21 = vsel %vm694_vm15, %v486_v4, %v758_v14  ;;  %v495_v24 = vpop.f32.mrf.mxu0  ;;  %v575_v25 = vpop.f32.mrf.mxu1  ;;  %v572_v29 = vadd.f32 %v571_v10, %v1455_v34  ;;  %663 = vst [vmem:[%s1453_s9 + $0x160] sm:$0xff] %v570_v22 }
  0xf7   : > { %v1286_v26 = vpack.c.bf16 %v822_v21, %v821_v17  ;;  %v854_v27 = vsel %vm726_vm0, %v566_v7, %v790_v18  ;;  %vm727_vm2 = vcmp.ge.f32.partialorder %v570_v22, 0.0  ;;  %v791_v32 = vmul.f32 0.01, %v570_v22  ;;  %632 = vst.msk [vmem:[%s1453_s9 + $0x68] sm:$0xff] %vm619_vm3, %v492_v23 }
  0xf8   : > { %v823_v28 = vsel %vm695_vm1, %v490_v8, %v759_v19  ;;  %v1302_v30 = vpack.c.bf16 %v854_v27, %v853_v20  ;;  %vm696_vm4 = vcmp.ge.f32.partialorder %v492_v23, 0.0  ;;  %v499_v33 = vpop.f32.mrf.mxu0  ;;  %v579_v35 = vpop.f32.mrf.mxu1  ;;  %v760_v36 = vmul.f32 0.01, %v492_v23  ;;  %664 = vst.msk [vmem:[%s1453_s9 + $0x168] sm:$0xff] %vm619_vm3, %v572_v29 }
  0xf9   : > { %1075 = vst.msk [vmem:[%s1477_s13 + $0x28] sm:$0xff] %vm1481_vm10, %v1286_v26  ;;  %vm728_vm5 = vcmp.ge.f32.partialorder %v572_v29, 0.0  ;;  %v792_v37 = vmul.f32 0.01, %v572_v29  ;;  %v494_v38 = vadd.f32 %v493_v15, %v1448_v31  ;;  %v855_v39 = vsel %vm727_vm2, %v570_v22, %v791_v32 }
  0xfa   : > { %1091 = vst.msk [vmem:[%s1477_s13 + $0xa8] sm:$0xff] %vm1481_vm10, %v1302_v30  ;;  %v574_v40 = vadd.f32 %v573_v16, %v1448_v31  ;;  %v496_v41 = vadd.f32 %v495_v24, %v1455_v34  ;;  %v576_v42 = vadd.f32 %v575_v25, %v1455_v34  ;;  %v501_v43 = vpop.f32.mrf.mxu0  ;;  %v581_v44 = vpop.f32.mrf.mxu1  ;;  %v824_v45 = vsel %vm696_vm4, %v492_v23, %v760_v36 }
  0xfb   : > { %v856_v46 = vsel %vm728_vm5, %v572_v29, %v792_v37  ;;  %633 = vst [vmem:[%s1453_s9 + $0x70] sm:$0xff] %v494_v38  ;;  %vm697_vm6 = vcmp.ge.f32.partialorder %v494_v38, 0.0  ;;  %v761_v47 = vmul.f32 0.01, %v494_v38  ;;  %v1287_v48 = vpack.c.bf16 %v824_v45, %v823_v28 }
  0xfc   : > { %v1303_v49 = vpack.c.bf16 %v856_v46, %v855_v39  ;;  %665 = vst [vmem:[%s1453_s9 + $0x170] sm:$0xff] %v574_v40  ;;  %vm729_vm7 = vcmp.ge.f32.partialorder %v574_v40, 0.0  ;;  %v793_v50 = vmul.f32 0.01, %v574_v40  ;;  %634 = vst.msk [vmem:[%s1453_s9 + $0x78] sm:$0xff] %vm619_vm3, %v496_v41  ;;  %v503_v51 = vpop.f32.mrf.mxu0  ;;  %v583_v52 = vpop.f32.mrf.mxu1  ;;  %vm698_vm8 = vcmp.ge.f32.partialorder %v496_v41, 0.0 }
  0xfd   : > { %666 = vst.msk [vmem:[%s1453_s9 + $0x178] sm:$0xff] %vm619_vm3, %v576_v42  ;;  %v825_v53 = vsel %vm697_vm6, %v494_v38, %v761_v47  ;;  %v762_v54 = vmul.f32 0.01, %v496_v41  ;;  %vm730_vm9 = vcmp.ge.f32.partialorder %v576_v42, 0.0  ;;  %v794_v57 = vmul.f32 0.01, %v576_v42 }
  0xfe   : > { %1076 = vst.msk [vmem:[%s1477_s13 + $0x30] sm:$0xff] %vm1481_vm10, %v1287_v48  ;;  %1092 = vst.msk [vmem:[%s1477_s13 + $0xb0] sm:$0xff] %vm1481_vm10, %v1303_v49  ;;  %v857_v55 = vsel %vm729_vm7, %v574_v40, %v793_v50  ;;  %v500_v58 = vadd.f32 %v499_v33, %v1448_v31  ;;  %v580_v59 = vadd.f32 %v579_v35, %v1448_v31  ;;  %v505_v60 = vpop.f32.mrf.mxu0  ;;  %v585_v61 = vpop.f32.mrf.mxu1 }
  0xff   : > { %v826_v62 = vsel %vm698_vm8, %v496_v41, %v762_v54  ;;  %v502_v63 = vadd.f32 %v501_v43, %v1455_v34  ;;  %v582_v0 = vadd.f32 %v581_v44, %v1455_v34  ;;  %v504_v1 = vadd.f32 %v503_v51, %v1448_v31 }
 0x100   : > { %v1288_v2 = vpack.c.bf16 %v826_v62, %v825_v53  ;;  %v858_v3 = vsel %vm730_vm9, %v576_v42, %v794_v57  ;;  %635 = vst [vmem:[%s1453_s9 + $0x80] sm:$0xff] %v500_v58  ;;  %vm699_vm11 = vcmp.ge.f32.partialorder %v500_v58, 0.0  ;;  %v763_v4 = vmul.f32 0.01, %v500_v58  ;;  %667 = vst [vmem:[%s1453_s9 + $0x180] sm:$0xff] %v580_v59  ;;  %v509_v5 = vpop.f32.mrf.mxu0  ;;  %v589_v6 = vpop.f32.mrf.mxu1 }
 0x101   : > { %v1304_v7 = vpack.c.bf16 %v858_v3, %v857_v55  ;;  %vm731_vm12 = vcmp.ge.f32.partialorder %v580_v59, 0.0  ;;  %v795_v8 = vmul.f32 0.01, %v580_v59  ;;  %636 = vst.msk [vmem:[%s1453_s9 + $0x88] sm:$0xff] %vm619_vm3, %v502_v63  ;;  %vm700_vm13 = vcmp.ge.f32.partialorder %v502_v63, 0.0  ;;  %668 = vst.msk [vmem:[%s1453_s9 + $0x188] sm:$0xff] %vm619_vm3, %v582_v0 }
 0x102   : > { %637 = vst [vmem:[%s1453_s9 + $0x90] sm:$0xff] %v504_v1  ;;  %1077 = vst.msk [vmem:[%s1477_s13 + $0x38] sm:$0xff] %vm1481_vm10, %v1288_v2  ;;  %v827_v9 = vsel %vm699_vm11, %v500_v58, %v763_v4  ;;  %v764_v10 = vmul.f32 0.01, %v502_v63  ;;  %vm732_vm14 = vcmp.ge.f32.partialorder %v582_v0, 0.0  ;;  %v511_v12 = vpop.f32.mrf.mxu0  ;;  %v591_v13 = vpop.f32.mrf.mxu1  ;;  %vm701_vm15 = vcmp.ge.f32.partialorder %v504_v1, 0.0 }
 0x103   : > { %v796_v11 = vmul.f32 0.01, %v582_v0  ;;  %1093 = vst.msk [vmem:[%s1477_s13 + $0xb8] sm:$0xff] %vm1481_vm10, %v1304_v7  ;;  %v859_v14 = vsel %vm731_vm12, %v580_v59, %v795_v8  ;;  %v765_v15 = vmul.f32 0.01, %v504_v1  ;;  %v584_v16 = vadd.f32 %v583_v52, %v1448_v31 }
 0x104   : > { %v828_v17 = vsel %vm700_vm13, %v502_v63, %v764_v10  ;;  %v506_v19 = vadd.f32 %v505_v60, %v1455_v34  ;;  %v586_v20 = vadd.f32 %v585_v61, %v1455_v34  ;;  %v513_v21 = vpop.f32.mrf.mxu0  ;;  %v593_v22 = vpop.f32.mrf.mxu1  ;;  %v510_v32 = vadd.f32 %v509_v5, %v1448_v31 }
 0x105   : > { %v860_v18 = vsel %vm732_vm14, %v582_v0, %v796_v11  ;;  %v1289_v23 = vpack.c.bf16 %v828_v17, %v827_v9  ;;  %v829_v25 = vsel %vm701_vm15, %v504_v1, %v765_v15  ;;  %669 = vst [vmem:[%s1453_s9 + $0x190] sm:$0xff] %v584_v16  ;;  %vm733_vm0 = vcmp.ge.f32.partialorder %v584_v16, 0.0 }
 0x106   : > { %v1305_v24 = vpack.c.bf16 %v860_v18, %v859_v14  ;;  %v797_v26 = vmul.f32 0.01, %v584_v16  ;;  %638 = vst.msk [vmem:[%s1453_s9 + $0x98] sm:$0xff] %vm619_vm3, %v506_v19  ;;  %vm702_vm1 = vcmp.ge.f32.partialorder %v506_v19, 0.0  ;;  %v766_v27 = vmul.f32 0.01, %v506_v19  ;;  %v515_v28 = vpop.f32.mrf.mxu0  ;;  %v595_v29 = vpop.f32.mrf.mxu1 }
 0x107   : > { %670 = vst.msk [vmem:[%s1453_s9 + $0x198] sm:$0xff] %vm619_vm3, %v586_v20  ;;  %vm734_vm2 = vcmp.ge.f32.partialorder %v586_v20, 0.0  ;;  %v798_v30 = vmul.f32 0.01, %v586_v20  ;;  %v590_v33 = vadd.f32 %v589_v6, %v1448_v31  ;;  %v512_v35 = vadd.f32 %v511_v12, %v1455_v34  ;;  %639 = vst [vmem:[%s1453_s9 + $0xa0] sm:$0xff] %v510_v32 }
 0x108   : > { %1078 = vst.msk [vmem:[%s1477_s13 + $0x40] sm:$0xff] %vm1481_vm10, %v1289_v23  ;;  %1094 = vst.msk [vmem:[%s1477_s13 + $0xc0] sm:$0xff] %vm1481_vm10, %v1305_v24  ;;  %v861_v36 = vsel %vm733_vm0, %v584_v16, %v797_v26  ;;  %v830_v37 = vsel %vm702_vm1, %v506_v19, %v766_v27  ;;  %v592_v38 = vadd.f32 %v591_v13, %v1455_v34  ;;  %v519_v40 = vpop.f32.mrf.mxu0  ;;  %v599_v41 = vpop.f32.mrf.mxu1  ;;  %vm703_vm4 = vcmp.ge.f32.partialorder %v510_v32, 0.0 }
 0x109   : > { %v514_v39 = vadd.f32 %v513_v21, %v1448_v31  ;;  %v1290_v42 = vpack.c.bf16 %v830_v37, %v829_v25  ;;  %v862_v43 = vsel %vm734_vm2, %v586_v20, %v798_v30  ;;  %v767_v44 = vmul.f32 0.01, %v510_v32  ;;  %671 = vst [vmem:[%s1453_s9 + $0x1a0] sm:$0xff] %v590_v33  ;;  %640 = vst.msk [vmem:[%s1453_s9 + $0xa8] sm:$0xff] %vm619_vm3, %v512_v35 }
 0x10a   : > { %v1306_v45 = vpack.c.bf16 %v862_v43, %v861_v36  ;;  %vm735_vm5 = vcmp.ge.f32.partialorder %v590_v33, 0.0  ;;  %v799_v46 = vmul.f32 0.01, %v590_v33  ;;  %vm704_vm6 = vcmp.ge.f32.partialorder %v512_v35, 0.0  ;;  %672 = vst.msk [vmem:[%s1453_s9 + $0x1a8] sm:$0xff] %vm619_vm3, %v592_v38  ;;  %v521_v47 = vpop.f32.mrf.mxu0  ;;  %v601_v48 = vpop.f32.mrf.mxu1 }
 0x10b   : > { %641 = vst [vmem:[%s1453_s9 + $0xb0] sm:$0xff] %v514_v39  ;;  %1079 = vst.msk [vmem:[%s1477_s13 + $0x48] sm:$0xff] %vm1481_vm10, %v1290_v42  ;;  %v831_v49 = vsel %vm703_vm4, %v510_v32, %v767_v44  ;;  %v768_v50 = vmul.f32 0.01, %v512_v35  ;;  %vm736_vm7 = vcmp.ge.f32.partialorder %v592_v38, 0.0  ;;  %vm705_vm8 = vcmp.ge.f32.partialorder %v514_v39, 0.0 }
 0x10c   : > { %v800_v51 = vmul.f32 0.01, %v592_v38  ;;  %1095 = vst.msk [vmem:[%s1477_s13 + $0xc8] sm:$0xff] %vm1481_vm10, %v1306_v45  ;;  %v863_v52 = vsel %vm735_vm5, %v590_v33, %v799_v46  ;;  %v769_v53 = vmul.f32 0.01, %v514_v39  ;;  %v594_v54 = vadd.f32 %v593_v22, %v1448_v31  ;;  %v523_v55 = vpop.f32.mrf.mxu0  ;;  %v603_v57 = vpop.f32.mrf.mxu1 }
 0x10d   : > { %v832_v58 = vsel %vm704_vm6, %v512_v35, %v768_v50  ;;  %v516_v60 = vadd.f32 %v515_v28, %v1455_v34  ;;  %v596_v61 = vadd.f32 %v595_v29, %v1455_v34  ;;  %v520_v6 = vadd.f32 %v519_v40, %v1448_v31 }
 0x10e   : > { %v864_v59 = vsel %vm736_vm7, %v592_v38, %v800_v51  ;;  %v1291_v62 = vpack.c.bf16 %v832_v58, %v831_v49  ;;  %v833_v0 = vsel %vm705_vm8, %v514_v39, %v769_v53  ;;  %673 = vst [vmem:[%s1453_s9 + $0x1b0] sm:$0xff] %v594_v54  ;;  %vm737_vm9 = vcmp.ge.f32.partialorder %v594_v54, 0.0  ;;  %v525_v1 = vpop.f32.mrf.mxu0  ;;  %v605_v2 = vpop.f32.mrf.mxu1 }
 0x10f   : > { %v1307_v63 = vpack.c.bf16 %v864_v59, %v863_v52  ;;  %v801_v3 = vmul.f32 0.01, %v594_v54  ;;  %642 = vst.msk [vmem:[%s1453_s9 + $0xb8] sm:$0xff] %vm619_vm3, %v516_v60  ;;  %vm706_vm11 = vcmp.ge.f32.partialorder %v516_v60, 0.0  ;;  %v770_v4 = vmul.f32 0.01, %v516_v60 }
 0x110   : > { %674 = vst.msk [vmem:[%s1453_s9 + $0x1b8] sm:$0xff] %vm619_vm3, %v596_v61  ;;  %vm738_vm12 = vcmp.ge.f32.partialorder %v596_v61, 0.0  ;;  %v802_v5 = vmul.f32 0.01, %v596_v61  ;;  %v600_v7 = vadd.f32 %v599_v41, %v1448_v31  ;;  %v522_v8 = vadd.f32 %v521_v47, %v1455_v34  ;;  %v529_v9 = vpop.f32.mrf.mxu0  ;;  %v609_v10 = vpop.f32.mrf.mxu1  ;;  %643 = vst [vmem:[%s1453_s9 + $0xc0] sm:$0xff] %v520_v6 }
 0x111   : > { %1080 = vst.msk [vmem:[%s1477_s13 + $0x50] sm:$0xff] %vm1481_vm10, %v1291_v62  ;;  %1096 = vst.msk [vmem:[%s1477_s13 + $0xd0] sm:$0xff] %vm1481_vm10, %v1307_v63  ;;  %v865_v11 = vsel %vm737_vm9, %v594_v54, %v801_v3  ;;  %v834_v12 = vsel %vm706_vm11, %v516_v60, %v770_v4  ;;  %v602_v13 = vadd.f32 %v601_v48, %v1455_v34  ;;  %vm707_vm13 = vcmp.ge.f32.partialorder %v520_v6, 0.0 }
 0x112   : > { %v524_v14 = vadd.f32 %v523_v55, %v1448_v31  ;;  %v1292_v15 = vpack.c.bf16 %v834_v12, %v833_v0  ;;  %v866_v16 = vsel %vm738_vm12, %v596_v61, %v802_v5  ;;  %v771_v17 = vmul.f32 0.01, %v520_v6  ;;  %675 = vst [vmem:[%s1453_s9 + $0x1c0] sm:$0xff] %v600_v7  ;;  %644 = vst.msk [vmem:[%s1453_s9 + $0xc8] sm:$0xff] %vm619_vm3, %v522_v8  ;;  %v531_v20 = vpop.f32.mrf.mxu0  ;;  %v611_v24 = vpop.f32.mrf.mxu1 }
 0x113   : > { %v1308_v18 = vpack.c.bf16 %v866_v16, %v865_v11  ;;  %vm739_vm14 = vcmp.ge.f32.partialorder %v600_v7, 0.0  ;;  %v803_v19 = vmul.f32 0.01, %v600_v7  ;;  %vm708_vm15 = vcmp.ge.f32.partialorder %v522_v8, 0.0  ;;  %676 = vst.msk [vmem:[%s1453_s9 + $0x1c8] sm:$0xff] %vm619_vm3, %v602_v13 }
 0x114   : > { %645 = vst [vmem:[%s1453_s9 + $0xd0] sm:$0xff] %v524_v14  ;;  %1081 = vst.msk [vmem:[%s1477_s13 + $0x58] sm:$0xff] %vm1481_vm10, %v1292_v15  ;;  %v835_v21 = vsel %vm707_vm13, %v520_v6, %v771_v17  ;;  %v772_v22 = vmul.f32 0.01, %v522_v8  ;;  %vm740_vm0 = vcmp.ge.f32.partialorder %v602_v13, 0.0  ;;  %vm709_vm1 = vcmp.ge.f32.partialorder %v524_v14, 0.0  ;;  %v533_v37 = vpop.f32.mrf.mxu0  ;;  %v613_v40 = vpop.f32.mrf.mxu1 }
 0x115   : > { %v804_v23 = vmul.f32 0.01, %v602_v13  ;;  %1097 = vst.msk [vmem:[%s1477_s13 + $0xd8] sm:$0xff] %vm1481_vm10, %v1308_v18  ;;  %v867_v25 = vsel %vm739_vm14, %v600_v7, %v803_v19  ;;  %v773_v26 = vmul.f32 0.01, %v524_v14  ;;  %v604_v27 = vadd.f32 %v603_v57, %v1448_v31 }
 0x116   : > { %v836_v28 = vsel %vm708_vm15, %v522_v8, %v772_v22  ;;  %v526_v30 = vadd.f32 %v525_v1, %v1455_v34  ;;  %v606_v32 = vadd.f32 %v605_v2, %v1455_v34  ;;  %v530_v42 = vadd.f32 %v529_v9, %v1448_v31  ;;  %v535_v54 = vpop.f32.mrf.mxu0  ;;  %v615_v55 = vpop.f32.mrf.mxu1 }
 0x117   : > { %v868_v29 = vsel %vm740_vm0, %v602_v13, %v804_v23  ;;  %v1293_v33 = vpack.c.bf16 %v836_v28, %v835_v21  ;;  %v837_v36 = vsel %vm709_vm1, %v524_v14, %v773_v26  ;;  %677 = vst [vmem:[%s1453_s9 + $0x1d0] sm:$0xff] %v604_v27  ;;  %vm741_vm2 = vcmp.ge.f32.partialorder %v604_v27, 0.0 }
 0x118   : > { %v1309_v35 = vpack.c.bf16 %v868_v29, %v867_v25  ;;  %v805_v38 = vmul.f32 0.01, %v604_v27  ;;  %646 = vst.msk [vmem:[%s1453_s9 + $0xd8] sm:$0xff] %vm619_vm3, %v526_v30  ;;  %vm710_vm4 = vcmp.ge.f32.partialorder %v526_v30, 0.0  ;;  %v774_v39 = vmul.f32 0.01, %v526_v30 }
 0x119   : > { %678 = vst.msk [vmem:[%s1453_s9 + $0x1d8] sm:$0xff] %vm619_vm3, %v606_v32  ;;  %vm742_vm5 = vcmp.ge.f32.partialorder %v606_v32, 0.0  ;;  %v806_v41 = vmul.f32 0.01, %v606_v32  ;;  %v610_v43 = vadd.f32 %v609_v10, %v1448_v31  ;;  %v532_v44 = vadd.f32 %v531_v20, %v1455_v34  ;;  %647 = vst [vmem:[%s1453_s9 + $0xe0] sm:$0xff] %v530_v42 }
 0x11a   : > { %1082 = vst.msk [vmem:[%s1477_s13 + $0x60] sm:$0xff] %vm1481_vm10, %v1293_v33  ;;  %1098 = vst.msk [vmem:[%s1477_s13 + $0xe0] sm:$0xff] %vm1481_vm10, %v1309_v35  ;;  %v869_v45 = vsel %vm741_vm2, %v604_v27, %v805_v38  ;;  %v838_v46 = vsel %vm710_vm4, %v526_v30, %v774_v39  ;;  %v612_v47 = vadd.f32 %v611_v24, %v1455_v34  ;;  %vm711_vm6 = vcmp.ge.f32.partialorder %v530_v42, 0.0 }
 0x11b   : > { %v534_v48 = vadd.f32 %v533_v37, %v1448_v31  ;;  %v1294_v49 = vpack.c.bf16 %v838_v46, %v837_v36  ;;  %v870_v50 = vsel %vm742_vm5, %v606_v32, %v806_v41  ;;  %v775_v51 = vmul.f32 0.01, %v530_v42  ;;  %679 = vst [vmem:[%s1453_s9 + $0x1e0] sm:$0xff] %v610_v43  ;;  %648 = vst.msk [vmem:[%s1453_s9 + $0xe8] sm:$0xff] %vm619_vm3, %v532_v44 }
 0x11c   : > { %v1310_v52 = vpack.c.bf16 %v870_v50, %v869_v45  ;;  %vm743_vm7 = vcmp.ge.f32.partialorder %v610_v43, 0.0  ;;  %v807_v53 = vmul.f32 0.01, %v610_v43  ;;  %vm712_vm8 = vcmp.ge.f32.partialorder %v532_v44, 0.0  ;;  %680 = vst.msk [vmem:[%s1453_s9 + $0x1e8] sm:$0xff] %vm619_vm3, %v612_v47 }
 0x11d   : > { %649 = vst [vmem:[%s1453_s9 + $0xf0] sm:$0xff] %v534_v48  ;;  %1083 = vst.msk [vmem:[%s1477_s13 + $0x68] sm:$0xff] %vm1481_vm10, %v1294_v49  ;;  %v776_v57 = vmul.f32 0.01, %v532_v44  ;;  %vm744_vm9 = vcmp.ge.f32.partialorder %v612_v47, 0.0  ;;  %v839_v59 = vsel %vm711_vm6, %v530_v42, %v775_v51  ;;  %v614_v62 = vadd.f32 %v613_v40, %v1448_v31 }
 0x11e   : > { %v808_v58 = vmul.f32 0.01, %v612_v47  ;;  %1099 = vst.msk [vmem:[%s1477_s13 + $0xe8] sm:$0xff] %vm1481_vm10, %v1310_v52  ;;  %v871_v60 = vsel %vm743_vm7, %v610_v43, %v807_v53  ;;  %v777_v61 = vmul.f32 0.01, %v534_v48  ;;  %v536_v1 = vadd.f32 %v535_v54, %v1455_v34 }
 0x11f   : > { %v840_v63 = vsel %vm712_vm8, %v532_v44, %v776_v57  ;;  %v616_v2 = vadd.f32 %v615_v55, %v1455_v34  ;;  %vm713_vm11 = vcmp.ge.f32.partialorder %v534_v48, 0.0  ;;  %681 = vst [vmem:[%s1453_s9 + $0x1f0] sm:$0xff] %v614_v62  ;;  %vm745_vm12 = vcmp.ge.f32.partialorder %v614_v62, 0.0 }
 0x120   : > { %v872_v0 = vsel %vm744_vm9, %v612_v47, %v808_v58  ;;  %v1295_v3 = vpack.c.bf16 %v840_v63, %v839_v59  ;;  %v809_v5 = vmul.f32 0.01, %v614_v62  ;;  %650 = vst.msk [vmem:[%s1453_s9 + $0xf8] sm:$0xff] %vm619_vm3, %v536_v1  ;;  %vm714_vm13 = vcmp.ge.f32.partialorder %v536_v1, 0.0 }
 0x121   : > { %v1311_v4 = vpack.c.bf16 %v872_v0, %v871_v60  ;;  %v778_v31 = vmul.f32 0.01, %v536_v1  ;;  %682 = vst.msk [vmem:[%s1453_s9 + $0x1f8] sm:$0xff] %vm619_vm3, %v616_v2  ;;  %vm746_vm14 = vcmp.ge.f32.partialorder %v616_v2, 0.0  ;;  %v810_v34 = vmul.f32 0.01, %v616_v2 }
 0x122   : > { %1084 = vst.msk [vmem:[%s1477_s13 + $0x70] sm:$0xff] %vm1481_vm10, %v1295_v3  ;;  %v841_v6 = vsel %vm713_vm11, %v534_v48, %v777_v61  ;;  %v873_v8 = vsel %vm745_vm12, %v614_v62, %v809_v5 }
 0x123   : > { %1100 = vst.msk [vmem:[%s1477_s13 + $0xf0] sm:$0xff] %vm1481_vm10, %v1311_v4  ;;  %v842_v7 = vsel %vm714_vm13, %v536_v1, %v778_v31  ;;  %v874_v10 = vsel %vm746_vm14, %v616_v2, %v810_v34 }
 0x124   : > { %v1296_v9 = vpack.c.bf16 %v842_v7, %v841_v6  ;;  %v1312_v11 = vpack.c.bf16 %v874_v10, %v873_v8 }
 0x126   : > { %1085 = vst.msk [vmem:[%s1477_s13 + $0x78] sm:$0xff] %vm1481_vm10, %v1296_v9  ;;  %1101 = vst.msk [vmem:[%s1477_s13 + $0xf8] sm:$0xff] %vm1481_vm10, %v1312_v11 }
 0x127 PF: > { %s15_s15 = sadd.s32 1, %s1355_s15  }
 0x128   : > { %p12_p4 = scmp.ge.s32.totalorder %s15_s15, 4  }
 0x12a   :  { %14 = sbr.rel (!%p12_p4) target bundleno = 1 (0x1), region = 74 }

// kernel: vid_forward.10
= control target key start
LH: loop header
LB: loop body
LE: loop exit
PB: predicated region body
PF: predicated region fallthrough
CT: control target
= control target key end

     0   :  { %vm560_vm0 = vcmask 523264   ;;  %s1885_s1 = inlined_call_operand.vmem [shape: bf16[576,128], index: 1, kind: input, shape index: {}]   ;;  %s1886_s0 = inlined_call_operand.vmem [shape: bf16[128,576], index: 0, kind: input, shape index: {}]   ;;  %s1887_s2 = inlined_call_operand.vmem [shape: f32[1,128], index: 2, kind: input, shape index: {}]   ;;  %s1888_s3 = inlined_call_operand.vmem [shape: f32[128,128], index: 3, kind: output, shape index: {0}]   ;;  %s1889_s4 = inlined_call_operand.vmem [shape: bf16[128,128], index: 4, kind: output, shape index: {1}]  }
   0x1   :  { %v1364_v0 = vld [vmem:[%s1885_s1 + $0x78] sm:$0xff]   ;;  %v1368_v4 = vld [vmem:[%s1885_s1 + $0x70] sm:$0xff]   ;;  %v1372_v8 = vld [vmem:[%s1885_s1 + $0x68] sm:$0xff]  }
   0x2   :  { %v1365_v1 = vld [vmem:[%s1885_s1 + $0xf8] sm:$0xff]   ;;  %1192 = vmatprep.subr.bf16.mxu0 %v1364_v0  ;;  %v1369_v5 = vld [vmem:[%s1885_s1 + $0xf0] sm:$0xff]   ;;  %v1373_v9 = vld [vmem:[%s1885_s1 + $0xe8] sm:$0xff]  }
   0x3   :  { %v1366_v2 = vld [vmem:[%s1885_s1 + $0x38] sm:$0xff]   ;;  %1256 = vmatprep.subr.bf16.mxu1 %v1365_v1  ;;  %v1370_v6 = vld [vmem:[%s1885_s1 + $0x30] sm:$0xff]   ;;  %v1374_v10 = vld [vmem:[%s1885_s1 + $0x28] sm:$0xff]  }
   0x4   :  { %v1367_v3 = vld [vmem:[%s1885_s1 + $0xb8] sm:$0xff]   ;;  %1193 = vmatpush3.bf16.msra.mxu0 %v1366_v2  ;;  %v1371_v7 = vld [vmem:[%s1885_s1 + $0xb0] sm:$0xff]   ;;  %v1375_v11 = vld [vmem:[%s1885_s1 + $0xa8] sm:$0xff]  }
   0x5   :  { %1257 = vmatpush3.bf16.msra.mxu1 %v1367_v3  ;;  %1194 = vmatprep.subr.bf16.mxu0 %v1368_v4  ;;  %v1376_v12 = vld [vmem:[%s1885_s1 + $0x60] sm:$0xff]   ;;  %v1380_v16 = vld [vmem:[%s1885_s1 + $0x58] sm:$0xff]   ;;  %v1384_v20 = vld [vmem:[%s1885_s1 + $0x50] sm:$0xff]  }
   0x6   :  { %1258 = vmatprep.subr.bf16.mxu1 %v1369_v5  ;;  %v1377_v13 = vld [vmem:[%s1885_s1 + $0xe0] sm:$0xff]   ;;  %v1381_v17 = vld [vmem:[%s1885_s1 + $0xd8] sm:$0xff]   ;;  %v1385_v21 = vld [vmem:[%s1885_s1 + $0xd0] sm:$0xff]  }
   0x7   :  { %v1378_v14 = vld [vmem:[%s1885_s1 + $0x20] sm:$0xff]   ;;  %v1382_v18 = vld [vmem:[%s1885_s1 + $0x18] sm:$0xff]   ;;  %v1386_v22 = vld [vmem:[%s1885_s1 + $0x10] sm:$0xff]  }
   0x8   :  { %1195 = vmatpush3.bf16.msra.mxu0 %v1370_v6  ;;  %v1379_v15 = vld [vmem:[%s1885_s1 + $0xa0] sm:$0xff]   ;;  %v1383_v19 = vld [vmem:[%s1885_s1 + $0x98] sm:$0xff]   ;;  %v1387_v23 = vld [vmem:[%s1885_s1 + $0x90] sm:$0xff]  }
   0x9   :  { %1259 = vmatpush3.bf16.msra.mxu1 %v1371_v7  ;;  %1196 = vmatprep.subr.bf16.mxu0 %v1372_v8  ;;  %v1388_v24 = vld [vmem:[%s1885_s1 + $0x48] sm:$0xff]   ;;  %v1392_v28 = vld [vmem:[%s1885_s1 + $0x40] sm:$0xff]   ;;  %v1402_v36 = vld [vmem:[%s1885_s1 + $0x118] sm:$0xff]  }
   0xa   :  { %1260 = vmatprep.subr.bf16.mxu1 %v1373_v9  ;;  %v1389_v25 = vld [vmem:[%s1885_s1 + $0xc8] sm:$0xff]   ;;  %v1393_v29 = vld [vmem:[%s1885_s1 + $0xc0] sm:$0xff]   ;;  %v1415_v42 = vld [vmem:[%s1885_s1 + $0x110] sm:$0xff]  }
   0xb   :  { %v1390_v26 = vld [vmem:[%s1885_s1 + $0x8] sm:$0xff]   ;;  %v1394_v30 = vld [vmem:[%s1885_s1] sm:$0xff]   ;;  %v1411_v43 = vld [vmem:[%s1886_s0 + $0x5c] ss:$20 sps:$4 sm:$0xff]  }
   0xc   :  { %1197 = vmatpush3.bf16.msra.mxu0 %v1374_v10  ;;  %v1391_v27 = vld [vmem:[%s1885_s1 + $0x88] sm:$0xff]   ;;  %v1395_v31 = vld [vmem:[%s1885_s1 + $0x80] sm:$0xff]   ;;  %v1416_v47 = vld [vmem:[%s1886_s0 + $0x7c] ss:$20 sps:$4 sm:$0xff]  }
   0xd   :  { %1261 = vmatpush3.bf16.msra.mxu1 %v1375_v11  ;;  %1198 = vmatprep.subr.bf16.mxu0 %v1376_v12  ;;  %v1396_v32 = vld [vmem:[%s1886_s0] ss:$20 sps:$4 sm:$0xff]   ;;  %v1398_v33 = vld [vmem:[%s1886_s0 + $0x4] ss:$20 sps:$4 sm:$0xff]   ;;  %v1399_v34 = vld [vmem:[%s1886_s0 + $0x8] ss:$20 sps:$4 sm:$0xff]  }
   0xe   :  { %1262 = vmatprep.subr.bf16.mxu1 %v1377_v13  ;;  %v1401_v35 = vld [vmem:[%s1886_s0 + $0xc] ss:$20 sps:$4 sm:$0xff]   ;;  %617 = vmatprep.mubr.bf16.mxu0 %v1398_v33  ;;  %v1405_v38 = vld [vmem:[%s1886_s0 + $0x34] ss:$20 sps:$4 sm:$0xff]   ;;  %v1408_v40 = vld [vmem:[%s1886_s0 + $0x30] ss:$20 sps:$4 sm:$0xff]  }
   0xf   :  { %714 = vmatprep.mubr.bf16.mxu1 %v1401_v35  ;;  %v1403_v37 = vld [vmem:[%s1886_s0 + $0x2c] ss:$20 sps:$4 sm:$0xff]   ;;  %v1407_v39 = vld [vmem:[%s1886_s0 + $0x28] ss:$20 sps:$4 sm:$0xff]   ;;  %v1413_v44 = vld [vmem:[%s1886_s0 + $0x50] ss:$20 sps:$4 sm:$0xff]  }
  0x10   :  { %1199 = vmatpush3.bf16.msra.mxu0 %v1378_v14  ;;  %v1409_v41 = vld [vmem:[%s1886_s0 + $0x54] ss:$20 sps:$4 sm:$0xff]   ;;  %v1414_v45 = vld [vmem:[%s1886_s0 + $0x58] ss:$20 sps:$4 sm:$0xff]   ;;  %v1441_v49 = vld [vmem:[%s1885_s1 + $0x100] sm:$0xff]  }
  0x11   :  { %1263 = vmatpush3.bf16.msra.mxu1 %v1379_v15  ;;  %1200 = vmatprep.subr.bf16.mxu0 %v1380_v16  ;;  %v1428_v46 = vld [vmem:[%s1885_s1 + $0x108] sm:$0xff]   ;;  %v1418_v48 = vld [vmem:[%s1886_s0 + $0x84] ss:$20 sps:$4 sm:$0xff]   ;;  %v1421_v51 = vld [vmem:[%s1886_s0 + $0x80] ss:$20 sps:$4 sm:$0xff]  }
  0x12   :  { %1264 = vmatprep.subr.bf16.mxu1 %v1381_v17  ;;  %v1420_v50 = vld [vmem:[%s1886_s0 + $0x78] ss:$20 sps:$4 sm:$0xff]   ;;  %v1426_v54 = vld [vmem:[%s1886_s0 + $0xa0] ss:$20 sps:$4 sm:$0xff]   ;;  %v1427_v55 = vld [vmem:[%s1886_s0 + $0xa8] ss:$20 sps:$4 sm:$0xff]  }
  0x13   :  { %v1422_v52 = vld [vmem:[%s1886_s0 + $0xa4] ss:$20 sps:$4 sm:$0xff]   ;;  %v1424_v53 = vld [vmem:[%s1886_s0 + $0xac] ss:$20 sps:$4 sm:$0xff]   ;;  %v1431_v57 = vld [vmem:[%s1886_s0 + $0xd4] ss:$20 sps:$4 sm:$0xff]  }
  0x14   :  { %1201 = vmatpush3.bf16.msra.mxu0 %v1382_v18  ;;  %v1429_v56 = vld [vmem:[%s1886_s0 + $0xcc] ss:$20 sps:$4 sm:$0xff]   ;;  %v1433_v58 = vld [vmem:[%s1886_s0 + $0xc8] ss:$20 sps:$4 sm:$0xff]   ;;  %v1434_v59 = vld [vmem:[%s1886_s0 + $0xd0] ss:$20 sps:$4 sm:$0xff]  }
  0x15   :  { %1265 = vmatpush3.bf16.msra.mxu1 %v1383_v19  ;;  %1202 = vmatprep.subr.bf16.mxu0 %v1384_v20  ;;  %v1435_v60 = vld [vmem:[%s1886_s0 + $0xf4] ss:$20 sps:$4 sm:$0xff]   ;;  %v1437_v61 = vld [vmem:[%s1886_s0 + $0xfc] ss:$20 sps:$4 sm:$0xff]   ;;  %v1440_v63 = vld [vmem:[%s1886_s0 + $0xf8] ss:$20 sps:$4 sm:$0xff]  }
  0x16   :  { %1266 = vmatprep.subr.bf16.mxu1 %v1385_v21  ;;  %v1439_v62 = vld [vmem:[%s1886_s0 + $0xf0] ss:$20 sps:$4 sm:$0xff]   ;;  %v1446_v2 = vld [vmem:[%s1886_s0 + $0x118] ss:$20 sps:$4 sm:$0xff]   ;;  %v1447_v3 = vld [vmem:[%s1886_s0 + $0x120] ss:$20 sps:$4 sm:$0xff]  }
  0x17   :  { %v1442_v0 = vld [vmem:[%s1886_s0 + $0x11c] ss:$20 sps:$4 sm:$0xff]   ;;  %v1444_v1 = vld [vmem:[%s1886_s0 + $0x124] ss:$20 sps:$4 sm:$0xff]   ;;  %v1452_v8 = vld [vmem:[%s1886_s0 + $0x60] ss:$20 sps:$4 sm:$0xff]  }
  0x18   :  { %1203 = vmatpush3.bf16.msra.mxu0 %v1386_v22  ;;  %v1448_v4 = vld [vmem:[%s1886_s0 + $0x10] ss:$20 sps:$4 sm:$0xff]   ;;  %v1450_v6 = vld [vmem:[%s1886_s0 + $0x38] ss:$20 sps:$4 sm:$0xff]   ;;  %v1453_v9 = vld [vmem:[%s1886_s0 + $0x100] ss:$20 sps:$4 sm:$0xff]  }
  0x19   :  { %1267 = vmatpush3.bf16.msra.mxu1 %v1387_v23  ;;  %1204 = vmatprep.subr.bf16.mxu0 %v1388_v24  ;;  %v1449_v5 = vld [vmem:[%s1886_s0 + $0xb0] ss:$20 sps:$4 sm:$0xff]   ;;  %v1451_v7 = vld [vmem:[%s1886_s0 + $0xd8] ss:$20 sps:$4 sm:$0xff]   ;;  %v1454_v10 = vld [vmem:[%s1886_s0 + $0x88] ss:$20 sps:$4 sm:$0xff]  }
  0x1a   :  { %1268 = vmatprep.subr.bf16.mxu1 %v1389_v25  ;;  %v1455_v11 = vld [vmem:[%s1886_s0 + $0x128] ss:$20 sps:$4 sm:$0xff]  }
  0x1c   :  { %1205 = vmatpush3.bf16.msra.mxu0 %v1390_v26 }
  0x1d   :  { %1269 = vmatpush3.bf16.msra.mxu1 %v1391_v27  ;;  %1206 = vmatprep.subr.bf16.mxu0 %v1392_v28 }
  0x1e   :  { %1270 = vmatprep.subr.bf16.mxu1 %v1393_v29 }
  0x20   :  { %1207 = vmatpush3.bf16.msra.mxu0 %v1394_v30 }
  0x21   :  { %1271 = vmatpush3.bf16.msra.mxu1 %v1395_v31  ;;  %1332 = vmatprep.subr.bf16.mxu0 %v1402_v36 }
  0x22   :  { %1356 = vmatprep.subr.bf16.mxu1 %v1402_v36 }
  0x23   :  { %618 = vmatmul.mubr.bf16.vlgmr.msra.gmra.mxu0 %v1396_v32 }
  0x24   :  { %715 = vmatmul.mubr.bf16.vlgmr.msra.gmra.mxu1 %v1399_v34  ;;  %1333 = vmatpush3.bf16.msra.mxu0 %v1402_v36 }
  0x25   :  { %1360 = vmatpush3.bf16.msra.mxu1 %v1402_v36  ;;  %625 = vmatprep.mubr.bf16.mxu0 %v1403_v37 }
  0x26   :  { %722 = vmatprep.mubr.bf16.mxu1 %v1405_v38  ;;  %1334 = vmatprep.subr.bf16.mxu0 %v1415_v42 }
  0x27   :  { %1357 = vmatprep.subr.bf16.mxu1 %v1415_v42 }
  0x28   :  { %1335 = vmatpush3.bf16.msra.mxu0 %v1415_v42 }
  0x29   :  { %1361 = vmatpush3.bf16.msra.mxu1 %v1415_v42  ;;  %1336 = vmatprep.subr.bf16.mxu0 %v1428_v46 }
  0x2a   :  { %1358 = vmatprep.subr.bf16.mxu1 %v1428_v46 }
  0x2b   :  { %626 = vmatmul.mubr.bf16.gmra.mxu0 %v1407_v39 }
  0x2c   :  { %723 = vmatmul.mubr.bf16.gmra.mxu1 %v1408_v40  ;;  %633 = vmatprep.mubr.bf16.mxu0 %v1409_v41 }
  0x2d   :  { %730 = vmatprep.mubr.bf16.mxu1 %v1411_v43  ;;  %1337 = vmatpush3.bf16.msra.mxu0 %v1428_v46 }
  0x2e   :  { %1362 = vmatpush3.bf16.msra.mxu1 %v1428_v46  ;;  %1338 = vmatprep.subr.bf16.mxu0 %v1441_v49 }
  0x2f   :  { %1359 = vmatprep.subr.bf16.mxu1 %v1441_v49 }
  0x31   :  { %1339 = vmatpush3.bf16.msra.mxu0 %v1441_v49 }
  0x32   :  { %1363 = vmatpush3.bf16.msra.mxu1 %v1441_v49 }
  0x33   :  { %634 = vmatmul.mubr.bf16.gmra.mxu0 %v1413_v44 }
  0x34   :  { %731 = vmatmul.mubr.bf16.gmra.mxu1 %v1414_v45  ;;  %641 = vmatprep.mubr.bf16.mxu0 %v1416_v47 }
  0x35   :  { %738 = vmatprep.mubr.bf16.mxu1 %v1418_v48 }
  0x3b   :  { %642 = vmatmul.mubr.bf16.gmra.mxu0 %v1420_v50 }
  0x3c   :  { %739 = vmatmul.mubr.bf16.gmra.mxu1 %v1421_v51  ;;  %649 = vmatprep.mubr.bf16.mxu0 %v1422_v52 }
  0x3d   :  { %746 = vmatprep.mubr.bf16.mxu1 %v1424_v53 }
  0x43   :  { %650 = vmatmul.mubr.bf16.gmra.mxu0 %v1426_v54 }
  0x44   :  { %747 = vmatmul.mubr.bf16.gmra.mxu1 %v1427_v55  ;;  %657 = vmatprep.mubr.bf16.mxu0 %v1429_v56 }
  0x45   :  { %754 = vmatprep.mubr.bf16.mxu1 %v1431_v57 }
  0x4b   :  { %658 = vmatmul.mubr.bf16.gmra.mxu0 %v1433_v58 }
  0x4c   :  { %755 = vmatmul.mubr.bf16.gmra.mxu1 %v1434_v59  ;;  %665 = vmatprep.mubr.bf16.mxu0 %v1435_v60  ;;  %v1742_v59 = vld [vmem:[%s1887_s2] ss:$0 sm:$0xff] }
  0x4d   :  { %762 = vmatprep.mubr.bf16.mxu1 %v1437_v61 }
  0x53   :  { %666 = vmatmul.mubr.bf16.gmra.mxu0 %v1439_v62 }
  0x54   :  { %763 = vmatmul.mubr.bf16.gmra.mxu1 %v1440_v63  ;;  %673 = vmatprep.mubr.bf16.mxu0 %v1442_v0 }
  0x55   :  { %770 = vmatprep.mubr.bf16.mxu1 %v1444_v1 }
  0x5b   :  { %674 = vmatmul.mubr.bf16.gmra.mxu0 %v1446_v2 }
  0x5c   :  { %771 = vmatmul.mubr.bf16.gmra.mxu1 %v1447_v3  ;;  %1340 = vmatprep.mubr.msk.bf16.mxu0 %vm560_vm0, %v1448_v4 }
  0x5d   :  { %1348 = vmatprep.mubr.msk.bf16.mxu1 %vm560_vm0, %v1449_v5 }
  0x63   :  { %1341 = vmatmul.mubr.msk.bf16.vlgmr.msra.gmra.mxu0 %vm560_vm0, %v1450_v6 }
  0x64   :  { %1349 = vmatmul.mubr.msk.bf16.vlgmr.msra.gmra.mxu1 %vm560_vm0, %v1451_v7  ;;  %1344 = vmatprep.mubr.msk.bf16.mxu0 %vm560_vm0, %v1452_v8 }
  0x65   :  { %1352 = vmatprep.mubr.msk.bf16.mxu1 %vm560_vm0, %v1453_v9 }
  0x6b   :  { %1345 = vmatmul.mubr.msk.bf16.gmra.mxu0 %vm560_vm0, %v1454_v10 }
  0x6c   :  { %1353 = vmatmul.mubr.msk.bf16.gmra.mxu1 %vm560_vm0, %v1455_v11 }
  0xe3   :  { %v1208_v12 = vpop.f32.mrf.mxu0 }
  0xe4   :  { %v1272_v13 = vpop.f32.mrf.mxu1 }
  0xe5   :  { %v1209_v14 = vpop.f32.mrf.mxu0 }
  0xe6   :  { %v1273_v15 = vpop.f32.mrf.mxu1  ;;  %v1210_v57 = vadd.f32 %v1209_v14, %v1208_v12 }
  0xe7   :  { %v1211_v16 = vpop.f32.mrf.mxu0  ;;  %v1274_v5 = vadd.f32 %v1273_v15, %v1272_v13 }
  0xe8   :  { %v1275_v17 = vpop.f32.mrf.mxu1  ;;  %v620_v63 = vadd.f32 %v1210_v57, %v1742_v59 }
  0xe9   :  { %v1212_v18 = vpop.f32.mrf.mxu0 }
  0xea   :  { %v1276_v19 = vpop.f32.mrf.mxu1  ;;  %v1213_v1 = vadd.f32 %v1212_v18, %v1211_v16  ;;  %v1747_v11 = vadd.f32 %v1274_v5, %v620_v63 }
  0xeb   :  { %v1214_v20 = vpop.f32.mrf.mxu0  ;;  %v1277_v14 = vadd.f32 %v1276_v19, %v1275_v17 }
  0xec   :  { %v1278_v21 = vpop.f32.mrf.mxu1  ;;  %v623_v12 = vadd.f32 %v1213_v1, %v1742_v59 }
  0xed   :  { %v1215_v22 = vpop.f32.mrf.mxu0 }
  0xee   :  { %v1279_v23 = vpop.f32.mrf.mxu1  ;;  %v1216_v2 = vadd.f32 %v1215_v22, %v1214_v20 }
  0xef   :  { %v1217_v24 = vpop.f32.mrf.mxu0  ;;  %v1280_v18 = vadd.f32 %v1279_v23, %v1278_v21 }
  0xf0   :  { %v1281_v25 = vpop.f32.mrf.mxu1 }
  0xf1   :  { %v1218_v26 = vpop.f32.mrf.mxu0 }
  0xf2   :  { %v1282_v27 = vpop.f32.mrf.mxu1  ;;  %v1219_v3 = vadd.f32 %v1218_v26, %v1217_v24 }
  0xf3   :  { %v1220_v28 = vpop.f32.mrf.mxu0  ;;  %v1283_v20 = vadd.f32 %v1282_v27, %v1281_v25  ;;  %v1755_v25 = vadd.f32 %v1277_v14, %v623_v12 }
  0xf4   :  { %v1717_v29 = vpop.f32.mrf.mxu1  ;;  %v631_v57 = vadd.f32 %v1219_v3, %v1742_v59 }
  0xf5   :  { %v1221_v30 = vpop.f32.mrf.mxu0 }
  0xf6   :  { %v1285_v31 = vpop.f32.mrf.mxu1  ;;  %v1222_v6 = vadd.f32 %v1221_v30, %v1220_v28  ;;  %v728_v23 = vadd.f32 %v1283_v20, %v631_v57 }
  0xf7   :  { %v1223_v32 = vpop.f32.mrf.mxu0 }
  0xf8   :  { %v1719_v33 = vpop.f32.mrf.mxu1  ;;  %v636_v13 = vadd.f32 %v1222_v6, %v1742_v59 }
  0xf9   :  { %v1224_v34 = vpop.f32.mrf.mxu0 }
  0xfa   :  { %v1721_v35 = vpop.f32.mrf.mxu1  ;;  %v1225_v24 = vadd.f32 %v1224_v34, %v1223_v32 }
  0xfb   :  { %v1226_v36 = vpop.f32.mrf.mxu0  ;;  %v1759_v27 = vadd.f32 %v1721_v35, %v1719_v33 }
  0xfc   :  { %v1290_v37 = vpop.f32.mrf.mxu1 }
  0xfd   :  { %v1227_v38 = vpop.f32.mrf.mxu0 }
  0xfe   :  { %v1291_v39 = vpop.f32.mrf.mxu1  ;;  %v1228_v8 = vadd.f32 %v1227_v38, %v1226_v36  ;;  %v1286_v38 = vadd.f32 %v1285_v31, %v1717_v29  ;;  %v1765_v29 = vadd.f32 %v1225_v24, %v1742_v59 }
  0xff   :  { %v1229_v40 = vpop.f32.mrf.mxu0 }
 0x100   :  { %v1723_v41 = vpop.f32.mrf.mxu1  ;;  %v644_v26 = vadd.f32 %v1228_v8, %v1742_v59 }
 0x101   :  { %v1230_v42 = vpop.f32.mrf.mxu0 }
 0x102   :  { %v1725_v43 = vpop.f32.mrf.mxu1  ;;  %v1231_v15 = vadd.f32 %v1230_v42, %v1229_v40  ;;  %v1762_v42 = vadd.f32 %v1286_v38, %v636_v13 }
 0x103   :  { %v1232_v44 = vpop.f32.mrf.mxu0  ;;  %v1295_v33 = vadd.f32 %v1725_v43, %v1723_v41 }
 0x104   :  { %v1727_v45 = vpop.f32.mrf.mxu1  ;;  %v647_v32 = vadd.f32 %v1231_v15, %v1742_v59 }
 0x105   :  { %v1233_v46 = vpop.f32.mrf.mxu0 }
 0x106   :  { %v1729_v47 = vpop.f32.mrf.mxu1  ;;  %v1234_v28 = vadd.f32 %v1233_v46, %v1232_v44  ;;  %v1783_v6 = vadd.f32 %v1295_v33, %v647_v32 }
 0x107   :  { %v1235_v48 = vpop.f32.mrf.mxu0 }
 0x108   :  { %v1731_v49 = vpop.f32.mrf.mxu1  ;;  %v652_v31 = vadd.f32 %v1234_v28, %v1742_v59 }
 0x109   :  { %v1236_v50 = vpop.f32.mrf.mxu0 }
 0x10a   :  { %v1733_v51 = vpop.f32.mrf.mxu1  ;;  %v1237_v17 = vadd.f32 %v1236_v50, %v1235_v48 }
 0x10b   :  { %v1238_v52 = vpop.f32.mrf.mxu0 }
 0x10c   :  { %v1735_v53 = vpop.f32.mrf.mxu1  ;;  %v655_v35 = vadd.f32 %v1237_v17, %v1742_v59 }
 0x10d   :  { %v1239_v54 = vpop.f32.mrf.mxu0 }
 0x10e   :  { %v1303_v55 = vpop.f32.mrf.mxu1  ;;  %v1240_v30 = vadd.f32 %v1239_v54, %v1238_v52  ;;  %v1298_v52 = vadd.f32 %v1729_v47, %v1727_v45 }
 0x10f   :  { %v1241_v56 = vpop.f32.mrf.mxu0  ;;  %v1304_v54 = vadd.f32 %v1303_v55, %v1735_v53 }
 0x110   :  { %v1737_v58 = vpop.f32.mrf.mxu1  ;;  %v749_v45 = vadd.f32 %v1298_v52, %v652_v31 }
 0x111   :  { %1890 = vst [vmem:[#allocation2_spill] sm:$0xff] %v1737_v58  ;;  %v1242_v60 = vpop.f32.mrf.mxu0  ;;  %v628_v58 = vadd.f32 %v1216_v2, %v1742_v59  ;;  %v1292_v2 = vadd.f32 %v1291_v39, %v1290_v37  ;;  %v660_v37 = vadd.f32 %v1240_v30, %v1742_v59 }
 0x112   :  { %v1306_v61 = vpop.f32.mrf.mxu1  ;;  %v1243_v19 = vadd.f32 %v1242_v60, %v1241_v56 }
 0x113   :  { %v1244_v62 = vpop.f32.mrf.mxu0  ;;  %v725_v21 = vadd.f32 %v1280_v18, %v628_v58  ;;  %v1769_v44 = vadd.f32 %v1292_v2, %v644_v26  ;;  %v757_v57 = vadd.f32 %v1304_v54, %v660_v37 }
 0x114   :  { %v1308_v0 = vpop.f32.mrf.mxu1  ;;  %v663_v46 = vadd.f32 %v1243_v19, %v1742_v59 }
 0x115   :  { %v1245_v4 = vpop.f32.mrf.mxu0 }
 0x116   :  { %v1309_v7 = vpop.f32.mrf.mxu1  ;;  %v1246_v63 = vadd.f32 %v1245_v4, %v1244_v62  ;;  %v1301_v62 = vadd.f32 %v1733_v51, %v1731_v49 }
 0x117   :  { %v1247_v9 = vpop.f32.mrf.mxu0  ;;  %v1310_v4 = vadd.f32 %v1309_v7, %v1308_v0 }
 0x118   :  { %v1745_v10 = vpop.f32.mrf.mxu1  ;;  %v668_v48 = vadd.f32 %v1246_v63, %v1742_v59  ;;  %v1891_v41 = vld [vmem:[#allocation2_spill] sm:$0xff] }
 0x119   :  { %v1248_v16 = vpop.f32.mrf.mxu0  ;;  %v1307_v43 = vadd.f32 %v1306_v61, %v1891_v41 }
 0x11a   :  { %v1312_v22 = vpop.f32.mrf.mxu1  ;;  %v1249_v56 = vadd.f32 %v1248_v16, %v1247_v9  ;;  %v752_v9 = vadd.f32 %v1301_v62, %v655_v35  ;;  %v1785_v16 = vadd.f32 %v1310_v4, %v668_v48 }
 0x11b   :  { %v1250_v36 = vpop.f32.mrf.mxu0  ;;  %v760_v55 = vadd.f32 %v1307_v43, %v663_v46  ;;  %v1791_v49 = vadd.f32 %v1312_v22, %v1745_v10 }
 0x11c   :  { %v1314_v1 = vpop.f32.mrf.mxu1  ;;  %v1788_v18 = vadd.f32 %v1249_v56, %v1742_v59 }
 0x11d   :  { %v1251_v3 = vpop.f32.mrf.mxu0 }
 0x11e   :  { %v1252_v34 = vadd.f32 %v1251_v3, %v1250_v36  ;;  %v1315_v40 = vpop.f32.mrf.mxu1 }
 0x11f   :  { %v1253_v39 = vpop.f32.mrf.mxu0  ;;  %v1316_v8 = vadd.f32 %v1315_v40, %v1314_v1 }
 0x120   :  { %v1317_v50 = vpop.f32.mrf.mxu1  ;;  %v676_v58 = vadd.f32 %v1252_v34, %v1742_v59 }
 0x121   :  { %v1254_v60 = vpop.f32.mrf.mxu0 }
 0x122   :  { %v1318_v5 = vpop.f32.mrf.mxu1  ;;  %v1255_v12 = vadd.f32 %v1254_v60, %v1253_v39  ;;  %v773_v0 = vadd.f32 %v1316_v8, %v676_v58 }
 0x123   :  { %v1342_v14 = vpop.f32.mrf.mxu0  ;;  %v1793_v7 = vadd.f32 %v1318_v5, %v1317_v50 }
 0x124   :  { %v822_v47 = vadd.f32 %v1342_v14, %v725_v21  ;;  %v1350_v53 = vpop.f32.mrf.mxu1  ;;  %v1800_v24 = vadd.f32 %v1255_v12, %v1742_v59  ;;  %v768_v14 = vadd.f32 %v1791_v49, %v1788_v18 }
 0x125   :  { %v854_v51 = vadd.f32 %v1350_v53, %v757_v57  ;;  %v813_v61 = vpop.f32.mrf.mxu0 }
 0x126   :  { %878 = vst [vmem:[%s1888_s3 + $0x10] sm:$0xff] %v822_v47  ;;  %vm894_vm1 = vcmp.ge.f32.partialorder %v822_v47, 0.0  ;;  %v910_v20 = vmul.f32 0.01, %v822_v47  ;;  %v814_v13 = vadd.f32 %v813_v61, %v1747_v11  ;;  %v845_v15 = vpop.f32.mrf.mxu1 }
 0x127   :  { %886 = vst [vmem:[%s1888_s3 + $0x50] sm:$0xff] %v854_v51  ;;  %vm902_vm2 = vcmp.ge.f32.partialorder %v854_v51, 0.0  ;;  %v918_v10 = vmul.f32 0.01, %v854_v51  ;;  %v846_v22 = vadd.f32 %v845_v15, %v749_v45  ;;  %v1343_v26 = vpop.f32.mrf.mxu0 }
 0x128   :  { %v926_v28 = vsel %vm894_vm1, %v822_v47, %v910_v20  ;;  %876 = vst [vmem:[%s1888_s3] sm:$0xff] %v814_v13  ;;  %vm892_vm3 = vcmp.ge.f32.partialorder %v814_v13, 0.0  ;;  %v908_v30 = vmul.f32 0.01, %v814_v13  ;;  %v825_v11 = vadd.f32 %v1343_v26, %v728_v23  ;;  %v1351_v36 = vpop.f32.mrf.mxu1 }
 0x129   :  { %v934_v38 = vsel %vm902_vm2, %v854_v51, %v918_v10  ;;  %884 = vst [vmem:[%s1888_s3 + $0x40] sm:$0xff] %v846_v22  ;;  %vm900_vm4 = vcmp.ge.f32.partialorder %v846_v22, 0.0  ;;  %v916_v59 = vmul.f32 0.01, %v846_v22  ;;  %v857_v17 = vadd.f32 %v1351_v36, %v760_v55  ;;  %v816_v19 = vpop.f32.mrf.mxu0 }
 0x12a   :  { %v924_v63 = vsel %vm892_vm3, %v814_v13, %v908_v30  ;;  %879 = vst [vmem:[%s1888_s3 + $0x18] sm:$0xff] %v825_v11  ;;  %vm895_vm5 = vcmp.ge.f32.partialorder %v825_v11, 0.0  ;;  %v911_v1 = vmul.f32 0.01, %v825_v11  ;;  %v817_v2 = vadd.f32 %v816_v19, %v1755_v25  ;;  %v848_v3 = vpop.f32.mrf.mxu1 }
 0x12b   :  { %v932_v21 = vsel %vm900_vm4, %v846_v22, %v916_v59  ;;  %887 = vst [vmem:[%s1888_s3 + $0x58] sm:$0xff] %v857_v17  ;;  %vm903_vm6 = vcmp.ge.f32.partialorder %v857_v17, 0.0  ;;  %v919_v23 = vmul.f32 0.01, %v857_v17  ;;  %v849_v32 = vadd.f32 %v848_v3, %v752_v9  ;;  %v1346_v34 = vpop.f32.mrf.mxu0 }
 0x12c   :  { %v927_v40 = vsel %vm895_vm5, %v825_v11, %v911_v1  ;;  %877 = vst [vmem:[%s1888_s3 + $0x8] sm:$0xff] %v817_v2  ;;  %vm893_vm7 = vcmp.ge.f32.partialorder %v817_v2, 0.0  ;;  %v909_v31 = vmul.f32 0.01, %v817_v2  ;;  %v838_v37 = vadd.f32 %v1346_v34, %v1769_v44  ;;  %v1354_v25 = vpop.f32.mrf.mxu1 }
 0x12d   :  { %v1153_v39 = vpack.c.bf16 %v927_v40, %v926_v28  ;;  %v935_v33 = vsel %vm903_vm6, %v857_v17, %v919_v23  ;;  %885 = vst [vmem:[%s1888_s3 + $0x48] sm:$0xff] %v849_v32  ;;  %vm901_vm8 = vcmp.ge.f32.partialorder %v849_v32, 0.0  ;;  %v917_v35 = vmul.f32 0.01, %v849_v32  ;;  %v829_v46 = vpop.f32.mrf.mxu0 }
 0x12e   :  { %v1173_v48 = vpack.c.bf16 %v935_v33, %v934_v38  ;;  %v925_v50 = vsel %vm893_vm7, %v817_v2, %v909_v31  ;;  %882 = vst [vmem:[%s1888_s3 + $0x30] sm:$0xff] %v838_v37  ;;  %vm898_vm9 = vcmp.ge.f32.partialorder %v838_v37, 0.0  ;;  %v914_v52 = vmul.f32 0.01, %v838_v37  ;;  %v861_v54 = vpop.f32.mrf.mxu1 }
 0x12f   :  { %1185 = vst [vmem:[%s1889_s4 + $0x8] sm:$0xff] %v1153_v39   ;;  %v1148_v44 = vpack.c.bf16 %v925_v50, %v924_v63  ;;  %v933_v56 = vsel %vm901_vm8, %v849_v32, %v917_v35  ;;  %v870_v58 = vadd.f32 %v1354_v25, %v773_v0  ;;  %v830_v60 = vadd.f32 %v829_v46, %v1762_v42  ;;  %v1347_v62 = vpop.f32.mrf.mxu0 }
 0x130   :  { %1189 = vst [vmem:[%s1889_s4 + $0x28] sm:$0xff] %v1173_v48   ;;  %v1168_v41 = vpack.c.bf16 %v933_v56, %v932_v21  ;;  %v862_v43 = vadd.f32 %v861_v54, %v1785_v16  ;;  %v841_v4 = vadd.f32 %v1347_v62, %v1783_v6  ;;  %v1355_v5 = vpop.f32.mrf.mxu1  ;;  %v930_v8 = vsel %vm898_vm9, %v838_v37, %v914_v52 }
 0x131   :  { %1149 = vst [vmem:[%s1889_s4] sm:$0xff] %v1148_v44   ;;  %890 = vst [vmem:[%s1888_s3 + $0x70] sm:$0xff] %v870_v58  ;;  %v776_v42 = vadd.f32 %v1793_v7, %v1800_v24  ;;  %v736_v6 = vadd.f32 %v1759_v27, %v1765_v29  ;;  %v832_v12 = vpop.f32.mrf.mxu0  ;;  %vm906_vm10 = vcmp.ge.f32.partialorder %v870_v58, 0.0  ;;  %v922_v57 = vmul.f32 0.01, %v870_v58 }
 0x132   :  { %880 = vst [vmem:[%s1888_s3 + $0x20] sm:$0xff] %v830_v60  ;;  %1188 = vst [vmem:[%s1889_s4 + $0x20] sm:$0xff] %v1168_v41   ;;  %vm899_vm11 = vcmp.ge.f32.partialorder %v841_v4, 0.0  ;;  %v915_v27 = vmul.f32 0.01, %v841_v4  ;;  %v864_v29 = vpop.f32.mrf.mxu1  ;;  %vm896_vm12 = vcmp.ge.f32.partialorder %v830_v60, 0.0 }
 0x133   :  { %888 = vst [vmem:[%s1888_s3 + $0x60] sm:$0xff] %v862_v43  ;;  %883 = vst [vmem:[%s1888_s3 + $0x38] sm:$0xff] %v841_v4  ;;  %v912_v45 = vmul.f32 0.01, %v830_v60  ;;  %v873_v47 = vadd.f32 %v1355_v5, %v776_v42  ;;  %v833_v53 = vadd.f32 %v832_v12, %v736_v6  ;;  %vm904_vm13 = vcmp.ge.f32.partialorder %v862_v43, 0.0 }
 0x134   :  { %v920_v55 = vmul.f32 0.01, %v862_v43  ;;  %v931_v9 = vsel %vm899_vm11, %v841_v4, %v915_v27  ;;  %v865_v16 = vadd.f32 %v864_v29, %v768_v14  ;;  %v938_v0 = vsel %vm906_vm10, %v870_v58, %v922_v57 }
 0x135   :  { %v1163_v18 = vpack.c.bf16 %v931_v9, %v930_v8  ;;  %891 = vst [vmem:[%s1888_s3 + $0x78] sm:$0xff] %v873_v47  ;;  %vm907_vm14 = vcmp.ge.f32.partialorder %v873_v47, 0.0  ;;  %v923_v49 = vmul.f32 0.01, %v873_v47  ;;  %881 = vst [vmem:[%s1888_s3 + $0x28] sm:$0xff] %v833_v53  ;;  %vm897_vm15 = vcmp.ge.f32.partialorder %v833_v53, 0.0 }
 0x136   :  { %v913_v51 = vmul.f32 0.01, %v833_v53  ;;  %889 = vst [vmem:[%s1888_s3 + $0x68] sm:$0xff] %v865_v16  ;;  %vm905_vm0 = vcmp.ge.f32.partialorder %v865_v16, 0.0  ;;  %v921_v61 = vmul.f32 0.01, %v865_v16  ;;  %v928_v7 = vsel %vm896_vm12, %v830_v60, %v912_v45 }
 0x137   :  { %1187 = vst [vmem:[%s1889_s4 + $0x18] sm:$0xff] %v1163_v18   ;;  %v939_v20 = vsel %vm907_vm14, %v873_v47, %v923_v49  ;;  %v936_v13 = vsel %vm904_vm13, %v862_v43, %v920_v55 }
 0x138   :  { %v1183_v15 = vpack.c.bf16 %v939_v20, %v938_v0  ;;  %v929_v24 = vsel %vm897_vm15, %v833_v53, %v913_v51  ;;  %v937_v10 = vsel %vm905_vm0, %v865_v16, %v921_v61 }
 0x139   :  { %v1158_v22 = vpack.c.bf16 %v929_v24, %v928_v7  ;;  %v1178_v26 = vpack.c.bf16 %v937_v10, %v936_v13 }
 0x13a   :  { %1191 = vst [vmem:[%s1889_s4 + $0x38] sm:$0xff] %v1183_v15  }
 0x13b   :  { %1186 = vst [vmem:[%s1889_s4 + $0x10] sm:$0xff] %v1158_v22   ;;  %1190 = vst [vmem:[%s1889_s4 + $0x30] sm:$0xff] %v1178_v26  }

// kernel: vid_forward.12
= control target key start
LH: loop header
LB: loop body
LE: loop exit
PB: predicated region body
PF: predicated region fallthrough
CT: control target
= control target key end

     0   :  { %s2320_s1 = inlined_call_operand.vmem [shape: bf16[1152,256], index: 1, kind: input, shape index: {}]   ;;  %s2321_s0 = inlined_call_operand.vmem [shape: bf16[32,1152], index: 0, kind: input, shape index: {}]   ;;  %s2322_s2 = inlined_call_operand.vmem [shape: f32[1,256], index: 2, kind: input, shape index: {}]   ;;  %s2323_s3 = inlined_call_operand.vmem [shape: f32[32,256], index: 3, kind: output, shape index: {0}]   ;;  %s2324_s4 = inlined_call_operand.vmem [shape: bf16[32,256], index: 4, kind: output, shape index: {1}]  }
   0x1   :  { %v1525_v0 = vld [vmem:[%s2320_s1 + $0x74] ss:$8 sps:$4 sm:$0xff]   ;;  %v1529_v2 = vld [vmem:[%s2320_s1 + $0x70] ss:$8 sps:$4 sm:$0xff]   ;;  %v1531_v4 = vld [vmem:[%s2320_s1 + $0x64] ss:$8 sps:$4 sm:$0xff]  }
   0x2   :  { %v1527_v1 = vld [vmem:[%s2320_s1 + $0x174] ss:$8 sps:$4 sm:$0xff]   ;;  %1005 = vmatprep.subr.bf16.mxu0 %v1525_v0  ;;  %v1530_v3 = vld [vmem:[%s2320_s1 + $0x170] ss:$8 sps:$4 sm:$0xff]   ;;  %v1533_v5 = vld [vmem:[%s2320_s1 + $0x164] ss:$8 sps:$4 sm:$0xff]  }
   0x3   :  { %1058 = vmatprep.subr.bf16.mxu1 %v1527_v1  ;;  %1006 = vmatpush1.bf16.msra.mxu0 %v1529_v2  ;;  %v1535_v6 = vld [vmem:[%s2320_s1 + $0x60] ss:$8 sps:$4 sm:$0xff]   ;;  %v1537_v8 = vld [vmem:[%s2320_s1 + $0x54] ss:$8 sps:$4 sm:$0xff]   ;;  %v1541_v10 = vld [vmem:[%s2320_s1 + $0x50] ss:$8 sps:$4 sm:$0xff]  }
   0x4   :  { %1059 = vmatpush1.bf16.msra.mxu1 %v1530_v3  ;;  %1007 = vmatprep.subr.bf16.mxu0 %v1531_v4  ;;  %v1536_v7 = vld [vmem:[%s2320_s1 + $0x160] ss:$8 sps:$4 sm:$0xff]   ;;  %v1539_v9 = vld [vmem:[%s2320_s1 + $0x154] ss:$8 sps:$4 sm:$0xff]   ;;  %v1542_v11 = vld [vmem:[%s2320_s1 + $0x150] ss:$8 sps:$4 sm:$0xff]  }
   0x5   :  { %1060 = vmatprep.subr.bf16.mxu1 %v1533_v5  ;;  %v1543_v12 = vld [vmem:[%s2320_s1 + $0x44] ss:$8 sps:$4 sm:$0xff]   ;;  %v1547_v14 = vld [vmem:[%s2320_s1 + $0x40] ss:$8 sps:$4 sm:$0xff]   ;;  %v1549_v16 = vld [vmem:[%s2320_s1 + $0x34] ss:$8 sps:$4 sm:$0xff]  }
   0x6   :  { %v1545_v13 = vld [vmem:[%s2320_s1 + $0x144] ss:$8 sps:$4 sm:$0xff]   ;;  %v1548_v15 = vld [vmem:[%s2320_s1 + $0x140] ss:$8 sps:$4 sm:$0xff]   ;;  %v1551_v17 = vld [vmem:[%s2320_s1 + $0x134] ss:$8 sps:$4 sm:$0xff]  }
   0x7   :  { %1008 = vmatpush1.bf16.msra.mxu0 %v1535_v6  ;;  %v1553_v18 = vld [vmem:[%s2320_s1 + $0x30] ss:$8 sps:$4 sm:$0xff]   ;;  %v1555_v20 = vld [vmem:[%s2320_s1 + $0x24] ss:$8 sps:$4 sm:$0xff]   ;;  %v1559_v22 = vld [vmem:[%s2320_s1 + $0x20] ss:$8 sps:$4 sm:$0xff]  }
   0x8   :  { %1061 = vmatpush1.bf16.msra.mxu1 %v1536_v7  ;;  %1009 = vmatprep.subr.bf16.mxu0 %v1537_v8  ;;  %v1554_v19 = vld [vmem:[%s2320_s1 + $0x130] ss:$8 sps:$4 sm:$0xff]   ;;  %v1557_v21 = vld [vmem:[%s2320_s1 + $0x124] ss:$8 sps:$4 sm:$0xff]   ;;  %v1560_v23 = vld [vmem:[%s2320_s1 + $0x120] ss:$8 sps:$4 sm:$0xff]  }
   0x9   :  { %1062 = vmatprep.subr.bf16.mxu1 %v1539_v9  ;;  %v1561_v24 = vld [vmem:[%s2320_s1 + $0x14] ss:$8 sps:$4 sm:$0xff]   ;;  %v1565_v26 = vld [vmem:[%s2320_s1 + $0x10] ss:$8 sps:$4 sm:$0xff]   ;;  %v1567_v28 = vld [vmem:[%s2320_s1 + $0x4] ss:$8 sps:$4 sm:$0xff]  }
   0xa   :  { %v1563_v25 = vld [vmem:[%s2320_s1 + $0x114] ss:$8 sps:$4 sm:$0xff]   ;;  %v1566_v27 = vld [vmem:[%s2320_s1 + $0x110] ss:$8 sps:$4 sm:$0xff]   ;;  %v1569_v29 = vld [vmem:[%s2320_s1 + $0x104] ss:$8 sps:$4 sm:$0xff]  }
   0xb   :  { %1010 = vmatpush1.bf16.msra.mxu0 %v1541_v10  ;;  %v1571_v30 = vld [vmem:[%s2320_s1] ss:$8 sps:$4 sm:$0xff]   ;;  %v1573_v32 = vld [vmem:[%s2320_s1 + $0xf4] ss:$8 sps:$4 sm:$0xff]   ;;  %v1577_v34 = vld [vmem:[%s2320_s1 + $0xf0] ss:$8 sps:$4 sm:$0xff]  }
   0xc   :  { %1063 = vmatpush1.bf16.msra.mxu1 %v1542_v11  ;;  %1011 = vmatprep.subr.bf16.mxu0 %v1543_v12  ;;  %v1572_v31 = vld [vmem:[%s2320_s1 + $0x100] ss:$8 sps:$4 sm:$0xff]   ;;  %v1575_v33 = vld [vmem:[%s2320_s1 + $0x1f4] ss:$8 sps:$4 sm:$0xff]   ;;  %v1578_v35 = vld [vmem:[%s2320_s1 + $0x1f0] ss:$8 sps:$4 sm:$0xff]  }
   0xd   :  { %1064 = vmatprep.subr.bf16.mxu1 %v1545_v13  ;;  %v1579_v36 = vld [vmem:[%s2320_s1 + $0xe4] ss:$8 sps:$4 sm:$0xff]   ;;  %v1583_v38 = vld [vmem:[%s2320_s1 + $0xe0] ss:$8 sps:$4 sm:$0xff]   ;;  %v1585_v40 = vld [vmem:[%s2320_s1 + $0xd4] ss:$8 sps:$4 sm:$0xff]  }
   0xe   :  { %v1581_v37 = vld [vmem:[%s2320_s1 + $0x1e4] ss:$8 sps:$4 sm:$0xff]   ;;  %v1584_v39 = vld [vmem:[%s2320_s1 + $0x1e0] ss:$8 sps:$4 sm:$0xff]   ;;  %v1587_v41 = vld [vmem:[%s2320_s1 + $0x1d4] ss:$8 sps:$4 sm:$0xff]  }
   0xf   :  { %1012 = vmatpush1.bf16.msra.mxu0 %v1547_v14  ;;  %v1589_v42 = vld [vmem:[%s2320_s1 + $0xd0] ss:$8 sps:$4 sm:$0xff]   ;;  %v1591_v44 = vld [vmem:[%s2320_s1 + $0xc4] ss:$8 sps:$4 sm:$0xff]   ;;  %v1595_v46 = vld [vmem:[%s2320_s1 + $0xc0] ss:$8 sps:$4 sm:$0xff]  }
  0x10   :  { %1065 = vmatpush1.bf16.msra.mxu1 %v1548_v15  ;;  %1013 = vmatprep.subr.bf16.mxu0 %v1549_v16  ;;  %v1590_v43 = vld [vmem:[%s2320_s1 + $0x1d0] ss:$8 sps:$4 sm:$0xff]   ;;  %v1593_v45 = vld [vmem:[%s2320_s1 + $0x1c4] ss:$8 sps:$4 sm:$0xff]   ;;  %v1596_v47 = vld [vmem:[%s2320_s1 + $0x1c0] ss:$8 sps:$4 sm:$0xff]  }
  0x11   :  { %1066 = vmatprep.subr.bf16.mxu1 %v1551_v17  ;;  %v1597_v48 = vld [vmem:[%s2320_s1 + $0xb4] ss:$8 sps:$4 sm:$0xff]   ;;  %v1623_v49 = vld [vmem:[%s2321_s0 + $0x4] ss:$36 sps:$4 sm:$0xff]   ;;  %v1626_v51 = vld [vmem:[%s2321_s0 + $0xc] ss:$36 sps:$4 sm:$0xff]  }
  0x12   :  { %v1599_v50 = vld [vmem:[%s2320_s1 + $0x1b4] ss:$8 sps:$4 sm:$0xff]   ;;  %1037 = vmatprep.mubr.bf16.mxu0 %v1623_v49  ;;  %v1601_v52 = vld [vmem:[%s2320_s1 + $0xb0] ss:$8 sps:$4 sm:$0xff]   ;;  %1090 = vmatprep.mubr.bf16.mxu1 %v1626_v51  ;;  %v1603_v54 = vld [vmem:[%s2320_s1 + $0xa4] ss:$8 sps:$4 sm:$0xff]  }
  0x13   :  { %1014 = vmatpush1.bf16.msra.mxu0 %v1553_v18  ;;  %v1602_v53 = vld [vmem:[%s2320_s1 + $0x1b0] ss:$8 sps:$4 sm:$0xff]   ;;  %v1605_v55 = vld [vmem:[%s2320_s1 + $0x1a4] ss:$8 sps:$4 sm:$0xff]   ;;  %v1607_v56 = vld [vmem:[%s2320_s1 + $0xa0] ss:$8 sps:$4 sm:$0xff]  }
  0x14   :  { %1067 = vmatpush1.bf16.msra.mxu1 %v1554_v19  ;;  %1015 = vmatprep.subr.bf16.mxu0 %v1555_v20  ;;  %v1608_v57 = vld [vmem:[%s2320_s1 + $0x1a0] ss:$8 sps:$4 sm:$0xff]   ;;  %v1609_v58 = vld [vmem:[%s2320_s1 + $0x94] ss:$8 sps:$4 sm:$0xff]   ;;  %v1613_v60 = vld [vmem:[%s2320_s1 + $0x90] ss:$8 sps:$4 sm:$0xff]  }
  0x15   :  { %1068 = vmatprep.subr.bf16.mxu1 %v1557_v21  ;;  %v1611_v59 = vld [vmem:[%s2320_s1 + $0x194] ss:$8 sps:$4 sm:$0xff]   ;;  %v1614_v61 = vld [vmem:[%s2320_s1 + $0x190] ss:$8 sps:$4 sm:$0xff]   ;;  %v1615_v62 = vld [vmem:[%s2320_s1 + $0x84] ss:$8 sps:$4 sm:$0xff]  }
  0x16   :  { %v1617_v63 = vld [vmem:[%s2320_s1 + $0x184] ss:$8 sps:$4 sm:$0xff]   ;;  %v1619_v0 = vld [vmem:[%s2320_s1 + $0x80] ss:$8 sps:$4 sm:$0xff]   ;;  %v1629_v2 = vld [vmem:[%s2320_s1 + $0x274] ss:$8 sps:$4 sm:$0xff]  }
  0x17   :  { %1016 = vmatpush1.bf16.msra.mxu0 %v1559_v22  ;;  %v1620_v1 = vld [vmem:[%s2320_s1 + $0x180] ss:$8 sps:$4 sm:$0xff]   ;;  %v1632_v3 = vld [vmem:[%s2320_s1 + $0x374] ss:$8 sps:$4 sm:$0xff]   ;;  %v1627_v6 = vld [vmem:[%s2320_s1 + $0x270] ss:$8 sps:$4 sm:$0xff]  }
  0x18   :  { %1069 = vmatpush1.bf16.msra.mxu1 %v1560_v23  ;;  %1017 = vmatprep.subr.bf16.mxu0 %v1561_v24  ;;  %v1621_v4 = vld [vmem:[%s2321_s0] ss:$36 sps:$4 sm:$0xff]   ;;  %v1624_v5 = vld [vmem:[%s2321_s0 + $0x8] ss:$36 sps:$4 sm:$0xff]   ;;  %v1630_v7 = vld [vmem:[%s2320_s1 + $0x370] ss:$8 sps:$4 sm:$0xff]  }
  0x19   :  { %1070 = vmatprep.subr.bf16.mxu1 %v1563_v25  ;;  %v1635_v8 = vld [vmem:[%s2320_s1 + $0x264] ss:$8 sps:$4 sm:$0xff]   ;;  %v1633_v10 = vld [vmem:[%s2320_s1 + $0x260] ss:$8 sps:$4 sm:$0xff]   ;;  %v1641_v12 = vld [vmem:[%s2320_s1 + $0x254] ss:$8 sps:$4 sm:$0xff]  }
  0x1a   :  { %v1638_v9 = vld [vmem:[%s2320_s1 + $0x364] ss:$8 sps:$4 sm:$0xff]   ;;  %v1636_v11 = vld [vmem:[%s2320_s1 + $0x360] ss:$8 sps:$4 sm:$0xff]   ;;  %v1644_v13 = vld [vmem:[%s2320_s1 + $0x354] ss:$8 sps:$4 sm:$0xff]  }
  0x1b   :  { %1018 = vmatpush1.bf16.msra.mxu0 %v1565_v26  ;;  %v1639_v14 = vld [vmem:[%s2320_s1 + $0x250] ss:$8 sps:$4 sm:$0xff]   ;;  %v1647_v16 = vld [vmem:[%s2320_s1 + $0x244] ss:$8 sps:$4 sm:$0xff]   ;;  %v1645_v18 = vld [vmem:[%s2320_s1 + $0x240] ss:$8 sps:$4 sm:$0xff]  }
  0x1c   :  { %1071 = vmatpush1.bf16.msra.mxu1 %v1566_v27  ;;  %1019 = vmatprep.subr.bf16.mxu0 %v1567_v28  ;;  %v1642_v15 = vld [vmem:[%s2320_s1 + $0x350] ss:$8 sps:$4 sm:$0xff]   ;;  %v1650_v17 = vld [vmem:[%s2320_s1 + $0x344] ss:$8 sps:$4 sm:$0xff]   ;;  %v1648_v19 = vld [vmem:[%s2320_s1 + $0x340] ss:$8 sps:$4 sm:$0xff]  }
  0x1d   :  { %1072 = vmatprep.subr.bf16.mxu1 %v1569_v29  ;;  %v1653_v20 = vld [vmem:[%s2320_s1 + $0x234] ss:$8 sps:$4 sm:$0xff]   ;;  %v1699_v22 = vld [vmem:[%s2321_s0 + $0x4c] ss:$36 sps:$4 sm:$0xff]   ;;  %v1657_v28 = vld [vmem:[%s2320_s1 + $0x220] ss:$8 sps:$4 sm:$0xff]  }
  0x1e   :  { %v1656_v21 = vld [vmem:[%s2320_s1 + $0x334] ss:$8 sps:$4 sm:$0xff]   ;;  %v1651_v23 = vld [vmem:[%s2320_s1 + $0x230] ss:$8 sps:$4 sm:$0xff]   ;;  %v1659_v25 = vld [vmem:[%s2320_s1 + $0x224] ss:$8 sps:$4 sm:$0xff]  }
  0x1f   :  { %1020 = vmatpush1.bf16.msra.mxu0 %v1571_v30  ;;  %v1654_v24 = vld [vmem:[%s2320_s1 + $0x330] ss:$8 sps:$4 sm:$0xff]   ;;  %v1662_v26 = vld [vmem:[%s2320_s1 + $0x324] ss:$8 sps:$4 sm:$0xff]   ;;  %v1660_v30 = vld [vmem:[%s2320_s1 + $0x320] ss:$8 sps:$4 sm:$0xff]  }
  0x20   :  { %1073 = vmatpush1.bf16.msra.mxu1 %v1572_v31  ;;  %1021 = vmatprep.subr.bf16.mxu0 %v1573_v32  ;;  %v1707_v27 = vld [vmem:[%s2321_s0 + $0x48] ss:$36 sps:$4 sm:$0xff]   ;;  %v1708_v29 = vld [vmem:[%s2321_s0 + $0x54] ss:$36 sps:$4 sm:$0xff]  }
  0x21   :  { %1074 = vmatprep.subr.bf16.mxu1 %v1575_v33  ;;  %v1710_v31 = vld [vmem:[%s2321_s0 + $0x50] ss:$36 sps:$4 sm:$0xff]   ;;  %v1684_v49 = vld [vmem:[%s2320_s1 + $0x3e0] ss:$8 sps:$4 sm:$0xff]  }
  0x22   :  { %v1665_v32 = vld [vmem:[%s2320_s1 + $0x214] ss:$8 sps:$4 sm:$0xff]  }
  0x23   :  { %1022 = vmatpush2.bf16.msra.mxu0 %v1577_v34  ;;  %v1668_v33 = vld [vmem:[%s2320_s1 + $0x314] ss:$8 sps:$4 sm:$0xff]   ;;  %v1663_v34 = vld [vmem:[%s2320_s1 + $0x210] ss:$8 sps:$4 sm:$0xff]  }
  0x24   :  { %1075 = vmatpush2.bf16.msra.mxu1 %v1578_v35  ;;  %1023 = vmatprep.subr.bf16.mxu0 %v1579_v36  ;;  %v1666_v35 = vld [vmem:[%s2320_s1 + $0x310] ss:$8 sps:$4 sm:$0xff]   ;;  %v1671_v36 = vld [vmem:[%s2320_s1 + $0x204] ss:$8 sps:$4 sm:$0xff]   ;;  %v1692_v51 = vld [vmem:[%s2320_s1 + $0x3d4] ss:$8 sps:$4 sm:$0xff]  }
  0x25   :  { %1076 = vmatprep.subr.bf16.mxu1 %v1581_v37  ;;  %v1674_v37 = vld [vmem:[%s2320_s1 + $0x304] ss:$8 sps:$4 sm:$0xff]  }
  0x27   :  { %1024 = vmatpush2.bf16.msra.mxu0 %v1583_v38  ;;  %v1669_v38 = vld [vmem:[%s2320_s1 + $0x200] ss:$8 sps:$4 sm:$0xff]  }
  0x28   :  { %1077 = vmatpush2.bf16.msra.mxu1 %v1584_v39  ;;  %1025 = vmatprep.subr.bf16.mxu0 %v1585_v40  ;;  %v1672_v39 = vld [vmem:[%s2320_s1 + $0x300] ss:$8 sps:$4 sm:$0xff]   ;;  %v1677_v40 = vld [vmem:[%s2320_s1 + $0x2f4] ss:$8 sps:$4 sm:$0xff]  }
  0x29   :  { %1078 = vmatprep.subr.bf16.mxu1 %v1587_v41  ;;  %v1731_v41 = vld [vmem:[%s2321_s0 + $0x14] ss:$36 sps:$4 sm:$0xff]  }
  0x2b   :  { %1026 = vmatpush2.bf16.msra.mxu0 %v1589_v42  ;;  %v1680_v42 = vld [vmem:[%s2320_s1 + $0x3f4] ss:$8 sps:$4 sm:$0xff]  }
  0x2c   :  { %1079 = vmatpush2.bf16.msra.mxu1 %v1590_v43  ;;  %1027 = vmatprep.subr.bf16.mxu0 %v1591_v44  ;;  %v1734_v43 = vld [vmem:[%s2321_s0 + $0x1c] ss:$36 sps:$4 sm:$0xff]   ;;  %v1675_v44 = vld [vmem:[%s2320_s1 + $0x2f0] ss:$8 sps:$4 sm:$0xff]  }
  0x2d   :  { %1080 = vmatprep.subr.bf16.mxu1 %v1593_v45  ;;  %v1678_v45 = vld [vmem:[%s2320_s1 + $0x3f0] ss:$8 sps:$4 sm:$0xff]  }
  0x2f   :  { %1028 = vmatpush2.bf16.msra.mxu0 %v1595_v46  ;;  %v1683_v46 = vld [vmem:[%s2320_s1 + $0x2e4] ss:$8 sps:$4 sm:$0xff]  }
  0x30   :  { %1081 = vmatpush2.bf16.msra.mxu1 %v1596_v47  ;;  %1029 = vmatprep.subr.bf16.mxu0 %v1597_v48  ;;  %v1686_v47 = vld [vmem:[%s2320_s1 + $0x3e4] ss:$8 sps:$4 sm:$0xff]   ;;  %v1681_v48 = vld [vmem:[%s2320_s1 + $0x2e0] ss:$8 sps:$4 sm:$0xff]  }
  0x31   :  { %1082 = vmatprep.subr.bf16.mxu1 %v1599_v50  ;;  %v1689_v50 = vld [vmem:[%s2320_s1 + $0x2d4] ss:$8 sps:$4 sm:$0xff]  }
  0x33   :  { %1030 = vmatpush2.bf16.msra.mxu0 %v1601_v52  ;;  %v1687_v52 = vld [vmem:[%s2320_s1 + $0x2d0] ss:$8 sps:$4 sm:$0xff]  }
  0x34   :  { %1083 = vmatpush2.bf16.msra.mxu1 %v1602_v53  ;;  %1031 = vmatprep.subr.bf16.mxu0 %v1603_v54  ;;  %v1690_v53 = vld [vmem:[%s2320_s1 + $0x3d0] ss:$8 sps:$4 sm:$0xff]   ;;  %v1695_v54 = vld [vmem:[%s2320_s1 + $0x2c4] ss:$8 sps:$4 sm:$0xff]  }
  0x35   :  { %1084 = vmatprep.subr.bf16.mxu1 %v1605_v55  ;;  %v1698_v55 = vld [vmem:[%s2320_s1 + $0x3c4] ss:$8 sps:$4 sm:$0xff]  }
  0x37   :  { %1032 = vmatpush2.bf16.msra.mxu0 %v1607_v56  ;;  %v1693_v56 = vld [vmem:[%s2320_s1 + $0x2c0] ss:$8 sps:$4 sm:$0xff]  }
  0x38   :  { %1085 = vmatpush2.bf16.msra.mxu1 %v1608_v57  ;;  %1033 = vmatprep.subr.bf16.mxu0 %v1609_v58  ;;  %v1696_v57 = vld [vmem:[%s2320_s1 + $0x3c0] ss:$8 sps:$4 sm:$0xff]   ;;  %v1703_v58 = vld [vmem:[%s2320_s1 + $0x2b4] ss:$8 sps:$4 sm:$0xff]  }
  0x39   :  { %1086 = vmatprep.subr.bf16.mxu1 %v1611_v59  ;;  %v1706_v59 = vld [vmem:[%s2320_s1 + $0x3b4] ss:$8 sps:$4 sm:$0xff]  }
  0x3b   :  { %1034 = vmatpush2.bf16.msra.mxu0 %v1613_v60  ;;  %v1701_v60 = vld [vmem:[%s2320_s1 + $0x2b0] ss:$8 sps:$4 sm:$0xff]  }
  0x3c   :  { %1087 = vmatpush2.bf16.msra.mxu1 %v1614_v61  ;;  %1035 = vmatprep.subr.bf16.mxu0 %v1615_v62  ;;  %v1704_v61 = vld [vmem:[%s2320_s1 + $0x3b0] ss:$8 sps:$4 sm:$0xff]   ;;  %v1713_v62 = vld [vmem:[%s2320_s1 + $0x2a4] ss:$8 sps:$4 sm:$0xff]  }
  0x3d   :  { %1088 = vmatprep.subr.bf16.mxu1 %v1617_v63  ;;  %v1716_v63 = vld [vmem:[%s2320_s1 + $0x3a4] ss:$8 sps:$4 sm:$0xff]  }
  0x3f   :  { %1036 = vmatpush2.bf16.msra.mxu0 %v1619_v0  ;;  %v1711_v0 = vld [vmem:[%s2320_s1 + $0x2a0] ss:$8 sps:$4 sm:$0xff]  }
  0x40   :  { %1089 = vmatpush2.bf16.msra.mxu1 %v1620_v1  ;;  %1111 = vmatprep.subr.bf16.mxu0 %v1629_v2  ;;  %v1714_v1 = vld [vmem:[%s2320_s1 + $0x3a0] ss:$8 sps:$4 sm:$0xff]   ;;  %v1719_v2 = vld [vmem:[%s2320_s1 + $0x294] ss:$8 sps:$4 sm:$0xff]  }
  0x41   :  { %1164 = vmatprep.subr.bf16.mxu1 %v1632_v3  ;;  %v1722_v3 = vld [vmem:[%s2320_s1 + $0x394] ss:$8 sps:$4 sm:$0xff]  }
  0x42   :  { %1038 = vmatmul.mubr.bf16.vlgmr.msra.gmra.mxu0 %v1621_v4  ;;  %v1717_v4 = vld [vmem:[%s2320_s1 + $0x290] ss:$8 sps:$4 sm:$0xff]  }
  0x43   :  { %1091 = vmatmul.mubr.bf16.vlgmr.msra.gmra.mxu1 %v1624_v5  ;;  %1112 = vmatpush1.bf16.msra.mxu0 %v1627_v6  ;;  %v1720_v5 = vld [vmem:[%s2320_s1 + $0x390] ss:$8 sps:$4 sm:$0xff]   ;;  %v1725_v6 = vld [vmem:[%s2320_s1 + $0x284] ss:$8 sps:$4 sm:$0xff]  }
  0x44   :  { %1165 = vmatpush1.bf16.msra.mxu1 %v1630_v7  ;;  %1113 = vmatprep.subr.bf16.mxu0 %v1635_v8  ;;  %v1728_v7 = vld [vmem:[%s2320_s1 + $0x384] ss:$8 sps:$4 sm:$0xff]   ;;  %v1723_v8 = vld [vmem:[%s2320_s1 + $0x280] ss:$8 sps:$4 sm:$0xff]  }
  0x45   :  { %1166 = vmatprep.subr.bf16.mxu1 %v1638_v9  ;;  %1047 = vmatprep.mubr.bf16.mxu0 %v1699_v22  ;;  %v1726_v9 = vld [vmem:[%s2320_s1 + $0x380] ss:$8 sps:$4 sm:$0xff]   ;;  %v1752_v22 = vld [vmem:[%s2320_s1 + $0x444] ss:$8 sps:$4 sm:$0xff]  }
  0x46   :  { %1100 = vmatprep.mubr.bf16.mxu1 %v1708_v29  ;;  %v1761_v29 = vld [vmem:[%s2320_s1 + $0x414] ss:$8 sps:$4 sm:$0xff]  }
  0x47   :  { %1114 = vmatpush1.bf16.msra.mxu0 %v1633_v10  ;;  %v1737_v10 = vld [vmem:[%s2320_s1 + $0x474] ss:$8 sps:$4 sm:$0xff]  }
  0x48   :  { %1167 = vmatpush1.bf16.msra.mxu1 %v1636_v11  ;;  %1115 = vmatprep.subr.bf16.mxu0 %v1641_v12  ;;  %v1729_v11 = vld [vmem:[%s2321_s0 + $0x10] ss:$36 sps:$4 sm:$0xff]   ;;  %v1732_v12 = vld [vmem:[%s2321_s0 + $0x18] ss:$36 sps:$4 sm:$0xff]  }
  0x49   :  { %1168 = vmatprep.subr.bf16.mxu1 %v1644_v13  ;;  %v1735_v13 = vld [vmem:[%s2320_s1 + $0x470] ss:$8 sps:$4 sm:$0xff]  }
  0x4a   :  { %1048 = vmatmul.mubr.bf16.gmra.mxu0 %v1707_v27  ;;  %v1758_v27 = vld [vmem:[%s2320_s1 + $0x424] ss:$8 sps:$4 sm:$0xff]  }
  0x4b   :  { %1116 = vmatpush1.bf16.msra.mxu0 %v1639_v14  ;;  %1101 = vmatmul.mubr.bf16.gmra.mxu1 %v1710_v31  ;;  %v1740_v14 = vld [vmem:[%s2320_s1 + $0x464] ss:$8 sps:$4 sm:$0xff]  }
  0x4c   :  { %1169 = vmatpush1.bf16.msra.mxu1 %v1642_v15  ;;  %1117 = vmatprep.subr.bf16.mxu0 %v1647_v16  ;;  %v1741_v15 = vld [vmem:[%s2321_s0 + $0x5c] ss:$36 sps:$4 sm:$0xff]   ;;  %v1747_v16 = vld [vmem:[%s2321_s0 + $0x64] ss:$36 sps:$4 sm:$0xff]  }
  0x4d   :  { %1170 = vmatprep.subr.bf16.mxu1 %v1650_v17  ;;  %1143 = vmatprep.mubr.bf16.mxu0 %v1731_v41  ;;  %v1738_v17 = vld [vmem:[%s2320_s1 + $0x460] ss:$8 sps:$4 sm:$0xff]   ;;  %v1764_v31 = vld [vmem:[%s2320_s1 + $0x404] ss:$8 sps:$4 sm:$0xff]  }
  0x4e   :  { %1196 = vmatprep.mubr.bf16.mxu1 %v1734_v43 }
  0x4f   :  { %1118 = vmatpush1.bf16.msra.mxu0 %v1645_v18  ;;  %v1746_v18 = vld [vmem:[%s2320_s1 + $0x454] ss:$8 sps:$4 sm:$0xff]  }
  0x50   :  { %1171 = vmatpush1.bf16.msra.mxu1 %v1648_v19  ;;  %1119 = vmatprep.subr.bf16.mxu0 %v1653_v20  ;;  %v1743_v19 = vld [vmem:[%s2321_s0 + $0x58] ss:$36 sps:$4 sm:$0xff]   ;;  %v1749_v20 = vld [vmem:[%s2321_s0 + $0x60] ss:$36 sps:$4 sm:$0xff]  }
  0x51   :  { %1172 = vmatprep.subr.bf16.mxu1 %v1656_v21  ;;  %v1744_v21 = vld [vmem:[%s2320_s1 + $0x450] ss:$8 sps:$4 sm:$0xff]  }
  0x53   :  { %1120 = vmatpush1.bf16.msra.mxu0 %v1651_v23  ;;  %v1750_v23 = vld [vmem:[%s2320_s1 + $0x440] ss:$8 sps:$4 sm:$0xff]  }
  0x54   :  { %1173 = vmatpush1.bf16.msra.mxu1 %v1654_v24  ;;  %1121 = vmatprep.subr.bf16.mxu0 %v1659_v25  ;;  %v1755_v24 = vld [vmem:[%s2320_s1 + $0x434] ss:$8 sps:$4 sm:$0xff]   ;;  %v1767_v25 = vmov 0  }
  0x55   :  { %1174 = vmatprep.subr.bf16.mxu1 %v1662_v26  ;;  %v1753_v26 = vld [vmem:[%s2320_s1 + $0x430] ss:$8 sps:$4 sm:$0xff]  }
  0x57   :  { %1122 = vmatpush1.bf16.msra.mxu0 %v1657_v28  ;;  %v1756_v28 = vld [vmem:[%s2320_s1 + $0x420] ss:$8 sps:$4 sm:$0xff]  }
  0x58   :  { %1175 = vmatpush1.bf16.msra.mxu1 %v1660_v30  ;;  %1123 = vmatprep.subr.bf16.mxu0 %v1665_v32  ;;  %v1759_v30 = vld [vmem:[%s2320_s1 + $0x410] ss:$8 sps:$4 sm:$0xff]   ;;  %v1762_v32 = vld [vmem:[%s2320_s1 + $0x400] ss:$8 sps:$4 sm:$0xff]  }
  0x59   :  { %1176 = vmatprep.subr.bf16.mxu1 %v1668_v33  ;;  %v1765_v33 = vld [vmem:[%s2321_s0 + $0x20] ss:$36 sps:$4 sm:$0xff]  }
  0x5b   :  { %1124 = vmatpush1.bf16.msra.mxu0 %v1663_v34  ;;  %v1766_v34 = vld [vmem:[%s2321_s0 + $0x68] ss:$36 sps:$4 sm:$0xff]  }
  0x5c   :  { %1177 = vmatpush1.bf16.msra.mxu1 %v1666_v35  ;;  %1125 = vmatprep.subr.bf16.mxu0 %v1671_v36 }
  0x5d   :  { %1178 = vmatprep.subr.bf16.mxu1 %v1674_v37 }
  0x5f   :  { %1126 = vmatpush1.bf16.msra.mxu0 %v1669_v38 }
  0x60   :  { %1179 = vmatpush1.bf16.msra.mxu1 %v1672_v39  ;;  %1127 = vmatprep.subr.bf16.mxu0 %v1677_v40 }
  0x61   :  { %1180 = vmatprep.subr.bf16.mxu1 %v1680_v42 }
  0x63   :  { %1128 = vmatpush2.bf16.msra.mxu0 %v1675_v44 }
  0x64   :  { %1181 = vmatpush2.bf16.msra.mxu1 %v1678_v45  ;;  %1129 = vmatprep.subr.bf16.mxu0 %v1683_v46 }
  0x65   :  { %1182 = vmatprep.subr.bf16.mxu1 %v1686_v47 }
  0x67   :  { %1130 = vmatpush2.bf16.msra.mxu0 %v1681_v48 }
  0x68   :  { %1183 = vmatpush2.bf16.msra.mxu1 %v1684_v49  ;;  %1131 = vmatprep.subr.bf16.mxu0 %v1689_v50 }
  0x69   :  { %1184 = vmatprep.subr.bf16.mxu1 %v1692_v51 }
  0x6b   :  { %1132 = vmatpush2.bf16.msra.mxu0 %v1687_v52 }
  0x6c   :  { %1185 = vmatpush2.bf16.msra.mxu1 %v1690_v53  ;;  %1133 = vmatprep.subr.bf16.mxu0 %v1695_v54  ;;  %v183_v53 = vlaneseq }
  0x6d   :  { %1186 = vmatprep.subr.bf16.mxu1 %v1698_v55 }
  0x6f   :  { %1134 = vmatpush2.bf16.msra.mxu0 %v1693_v56  ;;  %v184_v56 = vshrl.u32 %v183_v53, 7 }
  0x70   :  { %1187 = vmatpush2.bf16.msra.mxu1 %v1696_v57  ;;  %1135 = vmatprep.subr.bf16.mxu0 %v1703_v58 }
  0x71   :  { %1188 = vmatprep.subr.bf16.mxu1 %v1706_v59  ;;  %v185_v59 = vsub.s32 0, %v184_v56 }
  0x73   :  { %1136 = vmatpush2.bf16.msra.mxu0 %v1701_v60  ;;  %v181_v60 = vld [vmem:[%s2322_s2] sm:$0x3] }
  0x74   :  { %1189 = vmatpush2.bf16.msra.mxu1 %v1704_v61  ;;  %1137 = vmatprep.subr.bf16.mxu0 %v1713_v62  ;;  %v189_v62 = vsub.s32 1, %v184_v56 }
  0x75   :  { %1190 = vmatprep.subr.bf16.mxu1 %v1716_v63 }
  0x77   :  { %1138 = vmatpush2.bf16.msra.mxu0 %v1711_v0  ;;  %v186_v0 = vrot.slane %v181_v60, %v185_v59 }
  0x78   :  { %1191 = vmatpush2.bf16.msra.mxu1 %v1714_v1  ;;  %1139 = vmatprep.subr.bf16.mxu0 %v1719_v2 }
  0x79   :  { %1192 = vmatprep.subr.bf16.mxu1 %v1722_v3  ;;  %v190_v3 = vrot.slane %v181_v60, %v189_v62 }
  0x7b   :  { %1140 = vmatpush2.bf16.msra.mxu0 %v1717_v4 }
  0x7c   :  { %1193 = vmatpush2.bf16.msra.mxu1 %v1720_v5  ;;  %1141 = vmatprep.subr.bf16.mxu0 %v1725_v6 }
  0x7d   :  { %1194 = vmatprep.subr.bf16.mxu1 %v1728_v7 }
  0x7f   :  { %1142 = vmatpush2.bf16.msra.mxu0 %v1723_v8 }
  0x80   :  { %1195 = vmatpush2.bf16.msra.mxu1 %v1726_v9  ;;  %1217 = vmatprep.subr.bf16.mxu0 %v1737_v10 }
  0x81   :  { %1508 = vmatprep.subr.bf16.mxu1 %v1737_v10 }
  0x82   :  { %1144 = vmatmul.mubr.bf16.vlgmr.msra.gmra.mxu0 %v1729_v11 }
  0x83   :  { %1197 = vmatmul.mubr.bf16.vlgmr.msra.gmra.mxu1 %v1732_v12  ;;  %1218 = vmatpush1.bf16.msra.mxu0 %v1735_v13 }
  0x84   :  { %1516 = vmatpush1.bf16.msra.mxu1 %v1735_v13  ;;  %1219 = vmatprep.subr.bf16.mxu0 %v1740_v14 }
  0x85   :  { %1509 = vmatprep.subr.bf16.mxu1 %v1740_v14  ;;  %1153 = vmatprep.mubr.bf16.mxu0 %v1741_v15 }
  0x86   :  { %1206 = vmatprep.mubr.bf16.mxu1 %v1747_v16 }
  0x87   :  { %1220 = vmatpush1.bf16.msra.mxu0 %v1738_v17 }
  0x88   :  { %1517 = vmatpush1.bf16.msra.mxu1 %v1738_v17  ;;  %1221 = vmatprep.subr.bf16.mxu0 %v1746_v18 }
  0x89   :  { %1510 = vmatprep.subr.bf16.mxu1 %v1746_v18 }
  0x8a   :  { %1154 = vmatmul.mubr.bf16.gmra.mxu0 %v1743_v19 }
  0x8b   :  { %1207 = vmatmul.mubr.bf16.gmra.mxu1 %v1749_v20  ;;  %1222 = vmatpush1.bf16.msra.mxu0 %v1744_v21 }
  0x8c   :  { %1518 = vmatpush1.bf16.msra.mxu1 %v1744_v21  ;;  %1223 = vmatprep.subr.bf16.mxu0 %v1752_v22 }
  0x8d   :  { %1511 = vmatprep.subr.bf16.mxu1 %v1752_v22  ;;  %1249 = vmatprep.mubr.bf16.mxu0 %v1767_v25 }
  0x8e   :  { %1259 = vmatprep.mubr.bf16.mxu1 %v1767_v25 }
  0x8f   :  { %1224 = vmatpush1.bf16.msra.mxu0 %v1750_v23 }
  0x90   :  { %1519 = vmatpush1.bf16.msra.mxu1 %v1750_v23  ;;  %1225 = vmatprep.subr.bf16.mxu0 %v1755_v24 }
  0x91   :  { %1512 = vmatprep.subr.bf16.mxu1 %v1755_v24 }
  0x93   :  { %1226 = vmatpush1.bf16.msra.mxu0 %v1753_v26 }
  0x94   :  { %1520 = vmatpush1.bf16.msra.mxu1 %v1753_v26  ;;  %1227 = vmatprep.subr.bf16.mxu0 %v1758_v27 }
  0x95   :  { %1513 = vmatprep.subr.bf16.mxu1 %v1758_v27 }
  0x97   :  { %1228 = vmatpush1.bf16.msra.mxu0 %v1756_v28 }
  0x98   :  { %1521 = vmatpush1.bf16.msra.mxu1 %v1756_v28  ;;  %1229 = vmatprep.subr.bf16.mxu0 %v1761_v29 }
  0x99   :  { %1514 = vmatprep.subr.bf16.mxu1 %v1761_v29 }
  0x9b   :  { %1230 = vmatpush1.bf16.msra.mxu0 %v1759_v30 }
  0x9c   :  { %1522 = vmatpush1.bf16.msra.mxu1 %v1759_v30  ;;  %1231 = vmatprep.subr.bf16.mxu0 %v1764_v31 }
  0x9d   :  { %1515 = vmatprep.subr.bf16.mxu1 %v1764_v31 }
  0x9f   :  { %1232 = vmatpush1.bf16.msra.mxu0 %v1762_v32 }
  0xa0   :  { %1523 = vmatpush1.bf16.msra.mxu1 %v1762_v32 }
  0xa2   :  { %1250 = vmatmul.mubr.bf16.vlgmr.msra.gmra.mxu0 %v1765_v33 }
  0xa3   :  { %1260 = vmatmul.mubr.bf16.vlgmr.msra.gmra.mxu1 %v1766_v34 }
 0x102   :  { %v1039_v35 = vpop.f32.mrf.mxu0 }
 0x103   :  { %v1092_v36 = vpop.f32.mrf.mxu1  ;;  %v1040_v4 = vadd.f32 %v1039_v35, %v186_v0 }
 0x104   :  { %v1041_v37 = vpop.f32.mrf.mxu0 }
 0x105   :  { %v1094_v38 = vpop.f32.mrf.mxu1  ;;  %v1042_v8 = vadd.f32 %v1041_v37, %v190_v3  ;;  %v1093_v10 = vadd.f32 %v1092_v36, %v1040_v4 }
 0x106   :  { %v1043_v39 = vpop.f32.mrf.mxu0 }
 0x107   :  { %v1096_v40 = vpop.f32.mrf.mxu1  ;;  %v1044_v11 = vadd.f32 %v1043_v39, %v186_v0  ;;  %v1095_v20 = vadd.f32 %v1094_v38, %v1042_v8 }
 0x108   :  { %v1045_v41 = vpop.f32.mrf.mxu0 }
 0x109   :  { %v1098_v42 = vpop.f32.mrf.mxu1  ;;  %v1046_v14 = vadd.f32 %v1045_v41, %v190_v3  ;;  %v1097_v22 = vadd.f32 %v1096_v40, %v1044_v11 }
 0x10a   :  { %v1049_v43 = vpop.f32.mrf.mxu0 }
 0x10b   :  { %v1102_v44 = vpop.f32.mrf.mxu1  ;;  %v1050_v5 = vadd.f32 %v1049_v43, %v186_v0  ;;  %v1099_v24 = vadd.f32 %v1098_v42, %v1046_v14 }
 0x10c   :  { %v1051_v45 = vpop.f32.mrf.mxu0 }
 0x10d   :  { %v1104_v46 = vpop.f32.mrf.mxu1  ;;  %v1052_v9 = vadd.f32 %v1051_v45, %v190_v3  ;;  %v1103_v12 = vadd.f32 %v1102_v44, %v1050_v5 }
 0x10e   :  { %v1053_v47 = vpop.f32.mrf.mxu0 }
 0x10f   :  { %v1106_v48 = vpop.f32.mrf.mxu1  ;;  %v1054_v13 = vadd.f32 %v1053_v47, %v186_v0  ;;  %v1105_v21 = vadd.f32 %v1104_v46, %v1052_v9 }
 0x110   :  { %v1055_v49 = vpop.f32.mrf.mxu0 }
 0x111   :  { %v1108_v50 = vpop.f32.mrf.mxu1  ;;  %v1056_v15 = vadd.f32 %v1055_v49, %v190_v3  ;;  %v1107_v23 = vadd.f32 %v1106_v48, %v1054_v13 }
 0x113   :  { %v1109_v25 = vadd.f32 %v1108_v50, %v1056_v15 }
 0x142   :  { %v1145_v51 = vpop.f32.mrf.mxu0 }
 0x143   :  { %v1198_v52 = vpop.f32.mrf.mxu1  ;;  %v1146_v18 = vadd.f32 %v1145_v51, %v1093_v10 }
 0x144   :  { %v1147_v54 = vpop.f32.mrf.mxu0 }
 0x145   :  { %v1200_v55 = vpop.f32.mrf.mxu1  ;;  %v1148_v26 = vadd.f32 %v1147_v54, %v1095_v20  ;;  %v1199_v30 = vadd.f32 %v1198_v52, %v1146_v18 }
 0x146   :  { %v1149_v57 = vpop.f32.mrf.mxu0 }
 0x147   :  { %v1202_v58 = vpop.f32.mrf.mxu1  ;;  %v1150_v31 = vadd.f32 %v1149_v57, %v1097_v22  ;;  %v1201_v38 = vadd.f32 %v1200_v55, %v1148_v26 }
 0x148   :  { %v1151_v61 = vpop.f32.mrf.mxu0 }
 0x149   :  { %v1204_v63 = vpop.f32.mrf.mxu1  ;;  %v1152_v36 = vadd.f32 %v1151_v61, %v1099_v24  ;;  %v1203_v42 = vadd.f32 %v1202_v58, %v1150_v31 }
 0x14a   :  { %v1155_v1 = vpop.f32.mrf.mxu0 }
 0x14b   :  { %v1208_v2 = vpop.f32.mrf.mxu1  ;;  %v1156_v19 = vadd.f32 %v1155_v1, %v1103_v12  ;;  %v1205_v52 = vadd.f32 %v1204_v63, %v1152_v36 }
 0x14c   :  { %v1157_v6 = vpop.f32.mrf.mxu0 }
 0x14d   :  { %v1210_v7 = vpop.f32.mrf.mxu1  ;;  %v1158_v27 = vadd.f32 %v1157_v6, %v1105_v21  ;;  %v1209_v32 = vadd.f32 %v1208_v2, %v1156_v19 }
 0x14e   :  { %v1159_v16 = vpop.f32.mrf.mxu0 }
 0x14f   :  { %v1212_v17 = vpop.f32.mrf.mxu1  ;;  %v1160_v33 = vadd.f32 %v1159_v16, %v1107_v23  ;;  %v1211_v43 = vadd.f32 %v1210_v7, %v1158_v27 }
 0x150   :  { %v1161_v28 = vpop.f32.mrf.mxu0 }
 0x151   :  { %v1214_v29 = vpop.f32.mrf.mxu1  ;;  %v1162_v37 = vadd.f32 %v1161_v28, %v1109_v25  ;;  %v1213_v45 = vadd.f32 %v1212_v17, %v1160_v33 }
 0x153   :  { %v1215_v53 = vadd.f32 %v1214_v29, %v1162_v37 }
 0x162   :  { %v1251_v34 = vpop.f32.mrf.mxu0 }
 0x163   :  { %v1261_v35 = vpop.f32.mrf.mxu1  ;;  %v1252_v39 = vadd.f32 %v1251_v34, %v1199_v30 }
 0x164   :  { %v1262_v41 = vadd.f32 %v1261_v35, %v1209_v32  ;;  %v1253_v40 = vpop.f32.mrf.mxu0 }
 0x165   :  { %v1263_v44 = vpop.f32.mrf.mxu1  ;;  %1270 = vst [vmem:[%s2323_s3] sm:$0xff] %v1252_v39  ;;  %v1286_v46 = vmul.f32 0.01, %v1252_v39  ;;  %vm1278_vm0 = vcmp.ge.f32.partialorder %v1252_v39, 0.0  ;;  %v1254_v48 = vadd.f32 %v1253_v40, %v1201_v38 }
 0x166   :  { %1274 = vst [vmem:[%s2323_s3 + $0x20] sm:$0xff] %v1262_v41  ;;  %v1290_v47 = vmul.f32 0.01, %v1262_v41  ;;  %vm1282_vm1 = vcmp.ge.f32.partialorder %v1262_v41, 0.0  ;;  %v1264_v49 = vadd.f32 %v1263_v44, %v1211_v43  ;;  %v1255_v50 = vpop.f32.mrf.mxu0 }
 0x167   :  { %v1265_v51 = vpop.f32.mrf.mxu1  ;;  %v1256_v54 = vadd.f32 %v1255_v50, %v1203_v42  ;;  %1271 = vst [vmem:[%s2323_s3 + $0x8] sm:$0xff] %v1254_v48  ;;  %vm1279_vm2 = vcmp.ge.f32.partialorder %v1254_v48, 0.0  ;;  %v1287_v56 = vmul.f32 0.01, %v1254_v48  ;;  %v1294_v60 = vsel %vm1278_vm0, %v1252_v39, %v1286_v46 }
 0x168   :  { %v1266_v55 = vadd.f32 %v1265_v51, %v1213_v45  ;;  %1275 = vst [vmem:[%s2323_s3 + $0x28] sm:$0xff] %v1264_v49  ;;  %vm1283_vm3 = vcmp.ge.f32.partialorder %v1264_v49, 0.0  ;;  %v1291_v57 = vmul.f32 0.01, %v1264_v49  ;;  %v1257_v58 = vpop.f32.mrf.mxu0  ;;  %v1298_v61 = vsel %vm1282_vm1, %v1262_v41, %v1290_v47 }
 0x169   :  { %v1267_v59 = vpop.f32.mrf.mxu1  ;;  %1272 = vst [vmem:[%s2323_s3 + $0x10] sm:$0xff] %v1256_v54  ;;  %v1288_v62 = vmul.f32 0.01, %v1256_v54  ;;  %v1295_v0 = vsel %vm1279_vm2, %v1254_v48, %v1287_v56  ;;  %v1258_v2 = vadd.f32 %v1257_v58, %v1205_v52  ;;  %vm1280_vm4 = vcmp.ge.f32.partialorder %v1256_v54, 0.0 }
 0x16a   :  { %1276 = vst [vmem:[%s2323_s3 + $0x30] sm:$0xff] %v1266_v55  ;;  %v1292_v63 = vmul.f32 0.01, %v1266_v55  ;;  %v1299_v1 = vsel %vm1283_vm3, %v1264_v49, %v1291_v57  ;;  %v1268_v3 = vadd.f32 %v1267_v59, %v1215_v53  ;;  %v1504_v4 = vpack.c.bf16 %v1295_v0, %v1294_v60 }
 0x16b   :  { %v1506_v5 = vpack.c.bf16 %v1299_v1, %v1298_v61  ;;  %vm1284_vm5 = vcmp.ge.f32.partialorder %v1266_v55, 0.0  ;;  %1273 = vst [vmem:[%s2323_s3 + $0x18] sm:$0xff] %v1258_v2  ;;  %vm1281_vm6 = vcmp.ge.f32.partialorder %v1258_v2, 0.0  ;;  %v1289_v6 = vmul.f32 0.01, %v1258_v2 }
 0x16c   :  { %1277 = vst [vmem:[%s2323_s3 + $0x38] sm:$0xff] %v1268_v3  ;;  %vm1285_vm7 = vcmp.ge.f32.partialorder %v1268_v3, 0.0  ;;  %v1293_v7 = vmul.f32 0.01, %v1268_v3  ;;  %1326 = vst [vmem:[%s2324_s4] sm:$0xff] %v1504_v4  ;;  %v1296_v8 = vsel %vm1280_vm4, %v1256_v54, %v1288_v62  ;;  %v1300_v9 = vsel %vm1284_vm5, %v1266_v55, %v1292_v63 }
 0x16d   :  { %1328 = vst [vmem:[%s2324_s4 + $0x10] sm:$0xff] %v1506_v5  ;;  %v1297_v10 = vsel %vm1281_vm6, %v1258_v2, %v1289_v6 }
 0x16e   :  { %v1301_v11 = vsel %vm1285_vm7, %v1268_v3, %v1293_v7  ;;  %v1505_v12 = vpack.c.bf16 %v1297_v10, %v1296_v8 }
 0x16f   :  { %v1507_v13 = vpack.c.bf16 %v1301_v11, %v1300_v9 }
 0x170   :  { %1327 = vst [vmem:[%s2324_s4 + $0x8] sm:$0xff] %v1505_v12 }
 0x171   :  { %1329 = vst [vmem:[%s2324_s4 + $0x18] sm:$0xff] %v1507_v13 }

// kernel: vid_forward.14
= control target key start
LH: loop header
LB: loop body
LE: loop exit
PB: predicated region body
PF: predicated region fallthrough
CT: control target
= control target key end

     0   :  { %v36_v0 = vlaneseq  ;;  %v574_v3 = vmov 1983009808   ;;  %vm492_vm0 = vcmask 1041408   ;;  %vm566_vm1 = vcmask 1024   ;;  %s739_s2 = inlined_call_operand.<no memory space> [shape: f32[1,1], index: 2, kind: input, shape index: {}]   ;;  %s740_s1 = inlined_call_operand.vmem [shape: f32[1,4096], index: 1, kind: input, shape index: {}]   ;;  %s741_s0 = inlined_call_operand.vmem [shape: bf16[2,4096], index: 0, kind: input, shape index: {}]   ;;  %s742_s3 = inlined_call_operand.vmem [shape: f32[2,1], index: 3, kind: output, shape index: {}]  }
   0x1   :  { %v8_v1 = vstv %s739_s2  ;;  %v167_v4 = vunpack.c.l.s4 %v574_v3  ;;  %v28_v9 = vld [vmem:[%s740_s1] sm:$0xff]  ;;  %v29_v29 = vld [vmem:[%s740_s1 + $0x8] sm:$0xff]  ;;  %v30_v56 = vld [vmem:[%s740_s1 + $0x10] sm:$0xff] }
   0x2   :  { %9 = vst [vmem:[#allocation2] sm:$0x1] %v8_v1  ;;  %v37_v2 = vshrl.u32 %v36_v0, 7  ;;  %v16_v26 = vld [vmem:[%s741_s0] sm:$0xff]  ;;  %v17_v51 = vld [vmem:[%s741_s0 + $0x8] sm:$0xff] }
   0x3   :  { %v168_v10 = vunpack.c.0.s8 %v167_v4  ;;  %v20_v32 = vunpack.c.l.bf16 %v16_v26  ;;  %v21_v41 = vunpack.c.h.bf16 %v16_v26  ;;  %v22_v58 = vunpack.c.l.bf16 %v17_v51 }
   0x4   :  { %v598_v5 = vsub.s32 0, %v37_v2  ;;  %v600_v6 = vsub.s32 1, %v37_v2  ;;  %v602_v7 = vsub.s32 2, %v37_v2  ;;  %v604_v8 = vsub.s32 3, %v37_v2 }
   0x5   :  { %v609_v11 = vsub.s32 4, %v37_v2  ;;  %v611_v12 = vsub.s32 5, %v37_v2  ;;  %v613_v13 = vsub.s32 6, %v37_v2  ;;  %v615_v14 = vsub.s32 7, %v37_v2 }
   0x6   :  { %v39_v15 = vrot.slane %v28_v9, %v598_v5  ;;  %v43_v16 = vrot.slane %v28_v9, %v600_v6  ;;  %v47_v17 = vrot.slane %v28_v9, %v602_v7  ;;  %v51_v18 = vrot.slane %v28_v9, %v604_v8 }
   0x7   :  { %v55_v19 = vrot.slane %v28_v9, %v609_v11  ;;  %v59_v20 = vrot.slane %v28_v9, %v611_v12  ;;  %v63_v21 = vrot.slane %v28_v9, %v613_v13  ;;  %v67_v22 = vrot.slane %v28_v9, %v615_v14 }
   0x8   :  { %v164_v23 = vcombine.low %v39_v15, %v43_v16  ;;  %v165_v24 = vcombine.low %v47_v17, %v51_v18  ;;  %v625_v25 = vsub.s32 %v168_v10, %v37_v2  ;;  %v71_v34 = vrot.slane %v29_v29, %v598_v5 }
   0x9   :  { %v181_v30 = vcombine.low %v55_v19, %v59_v20  ;;  %v182_v31 = vcombine.low %v63_v21, %v67_v22  ;;  %v75_v35 = vrot.slane %v29_v29, %v600_v6  ;;  %v79_v36 = vrot.slane %v29_v29, %v602_v7 }
   0xa   :  { %v172_v27 = vrot.slane %v164_v23, %v625_v25  ;;  %v179_v28 = vrot.slane %v165_v24, %v625_v25  ;;  %v83_v37 = vrot.slane %v29_v29, %v604_v8  ;;  %v87_v47 = vrot.slane %v29_v29, %v609_v11 }
   0xb   :  { %v189_v38 = vrot.slane %v181_v30, %v625_v25  ;;  %v196_v39 = vrot.slane %v182_v31, %v625_v25  ;;  %v198_v43 = vcombine.low %v71_v34, %v75_v35  ;;  %v91_v48 = vrot.slane %v29_v29, %v611_v12 }
   0xc   :  { %v180_v33 = vcombine.low %v172_v27, %v179_v28  ;;  %v199_v44 = vcombine.low %v79_v36, %v83_v37  ;;  %v95_v49 = vrot.slane %v29_v29, %v613_v13  ;;  %v99_v50 = vrot.slane %v29_v29, %v615_v14 }
   0xd   :  { %v197_v42 = vcombine.low %v189_v38, %v196_v39  ;;  %v206_v52 = vrot.slane %v198_v43, %v625_v25  ;;  %v215_v59 = vcombine.low %v87_v47, %v91_v48  ;;  %v103_v1 = vrot.slane %v30_v56, %v598_v5 }
   0xe   :  { %v308_v40 = vmul.f32 %v180_v33, %v20_v32  ;;  %v213_v53 = vrot.slane %v199_v44, %v625_v25  ;;  %v216_v60 = vcombine.low %v95_v49, %v99_v50  ;;  %v107_v2 = vrot.slane %v30_v56, %v600_v6 }
   0xf   :  { %v309_v54 = vmul.f32 %v197_v42, %v21_v41  ;;  %v111_v3 = vrot.slane %v30_v56, %v602_v7  ;;  %v115_v4 = vrot.slane %v30_v56, %v604_v8  ;;  %v223_v15 = vrot.slane %v215_v59, %v625_v25 }
  0x10   :  { %v324_v45 = vcombine.high %v308_v40, %v308_v40  ;;  %v331_v46 = vrot.slane %v308_v40, %v625_v25  ;;  %v214_v61 = vcombine.low %v206_v52, %v213_v53  ;;  %v230_v16 = vrot.slane %v216_v60, %v625_v25  ;;  %v18_v40 = vld [vmem:[%s741_s0 + $0x10] sm:$0xff]  ;;  %v31_v52 = vld [vmem:[%s740_s1 + $0x18] sm:$0xff] }
  0x11   :  { %v341_v63 = vcombine.high %v309_v54, %v309_v54  ;;  %v348_v0 = vrot.slane %v309_v54, %v625_v25  ;;  %v23_v24 = vunpack.c.h.bf16 %v17_v51  ;;  %v232_v28 = vcombine.low %v103_v1, %v107_v2 }
  0x12   :  { %v338_v55 = vrot.slane %v324_v45, %v625_v25  ;;  %v339_v57 = vcombine.high %v331_v46, %v331_v46  ;;  %v493_v9 = vsel %vm492_vm0, %v331_v46, 0.0  ;;  %v310_v19 = vmul.f32 %v214_v61, %v22_v58 }
  0x13   :  { %v355_v20 = vrot.slane %v341_v63, %v625_v25  ;;  %v356_v21 = vcombine.high %v348_v0, %v348_v0  ;;  %v500_v26 = vsel %vm492_vm0, %v348_v0, 0.0  ;;  %v231_v27 = vcombine.low %v223_v15, %v230_v16 }
  0x14   :  { %v340_v62 = vcombine.high %v338_v55, %v338_v55  ;;  %v494_v10 = vsel %vm492_vm0, %v339_v57, 0.0  ;;  %v496_v18 = vsel %vm492_vm0, %v338_v55, 0.0  ;;  %v233_v29 = vcombine.low %v111_v3, %v115_v4 }
  0x15   :  { %v495_v17 = vadd.f32 %v494_v10, %v493_v9  ;;  %v357_v31 = vcombine.high %v355_v20, %v355_v20  ;;  %v358_v32 = vcombine.high %v310_v19, %v310_v19  ;;  %v365_v33 = vrot.slane %v310_v19, %v625_v25 }
  0x16   :  { %v498_v22 = vsel %vm492_vm0, %v340_v62, 0.0  ;;  %v502_v34 = vsel %vm492_vm0, %v356_v21, 0.0  ;;  %v119_v36 = vrot.slane %v30_v56, %v609_v11  ;;  %v123_v37 = vrot.slane %v30_v56, %v611_v12 }
  0x17   :  { %v497_v23 = vadd.f32 %v496_v18, %v495_v17  ;;  %v127_v38 = vrot.slane %v30_v56, %v613_v13  ;;  %v504_v39 = vsel %vm492_vm0, %v355_v20, 0.0  ;;  %v131_v41 = vrot.slane %v30_v56, %v615_v14 }
  0x18   :  { %v240_v42 = vrot.slane %v232_v28, %v625_v25  ;;  %v247_v43 = vrot.slane %v233_v29, %v625_v25  ;;  %v311_v45 = vmul.f32 %v231_v27, %v23_v24  ;;  %v372_v46 = vrot.slane %v358_v32, %v625_v25 }
  0x19   :  { %v499_v30 = vadd.f32 %v498_v22, %v497_v23  ;;  %v373_v47 = vcombine.high %v365_v33, %v365_v33  ;;  %v506_v48 = vsel %vm492_vm0, %v357_v31, 0.0  ;;  %v24_v50 = vunpack.c.l.bf16 %v18_v40  ;;  %v19_v31 = vld [vmem:[%s741_s0 + $0x18] sm:$0xff] }
  0x1a   :  { %v508_v51 = vsel %vm492_vm0, %v365_v33, 0.0  ;;  %v248_v53 = vcombine.low %v240_v42, %v247_v43  ;;  %v249_v54 = vcombine.low %v119_v36, %v123_v37  ;;  %v250_v55 = vcombine.low %v127_v38, %v131_v41 }
  0x1b   :  { %v501_v35 = vadd.f32 %v500_v26, %v499_v30  ;;  %v374_v57 = vcombine.high %v372_v46, %v372_v46  ;;  %v375_v58 = vcombine.high %v311_v45, %v311_v45  ;;  %v382_v59 = vrot.slane %v311_v45, %v625_v25 }
  0x1c   :  { %v510_v60 = vsel %vm492_vm0, %v373_v47, 0.0  ;;  %v135_v62 = vrot.slane %v31_v52, %v598_v5  ;;  %v139_v63 = vrot.slane %v31_v52, %v600_v6  ;;  %v143_v0 = vrot.slane %v31_v52, %v602_v7 }
  0x1d   :  { %v503_v44 = vadd.f32 %v502_v34, %v501_v35  ;;  %v512_v1 = vsel %vm492_vm0, %v372_v46, 0.0  ;;  %v147_v2 = vrot.slane %v31_v52, %v604_v8  ;;  %v257_v3 = vrot.slane %v249_v54, %v625_v25 }
  0x1e   :  { %v264_v4 = vrot.slane %v250_v55, %v625_v25  ;;  %v312_v10 = vmul.f32 %v248_v53, %v24_v50  ;;  %v389_v15 = vrot.slane %v375_v58, %v625_v25  ;;  %v390_v16 = vcombine.high %v382_v59, %v382_v59 }
  0x1f   :  { %v505_v49 = vadd.f32 %v504_v39, %v503_v44  ;;  %v514_v17 = vsel %vm492_vm0, %v374_v57, 0.0  ;;  %v25_v18 = vunpack.c.h.bf16 %v18_v40  ;;  %v516_v6 = vsel %vm492_vm0, %v382_v59, 0.0 }
  0x20   :  { %v265_v7 = vcombine.low %v257_v3, %v264_v4  ;;  %v266_v19 = vcombine.low %v135_v62, %v139_v63  ;;  %v267_v20 = vcombine.low %v143_v0, %v147_v2  ;;  %v391_v8 = vcombine.high %v389_v15, %v389_v15 }
  0x21   :  { %v507_v56 = vadd.f32 %v506_v48, %v505_v49  ;;  %v392_v22 = vcombine.high %v312_v10, %v312_v10  ;;  %v399_v23 = vrot.slane %v312_v10, %v625_v25  ;;  %v518_v24 = vsel %vm492_vm0, %v390_v16, 0.0 }
  0x22   :  { %v151_v27 = vrot.slane %v31_v52, %v609_v11  ;;  %v155_v28 = vrot.slane %v31_v52, %v611_v12  ;;  %v159_v29 = vrot.slane %v31_v52, %v613_v13  ;;  %v520_v30 = vsel %vm492_vm0, %v389_v15, 0.0 }
  0x23   :  { %v509_v61 = vadd.f32 %v508_v51, %v507_v56  ;;  %v163_v32 = vrot.slane %v31_v52, %v615_v14  ;;  %v274_v33 = vrot.slane %v266_v19, %v625_v25  ;;  %v281_v34 = vrot.slane %v267_v20, %v625_v25 }
  0x24   :  { %v313_v36 = vmul.f32 %v265_v7, %v25_v18  ;;  %v406_v11 = vrot.slane %v392_v22, %v625_v25  ;;  %v407_v37 = vcombine.high %v399_v23, %v399_v23  ;;  %v522_v12 = vsel %vm492_vm0, %v391_v8, 0.0 }
  0x25   :  { %v511_v9 = vadd.f32 %v510_v60, %v509_v61  ;;  %v26_v38 = vunpack.c.l.bf16 %v19_v31  ;;  %v524_v39 = vsel %vm492_vm0, %v399_v23, 0.0  ;;  %v282_v40 = vcombine.low %v274_v33, %v281_v34 }
  0x26   :  { %v283_v41 = vcombine.low %v151_v27, %v155_v28  ;;  %v284_v42 = vcombine.low %v159_v29, %v163_v32  ;;  %v408_v14 = vcombine.high %v406_v11, %v406_v11  ;;  %v409_v44 = vcombine.high %v313_v36, %v313_v36 }
  0x27   :  { %v513_v5 = vadd.f32 %v512_v1, %v511_v9  ;;  %v416_v45 = vrot.slane %v313_v36, %v625_v25  ;;  %v526_v46 = vsel %vm492_vm0, %v407_v37, 0.0  ;;  %v528_v48 = vsel %vm492_vm0, %v406_v11, 0.0 }
  0x28   :  { %v291_v49 = vrot.slane %v283_v41, %v625_v25  ;;  %v298_v50 = vrot.slane %v284_v42, %v625_v25  ;;  %v314_v52 = vmul.f32 %v282_v40, %v26_v38  ;;  %v423_v53 = vrot.slane %v409_v44, %v625_v25 }
  0x29   :  { %v515_v21 = vadd.f32 %v514_v17, %v513_v5  ;;  %v424_v54 = vcombine.high %v416_v45, %v416_v45  ;;  %v530_v55 = vsel %vm492_vm0, %v408_v14, 0.0  ;;  %v532_v57 = vsel %vm492_vm0, %v416_v45, 0.0 }
  0x2a   :  { %v27_v58 = vunpack.c.h.bf16 %v19_v31  ;;  %v299_v59 = vcombine.low %v291_v49, %v298_v50  ;;  %v425_v61 = vcombine.high %v423_v53, %v423_v53  ;;  %v426_v62 = vcombine.high %v314_v52, %v314_v52 }
  0x2b   :  { %v517_v26 = vadd.f32 %v516_v6, %v515_v21  ;;  %v433_v63 = vrot.slane %v314_v52, %v625_v25  ;;  %v534_v0 = vsel %vm492_vm0, %v424_v54, 0.0  ;;  %v536_v2 = vsel %vm492_vm0, %v423_v53, 0.0 }
  0x2c   :  { %v315_v4 = vmul.f32 %v299_v59, %v27_v58  ;;  %v440_v9 = vrot.slane %v426_v62, %v625_v25  ;;  %v538_v15 = vsel %vm492_vm0, %v425_v61, 0.0 }
  0x2d   :  { %v519_v35 = vadd.f32 %v518_v24, %v517_v26  ;;  %v441_v10 = vcombine.high %v433_v63, %v433_v63  ;;  %v540_v17 = vsel %vm492_vm0, %v433_v63, 0.0 }
  0x2e   :  { %v442_v18 = vcombine.high %v440_v9, %v440_v9  ;;  %v443_v6 = vcombine.high %v315_v4, %v315_v4  ;;  %v450_v7 = vrot.slane %v315_v4, %v625_v25  ;;  %v544_v21 = vsel %vm492_vm0, %v440_v9, 0.0 }
  0x2f   :  { %v521_v13 = vadd.f32 %v520_v30, %v519_v35  ;;  %v542_v19 = vsel %vm492_vm0, %v441_v10, 0.0 }
  0x30   :  { %v457_v22 = vrot.slane %v443_v6, %v625_v25  ;;  %v458_v23 = vcombine.high %v450_v7, %v450_v7  ;;  %v546_v24 = vsel %vm492_vm0, %v442_v18, 0.0  ;;  %v548_v27 = vsel %vm492_vm0, %v450_v7, 0.0  ;;  %v572_v25 = vld [vmem:[#allocation2] ss:$0 sm:$0xff] }
  0x31   :  { %v523_v43 = vadd.f32 %v522_v12, %v521_v13 }
  0x32   :  { %v459_v29 = vcombine.high %v457_v22, %v457_v22  ;;  %v550_v30 = vsel %vm492_vm0, %v458_v23, 0.0  ;;  %v552_v32 = vsel %vm492_vm0, %v457_v22, 0.0 }
  0x33   :  { %v525_v47 = vadd.f32 %v524_v39, %v523_v43 }
  0x34   :  { %v554_v34 = vsel %vm492_vm0, %v459_v29, 0.0 }
  0x35   :  { %v527_v51 = vadd.f32 %v526_v46, %v525_v47 }
  0x37   :  { %v529_v56 = vadd.f32 %v528_v48, %v527_v51 }
  0x39   :  { %v531_v60 = vadd.f32 %v530_v55, %v529_v56 }
  0x3b   :  { %v533_v1 = vadd.f32 %v532_v57, %v531_v60 }
  0x3d   :  { %v535_v3 = vadd.f32 %v534_v0, %v533_v1 }
  0x3f   :  { %v537_v16 = vadd.f32 %v536_v2, %v535_v3 }
  0x41   :  { %v539_v5 = vadd.f32 %v538_v15, %v537_v16 }
  0x43   :  { %v541_v20 = vadd.f32 %v540_v17, %v539_v5 }
  0x45   :  { %v543_v8 = vadd.f32 %v542_v19, %v541_v20 }
  0x47   :  { %v545_v26 = vadd.f32 %v544_v21, %v543_v8 }
  0x49   :  { %v547_v28 = vadd.f32 %v546_v24, %v545_v26 }
  0x4b   :  { %v549_v31 = vadd.f32 %v548_v27, %v547_v28 }
  0x4d   :  { %v551_v33 = vadd.f32 %v550_v30, %v549_v31 }
  0x4f   :  { %v553_v35 = vadd.f32 %v552_v32, %v551_v33 }
  0x51   :  { %v555_v36 = vadd.f32 %v554_v34, %v553_v35 }
  0x53   :  { %556 = vadd.xlane.f32.xlu0 %v555_v36 }
  0xdc   :  { %v557_v11 = vpop.xlane.xlu0 %556 }
  0xdd   :  { %v565_v37 = vadd.f32 %v572_v25, %v557_v11 }
  0xdf   :  { %567 = vst.msk [vmem:[%s742_s3] sm:$0x3] %vm566_vm1, %v565_v37 }

// kernel: vid_forward.15
= control target key start
LH: loop header
LB: loop body
LE: loop exit
PB: predicated region body
PF: predicated region fallthrough
CT: control target
= control target key end

     0   :  { %vm137_vm0 = vcmask 523264   ;;  %s1967_s0 = inlined_call_operand.vmem [shape: f32[512,64], index: 0, kind: input, shape index: {}]   ;;  %s1968_s1 = inlined_call_operand.vmem [shape: f32[512,128], index: 1, kind: input, shape index: {}]   ;;  %s1969_s2 = inlined_call_operand.vmem [shape: f32[64,128], index: 2, kind: input, shape index: {}]   ;;  %s1970_s3 = inlined_call_operand.vmem [shape: f32[1,128], index: 3, kind: input, shape index: {}]   ;;  %s1971_s4 = inlined_call_operand.vmem [shape: f32[1,128], index: 4, kind: input, shape index: {}]   ;;  %s1972_s5 = inlined_call_operand.hbm [shape: f32[1,1], index: 5, kind: output, shape index: {}]  }
   0x1   :  { %v124_v0 = vld [vmem:[%s1969_s2 + $0x30] sm:$0xff]  ;;  %v125_v1 = vld [vmem:[%s1969_s2 + $0x38] sm:$0xff]  ;;  %v122_v2 = vld [vmem:[%s1969_s2 + $0x20] sm:$0xff] }
   0x2   :  { %v129_v3 = vpack.c.bf16 %v125_v1, %v124_v0  ;;  %v123_v4 = vld [vmem:[%s1969_s2 + $0x28] sm:$0xff]  ;;  %v120_v6 = vld [vmem:[%s1969_s2 + $0x10] sm:$0xff]  ;;  %v121_v7 = vld [vmem:[%s1969_s2 + $0x18] sm:$0xff] }
   0x3   :  { %v128_v5 = vpack.c.bf16 %v123_v4, %v122_v2  ;;  %v22_v8 = vld [vmem:[%s1967_s0] sm:$0xff]  ;;  %v23_v9 = vld [vmem:[%s1967_s0 + $0x8] sm:$0xff]  ;;  %v127_v11 = vpack.c.bf16 %v121_v7, %v120_v6  ;;  %v24_v15 = vld [vmem:[%s1967_s0 + $0x10] sm:$0xff] }
   0x4   :  { %1092 = vmatprep.subr.bf16.mxu0 %v129_v3  ;;  %1164 = vmatprep.subr.bf16.mxu1 %v129_v3  ;;  %v86_v10 = vpack.c.bf16 %v23_v9, %v22_v8  ;;  %v118_v12 = vld [vmem:[%s1969_s2] sm:$0xff]  ;;  %v119_v13 = vld [vmem:[%s1969_s2 + $0x8] sm:$0xff]  ;;  %v25_v16 = vld [vmem:[%s1967_s0 + $0x18] sm:$0xff] }
   0x5   :  { %1093 = vmatpush3.bf16.msra.mxu0 %v129_v3  ;;  %1168 = vmatpush3.bf16.msra.mxu1 %v129_v3  ;;  %v126_v14 = vpack.c.bf16 %v119_v13, %v118_v12  ;;  %v26_v17 = vld [vmem:[%s1967_s0 + $0x20] sm:$0xff]  ;;  %v27_v18 = vld [vmem:[%s1967_s0 + $0x28] sm:$0xff]  ;;  %v56_v22 = vld [vmem:[%s1967_s0 + $0x110] sm:$0xff]  ;;  %v87_v25 = vpack.c.bf16 %v25_v16, %v24_v15 }
   0x6   :  { %1094 = vmatprep.subr.bf16.mxu0 %v128_v5  ;;  %1165 = vmatprep.subr.bf16.mxu1 %v128_v5  ;;  %v54_v19 = vld [vmem:[%s1967_s0 + $0x100] sm:$0xff]  ;;  %v55_v20 = vld [vmem:[%s1967_s0 + $0x108] sm:$0xff]  ;;  %v57_v23 = vld [vmem:[%s1967_s0 + $0x118] sm:$0xff]  ;;  %v88_v28 = vpack.c.bf16 %v27_v18, %v26_v17 }
   0x7   :  { %1100 = vmatprep.mubr.msk.bf16.mxu0 %vm137_vm0, %v86_v10  ;;  %v102_v21 = vpack.c.bf16 %v55_v20, %v54_v19  ;;  %v58_v24 = vld [vmem:[%s1967_s0 + $0x120] sm:$0xff]  ;;  %v103_v26 = vpack.c.bf16 %v57_v23, %v56_v22  ;;  %v59_v27 = vld [vmem:[%s1967_s0 + $0x128] sm:$0xff]  ;;  %v28_v30 = vld [vmem:[%s1967_s0 + $0x30] sm:$0xff] }
   0x8   :  { %v104_v29 = vpack.c.bf16 %v59_v27, %v58_v24  ;;  %v29_v31 = vld [vmem:[%s1967_s0 + $0x38] sm:$0xff]  ;;  %v30_v32 = vld [vmem:[%s1967_s0 + $0x40] sm:$0xff]  ;;  %v60_v33 = vld [vmem:[%s1967_s0 + $0x130] sm:$0xff] }
   0x9   :  { %1095 = vmatpush3.bf16.msra.mxu0 %v128_v5  ;;  %1169 = vmatpush3.bf16.msra.mxu1 %v128_v5  ;;  %v61_v34 = vld [vmem:[%s1967_s0 + $0x138] sm:$0xff]  ;;  %v31_v35 = vld [vmem:[%s1967_s0 + $0x48] sm:$0xff]  ;;  %v62_v36 = vld [vmem:[%s1967_s0 + $0x140] sm:$0xff]  ;;  %v89_v38 = vpack.c.bf16 %v29_v31, %v28_v30 }
   0xa   :  { %1096 = vmatprep.subr.bf16.mxu0 %v127_v11  ;;  %1166 = vmatprep.subr.bf16.mxu1 %v127_v11  ;;  %v63_v37 = vld [vmem:[%s1967_s0 + $0x148] sm:$0xff]  ;;  %v105_v39 = vpack.c.bf16 %v61_v34, %v60_v33  ;;  %v90_v40 = vpack.c.bf16 %v31_v35, %v30_v32 }
   0xb   :  { %1132 = vmatprep.mubr.msk.bf16.mxu1 %vm137_vm0, %v102_v21  ;;  %v106_v41 = vpack.c.bf16 %v63_v37, %v62_v36 }
   0xd   :  { %1097 = vmatpush3.bf16.msra.mxu0 %v127_v11  ;;  %1170 = vmatpush3.bf16.msra.mxu1 %v127_v11 }
   0xe   :  { %1098 = vmatprep.subr.bf16.mxu0 %v126_v14  ;;  %1167 = vmatprep.subr.bf16.mxu1 %v126_v14 }
  0x11   :  { %1099 = vmatpush3.bf16.msra.mxu0 %v126_v14  ;;  %1171 = vmatpush3.bf16.msra.mxu1 %v126_v14 }
  0x14   :  { %1101 = vmatmul.mubr.msk.bf16.vlgmr.msra.gmra.mxu0 %vm137_vm0, %v87_v25  ;;  %1133 = vmatmul.mubr.msk.bf16.vlgmr.msra.gmra.mxu1 %vm137_vm0, %v103_v26 }
  0x15   :  { %1104 = vmatprep.mubr.msk.bf16.mxu0 %vm137_vm0, %v88_v28  ;;  %1136 = vmatprep.mubr.msk.bf16.mxu1 %vm137_vm0, %v104_v29 }
  0x16   :  { %10 = vsyncpa [#allocation3], 0  ;;  %v32_v42 = vld [vmem:[%s1967_s0 + $0x50] sm:$0xff]  ;;  %v33_v43 = vld [vmem:[%s1967_s0 + $0x58] sm:$0xff]  ;;  %vm1007_vm1 = vcmask 0  }
  0x17   :  { %v34_v44 = vld [vmem:[%s1967_s0 + $0x60] sm:$0xff]  ;;  %v64_v45 = vld [vmem:[%s1967_s0 + $0x150] sm:$0xff]  ;;  %v65_v46 = vld [vmem:[%s1967_s0 + $0x158] sm:$0xff]  ;;  %v91_v50 = vpack.c.bf16 %v33_v43, %v32_v42 }
  0x18   :  { %v35_v47 = vld [vmem:[%s1967_s0 + $0x68] sm:$0xff]  ;;  %v66_v48 = vld [vmem:[%s1967_s0 + $0x160] sm:$0xff]  ;;  %v107_v51 = vpack.c.bf16 %v65_v46, %v64_v45  ;;  %v36_v54 = vld [vmem:[%s1967_s0 + $0x70] sm:$0xff] }
  0x19   :  { %v67_v49 = vld [vmem:[%s1967_s0 + $0x168] sm:$0xff]  ;;  %v92_v52 = vpack.c.bf16 %v35_v47, %v34_v44  ;;  %v37_v55 = vld [vmem:[%s1967_s0 + $0x78] sm:$0xff]  ;;  %v38_v56 = vld [vmem:[%s1967_s0 + $0x80] sm:$0xff] }
  0x1a   :  { %v108_v53 = vpack.c.bf16 %v67_v49, %v66_v48  ;;  %v68_v57 = vld [vmem:[%s1967_s0 + $0x170] sm:$0xff]  ;;  %v69_v58 = vld [vmem:[%s1967_s0 + $0x178] sm:$0xff]  ;;  %v39_v59 = vld [vmem:[%s1967_s0 + $0x88] sm:$0xff]  ;;  %v93_v62 = vpack.c.bf16 %v37_v55, %v36_v54  ;;  %v730_v55 = vlaneseq }
  0x1b   :  { %v70_v60 = vld [vmem:[%s1967_s0 + $0x180] sm:$0xff]  ;;  %v71_v61 = vld [vmem:[%s1967_s0 + $0x188] sm:$0xff]  ;;  %v109_v63 = vpack.c.bf16 %v69_v58, %v68_v57  ;;  %v94_v0 = vpack.c.bf16 %v39_v59, %v38_v56  ;;  %v40_v2 = vld [vmem:[%s1967_s0 + $0x90] sm:$0xff] }
  0x1c   :  { %1105 = vmatmul.mubr.msk.bf16.gmra.mxu0 %vm137_vm0, %v89_v38  ;;  %1137 = vmatmul.mubr.msk.bf16.gmra.mxu1 %vm137_vm0, %v105_v39  ;;  %v110_v1 = vpack.c.bf16 %v71_v61, %v70_v60  ;;  %v41_v3 = vld [vmem:[%s1967_s0 + $0x98] sm:$0xff]  ;;  %v42_v4 = vld [vmem:[%s1967_s0 + $0xa0] sm:$0xff]  ;;  %v72_v5 = vld [vmem:[%s1967_s0 + $0x190] sm:$0xff]  ;;  %v731_v57 = vshrl.u32 %v730_v55, 7 }
  0x1d   :  { %1108 = vmatprep.mubr.msk.bf16.mxu0 %vm137_vm0, %v90_v40  ;;  %1140 = vmatprep.mubr.msk.bf16.mxu1 %vm137_vm0, %v106_v41  ;;  %v73_v6 = vld [vmem:[%s1967_s0 + $0x198] sm:$0xff]  ;;  %v43_v7 = vld [vmem:[%s1967_s0 + $0xa8] sm:$0xff]  ;;  %v74_v8 = vld [vmem:[%s1967_s0 + $0x1a0] sm:$0xff]  ;;  %v95_v10 = vpack.c.bf16 %v41_v3, %v40_v2 }
  0x1e   :  { %v75_v9 = vld [vmem:[%s1967_s0 + $0x1a8] sm:$0xff]  ;;  %v111_v11 = vpack.c.bf16 %v73_v6, %v72_v5  ;;  %v96_v12 = vpack.c.bf16 %v43_v7, %v42_v4  ;;  %v44_v14 = vld [vmem:[%s1967_s0 + $0xb0] sm:$0xff]  ;;  %v45_v15 = vld [vmem:[%s1967_s0 + $0xb8] sm:$0xff] }
  0x1f   :  { %v112_v13 = vpack.c.bf16 %v75_v9, %v74_v8  ;;  %v46_v16 = vld [vmem:[%s1967_s0 + $0xc0] sm:$0xff]  ;;  %v76_v17 = vld [vmem:[%s1967_s0 + $0x1b0] sm:$0xff]  ;;  %v77_v18 = vld [vmem:[%s1967_s0 + $0x1b8] sm:$0xff]  ;;  %v97_v22 = vpack.c.bf16 %v45_v15, %v44_v14 }
  0x20   :  { %v47_v19 = vld [vmem:[%s1967_s0 + $0xc8] sm:$0xff]  ;;  %v78_v20 = vld [vmem:[%s1967_s0 + $0x1c0] sm:$0xff]  ;;  %v113_v23 = vpack.c.bf16 %v77_v18, %v76_v17  ;;  %v48_v26 = vld [vmem:[%s1967_s0 + $0xd0] sm:$0xff] }
  0x21   :  { %v79_v21 = vld [vmem:[%s1967_s0 + $0x1c8] sm:$0xff]  ;;  %v98_v24 = vpack.c.bf16 %v47_v19, %v46_v16  ;;  %v49_v27 = vld [vmem:[%s1967_s0 + $0xd8] sm:$0xff]  ;;  %v50_v28 = vld [vmem:[%s1967_s0 + $0xe0] sm:$0xff] }
  0x22   :  { %v114_v25 = vpack.c.bf16 %v79_v21, %v78_v20  ;;  %v80_v29 = vld [vmem:[%s1967_s0 + $0x1d0] sm:$0xff]  ;;  %v81_v30 = vld [vmem:[%s1967_s0 + $0x1d8] sm:$0xff]  ;;  %v51_v31 = vld [vmem:[%s1967_s0 + $0xe8] sm:$0xff]  ;;  %v99_v34 = vpack.c.bf16 %v49_v27, %v48_v26 }
  0x23   :  { %v82_v32 = vld [vmem:[%s1967_s0 + $0x1e0] sm:$0xff]  ;;  %v83_v33 = vld [vmem:[%s1967_s0 + $0x1e8] sm:$0xff]  ;;  %v115_v35 = vpack.c.bf16 %v81_v30, %v80_v29  ;;  %v100_v36 = vpack.c.bf16 %v51_v31, %v50_v28  ;;  %v52_v38 = vld [vmem:[%s1967_s0 + $0xf0] sm:$0xff] }
  0x24   :  { %1109 = vmatmul.mubr.msk.bf16.gmra.mxu0 %vm137_vm0, %v91_v50  ;;  %1141 = vmatmul.mubr.msk.bf16.gmra.mxu1 %vm137_vm0, %v107_v51  ;;  %v116_v37 = vpack.c.bf16 %v83_v33, %v82_v32  ;;  %v53_v39 = vld [vmem:[%s1967_s0 + $0xf8] sm:$0xff]  ;;  %v84_v40 = vld [vmem:[%s1967_s0 + $0x1f0] sm:$0xff]  ;;  %v523_v44 = vld [vmem:[%s1971_s4] sm:$0x1] }
  0x25   :  { %1112 = vmatprep.mubr.msk.bf16.mxu0 %vm137_vm0, %v92_v52  ;;  %1144 = vmatprep.mubr.msk.bf16.mxu1 %vm137_vm0, %v108_v53  ;;  %v85_v41 = vld [vmem:[%s1967_s0 + $0x1f8] sm:$0xff]  ;;  %v101_v42 = vpack.c.bf16 %v53_v39, %v52_v38  ;;  %v525_v45 = vand.u32 2147483647, %v523_v44  ;;  %v524_v51 = vmax.f32 %v523_v44, 0.0  ;;  %v1491_v56 = vld [vmem:[%s1970_s3] ss:$0 sm:$0xff] }
  0x26   :  { %v117_v43 = vpack.c.bf16 %v85_v41, %v84_v40  ;;  %v539_v59 = vld [vmem:[%s1968_s1 + $0x10] sm:$0xff]  ;;  %v540_v7 = vld [vmem:[%s1968_s1 + $0x18] sm:$0xff]  ;;  %v538_v15 = vld [vmem:[%s1968_s1 + $0x8] sm:$0xff] }
  0x27   :  { %v526_v46 = vsub.f32 0.0, %v525_v45  ;;  %v541_v31 = vld [vmem:[%s1968_s1 + $0x20] sm:$0xff]  ;;  %v544_v38 = vld [vmem:[%s1968_s1 + $0x38] sm:$0xff]  ;;  %v542_v44 = vld [vmem:[%s1968_s1 + $0x28] sm:$0xff] }
  0x29   :  { %v527_v47 = vmul.f32 1.442695, %v526_v46 }
  0x2b   :  { %1175 = vpow2.f32 %v527_v47 }
  0x2c   :  { %1113 = vmatmul.mubr.msk.bf16.gmra.mxu0 %vm137_vm0, %v93_v62  ;;  %1145 = vmatmul.mubr.msk.bf16.gmra.mxu1 %vm137_vm0, %v109_v63  ;;  %v732_v63 = vsub.s32 0, %v731_v57 }
  0x2d   :  { %1116 = vmatprep.mubr.msk.bf16.mxu0 %vm137_vm0, %v94_v0  ;;  %1148 = vmatprep.mubr.msk.bf16.mxu1 %vm137_vm0, %v110_v1  ;;  %v537_v1 = vld [vmem:[%s1968_s1] sm:$0xff] }
  0x34   :  { %1117 = vmatmul.mubr.msk.bf16.gmra.mxu0 %vm137_vm0, %v95_v10  ;;  %1149 = vmatmul.mubr.msk.bf16.gmra.mxu1 %vm137_vm0, %v111_v11 }
  0x35   :  { %1120 = vmatprep.mubr.msk.bf16.mxu0 %vm137_vm0, %v96_v12  ;;  %1152 = vmatprep.mubr.msk.bf16.mxu1 %vm137_vm0, %v112_v13 }
  0x38   :  { %v1176_v48 = vpop.eup %1175 }
  0x39   :  { %v529_v49 = vadd.f32 1.0, %v1176_v48 }
  0x3b   :  { %1177 = vlog2.f32 %v529_v49 }
  0x3c   :  { %1121 = vmatmul.mubr.msk.bf16.gmra.mxu0 %vm137_vm0, %v97_v22  ;;  %1153 = vmatmul.mubr.msk.bf16.gmra.mxu1 %vm137_vm0, %v113_v23 }
  0x3d   :  { %1124 = vmatprep.mubr.msk.bf16.mxu0 %vm137_vm0, %v98_v24  ;;  %1156 = vmatprep.mubr.msk.bf16.mxu1 %vm137_vm0, %v114_v25  ;;  %v543_v25 = vld [vmem:[%s1968_s1 + $0x30] sm:$0xff] }
  0x44   :  { %1125 = vmatmul.mubr.msk.bf16.gmra.mxu0 %vm137_vm0, %v99_v34  ;;  %1157 = vmatmul.mubr.msk.bf16.gmra.mxu1 %vm137_vm0, %v115_v35 }
  0x45   :  { %1128 = vmatprep.mubr.msk.bf16.mxu0 %vm137_vm0, %v100_v36  ;;  %1160 = vmatprep.mubr.msk.bf16.mxu1 %vm137_vm0, %v116_v37 }
  0x48   :  { %v1178_v50 = vpop.eup %1177 }
  0x49   :  { %v531_v52 = vmul.f32 0.6931472, %v1178_v50 }
  0x4b   :  { %v532_v53 = vadd.f32 %v531_v52, %v524_v51 }
  0x4c   :  { %1129 = vmatmul.mubr.msk.bf16.gmra.mxu0 %vm137_vm0, %v101_v42  ;;  %1161 = vmatmul.mubr.msk.bf16.gmra.mxu1 %vm137_vm0, %v117_v43 }
  0x4d   :  { %v533_v54 = vadd.f32 1e-05, %v532_v53 }
  0x4f   :  { %1179 = vrcp.f32 %v533_v54 }
  0x50   :  { %1181 = vlog2.f32 %v533_v54  ;;  %v547_v54 = vld [vmem:[%s1968_s1 + $0x50] sm:$0xff] }
  0x5c   :  { %v1180_v62 = vpop.eup %1179 }
  0x5d   :  { %v1182_v3 = vpop.eup %1181  ;;  %v1511_v13 = vrot.slane %v1180_v62, %v732_v63 }
  0x5e   :  { %v536_v11 = vmul.f32 0.6931472, %v1182_v3 }
  0x60   :  { %v1526_v27 = vrot.slane %v536_v11, %v732_v63 }
  0xd4   :  { %v1102_v58 = vpop.f32.mrf.mxu0  ;;  %v1496_v60 = vpop.f32.mrf.mxu1 }
  0xd5   :  { %v277_v61 = vadd.f32 %v1102_v58, %v1491_v56 }
  0xd6   :  { %v268_v0 = vpop.f32.mrf.mxu0  ;;  %v1502_v2 = vpop.f32.mrf.mxu1 }
  0xd7   :  { %v603_v4 = vsub.f32 %v277_v61, %v539_v59  ;;  %v269_v5 = vadd.f32 %v1491_v56, %v268_v0 }
  0xd8   :  { %v1103_v6 = vpop.f32.mrf.mxu0  ;;  %v1508_v8 = vpop.f32.mrf.mxu1 }
  0xd9   :  { %v601_v9 = vsub.f32 %v269_v5, %v537_v1  ;;  %v280_v10 = vadd.f32 %v1103_v6, %v1491_v56  ;;  %v667_v12 = vmul.f32 %v603_v4, %v603_v4  ;;  %v545_v5 = vld [vmem:[%s1968_s1 + $0x40] sm:$0xff] }
  0xda   :  { %v271_v14 = vpop.f32.mrf.mxu0  ;;  %v1516_v16 = vpop.f32.mrf.mxu1 }
  0xdb   :  { %v665_v17 = vmul.f32 %v601_v9, %v601_v9  ;;  %v604_v18 = vsub.f32 %v280_v10, %v540_v7  ;;  %v272_v19 = vadd.f32 %v1491_v56, %v271_v14  ;;  %v737_v26 = vmul.f32 %v1511_v13, %v667_v12 }
  0xdc   :  { %v1106_v20 = vpop.f32.mrf.mxu0  ;;  %v1519_v21 = vpop.f32.mrf.mxu1 }
  0xdd   :  { %v735_v22 = vmul.f32 %v1511_v13, %v665_v17  ;;  %v668_v23 = vmul.f32 %v604_v18, %v604_v18  ;;  %v602_v24 = vsub.f32 %v272_v19, %v538_v15  ;;  %v293_v28 = vadd.f32 %v1106_v20, %v1491_v56  ;;  %v548_v17 = vld [vmem:[%s1968_s1 + $0x58] sm:$0xff] }
  0xde   :  { %v284_v29 = vpop.f32.mrf.mxu0  ;;  %v1532_v32 = vpop.f32.mrf.mxu1  ;;  %v807_v41 = vadd.f32 %v1526_v27, %v737_v26 }
  0xdf   :  { %v666_v30 = vmul.f32 %v602_v24, %v602_v24  ;;  %v805_v33 = vadd.f32 %v1526_v27, %v735_v22  ;;  %v738_v34 = vmul.f32 %v1511_v13, %v668_v23  ;;  %v607_v35 = vsub.f32 %v293_v28, %v543_v25  ;;  %v546_v28 = vld [vmem:[%s1968_s1 + $0x48] sm:$0xff] }
  0xe0   :  { %v285_v36 = vadd.f32 %v1491_v56, %v284_v29  ;;  %v1107_v37 = vpop.f32.mrf.mxu0  ;;  %v1548_v49 = vpop.f32.mrf.mxu1  ;;  %v871_v61 = vmul.f32 0.5, %v807_v41 }
  0xe1   :  { %v736_v39 = vmul.f32 %v1511_v13, %v666_v30  ;;  %v296_v40 = vadd.f32 %v1107_v37, %v1491_v56  ;;  %v671_v46 = vmul.f32 %v607_v35, %v607_v35  ;;  %v869_v50 = vmul.f32 0.5, %v805_v33 }
  0xe2   :  { %v605_v42 = vsub.f32 %v285_v36, %v541_v31  ;;  %v287_v43 = vpop.f32.mrf.mxu0  ;;  %v808_v51 = vadd.f32 %v1526_v27, %v738_v34  ;;  %v1560_v6 = vpop.f32.mrf.mxu1  ;;  %v551_v36 = vld [vmem:[%s1968_s1 + $0x70] sm:$0xff] }
  0xe3   :  { %v806_v45 = vadd.f32 %v1526_v27, %v736_v39  ;;  %v608_v47 = vsub.f32 %v296_v40, %v544_v38  ;;  %v288_v48 = vadd.f32 %v1491_v56, %v287_v43  ;;  %v741_v1 = vmul.f32 %v1511_v13, %v671_v46 }
  0xe4   :  { %v669_v52 = vmul.f32 %v605_v42, %v605_v42  ;;  %v1110_v53 = vpop.f32.mrf.mxu0  ;;  %v872_v12 = vmul.f32 0.5, %v808_v51  ;;  %v1575_v29 = vpop.f32.mrf.mxu1 }
  0xe5   :  { %v870_v55 = vmul.f32 0.5, %v806_v45  ;;  %v672_v57 = vmul.f32 %v608_v47, %v608_v47  ;;  %v606_v58 = vsub.f32 %v288_v48, %v542_v44  ;;  %v309_v59 = vadd.f32 %v1110_v53, %v1491_v56  ;;  %v549_v45 = vld [vmem:[%s1968_s1 + $0x60] sm:$0xff] }
  0xe6   :  { %v739_v62 = vmul.f32 %v1511_v13, %v669_v52  ;;  %v300_v63 = vpop.f32.mrf.mxu0  ;;  %v811_v23 = vadd.f32 %v1526_v27, %v741_v1  ;;  %v1589_v51 = vpop.f32.mrf.mxu1 }
  0xe7   :  { %v933_v0 = vadd.f32 %v870_v55, %v869_v50  ;;  %v670_v3 = vmul.f32 %v606_v58, %v606_v58  ;;  %v611_v4 = vsub.f32 %v309_v59, %v547_v54  ;;  %v742_v9 = vmul.f32 %v1511_v13, %v672_v57  ;;  %v552_v57 = vld [vmem:[%s1968_s1 + $0x78] sm:$0xff] }
  0xe8   :  { %v809_v7 = vadd.f32 %v1526_v27, %v739_v62  ;;  %v301_v10 = vadd.f32 %v1491_v56, %v300_v63  ;;  %v1111_v11 = vpop.f32.mrf.mxu0  ;;  %v875_v46 = vmul.f32 0.5, %v811_v23 }
  0xe9   :  { %v934_v14 = vadd.f32 %v933_v0, %v871_v61  ;;  %v740_v15 = vmul.f32 %v1511_v13, %v670_v3  ;;  %v675_v18 = vmul.f32 %v611_v4, %v611_v4  ;;  %v312_v20 = vadd.f32 %v1111_v11, %v1491_v56  ;;  %v1602_v11 = vpop.f32.mrf.mxu1 }
  0xea   :  { %v609_v19 = vsub.f32 %v301_v10, %v545_v5  ;;  %v303_v22 = vpop.f32.mrf.mxu0  ;;  %v873_v24 = vmul.f32 0.5, %v809_v7  ;;  %v812_v30 = vadd.f32 %v1526_v27, %v742_v9  ;;  %v550_v10 = vld [vmem:[%s1968_s1 + $0x68] sm:$0xff] }
  0xeb   :  { %v935_v25 = vadd.f32 %v934_v14, %v872_v12  ;;  %v810_v26 = vadd.f32 %v1526_v27, %v740_v15  ;;  %v612_v33 = vsub.f32 %v312_v20, %v548_v17  ;;  %v304_v34 = vadd.f32 %v1491_v56, %v303_v22  ;;  %v555_v22 = vld [vmem:[%s1968_s1 + $0x90] sm:$0xff] }
  0xec   :  { %v673_v31 = vmul.f32 %v609_v19, %v609_v19  ;;  %v1114_v35 = vpop.f32.mrf.mxu0  ;;  %v745_v40 = vmul.f32 %v1511_v13, %v675_v18  ;;  %v876_v52 = vmul.f32 0.5, %v812_v30  ;;  %v553_v30 = vld [vmem:[%s1968_s1 + $0x80] sm:$0xff] }
  0xed   :  { %v936_v37 = vadd.f32 %v935_v25, %v873_v24  ;;  %v874_v38 = vmul.f32 0.5, %v810_v26  ;;  %v325_v39 = vadd.f32 %v1114_v35, %v1491_v56  ;;  %v676_v42 = vmul.f32 %v612_v33, %v612_v33  ;;  %v1618_v35 = vpop.f32.mrf.mxu1 }
  0xee   :  { %v743_v41 = vmul.f32 %v1511_v13, %v673_v31  ;;  %v610_v43 = vsub.f32 %v304_v34, %v546_v28  ;;  %v316_v44 = vpop.f32.mrf.mxu0  ;;  %v815_v63 = vadd.f32 %v1526_v27, %v745_v40 }
  0xef   :  { %v937_v47 = vadd.f32 %v936_v37, %v874_v38  ;;  %v615_v48 = vsub.f32 %v325_v39, %v551_v36  ;;  %v317_v50 = vadd.f32 %v1491_v56, %v316_v44  ;;  %v746_v59 = vmul.f32 %v1511_v13, %v676_v42 }
  0xf0   :  { %v813_v53 = vadd.f32 %v1526_v27, %v743_v41  ;;  %v674_v54 = vmul.f32 %v610_v43, %v610_v43  ;;  %v1115_v55 = vpop.f32.mrf.mxu0  ;;  %v879_v31 = vmul.f32 0.5, %v815_v63  ;;  %v556_v41 = vld [vmem:[%s1968_s1 + $0x98] sm:$0xff] }
  0xf1   :  { %v938_v58 = vadd.f32 %v937_v47, %v875_v46  ;;  %v613_v61 = vsub.f32 %v317_v50, %v549_v45  ;;  %v328_v62 = vadd.f32 %v1115_v55, %v1491_v56  ;;  %v679_v1 = vmul.f32 %v615_v48, %v615_v48  ;;  %v554_v50 = vld [vmem:[%s1968_s1 + $0x88] sm:$0xff] }
  0xf2   :  { %v744_v0 = vmul.f32 %v1511_v13, %v674_v54  ;;  %v319_v3 = vpop.f32.mrf.mxu0  ;;  %v877_v4 = vmul.f32 0.5, %v813_v53  ;;  %v816_v18 = vadd.f32 %v1526_v27, %v746_v59 }
  0xf3   :  { %v939_v5 = vadd.f32 %v938_v58, %v876_v52  ;;  %v677_v7 = vmul.f32 %v613_v61, %v613_v61  ;;  %v616_v9 = vsub.f32 %v328_v62, %v552_v57  ;;  %v320_v14 = vadd.f32 %v1491_v56, %v319_v3  ;;  %v1631_v57 = vpop.f32.mrf.mxu1 }
  0xf4   :  { %v814_v12 = vadd.f32 %v1526_v27, %v744_v0  ;;  %v1118_v15 = vpop.f32.mrf.mxu0  ;;  %v749_v24 = vmul.f32 %v1511_v13, %v679_v1  ;;  %v880_v44 = vmul.f32 0.5, %v816_v18  ;;  %v559_v0 = vld [vmem:[%s1968_s1 + $0xb0] sm:$0xff] }
  0xf5   :  { %v940_v17 = vadd.f32 %v939_v5, %v877_v4  ;;  %v747_v19 = vmul.f32 %v1511_v13, %v677_v7  ;;  %v680_v20 = vmul.f32 %v616_v9, %v616_v9  ;;  %v614_v25 = vsub.f32 %v320_v14, %v550_v10  ;;  %v1644_v18 = vpop.f32.mrf.mxu1 }
  0xf6   :  { %v878_v23 = vmul.f32 0.5, %v814_v12  ;;  %v341_v26 = vadd.f32 %v1118_v15, %v1491_v56  ;;  %v332_v28 = vpop.f32.mrf.mxu0  ;;  %v819_v46 = vadd.f32 %v1526_v27, %v749_v24 }
  0xf7   :  { %v817_v33 = vadd.f32 %v1526_v27, %v747_v19  ;;  %v333_v34 = vadd.f32 %v1491_v56, %v332_v28  ;;  %v750_v37 = vmul.f32 %v1511_v13, %v680_v20  ;;  %v678_v38 = vmul.f32 %v614_v25, %v614_v25 }
  0xf8   :  { %v941_v36 = vadd.f32 %v940_v17, %v878_v23  ;;  %v619_v39 = vsub.f32 %v341_v26, %v555_v22  ;;  %v1119_v40 = vpop.f32.mrf.mxu0  ;;  %v557_v17 = vld [vmem:[%s1968_s1 + $0xa0] sm:$0xff]  ;;  %v883_v19 = vmul.f32 0.5, %v819_v46 }
  0xf9   :  { %v617_v42 = vsub.f32 %v333_v34, %v553_v30  ;;  %v344_v43 = vadd.f32 %v1119_v40, %v1491_v56  ;;  %v748_v47 = vmul.f32 %v1511_v13, %v678_v38  ;;  %v881_v58 = vmul.f32 0.5, %v817_v33  ;;  %v560_v30 = vld [vmem:[%s1968_s1 + $0xb8] sm:$0xff]  ;;  %v558_v38 = vld [vmem:[%s1968_s1 + $0xa8] sm:$0xff] }
  0xfa   :  { %v942_v45 = vadd.f32 %v941_v36, %v879_v31  ;;  %v335_v48 = vpop.f32.mrf.mxu0  ;;  %v683_v52 = vmul.f32 %v619_v39, %v619_v39  ;;  %v820_v61 = vadd.f32 %v1526_v27, %v750_v37 }
  0xfb   :  { %v681_v53 = vmul.f32 %v617_v42, %v617_v42  ;;  %v620_v54 = vsub.f32 %v344_v43, %v556_v41  ;;  %v336_v55 = vadd.f32 %v1491_v56, %v335_v48  ;;  %v818_v62 = vadd.f32 %v1526_v27, %v748_v47  ;;  %v1660_v42 = vpop.f32.mrf.mxu1  ;;  %v563_v48 = vld [vmem:[%s1968_s1 + $0xd0] sm:$0xff] }
  0xfc   :  { %v943_v59 = vadd.f32 %v942_v45, %v880_v44  ;;  %v1122_v63 = vpop.f32.mrf.mxu0  ;;  %v753_v12 = vmul.f32 %v1511_v13, %v683_v52  ;;  %v884_v25 = vmul.f32 0.5, %v820_v61 }
  0xfd   :  { %v751_v1 = vmul.f32 %v1511_v13, %v681_v53  ;;  %v684_v3 = vmul.f32 %v620_v54, %v620_v54  ;;  %v618_v4 = vsub.f32 %v336_v55, %v554_v50  ;;  %v357_v5 = vadd.f32 %v1122_v63, %v1491_v56  ;;  %v561_v63 = vld [vmem:[%s1968_s1 + $0xc0] sm:$0xff] }
  0xfe   :  { %v944_v7 = vadd.f32 %v943_v59, %v881_v58  ;;  %v882_v9 = vmul.f32 0.5, %v818_v62  ;;  %v348_v10 = vpop.f32.mrf.mxu0  ;;  %v823_v39 = vadd.f32 %v1526_v27, %v753_v12  ;;  %v564_v12 = vld [vmem:[%s1968_s1 + $0xd8] sm:$0xff] }
  0xff   :  { %v682_v14 = vmul.f32 %v618_v4, %v618_v4  ;;  %v623_v15 = vsub.f32 %v357_v5, %v559_v0  ;;  %v821_v22 = vadd.f32 %v1526_v27, %v751_v1  ;;  %v349_v23 = vadd.f32 %v1491_v56, %v348_v10  ;;  %v1673_v4 = vpop.f32.mrf.mxu1 }
 0x100   :  { %v945_v20 = vadd.f32 %v944_v7, %v882_v9  ;;  %v1123_v24 = vpop.f32.mrf.mxu0  ;;  %v754_v26 = vmul.f32 %v1511_v13, %v684_v3  ;;  %v887_v5 = vmul.f32 0.5, %v823_v39 }
 0x101   :  { %v752_v28 = vmul.f32 %v1511_v13, %v682_v14  ;;  %v687_v33 = vmul.f32 %v623_v15, %v623_v15  ;;  %v621_v34 = vsub.f32 %v349_v23, %v557_v17  ;;  %v360_v36 = vadd.f32 %v1123_v24, %v1491_v56 }
 0x102   :  { %v946_v31 = vadd.f32 %v945_v20, %v883_v19  ;;  %v351_v37 = vpop.f32.mrf.mxu0  ;;  %v885_v43 = vmul.f32 0.5, %v821_v22  ;;  %v824_v50 = vadd.f32 %v1526_v27, %v754_v26 }
 0x103   :  { %v822_v40 = vadd.f32 %v1526_v27, %v752_v28  ;;  %v352_v41 = vadd.f32 %v1491_v56, %v351_v37  ;;  %v685_v45 = vmul.f32 %v621_v34, %v621_v34  ;;  %v624_v46 = vsub.f32 %v360_v36, %v560_v30 }
 0x104   :  { %v947_v44 = vadd.f32 %v946_v31, %v884_v25  ;;  %v1126_v47 = vpop.f32.mrf.mxu0  ;;  %v757_v58 = vmul.f32 %v1511_v13, %v687_v33  ;;  %v888_v20 = vmul.f32 0.5, %v824_v50  ;;  %v562_v31 = vld [vmem:[%s1968_s1 + $0xc8] sm:$0xff]  ;;  %v1687_v33 = vpop.f32.mrf.mxu1 }
 0x105   :  { %v886_v52 = vmul.f32 0.5, %v822_v40  ;;  %v622_v53 = vsub.f32 %v352_v41, %v558_v38  ;;  %v373_v54 = vadd.f32 %v1126_v47, %v1491_v56  ;;  %v755_v59 = vmul.f32 %v1511_v13, %v685_v45 }
 0x106   :  { %v948_v55 = vadd.f32 %v947_v44, %v885_v43  ;;  %v688_v61 = vmul.f32 %v624_v46, %v624_v46  ;;  %v364_v62 = vpop.f32.mrf.mxu0  ;;  %v827_v23 = vadd.f32 %v1526_v27, %v757_v58  ;;  %v567_v43 = vld [vmem:[%s1968_s1 + $0xf0] sm:$0xff]  ;;  %v397_v44 = vadd.f32 %v1491_v56, %v1502_v2 }
 0x107   :  { %v686_v0 = vmul.f32 %v622_v53, %v622_v53  ;;  %v627_v1 = vsub.f32 %v373_v54, %v563_v48  ;;  %v365_v3 = vadd.f32 %v1491_v56, %v364_v62  ;;  %v825_v9 = vadd.f32 %v1526_v27, %v755_v59  ;;  %v569_v53 = vld [vmem:[%s1968_s1 + $0x100] sm:$0xff]  ;;  %v1708_v59 = vpop.f32.mrf.mxu1 }
 0x108   :  { %v949_v7 = vadd.f32 %v948_v55, %v886_v52  ;;  %v1127_v10 = vpop.f32.mrf.mxu0  ;;  %v758_v14 = vmul.f32 %v1511_v13, %v688_v61  ;;  %v565_v52 = vld [vmem:[%s1968_s1 + $0xe0] sm:$0xff]  ;;  %v891_v54 = vmul.f32 0.5, %v827_v23  ;;  %v405_v2 = vadd.f32 %v1496_v60, %v1491_v56 }
 0x109   :  { %v756_v15 = vmul.f32 %v1511_v13, %v686_v0  ;;  %v625_v17 = vsub.f32 %v365_v3, %v561_v63  ;;  %v376_v19 = vadd.f32 %v1127_v10, %v1491_v56  ;;  %v691_v26 = vmul.f32 %v627_v1, %v627_v1  ;;  %v568_v3 = vld [vmem:[%s1968_s1 + $0xf8] sm:$0xff] }
 0x10a   :  { %v950_v22 = vadd.f32 %v949_v7, %v887_v5  ;;  %v367_v24 = vpop.f32.mrf.mxu0  ;;  %v889_v34 = vmul.f32 0.5, %v825_v9  ;;  %v828_v39 = vadd.f32 %v1526_v27, %v758_v14  ;;  %v633_v9 = vsub.f32 %v397_v44, %v569_v53 }
 0x10b   :  { %v826_v25 = vadd.f32 %v1526_v27, %v756_v15  ;;  %v689_v28 = vmul.f32 %v625_v17, %v625_v17  ;;  %v628_v30 = vsub.f32 %v376_v19, %v564_v12  ;;  %v368_v37 = vadd.f32 %v1491_v56, %v367_v24  ;;  %v566_v19 = vld [vmem:[%s1968_s1 + $0xe8] sm:$0xff] }
 0x10c   :  { %v951_v36 = vadd.f32 %v950_v22, %v888_v20  ;;  %v1130_v38 = vpop.f32.mrf.mxu0  ;;  %v761_v55 = vmul.f32 %v1511_v13, %v691_v26  ;;  %v400_v10 = vadd.f32 %v1491_v56, %v1516_v16  ;;  %v892_v60 = vmul.f32 0.5, %v828_v39  ;;  %v570_v20 = vld [vmem:[%s1968_s1 + $0x108] sm:$0xff] }
 0x10d   :  { %v890_v40 = vmul.f32 0.5, %v826_v25  ;;  %v759_v41 = vmul.f32 %v1511_v13, %v689_v28  ;;  %v692_v46 = vmul.f32 %v628_v30, %v628_v30  ;;  %v626_v47 = vsub.f32 %v368_v37, %v562_v31  ;;  %v1727_v25 = vpop.f32.mrf.mxu1 }
 0x10e   :  { %v952_v45 = vadd.f32 %v951_v36, %v889_v34  ;;  %v389_v48 = vadd.f32 %v1130_v38, %v1491_v56  ;;  %v380_v50 = vpop.f32.mrf.mxu0  ;;  %v831_v22 = vadd.f32 %v1526_v27, %v761_v55  ;;  %v571_v34 = vld [vmem:[%s1968_s1 + $0x110] sm:$0xff]  ;;  %v408_v38 = vadd.f32 %v1508_v8, %v1491_v56 }
 0x10f   :  { %v381_v58 = vadd.f32 %v1491_v56, %v380_v50  ;;  %v829_v62 = vadd.f32 %v1526_v27, %v759_v41  ;;  %v690_v63 = vmul.f32 %v626_v47, %v626_v47  ;;  %v762_v14 = vmul.f32 %v1511_v13, %v692_v46 }
 0x110   :  { %v953_v61 = vadd.f32 %v952_v45, %v890_v40  ;;  %v631_v0 = vsub.f32 %v389_v48, %v567_v43  ;;  %v1131_v1 = vpop.f32.mrf.mxu0  ;;  %v634_v39 = vsub.f32 %v400_v10, %v570_v20  ;;  %v572_v45 = vld [vmem:[%s1968_s1 + $0x118] sm:$0xff]  ;;  %v635_v46 = vsub.f32 %v405_v2, %v571_v34  ;;  %v573_v2 = vld [vmem:[%s1968_s1 + $0x120] sm:$0xff]  ;;  %v574_v10 = vld [vmem:[%s1968_s1 + $0x128] sm:$0xff] }
 0x111   :  { %v629_v5 = vsub.f32 %v381_v58, %v565_v52  ;;  %v392_v7 = vadd.f32 %v1131_v1, %v1491_v56  ;;  %v760_v15 = vmul.f32 %v1511_v13, %v690_v63  ;;  %v893_v26 = vmul.f32 0.5, %v829_v62  ;;  %v1742_v52 = vpop.f32.mrf.mxu1 }
 0x112   :  { %v954_v12 = vadd.f32 %v953_v61, %v891_v54  ;;  %v383_v17 = vpop.f32.mrf.mxu0  ;;  %v695_v31 = vmul.f32 %v631_v0, %v631_v0  ;;  %v832_v41 = vadd.f32 %v1526_v27, %v762_v14  ;;  %v697_v47 = vmul.f32 %v633_v9, %v633_v9 }
 0x113   :  { %v693_v23 = vmul.f32 %v629_v5, %v629_v5  ;;  %v632_v24 = vsub.f32 %v392_v7, %v568_v3  ;;  %v384_v16 = vadd.f32 %v1491_v56, %v383_v17  ;;  %v830_v30 = vadd.f32 %v1526_v27, %v760_v15 }
 0x114   :  { %v955_v28 = vadd.f32 %v954_v12, %v892_v60  ;;  %v413_v50 = vadd.f32 %v1491_v56, %v1532_v32  ;;  %v895_v53 = vmul.f32 0.5, %v831_v22  ;;  %v765_v54 = vmul.f32 %v1511_v13, %v695_v31  ;;  %v1760_v60 = vpop.f32.mrf.mxu1  ;;  %v575_v22 = vld [vmem:[%s1968_s1 + $0x130] sm:$0xff] }
 0x115   :  { %v763_v36 = vmul.f32 %v1511_v13, %v693_v23  ;;  %v630_v37 = vsub.f32 %v384_v16, %v566_v19  ;;  %v894_v43 = vmul.f32 0.5, %v830_v30  ;;  %v696_v44 = vmul.f32 %v632_v24, %v632_v24  ;;  %v576_v30 = vld [vmem:[%s1968_s1 + $0x138] sm:$0xff] }
 0x116   :  { %v956_v40 = vadd.f32 %v955_v28, %v893_v26  ;;  %v636_v61 = vsub.f32 %v408_v38, %v572_v45  ;;  %v698_v62 = vmul.f32 %v634_v39, %v634_v39  ;;  %v896_v63 = vmul.f32 0.5, %v832_v41  ;;  %v1777_v34 = vpop.f32.mrf.mxu1 }
 0x117   :  { %v694_v48 = vmul.f32 %v630_v37, %v630_v37  ;;  %v833_v55 = vadd.f32 %v1526_v27, %v763_v36  ;;  %v766_v32 = vmul.f32 %v1511_v13, %v696_v44  ;;  %v416_v1 = vadd.f32 %v1491_v56, %v1560_v6 }
 0x118   :  { %v957_v8 = vadd.f32 %v956_v40, %v894_v43  ;;  %v699_v3 = vmul.f32 %v635_v46, %v635_v46  ;;  %v767_v5 = vmul.f32 %v1511_v13, %v697_v47  ;;  %v421_v9 = vadd.f32 %v1519_v21, %v1491_v56  ;;  %v578_v47 = vld [vmem:[%s1968_s1 + $0x148] sm:$0xff] }
 0x119   :  { %v764_v58 = vmul.f32 %v1511_v13, %v694_v48  ;;  %v835_v12 = vadd.f32 %v1526_v27, %v765_v54  ;;  %v897_v14 = vmul.f32 0.5, %v833_v55  ;;  %v637_v17 = vsub.f32 %v413_v50, %v573_v2 }
 0x11a   :  { %v958_v0 = vadd.f32 %v957_v8, %v895_v53  ;;  %v700_v19 = vmul.f32 %v636_v61, %v636_v61  ;;  %v768_v20 = vmul.f32 %v1511_v13, %v698_v62  ;;  %v836_v23 = vadd.f32 %v1526_v27, %v766_v32  ;;  %v1792_v8 = vpop.f32.mrf.mxu1  ;;  %v579_v61 = vld [vmem:[%s1968_s1 + $0x150] sm:$0xff] }
 0x11b   :  { %v834_v7 = vadd.f32 %v1526_v27, %v764_v58  ;;  %v424_v24 = vadd.f32 %v1548_v49, %v1491_v56  ;;  %v638_v16 = vsub.f32 %v416_v1, %v574_v10  ;;  %v769_v26 = vmul.f32 %v1511_v13, %v699_v3  ;;  %v577_v49 = vld [vmem:[%s1968_s1 + $0x140] sm:$0xff]  ;;  %v580_v3 = vld [vmem:[%s1968_s1 + $0x158] sm:$0xff] }
 0x11c   :  { %v959_v15 = vadd.f32 %v958_v0, %v896_v63  ;;  %v837_v28 = vadd.f32 %v1526_v27, %v767_v5  ;;  %v429_v31 = vadd.f32 %v1491_v56, %v1589_v51  ;;  %v899_v36 = vmul.f32 0.5, %v835_v12  ;;  %v1805_v10 = vpop.f32.mrf.mxu1 }
 0x11d   :  { %v898_v6 = vmul.f32 0.5, %v834_v7  ;;  %v639_v38 = vsub.f32 %v421_v9, %v575_v22  ;;  %v701_v39 = vmul.f32 %v637_v17, %v637_v17  ;;  %v770_v40 = vmul.f32 %v1511_v13, %v700_v19 }
 0x11e   :  { %v960_v21 = vadd.f32 %v959_v15, %v897_v14  ;;  %v838_v41 = vadd.f32 %v1526_v27, %v768_v20  ;;  %v432_v43 = vadd.f32 %v1491_v56, %v1618_v35  ;;  %v900_v44 = vmul.f32 0.5, %v836_v23  ;;  %v581_v20 = vld [vmem:[%s1968_s1 + $0x160] sm:$0xff] }
 0x11f   :  { %v640_v51 = vsub.f32 %v424_v24, %v576_v30  ;;  %v702_v46 = vmul.f32 %v638_v16, %v638_v16  ;;  %v839_v48 = vadd.f32 %v1526_v27, %v769_v26  ;;  %v437_v50 = vadd.f32 %v1575_v29, %v1491_v56  ;;  %v1824_v30 = vpop.f32.mrf.mxu1 }
 0x120   :  { %v961_v37 = vadd.f32 %v960_v21, %v898_v6  ;;  %v641_v53 = vsub.f32 %v429_v31, %v577_v49  ;;  %v901_v54 = vmul.f32 0.5, %v837_v28  ;;  %v703_v58 = vmul.f32 %v639_v38, %v639_v38  ;;  %v582_v28 = vld [vmem:[%s1968_s1 + $0x168] sm:$0xff] }
 0x121   :  { %v771_v35 = vmul.f32 %v1511_v13, %v701_v39  ;;  %v840_v62 = vadd.f32 %v1526_v27, %v770_v40  ;;  %v440_v2 = vadd.f32 %v1602_v11, %v1491_v56  ;;  %v642_v63 = vsub.f32 %v432_v43, %v578_v47 }
 0x122   :  { %v962_v45 = vadd.f32 %v961_v37, %v899_v36  ;;  %v902_v0 = vmul.f32 0.5, %v838_v41  ;;  %v704_v32 = vmul.f32 %v640_v51, %v640_v51  ;;  %v772_v1 = vmul.f32 %v1511_v13, %v702_v46 }
 0x123   :  { %v903_v5 = vmul.f32 0.5, %v839_v48  ;;  %v643_v7 = vsub.f32 %v437_v50, %v579_v61  ;;  %v705_v9 = vmul.f32 %v641_v53, %v641_v53  ;;  %v773_v14 = vmul.f32 %v1511_v13, %v703_v58  ;;  %v1839_v48 = vpop.f32.mrf.mxu1  ;;  %v585_v61 = vld [vmem:[%s1968_s1 + $0x180] sm:$0xff] }
 0x124   :  { %v963_v55 = vadd.f32 %v962_v45, %v900_v44  ;;  %v841_v11 = vadd.f32 %v1526_v27, %v771_v35  ;;  %v445_v15 = vadd.f32 %v1491_v56, %v1644_v18  ;;  %v904_v17 = vmul.f32 0.5, %v840_v62  ;;  %v584_v44 = vld [vmem:[%s1968_s1 + $0x178] sm:$0xff] }
 0x125   :  { %v644_v6 = vsub.f32 %v440_v2, %v580_v3  ;;  %v706_v19 = vmul.f32 %v642_v63, %v642_v63  ;;  %v774_v21 = vmul.f32 %v1511_v13, %v704_v32  ;;  %v842_v23 = vadd.f32 %v1526_v27, %v772_v1  ;;  %v1854_v3 = vpop.f32.mrf.mxu1 }
 0x126   :  { %v964_v29 = vadd.f32 %v963_v55, %v901_v54  ;;  %v448_v24 = vadd.f32 %v1491_v56, %v1673_v4  ;;  %v707_v16 = vmul.f32 %v643_v7, %v643_v7  ;;  %v775_v26 = vmul.f32 %v1511_v13, %v705_v9  ;;  %v583_v4 = vld [vmem:[%s1968_s1 + $0x170] sm:$0xff] }
 0x127   :  { %v453_v18 = vadd.f32 %v1631_v57, %v1491_v56  ;;  %v843_v31 = vadd.f32 %v1526_v27, %v773_v14  ;;  %v905_v36 = vmul.f32 0.5, %v841_v11  ;;  %v645_v38 = vsub.f32 %v445_v15, %v581_v20  ;;  %v587_v15 = vld [vmem:[%s1968_s1 + $0x190] sm:$0xff] }
 0x128   :  { %v965_v12 = vadd.f32 %v964_v29, %v902_v0  ;;  %v708_v39 = vmul.f32 %v644_v6, %v644_v6  ;;  %v776_v49 = vmul.f32 %v1511_v13, %v706_v19  ;;  %v456_v57 = vadd.f32 %v1660_v42, %v1491_v56 }
 0x129   :  { %v844_v41 = vadd.f32 %v1526_v27, %v774_v21  ;;  %v906_v43 = vmul.f32 0.5, %v842_v23  ;;  %v646_v45 = vsub.f32 %v448_v24, %v582_v28  ;;  %v777_v51 = vmul.f32 %v1511_v13, %v707_v16  ;;  %v495_v24 = vpop.f32.mrf.mxu1 }
 0x12a   :  { %v966_v22 = vadd.f32 %v965_v12, %v903_v5  ;;  %v845_v46 = vadd.f32 %v1526_v27, %v775_v26  ;;  %v647_v47 = vsub.f32 %v453_v18, %v583_v4  ;;  %v907_v50 = vmul.f32 0.5, %v843_v31 }
 0x12b   :  { %v709_v54 = vmul.f32 %v645_v38, %v645_v38  ;;  %v461_v42 = vadd.f32 %v1491_v56, %v1708_v59  ;;  %v778_v55 = vmul.f32 %v1511_v13, %v708_v39  ;;  %v846_v58 = vadd.f32 %v1526_v27, %v776_v49  ;;  %v586_v59 = vld [vmem:[%s1968_s1 + $0x188] sm:$0xff] }
 0x12c   :  { %v967_v37 = vadd.f32 %v966_v22, %v904_v17  ;;  %v648_v35 = vsub.f32 %v456_v57, %v584_v44  ;;  %v908_v62 = vmul.f32 0.5, %v844_v41  ;;  %v710_v63 = vmul.f32 %v646_v45, %v646_v45  ;;  %v590_v49 = vld [vmem:[%s1968_s1 + $0x1a8] sm:$0xff] }
 0x12d   :  { %v464_v0 = vadd.f32 %v1491_v56, %v1742_v52  ;;  %v847_v29 = vadd.f32 %v1526_v27, %v777_v51  ;;  %v909_v32 = vmul.f32 0.5, %v845_v46  ;;  %v711_v1 = vmul.f32 %v647_v47, %v647_v47  ;;  %v591_v46 = vld [vmem:[%s1968_s1 + $0x1b0] sm:$0xff] }
 0x12e   :  { %v968_v40 = vadd.f32 %v967_v37, %v905_v36  ;;  %v779_v7 = vmul.f32 %v1511_v13, %v709_v54  ;;  %v469_v9 = vadd.f32 %v1687_v33, %v1491_v56  ;;  %v649_v12 = vsub.f32 %v461_v42, %v585_v61  ;;  %v588_v33 = vld [vmem:[%s1968_s1 + $0x198] sm:$0xff] }
 0x12f   :  { %v848_v14 = vadd.f32 %v1526_v27, %v778_v55  ;;  %v910_v52 = vmul.f32 0.5, %v846_v58  ;;  %v712_v11 = vmul.f32 %v648_v35, %v648_v35  ;;  %v780_v6 = vmul.f32 %v1511_v13, %v710_v63  ;;  %v592_v58 = vld [vmem:[%s1968_s1 + $0x1b8] sm:$0xff] }
 0x130   :  { %v969_v53 = vadd.f32 %v968_v40, %v906_v43  ;;  %v472_v19 = vadd.f32 %v1727_v25, %v1491_v56  ;;  %v650_v20 = vsub.f32 %v464_v0, %v586_v59  ;;  %v911_v22 = vmul.f32 0.5, %v847_v29  ;;  %v589_v25 = vld [vmem:[%s1968_s1 + $0x1a0] sm:$0xff]  ;;  %v1886_v43 = vpop.f32.mrf.mxu1 }
 0x131   :  { %v781_v21 = vmul.f32 %v1511_v13, %v711_v1  ;;  %v477_v23 = vadd.f32 %v1491_v56, %v1777_v34  ;;  %v849_v26 = vadd.f32 %v1526_v27, %v779_v7  ;;  %v651_v18 = vsub.f32 %v469_v9, %v587_v15  ;;  %v594_v15 = vld [vmem:[%s1968_s1 + $0x1c8] sm:$0xff] }
 0x132   :  { %v970_v2 = vadd.f32 %v969_v53, %v907_v50  ;;  %v713_v28 = vmul.f32 %v649_v12, %v649_v12  ;;  %v912_v31 = vmul.f32 0.5, %v848_v14  ;;  %v782_v36 = vmul.f32 %v1511_v13, %v712_v11 }
 0x133   :  { %v480_v37 = vadd.f32 %v1491_v56, %v1805_v10  ;;  %v850_v38 = vadd.f32 %v1526_v27, %v780_v6  ;;  %v652_v34 = vsub.f32 %v472_v19, %v588_v33  ;;  %v714_v39 = vmul.f32 %v650_v20, %v650_v20 }
 0x134   :  { %v971_v5 = vadd.f32 %v970_v2, %v908_v62  ;;  %v851_v57 = vadd.f32 %v1526_v27, %v781_v21  ;;  %v485_v40 = vadd.f32 %v1760_v60, %v1491_v56  ;;  %v653_v41 = vsub.f32 %v477_v23, %v589_v25  ;;  %v508_v2 = vpop.f32.mrf.mxu1 }
 0x135   :  { %v913_v44 = vmul.f32 0.5, %v849_v26  ;;  %v715_v10 = vmul.f32 %v651_v18, %v651_v18  ;;  %v783_v51 = vmul.f32 %v1511_v13, %v713_v28  ;;  %v852_v47 = vadd.f32 %v1526_v27, %v782_v36  ;;  %v596_v18 = vld [vmem:[%s1968_s1 + $0x1d8] sm:$0xff] }
 0x136   :  { %v972_v17 = vadd.f32 %v971_v5, %v909_v32  ;;  %v488_v50 = vadd.f32 %v1792_v8, %v1491_v56  ;;  %v654_v53 = vsub.f32 %v480_v37, %v590_v49  ;;  %v914_v60 = vmul.f32 0.5, %v850_v38  ;;  %v593_v5 = vld [vmem:[%s1968_s1 + $0x1c0] sm:$0xff] }
 0x137   :  { %v716_v42 = vmul.f32 %v652_v34, %v652_v34  ;;  %v784_v55 = vmul.f32 %v1511_v13, %v714_v39  ;;  %v915_v35 = vmul.f32 0.5, %v851_v57  ;;  %v655_v61 = vsub.f32 %v485_v40, %v591_v46  ;;  %v597_v40 = vld [vmem:[%s1968_s1 + $0x1e0] sm:$0xff] }
 0x138   :  { %v973_v16 = vadd.f32 %v972_v17, %v910_v52  ;;  %v717_v62 = vmul.f32 %v653_v41, %v653_v41  ;;  %v785_v0 = vmul.f32 %v1511_v13, %v715_v10  ;;  %v853_v29 = vadd.f32 %v1526_v27, %v783_v51  ;;  %v1163_v17 = vpop.f32.mrf.mxu1 }
 0x139   :  { %v493_v8 = vadd.f32 %v1491_v56, %v1839_v48  ;;  %v916_v32 = vmul.f32 0.5, %v852_v47  ;;  %v656_v1 = vsub.f32 %v488_v50, %v592_v58  ;;  %v718_v59 = vmul.f32 %v654_v53, %v654_v53  ;;  %v598_v50 = vld [vmem:[%s1968_s1 + $0x1e8] sm:$0xff] }
 0x13a   :  { %v974_v4 = vadd.f32 %v973_v16, %v911_v22  ;;  %v786_v9 = vmul.f32 %v1511_v13, %v716_v42  ;;  %v854_v12 = vadd.f32 %v1526_v27, %v784_v55  ;;  %v496_v14 = vadd.f32 %v1491_v56, %v495_v24  ;;  %v595_v22 = vld [vmem:[%s1968_s1 + $0x1d0] sm:$0xff]  ;;  %v511_v37 = vpop.f32.mrf.mxu1 }
 0x13b   :  { %v719_v52 = vmul.f32 %v655_v61, %v655_v61  ;;  %v787_v11 = vmul.f32 %v1511_v13, %v717_v62  ;;  %v501_v48 = vadd.f32 %v1824_v30, %v1491_v56  ;;  %v855_v6 = vadd.f32 %v1526_v27, %v785_v0  ;;  %v599_v61 = vld [vmem:[%s1968_s1 + $0x1f0] sm:$0xff] }
 0x13c   :  { %v975_v45 = vadd.f32 %v974_v4, %v912_v31  ;;  %v917_v19 = vmul.f32 0.5, %v853_v29  ;;  %v657_v21 = vsub.f32 %v493_v8, %v593_v5  ;;  %v720_v33 = vmul.f32 %v656_v1, %v656_v1 }
 0x13d   :  { %v788_v23 = vmul.f32 %v1511_v13, %v718_v59  ;;  %v504_v30 = vadd.f32 %v1854_v3, %v1491_v56  ;;  %v856_v16 = vadd.f32 %v1526_v27, %v786_v9  ;;  %v918_v26 = vmul.f32 0.5, %v854_v12  ;;  %v1183_v56 = vld [vmem:[%s1970_s3] ss:$0 sm:$0xff] }
 0x13e   :  { %v976_v54 = vadd.f32 %v975_v45, %v913_v44  ;;  %v658_v28 = vsub.f32 %v496_v14, %v594_v15  ;;  %v789_v25 = vmul.f32 %v1511_v13, %v719_v52  ;;  %v857_v31 = vadd.f32 %v1526_v27, %v787_v11 }
 0x13f   :  { %v659_v36 = vsub.f32 %v501_v48, %v595_v22  ;;  %v919_v4 = vmul.f32 0.5, %v855_v6  ;;  %v721_v34 = vmul.f32 %v657_v21, %v657_v21  ;;  %v509_v3 = vadd.f32 %v1183_v56, %v508_v2 }
 0x140   :  { %v977_v63 = vadd.f32 %v976_v54, %v914_v60  ;;  %v790_v39 = vmul.f32 %v1511_v13, %v720_v33  ;;  %v858_v49 = vadd.f32 %v1526_v27, %v788_v23  ;;  %v660_v57 = vsub.f32 %v504_v30, %v596_v18 }
 0x141   :  { %v920_v41 = vmul.f32 0.5, %v856_v16  ;;  %v722_v45 = vmul.f32 %v658_v28, %v658_v28  ;;  %v512_v10 = vadd.f32 %v1183_v56, %v511_v37  ;;  %v859_v51 = vadd.f32 %v1526_v27, %v789_v25 }
 0x142   :  { %v978_v7 = vadd.f32 %v977_v63, %v915_v35  ;;  %v921_v46 = vmul.f32 0.5, %v857_v31  ;;  %v723_v47 = vmul.f32 %v659_v36, %v659_v36  ;;  %v791_v54 = vmul.f32 %v1511_v13, %v721_v34 }
 0x143   :  { %v517_v60 = vadd.f32 %v1183_v56, %v1886_v43  ;;  %v661_v42 = vsub.f32 %v509_v3, %v597_v40  ;;  %v860_v55 = vadd.f32 %v1526_v27, %v790_v39  ;;  %v922_v58 = vmul.f32 0.5, %v858_v49  ;;  %v600_v43 = vld [vmem:[%s1968_s1 + $0x1f8] sm:$0xff]  ;;  %s1206_s1 = smov [#allocation2]  }
 0x144   :  { %v979_v20 = vadd.f32 %v978_v7, %v916_v32  ;;  %v724_v35 = vmul.f32 %v660_v57, %v660_v57  ;;  %v792_v2 = vmul.f32 %v1511_v13, %v722_v45  ;;  %v520_v63 = vadd.f32 %v1183_v56, %v1163_v17  ;;  %s1015_s25 = sshll.u32 %s1206_s1, 4  ;;  %s1016_s25 = int_to_ptr.vmem [resolvable:$true] %s1015_s25 }
 0x145   :  { %v662_v0 = vsub.f32 %v512_v10, %v598_v50  ;;  %v923_v29 = vmul.f32 0.5, %v859_v51  ;;  %v793_v8 = vmul.f32 %v1511_v13, %v723_v47  ;;  %v861_v1 = vadd.f32 %v1526_v27, %v791_v54  ;;  %s1184_s28 = scalar_lea.vmem %s1016_s25, 16  ;;  %s1188_s29 = scalar_lea.vmem %s1016_s25, 32 }
 0x146   :  { %v980_v24 = vadd.f32 %v979_v20, %v917_v19  ;;  %v663_v59 = vsub.f32 %v517_v60, %v599_v61  ;;  %v725_v5 = vmul.f32 %v661_v42, %v661_v42  ;;  %v924_v7 = vmul.f32 0.5, %v860_v55  ;;  %p1185_p0 = scmp.ne.s32.totalorder %s1016_s25, %s1184_s28  ;;  %p1189_p1 = scmp.lt.s32.totalorder %s1016_s25, %s1016_s25 }
 0x147   :  { %v794_v9 = vmul.f32 %v1511_v13, %v724_v35  ;;  %v862_v14 = vadd.f32 %v1526_v27, %v792_v2  ;;  %v664_v52 = vsub.f32 %v520_v63, %v600_v43  ;;  %v726_v11 = vmul.f32 %v662_v0, %v662_v0  ;;  %p1190_p2 = scmp.lt.s32.totalorder %s1188_s29, %s1184_s28 }
 0x148   :  { %v981_v38 = vadd.f32 %v980_v24, %v918_v26  ;;  %v863_v48 = vadd.f32 %v1526_v27, %v793_v8  ;;  %v925_v15 = vmul.f32 0.5, %v861_v1  ;;  %v727_v6 = vmul.f32 %v663_v59, %v663_v59 }
 0x149   :  { %v795_v19 = vmul.f32 %v1511_v13, %v725_v5  ;;  %v864_v20 = vadd.f32 %v1526_v27, %v794_v9  ;;  %v926_v21 = vmul.f32 0.5, %v862_v14  ;;  %v728_v33 = vmul.f32 %v664_v52, %v664_v52  ;;  %p1191_p3 = por %p1190_p2, %p1189_p1 }
 0x14a   :  { %v982_v44 = vadd.f32 %v981_v38, %v919_v4  ;;  %v796_v23 = vmul.f32 %v1511_v13, %v726_v11  ;;  %v927_v30 = vmul.f32 0.5, %v863_v48  ;;  %v797_v16 = vmul.f32 %v1511_v13, %v727_v6 }
 0x14b   :  { %v865_v26 = vadd.f32 %v1526_v27, %v795_v19  ;;  %v928_v18 = vmul.f32 0.5, %v864_v20  ;;  %v798_v28 = vmul.f32 %v1511_v13, %v728_v33  ;;  %p1192_p4 = pnand %p1191_p3, %p1185_p0 }
 0x14c   :  { %v983_v53 = vadd.f32 %v982_v44, %v920_v41  ;;  %v866_v25 = vadd.f32 %v1526_v27, %v796_v23  ;;  %v867_v37 = vadd.f32 %v1526_v27, %v797_v16 }
 0x14d   :  { %v929_v36 = vmul.f32 0.5, %v865_v26  ;;  %v868_v38 = vadd.f32 %v1526_v27, %v798_v28 }
 0x14e   :  { %v984_v62 = vadd.f32 %v983_v53, %v921_v46  ;;  %v930_v34 = vmul.f32 0.5, %v866_v25  ;;  %v931_v3 = vmul.f32 0.5, %v867_v37 }
 0x14f   :  { %v932_v49 = vmul.f32 0.5, %v868_v38 }
 0x150   :  { %v985_v32 = vadd.f32 %v984_v62, %v922_v58 }
 0x152   :  { %v986_v12 = vadd.f32 %v985_v32, %v923_v29 }
 0x154   :  { %v987_v17 = vadd.f32 %v986_v12, %v924_v7 }
 0x156   :  { %v988_v22 = vadd.f32 %v987_v17, %v925_v15 }
 0x158   :  { %v989_v24 = vadd.f32 %v988_v22, %v926_v21 }
 0x15a   :  { %v990_v31 = vadd.f32 %v989_v24, %v927_v30 }
 0x15c   :  { %v991_v4 = vadd.f32 %v990_v31, %v928_v18 }
 0x15e   :  { %v992_v56 = vadd.f32 %v991_v4, %v929_v36 }
 0x160   :  { %v993_v39 = vadd.f32 %v992_v56, %v930_v34 }
 0x162   :  { %v994_v57 = vadd.f32 %v993_v39, %v931_v3 }
 0x164   :  { %v995_v40 = vadd.f32 %v994_v57, %v932_v49 }
 0x166   :  { %996 = vadd.xlane.f32.xlu0 %v995_v40 }
 0x1ef   :  { %v997_v41 = vpop.xlane.xlu0 %996 }
 0x1f0   :  { %v998_v44 = vrot.slane %v997_v41, 4 }
 0x1f2   :  { %v999_v13 = vadd.f32 %v998_v44, %v997_v41 }
 0x1f4   :  { %v1000_v45 = vrot.slane %v999_v13, 2 }
 0x1f6   :  { %v1001_v10 = vadd.f32 %v1000_v45, %v999_v13 }
 0x1f8   :  { %v1002_v51 = vrot.slane %v1001_v10, 1 }
 0x1fa   :  { %v1003_v46 = vadd.f32 %v1002_v51, %v1001_v10 }
 0x1fc   :  { %1172 = vpush %v1003_v46 }
 0x22d   :  { %s1173_s26 = spop %1172 }
 0x22e   :  { %s1005_s27 = smul.f32 1.5258789e-05, %s1173_s26 }
 0x230   :  { %v1006_v27 = vstv %s1005_s27 }
 0x231   :  { %1008 = vst.msk [vmem:[#allocation2] sm:$0x1] %vm1007_vm1, %v1006_v27 }
 0x232   :  { %1195 = shalt.err (!%p1192_p4)
}
 0x233   :  { %1018 = dma.vmem_to_hbm [thread:$0]  %s1016_s25, 16, %s1972_s5, [#allocation3]  }
 0x234   :  { %1204 = dma.done.wait [#allocation3], 16  }
 0x235   :  { %1205 = vsyncadd [#allocation3], 4294967280 }
 0x236   :  { %1022 = vsyncpa [#allocation3], 1 }

// kernel: vid_forward.16
= control target key start
LH: loop header
LB: loop body
LE: loop exit
PB: predicated region body
PF: predicated region fallthrough
CT: control target
= control target key end

     0   :  { %v555_v7 = vmov 0   ;;  %s982_s0 = inlined_call_operand.vmem [shape: f32[128,128], index: 0, kind: input, shape index: {}]   ;;  %s983_s1 = inlined_call_operand.vmem [shape: f32[128,256], index: 1, kind: input, shape index: {}]   ;;  %s984_s2 = inlined_call_operand.vmem [shape: f32[128,256], index: 2, kind: input, shape index: {}]   ;;  %s985_s3 = inlined_call_operand.vmem [shape: f32[1,256], index: 3, kind: input, shape index: {}]   ;;  %s986_s4 = inlined_call_operand.vmem [shape: f32[1,256], index: 4, kind: input, shape index: {}]   ;;  %s987_s5 = inlined_call_operand.hbm [shape: f32[1,1], index: 5, kind: output, shape index: {}]  }
   0x1   :  { %v75_v0 = vld [vmem:[%s984_s2 + $0xe8] sm:$0xff]  ;;  %v77_v1 = vld [vmem:[%s984_s2 + $0xf8] sm:$0xff]  ;;  %v74_v2 = vld [vmem:[%s984_s2 + $0xe0] sm:$0xff]  ;;  %138 = vmatprep.mubr.bf16.mxu0 %v555_v7  ;;  %178 = vmatprep.mubr.bf16.mxu1 %v555_v7 }
   0x2   :  { %v93_v3 = vpack.c.bf16 %v77_v1, %v75_v0  ;;  %v76_v4 = vld [vmem:[%s984_s2 + $0xf0] sm:$0xff]  ;;  %v71_v5 = vld [vmem:[%s984_s2 + $0xc8] sm:$0xff]  ;;  %v73_v6 = vld [vmem:[%s984_s2 + $0xd8] sm:$0xff] }
   0x3   :  { %v92_v8 = vpack.c.bf16 %v76_v4, %v74_v2  ;;  %v91_v9 = vpack.c.bf16 %v73_v6, %v71_v5  ;;  %v70_v10 = vld [vmem:[%s984_s2 + $0xc0] sm:$0xff]  ;;  %v72_v11 = vld [vmem:[%s984_s2 + $0xd0] sm:$0xff]  ;;  %v67_v12 = vld [vmem:[%s984_s2 + $0xa8] sm:$0xff] }
   0x4   :  { %106 = vmatprep.subr.bf16.mxu0 %v93_v3  ;;  %v69_v13 = vld [vmem:[%s984_s2 + $0xb8] sm:$0xff]  ;;  %505 = vmatprep.subr.bf16.mxu1 %v93_v3  ;;  %v90_v14 = vpack.c.bf16 %v72_v11, %v70_v10  ;;  %v66_v16 = vld [vmem:[%s984_s2 + $0xa0] sm:$0xff]  ;;  %v68_v17 = vld [vmem:[%s984_s2 + $0xb0] sm:$0xff] }
   0x5   :  { %107 = vmatpush1.bf16.msra.mxu0 %v92_v8  ;;  %513 = vmatpush1.bf16.msra.mxu1 %v92_v8  ;;  %v89_v15 = vpack.c.bf16 %v69_v13, %v67_v12  ;;  %v63_v18 = vld [vmem:[%s984_s2 + $0x88] sm:$0xff]  ;;  %v65_v19 = vld [vmem:[%s984_s2 + $0x98] sm:$0xff]  ;;  %v88_v20 = vpack.c.bf16 %v68_v17, %v66_v16  ;;  %v62_v22 = vld [vmem:[%s984_s2 + $0x80] sm:$0xff] }
   0x6   :  { %108 = vmatprep.subr.bf16.mxu0 %v91_v9  ;;  %506 = vmatprep.subr.bf16.mxu1 %v91_v9  ;;  %v87_v21 = vpack.c.bf16 %v65_v19, %v63_v18  ;;  %v64_v23 = vld [vmem:[%s984_s2 + $0x90] sm:$0xff]  ;;  %v59_v24 = vld [vmem:[%s984_s2 + $0x68] sm:$0xff]  ;;  %v61_v25 = vld [vmem:[%s984_s2 + $0x78] sm:$0xff] }
   0x7   :  { %v86_v26 = vpack.c.bf16 %v64_v23, %v62_v22  ;;  %v85_v27 = vpack.c.bf16 %v61_v25, %v59_v24  ;;  %v58_v28 = vld [vmem:[%s984_s2 + $0x60] sm:$0xff]  ;;  %v60_v29 = vld [vmem:[%s984_s2 + $0x70] sm:$0xff]  ;;  %v55_v30 = vld [vmem:[%s984_s2 + $0x48] sm:$0xff] }
   0x8   :  { %v57_v31 = vld [vmem:[%s984_s2 + $0x58] sm:$0xff]  ;;  %v84_v32 = vpack.c.bf16 %v60_v29, %v58_v28 }
   0x9   :  { %109 = vmatpush1.bf16.msra.mxu0 %v90_v14  ;;  %514 = vmatpush1.bf16.msra.mxu1 %v90_v14 }
   0xa   :  { %110 = vmatprep.subr.bf16.mxu0 %v89_v15  ;;  %507 = vmatprep.subr.bf16.mxu1 %v89_v15 }
   0xd   :  { %111 = vmatpush1.bf16.msra.mxu0 %v88_v20  ;;  %515 = vmatpush1.bf16.msra.mxu1 %v88_v20 }
   0xe   :  { %112 = vmatprep.subr.bf16.mxu0 %v87_v21  ;;  %508 = vmatprep.subr.bf16.mxu1 %v87_v21 }
  0x11   :  { %113 = vmatpush1.bf16.msra.mxu0 %v86_v26  ;;  %516 = vmatpush1.bf16.msra.mxu1 %v86_v26 }
  0x12   :  { %10 = vsyncpa [#allocation3], 0  ;;  %114 = vmatprep.subr.bf16.mxu0 %v85_v27  ;;  %v83_v33 = vpack.c.bf16 %v57_v31, %v55_v30  ;;  %v54_v34 = vld [vmem:[%s984_s2 + $0x40] sm:$0xff]  ;;  %v56_v35 = vld [vmem:[%s984_s2 + $0x50] sm:$0xff]  ;;  %509 = vmatprep.subr.bf16.mxu1 %v85_v27  ;;  %v96_v20 = vlaneseq  ;;  %vm489_vm0 = vcmask 0  }
  0x13   :  { %v51_v36 = vld [vmem:[%s984_s2 + $0x28] sm:$0xff]  ;;  %v53_v37 = vld [vmem:[%s984_s2 + $0x38] sm:$0xff]  ;;  %v82_v38 = vpack.c.bf16 %v56_v35, %v54_v34  ;;  %v50_v40 = vld [vmem:[%s984_s2 + $0x20] sm:$0xff] }
  0x14   :  { %v81_v39 = vpack.c.bf16 %v53_v37, %v51_v36  ;;  %v52_v41 = vld [vmem:[%s984_s2 + $0x30] sm:$0xff]  ;;  %v47_v42 = vld [vmem:[%s984_s2 + $0x8] sm:$0xff]  ;;  %v49_v43 = vld [vmem:[%s984_s2 + $0x18] sm:$0xff]  ;;  %v97_v21 = vshrl.u32 %v96_v20, 7 }
  0x15   :  { %115 = vmatpush1.bf16.msra.mxu0 %v84_v32  ;;  %517 = vmatpush1.bf16.msra.mxu1 %v84_v32  ;;  %v80_v44 = vpack.c.bf16 %v52_v41, %v50_v40  ;;  %v79_v45 = vpack.c.bf16 %v49_v43, %v47_v42  ;;  %v46_v46 = vld [vmem:[%s984_s2] sm:$0xff]  ;;  %v48_v47 = vld [vmem:[%s984_s2 + $0x10] sm:$0xff]  ;;  %v23_v50 = vld [vmem:[%s982_s0 + $0x8] sm:$0xff] }
  0x16   :  { %116 = vmatprep.subr.bf16.mxu0 %v83_v33  ;;  %510 = vmatprep.subr.bf16.mxu1 %v83_v33  ;;  %v22_v48 = vld [vmem:[%s982_s0] sm:$0xff]  ;;  %v78_v49 = vpack.c.bf16 %v48_v47, %v46_v46  ;;  %v31_v52 = vld [vmem:[%s982_s0 + $0x48] sm:$0xff]  ;;  %v24_v55 = vld [vmem:[%s982_s0 + $0x10] sm:$0xff]  ;;  %v98_v22 = vsub.s32 0, %v97_v21  ;;  %v102_v24 = vsub.s32 1, %v97_v21 }
  0x17   :  { %v30_v51 = vld [vmem:[%s982_s0 + $0x40] sm:$0xff]  ;;  %v38_v53 = vpack.c.bf16 %v23_v50, %v22_v48  ;;  %v25_v56 = vld [vmem:[%s982_s0 + $0x18] sm:$0xff]  ;;  %v32_v57 = vld [vmem:[%s982_s0 + $0x50] sm:$0xff] }
  0x18   :  { %v42_v54 = vpack.c.bf16 %v31_v52, %v30_v51  ;;  %v33_v58 = vld [vmem:[%s982_s0 + $0x58] sm:$0xff]  ;;  %v39_v59 = vpack.c.bf16 %v25_v56, %v24_v55  ;;  %v26_v61 = vld [vmem:[%s982_s0 + $0x20] sm:$0xff]  ;;  %v27_v62 = vld [vmem:[%s982_s0 + $0x28] sm:$0xff] }
  0x19   :  { %117 = vmatpush1.bf16.msra.mxu0 %v82_v38  ;;  %518 = vmatpush1.bf16.msra.mxu1 %v82_v38  ;;  %v43_v60 = vpack.c.bf16 %v33_v58, %v32_v57  ;;  %v34_v63 = vld [vmem:[%s982_s0 + $0x60] sm:$0xff]  ;;  %v35_v0 = vld [vmem:[%s982_s0 + $0x68] sm:$0xff]  ;;  %v40_v1 = vpack.c.bf16 %v27_v62, %v26_v61  ;;  %v28_v3 = vld [vmem:[%s982_s0 + $0x30] sm:$0xff] }
  0x1a   :  { %118 = vmatprep.subr.bf16.mxu0 %v81_v39  ;;  %511 = vmatprep.subr.bf16.mxu1 %v81_v39  ;;  %v44_v2 = vpack.c.bf16 %v35_v0, %v34_v63  ;;  %v29_v4 = vld [vmem:[%s982_s0 + $0x38] sm:$0xff]  ;;  %v36_v5 = vld [vmem:[%s982_s0 + $0x70] sm:$0xff]  ;;  %v219_v10 = vld [vmem:[%s986_s4] sm:$0x3] }
  0x1b   :  { %v37_v6 = vld [vmem:[%s982_s0 + $0x78] sm:$0xff]  ;;  %v41_v8 = vpack.c.bf16 %v29_v4, %v28_v3  ;;  %v221_v11 = vand.u32 2147483647, %v219_v10  ;;  %v220_v16 = vmax.f32 %v219_v10, 0.0  ;;  %v94_v23 = vld [vmem:[%s985_s3] sm:$0x3] }
  0x1c   :  { %v45_v9 = vpack.c.bf16 %v37_v6, %v36_v5  ;;  %v745_v25 = vrot.slane %v94_v23, %v98_v22  ;;  %v747_v27 = vrot.slane %v94_v23, %v102_v24  ;;  %v233_v30 = vld [vmem:[%s983_s1] sm:$0xff]  ;;  %v234_v35 = vld [vmem:[%s983_s1 + $0x8] sm:$0xff]  ;;  %v235_v42 = vld [vmem:[%s983_s1 + $0x10] sm:$0xff] }
  0x1d   :  { %119 = vmatpush1.bf16.msra.mxu0 %v80_v44  ;;  %519 = vmatpush1.bf16.msra.mxu1 %v80_v44  ;;  %v222_v12 = vsub.f32 0.0, %v221_v11  ;;  %v236_v50 = vld [vmem:[%s983_s1 + $0x18] sm:$0xff]  ;;  %v249_v57 = vld [vmem:[%s983_s1 + $0x80] sm:$0xff] }
  0x1e   :  { %120 = vmatprep.subr.bf16.mxu0 %v79_v45  ;;  %512 = vmatprep.subr.bf16.mxu1 %v79_v45  ;;  %v237_v0 = vld [vmem:[%s983_s1 + $0x20] sm:$0xff] }
  0x1f   :  { %v223_v13 = vmul.f32 1.442695, %v222_v12 }
  0x21   :  { %121 = vmatpush1.bf16.msra.mxu0 %v78_v49  ;;  %520 = vmatpush1.bf16.msra.mxu1 %v78_v49  ;;  %525 = vpow2.f32 %v223_v13 }
  0x24   :  { %139 = vmatmul.mubr.bf16.vlgmr.msra.gmra.mxu0 %v38_v53  ;;  %179 = vmatmul.mubr.bf16.vlgmr.msra.gmra.mxu1 %v42_v54 }
  0x25   :  { %148 = vmatprep.mubr.bf16.mxu0 %v555_v7  ;;  %188 = vmatprep.mubr.bf16.mxu1 %v555_v7 }
  0x2c   :  { %149 = vmatmul.mubr.bf16.gmra.mxu0 %v39_v59  ;;  %189 = vmatmul.mubr.bf16.gmra.mxu1 %v43_v60 }
  0x2d   :  { %158 = vmatprep.mubr.bf16.mxu0 %v555_v7  ;;  %198 = vmatprep.mubr.bf16.mxu1 %v555_v7 }
  0x34   :  { %159 = vmatmul.mubr.bf16.gmra.mxu0 %v40_v1  ;;  %199 = vmatmul.mubr.bf16.gmra.mxu1 %v44_v2 }
  0x35   :  { %168 = vmatprep.mubr.bf16.mxu0 %v555_v7  ;;  %208 = vmatprep.mubr.bf16.mxu1 %v555_v7  ;;  %v526_v7 = vpop.eup %525 }
  0x36   :  { %v225_v14 = vadd.f32 1.0, %v526_v7  ;;  %v239_v7 = vld [vmem:[%s983_s1 + $0x30] sm:$0xff] }
  0x38   :  { %527 = vlog2.f32 %v225_v14 }
  0x3c   :  { %169 = vmatmul.mubr.bf16.gmra.mxu0 %v41_v8  ;;  %209 = vmatmul.mubr.bf16.gmra.mxu1 %v45_v9  ;;  %v238_v8 = vld [vmem:[%s983_s1 + $0x28] sm:$0xff] }
  0x45   :  { %v528_v15 = vpop.eup %527 }
  0x46   :  { %v227_v17 = vmul.f32 0.6931472, %v528_v15 }
  0x48   :  { %v228_v18 = vadd.f32 %v227_v17, %v220_v16 }
  0x4a   :  { %v229_v19 = vadd.f32 1e-05, %v228_v18 }
  0x4c   :  { %529 = vlog2.f32 %v229_v19 }
  0x4d   :  { %531 = vrcp.f32 %v229_v19  ;;  %v250_v19 = vld [vmem:[%s983_s1 + $0x88] sm:$0xff] }
  0x59   :  { %v530_v26 = vpop.eup %529 }
  0x5a   :  { %v532_v28 = vpop.eup %531  ;;  %v232_v33 = vmul.f32 0.6931472, %v530_v26 }
  0x5b   :  { %v756_v38 = vrot.slane %v532_v28, %v98_v22  ;;  %v759_v40 = vrot.slane %v532_v28, %v102_v24 }
  0x5c   :  { %v766_v45 = vrot.slane %v232_v33, %v98_v22  ;;  %v769_v48 = vrot.slane %v232_v33, %v102_v24 }
  0xe4   :  { %v140_v29 = vpop.f32.mrf.mxu0  ;;  %v180_v31 = vpop.f32.mrf.mxu1 }
  0xe5   :  { %v141_v32 = vadd.f32 %v140_v29, %v745_v25  ;;  %v181_v51 = vadd.f32 %v180_v31, %v745_v25 }
  0xe6   :  { %v142_v34 = vpop.f32.mrf.mxu0  ;;  %v182_v36 = vpop.f32.mrf.mxu1 }
  0xe7   :  { %v265_v37 = vsub.f32 %v141_v32, %v233_v30  ;;  %v143_v39 = vadd.f32 %v142_v34, %v747_v27  ;;  %v281_v3 = vsub.f32 %v181_v51, %v249_v57  ;;  %v183_v14 = vadd.f32 %v182_v36, %v747_v27  ;;  %v240_v30 = vld [vmem:[%s983_s1 + $0x38] sm:$0xff]  ;;  %v241_v36 = vld [vmem:[%s983_s1 + $0x40] sm:$0xff]  ;;  %v242_v51 = vld [vmem:[%s983_s1 + $0x48] sm:$0xff] }
  0xe8   :  { %v144_v41 = vpop.f32.mrf.mxu0  ;;  %v764_v43 = vpop.f32.mrf.mxu1 }
  0xe9   :  { %v297_v44 = vmul.f32 %v265_v37, %v265_v37  ;;  %v266_v46 = vsub.f32 %v143_v39, %v234_v35  ;;  %v145_v47 = vadd.f32 %v144_v41, %v745_v25  ;;  %v313_v23 = vmul.f32 %v281_v3, %v281_v3 }
  0xea   :  { %v146_v49 = vpop.f32.mrf.mxu0  ;;  %v775_v52 = vpop.f32.mrf.mxu1  ;;  %v282_v37 = vsub.f32 %v183_v14, %v250_v19 }
  0xeb   :  { %v340_v53 = vmul.f32 %v756_v38, %v297_v44  ;;  %v298_v54 = vmul.f32 %v266_v46, %v266_v46  ;;  %v267_v55 = vsub.f32 %v145_v47, %v235_v42  ;;  %v147_v56 = vadd.f32 %v146_v49, %v747_v27 }
  0xec   :  { %v150_v58 = vpop.f32.mrf.mxu0  ;;  %v782_v59 = vpop.f32.mrf.mxu1 }
  0xed   :  { %v383_v60 = vadd.f32 %v766_v45, %v340_v53  ;;  %v341_v61 = vmul.f32 %v759_v40, %v298_v54  ;;  %v299_v62 = vmul.f32 %v267_v55, %v267_v55  ;;  %v268_v63 = vsub.f32 %v147_v56, %v236_v50 }
  0xee   :  { %v151_v1 = vadd.f32 %v150_v58, %v745_v25  ;;  %v152_v2 = vpop.f32.mrf.mxu0  ;;  %v795_v9 = vpop.f32.mrf.mxu1  ;;  %v185_v53 = vadd.f32 %v764_v43, %v745_v25 }
  0xef   :  { %v384_v4 = vadd.f32 %v769_v48, %v341_v61  ;;  %v342_v5 = vmul.f32 %v756_v38, %v299_v62  ;;  %v300_v6 = vmul.f32 %v268_v63, %v268_v63  ;;  %v415_v10 = vmul.f32 0.5, %v383_v60 }
  0xf0   :  { %v269_v11 = vsub.f32 %v151_v1, %v237_v0  ;;  %v153_v12 = vadd.f32 %v152_v2, %v747_v27  ;;  %v154_v13 = vpop.f32.mrf.mxu0  ;;  %v812_v31 = vpop.f32.mrf.mxu1  ;;  %v243_v0 = vld [vmem:[%s983_s1 + $0x50] sm:$0xff]  ;;  %v836_v1 = vmul.f32 %v756_v38, %v313_v23 }
  0xf1   :  { %v416_v15 = vmul.f32 0.5, %v384_v4  ;;  %v385_v16 = vadd.f32 %v766_v45, %v342_v5  ;;  %v343_v17 = vmul.f32 %v759_v40, %v300_v6  ;;  %v155_v18 = vadd.f32 %v154_v13, %v745_v25  ;;  %v251_v5 = vld [vmem:[%s983_s1 + $0x90] sm:$0xff] }
  0xf2   :  { %v301_v20 = vmul.f32 %v269_v11, %v269_v11  ;;  %v270_v21 = vsub.f32 %v153_v12, %v238_v8  ;;  %v156_v22 = vpop.f32.mrf.mxu0  ;;  %v829_v58 = vpop.f32.mrf.mxu1  ;;  %v844_v12 = vmul.f32 %v282_v37, %v282_v37  ;;  %v283_v23 = vsub.f32 %v185_v53, %v251_v5 }
  0xf3   :  { %v447_v24 = vadd.f32 %v416_v15, %v415_v10  ;;  %v417_v26 = vmul.f32 0.5, %v385_v16  ;;  %v386_v28 = vadd.f32 %v769_v48, %v343_v17  ;;  %v271_v29 = vsub.f32 %v155_v18, %v239_v7  ;;  %v244_v16 = vld [vmem:[%s983_s1 + $0x58] sm:$0xff] }
  0xf4   :  { %v344_v32 = vmul.f32 %v756_v38, %v301_v20  ;;  %v302_v33 = vmul.f32 %v270_v21, %v270_v21  ;;  %v157_v34 = vadd.f32 %v156_v22, %v747_v27  ;;  %v160_v35 = vpop.f32.mrf.mxu0  ;;  %v850_v17 = vpop.f32.mrf.mxu1  ;;  %v245_v22 = vld [vmem:[%s983_s1 + $0x60] sm:$0xff] }
  0xf5   :  { %v448_v39 = vadd.f32 %v447_v24, %v417_v26  ;;  %v418_v41 = vmul.f32 0.5, %v386_v28  ;;  %v303_v42 = vmul.f32 %v271_v29, %v271_v29  ;;  %v161_v44 = vadd.f32 %v160_v35, %v745_v25 }
  0xf6   :  { %v387_v46 = vadd.f32 %v766_v45, %v344_v32  ;;  %v345_v47 = vmul.f32 %v759_v40, %v302_v33  ;;  %v272_v49 = vsub.f32 %v157_v34, %v240_v30  ;;  %v162_v50 = vpop.f32.mrf.mxu0  ;;  %v187_v35 = vadd.f32 %v775_v52, %v747_v27  ;;  %v247_v52 = vld [vmem:[%s983_s1 + $0x70] sm:$0xff] }
  0xf7   :  { %v449_v54 = vadd.f32 %v448_v39, %v418_v41  ;;  %v346_v55 = vmul.f32 %v756_v38, %v303_v42  ;;  %v273_v56 = vsub.f32 %v161_v44, %v241_v36  ;;  %v163_v57 = vadd.f32 %v162_v50, %v747_v27  ;;  %v246_v42 = vld [vmem:[%s983_s1 + $0x68] sm:$0xff]  ;;  %v867_v44 = vpop.f32.mrf.mxu1 }
  0xf8   :  { %v419_v60 = vmul.f32 0.5, %v387_v46  ;;  %v388_v61 = vadd.f32 %v769_v48, %v345_v47  ;;  %v304_v62 = vmul.f32 %v272_v49, %v272_v49  ;;  %v164_v63 = vpop.f32.mrf.mxu0 }
  0xf9   :  { %v389_v43 = vadd.f32 %v766_v45, %v346_v55  ;;  %v305_v2 = vmul.f32 %v273_v56, %v273_v56  ;;  %v274_v3 = vsub.f32 %v163_v57, %v242_v51  ;;  %v165_v4 = vadd.f32 %v164_v63, %v745_v25  ;;  %v252_v57 = vld [vmem:[%s983_s1 + $0x98] sm:$0xff] }
  0xfa   :  { %v450_v6 = vadd.f32 %v449_v54, %v419_v60  ;;  %v420_v8 = vmul.f32 0.5, %v388_v61  ;;  %v347_v10 = vmul.f32 %v759_v40, %v304_v62  ;;  %v166_v11 = vpop.f32.mrf.mxu0  ;;  %v315_v51 = vmul.f32 %v283_v23, %v283_v23 }
  0xfb   :  { %v421_v13 = vmul.f32 0.5, %v389_v43  ;;  %v348_v7 = vmul.f32 %v756_v38, %v305_v2  ;;  %v306_v14 = vmul.f32 %v274_v3, %v274_v3  ;;  %v275_v15 = vsub.f32 %v165_v4, %v243_v0  ;;  %v248_v0 = vld [vmem:[%s983_s1 + $0x78] sm:$0xff] }
  0xfc   :  { %v451_v18 = vadd.f32 %v450_v6, %v420_v8  ;;  %v390_v19 = vadd.f32 %v769_v48, %v347_v10  ;;  %v167_v20 = vadd.f32 %v166_v11, %v747_v27  ;;  %v170_v21 = vpop.f32.mrf.mxu0  ;;  %v191_v43 = vadd.f32 %v782_v59, %v745_v25  ;;  %v253_v6 = vld [vmem:[%s983_s1 + $0xa0] sm:$0xff]  ;;  %v204_v8 = vpop.f32.mrf.mxu1  ;;  %v254_v59 = vld [vmem:[%s983_s1 + $0xa8] sm:$0xff] }
  0xfd   :  { %v391_v24 = vadd.f32 %v766_v45, %v348_v7  ;;  %v349_v26 = vmul.f32 %v759_v40, %v306_v14  ;;  %v307_v28 = vmul.f32 %v275_v15, %v275_v15  ;;  %v171_v29 = vadd.f32 %v170_v21, %v745_v25 }
  0xfe   :  { %v452_v30 = vadd.f32 %v451_v18, %v421_v13  ;;  %v422_v32 = vmul.f32 0.5, %v390_v19  ;;  %v276_v33 = vsub.f32 %v167_v20, %v244_v16  ;;  %v172_v34 = vpop.f32.mrf.mxu0  ;;  %v284_v7 = vsub.f32 %v187_v35, %v252_v57 }
  0xff   :  { %v423_v36 = vmul.f32 0.5, %v391_v24  ;;  %v392_v37 = vadd.f32 %v769_v48, %v349_v26  ;;  %v350_v39 = vmul.f32 %v756_v38, %v307_v28  ;;  %v277_v41 = vsub.f32 %v171_v29, %v245_v22  ;;  %v206_v29 = vpop.f32.mrf.mxu1 }
 0x100   :  { %v453_v46 = vadd.f32 %v452_v30, %v422_v32  ;;  %v308_v47 = vmul.f32 %v276_v33, %v276_v33  ;;  %v173_v49 = vadd.f32 %v172_v34, %v747_v27  ;;  %v174_v50 = vpop.f32.mrf.mxu0  ;;  %v193_v18 = vadd.f32 %v795_v9, %v747_v27 }
 0x101   :  { %v424_v53 = vmul.f32 0.5, %v392_v37  ;;  %v393_v54 = vadd.f32 %v766_v45, %v350_v39  ;;  %v309_v55 = vmul.f32 %v277_v41, %v277_v41  ;;  %v175_v56 = vadd.f32 %v174_v50, %v745_v25  ;;  %v255_v37 = vld [vmem:[%s983_s1 + $0xb0] sm:$0xff] }
 0x102   :  { %v454_v60 = vadd.f32 %v453_v46, %v423_v36  ;;  %v351_v61 = vmul.f32 %v759_v40, %v308_v47  ;;  %v278_v62 = vsub.f32 %v173_v49, %v246_v42  ;;  %v176_v63 = vpop.f32.mrf.mxu0  ;;  %v285_v22 = vsub.f32 %v191_v43, %v253_v6 }
 0x103   :  { %v425_v2 = vmul.f32 0.5, %v393_v54  ;;  %v352_v3 = vmul.f32 %v756_v38, %v309_v55  ;;  %v279_v4 = vsub.f32 %v175_v56, %v247_v52  ;;  %v177_v5 = vadd.f32 %v176_v63, %v747_v27 }
 0x104   :  { %v455_v10 = vadd.f32 %v454_v60, %v424_v53  ;;  %v394_v11 = vadd.f32 %v769_v48, %v351_v61  ;;  %v310_v13 = vmul.f32 %v278_v62, %v278_v62  ;;  %v286_v28 = vsub.f32 %v193_v18, %v254_v59  ;;  %v210_v53 = vpop.f32.mrf.mxu1  ;;  %v259_v59 = vld [vmem:[%s983_s1 + $0xd0] sm:$0xff] }
 0x105   :  { %v395_v14 = vadd.f32 %v766_v45, %v352_v3  ;;  %v311_v15 = vmul.f32 %v279_v4, %v279_v4  ;;  %v280_v16 = vsub.f32 %v177_v5, %v248_v0  ;;  %v316_v33 = vmul.f32 %v284_v7, %v284_v7 }
 0x106   :  { %v456_v19 = vadd.f32 %v455_v10, %v425_v2  ;;  %v426_v20 = vmul.f32 0.5, %v394_v11  ;;  %v353_v21 = vmul.f32 %v759_v40, %v310_v13  ;;  %v195_v34 = vadd.f32 %v812_v31, %v745_v25  ;;  %v258_v2 = vld [vmem:[%s983_s1 + $0xc8] sm:$0xff]  ;;  %v212_v4 = vpop.f32.mrf.mxu1 }
 0x107   :  { %v427_v23 = vmul.f32 0.5, %v395_v14  ;;  %v354_v24 = vmul.f32 %v756_v38, %v311_v15  ;;  %v312_v26 = vmul.f32 %v280_v16, %v280_v16  ;;  %v399_v9 = vadd.f32 %v766_v45, %v836_v1  ;;  %v256_v1 = vld [vmem:[%s983_s1 + $0xb8] sm:$0xff] }
 0x108   :  { %v457_v30 = vadd.f32 %v456_v19, %v426_v20  ;;  %v396_v32 = vadd.f32 %v769_v48, %v353_v21  ;;  %v197_v39 = vadd.f32 %v829_v58, %v747_v27  ;;  %v357_v46 = vmul.f32 %v759_v40, %v844_v12  ;;  %v257_v58 = vld [vmem:[%s983_s1 + $0xc0] sm:$0xff]  ;;  %v260_v19 = vld [vmem:[%s983_s1 + $0xd8] sm:$0xff] }
 0x109   :  { %v397_v35 = vadd.f32 %v766_v45, %v354_v24  ;;  %v355_v36 = vmul.f32 %v759_v40, %v312_v26  ;;  %v317_v31 = vmul.f32 %v285_v22, %v285_v22  ;;  %v358_v50 = vmul.f32 %v756_v38, %v315_v51  ;;  %v261_v22 = vld [vmem:[%s983_s1 + $0xe0] sm:$0xff] }
 0x10a   :  { %v458_v41 = vadd.f32 %v457_v30, %v427_v23  ;;  %v428_v42 = vmul.f32 0.5, %v396_v32  ;;  %v318_v52 = vmul.f32 %v286_v28, %v286_v28  ;;  %v359_v55 = vmul.f32 %v759_v40, %v316_v33  ;;  %v214_v23 = vpop.f32.mrf.mxu1 }
 0x10b   :  { %v429_v47 = vmul.f32 0.5, %v397_v35  ;;  %v398_v49 = vadd.f32 %v769_v48, %v355_v36  ;;  %v287_v12 = vsub.f32 %v195_v34, %v255_v37  ;;  %v201_v56 = vadd.f32 %v850_v17, %v745_v25 }
 0x10c   :  { %v459_v54 = vadd.f32 %v458_v41, %v428_v42  ;;  %v431_v57 = vmul.f32 0.5, %v399_v9  ;;  %v288_v61 = vsub.f32 %v197_v39, %v256_v1  ;;  %v203_v62 = vadd.f32 %v867_v44, %v747_v27  ;;  %v262_v41 = vld [vmem:[%s983_s1 + $0xe8] sm:$0xff]  ;;  %v216_v42 = vpop.f32.mrf.mxu1 }
 0x10d   :  { %v430_v60 = vmul.f32 0.5, %v398_v49  ;;  %v400_v63 = vadd.f32 %v769_v48, %v357_v46  ;;  %v360_v0 = vmul.f32 %v756_v38, %v317_v31  ;;  %v289_v43 = vsub.f32 %v201_v56, %v257_v58 }
 0x10e   :  { %v460_v51 = vadd.f32 %v459_v54, %v429_v47  ;;  %v401_v3 = vadd.f32 %v766_v45, %v358_v50  ;;  %v361_v17 = vmul.f32 %v759_v40, %v318_v52  ;;  %v402_v6 = vadd.f32 %v769_v48, %v359_v55 }
 0x10f   :  { %v319_v10 = vmul.f32 %v287_v12, %v287_v12  ;;  %v205_v44 = vadd.f32 %v204_v8, %v745_v25  ;;  %v320_v11 = vmul.f32 %v288_v61, %v288_v61  ;;  %v321_v13 = vmul.f32 %v289_v43, %v289_v43 }
 0x110   :  { %v461_v5 = vadd.f32 %v460_v51, %v430_v60  ;;  %v290_v7 = vsub.f32 %v203_v62, %v258_v2  ;;  %v207_v14 = vadd.f32 %v206_v29, %v747_v27  ;;  %v432_v15 = vmul.f32 0.5, %v400_v63 }
 0x111   :  { %v403_v18 = vadd.f32 %v766_v45, %v360_v0  ;;  %v211_v20 = vadd.f32 %v210_v53, %v745_v25  ;;  %v433_v8 = vmul.f32 0.5, %v401_v3  ;;  %v404_v21 = vadd.f32 %v769_v48, %v361_v17  ;;  %v263_v53 = vld [vmem:[%s983_s1 + $0xf0] sm:$0xff] }
 0x112   :  { %v462_v16 = vadd.f32 %v461_v5, %v431_v57  ;;  %v434_v26 = vmul.f32 0.5, %v402_v6  ;;  %v362_v28 = vmul.f32 %v756_v38, %v319_v10  ;;  %v291_v29 = vsub.f32 %v205_v44, %v259_v59 }
 0x113   :  { %v363_v30 = vmul.f32 %v759_v40, %v320_v11  ;;  %v364_v32 = vmul.f32 %v756_v38, %v321_v13  ;;  %v322_v33 = vmul.f32 %v290_v7, %v290_v7  ;;  %v292_v34 = vsub.f32 %v207_v14, %v260_v19 }
 0x114   :  { %v463_v24 = vadd.f32 %v462_v16, %v432_v15  ;;  %v435_v35 = vmul.f32 0.5, %v403_v18  ;;  %v293_v36 = vsub.f32 %v211_v20, %v261_v22  ;;  %v213_v37 = vadd.f32 %v212_v4, %v747_v27 }
 0x115   :  { %v436_v39 = vmul.f32 0.5, %v404_v21  ;;  %v405_v31 = vadd.f32 %v766_v45, %v362_v28  ;;  %v323_v1 = vmul.f32 %v291_v29, %v291_v29  ;;  %v215_v47 = vadd.f32 %v214_v23, %v745_v25  ;;  %v264_v25 = vld [vmem:[%s983_s1 + $0xf8] sm:$0xff]  ;;  %s556_s1 = smov [#allocation2]  }
 0x116   :  { %v464_v9 = vadd.f32 %v463_v24, %v433_v8  ;;  %v406_v49 = vadd.f32 %v769_v48, %v363_v30  ;;  %v407_v50 = vadd.f32 %v766_v45, %v364_v32  ;;  %v365_v52 = vmul.f32 %v759_v40, %v322_v33  ;;  %s497_s19 = sshll.u32 %s556_s1, 4  ;;  %s498_s19 = int_to_ptr.vmem [resolvable:$true] %s497_s19 }
 0x117   :  { %v324_v58 = vmul.f32 %v292_v34, %v292_v34  ;;  %v325_v55 = vmul.f32 %v293_v36, %v293_v36  ;;  %v294_v12 = vsub.f32 %v213_v37, %v262_v41  ;;  %v217_v56 = vadd.f32 %v216_v42, %v747_v27  ;;  %s533_s22 = scalar_lea.vmem %s498_s19, 16  ;;  %s537_s23 = scalar_lea.vmem %s498_s19, 32 }
 0x118   :  { %v465_v46 = vadd.f32 %v464_v9, %v434_v26  ;;  %v437_v60 = vmul.f32 0.5, %v405_v31  ;;  %v366_v61 = vmul.f32 %v756_v38, %v323_v1  ;;  %v295_v62 = vsub.f32 %v215_v47, %v263_v53  ;;  %p534_p0 = scmp.ne.s32.totalorder %s498_s19, %s533_s22  ;;  %p538_p1 = scmp.lt.s32.totalorder %s498_s19, %s498_s19 }
 0x119   :  { %v438_v51 = vmul.f32 0.5, %v406_v49  ;;  %v439_v63 = vmul.f32 0.5, %v407_v50  ;;  %v408_v0 = vadd.f32 %v769_v48, %v365_v52  ;;  %v367_v43 = vmul.f32 %v759_v40, %v324_v58  ;;  %p539_p2 = scmp.lt.s32.totalorder %s537_s23, %s533_s22 }
 0x11a   :  { %v466_v54 = vadd.f32 %v465_v46, %v435_v35  ;;  %v368_v3 = vmul.f32 %v756_v38, %v325_v55  ;;  %v326_v17 = vmul.f32 %v294_v12, %v294_v12  ;;  %v296_v27 = vsub.f32 %v217_v56, %v264_v25 }
 0x11b   :  { %v409_v5 = vadd.f32 %v766_v45, %v366_v61  ;;  %v327_v6 = vmul.f32 %v295_v62, %v295_v62  ;;  %v440_v10 = vmul.f32 0.5, %v408_v0  ;;  %v410_v44 = vadd.f32 %v769_v48, %v367_v43  ;;  %p540_p3 = por %p539_p2, %p538_p1 }
 0x11c   :  { %v467_v57 = vadd.f32 %v466_v54, %v436_v39  ;;  %v411_v13 = vadd.f32 %v766_v45, %v368_v3  ;;  %v369_v7 = vmul.f32 %v759_v40, %v326_v17  ;;  %v328_v59 = vmul.f32 %v296_v27, %v296_v27 }
 0x11d   :  { %v441_v15 = vmul.f32 0.5, %v409_v5  ;;  %v370_v16 = vmul.f32 %v756_v38, %v327_v6  ;;  %v442_v18 = vmul.f32 0.5, %v410_v44  ;;  %p541_p4 = pnand %p540_p3, %p534_p0 }
 0x11e   :  { %v468_v2 = vadd.f32 %v467_v57, %v437_v60  ;;  %v443_v20 = vmul.f32 0.5, %v411_v13  ;;  %v371_v8 = vmul.f32 %v759_v40, %v328_v59  ;;  %v412_v21 = vadd.f32 %v769_v48, %v369_v7 }
 0x11f   :  { %v413_v22 = vadd.f32 %v766_v45, %v370_v16 }
 0x120   :  { %v469_v4 = vadd.f32 %v468_v2, %v438_v51  ;;  %v414_v24 = vadd.f32 %v769_v48, %v371_v8  ;;  %v444_v26 = vmul.f32 0.5, %v412_v21 }
 0x121   :  { %v445_v29 = vmul.f32 0.5, %v413_v22 }
 0x122   :  { %v470_v11 = vadd.f32 %v469_v4, %v439_v63  ;;  %v446_v32 = vmul.f32 0.5, %v414_v24 }
 0x124   :  { %v471_v14 = vadd.f32 %v470_v11, %v440_v10 }
 0x126   :  { %v472_v19 = vadd.f32 %v471_v14, %v441_v15 }
 0x128   :  { %v473_v23 = vadd.f32 %v472_v19, %v442_v18 }
 0x12a   :  { %v474_v28 = vadd.f32 %v473_v23, %v443_v20 }
 0x12c   :  { %v475_v30 = vadd.f32 %v474_v28, %v444_v26 }
 0x12e   :  { %v476_v33 = vadd.f32 %v475_v30, %v445_v29 }
 0x130   :  { %v477_v34 = vadd.f32 %v476_v33, %v446_v32 }
 0x132   :  { %478 = vadd.xlane.f32.xlu0 %v477_v34 }
 0x1bb   :  { %v479_v38 = vpop.xlane.xlu0 %478 }
 0x1bc   :  { %v480_v9 = vrot.slane %v479_v38, 4 }
 0x1be   :  { %v481_v35 = vadd.f32 %v480_v9, %v479_v38 }
 0x1c0   :  { %v482_v36 = vrot.slane %v481_v35, 2 }
 0x1c2   :  { %v483_v40 = vadd.f32 %v482_v36, %v481_v35 }
 0x1c4   :  { %v484_v37 = vrot.slane %v483_v40, 1 }
 0x1c6   :  { %v485_v39 = vadd.f32 %v484_v37, %v483_v40 }
 0x1c8   :  { %521 = vpush %v485_v39 }
 0x1f9   :  { %s522_s20 = spop %521 }
 0x1fa   :  { %s487_s21 = smul.f32 3.0517578e-05, %s522_s20 }
 0x1fc   :  { %v488_v45 = vstv %s487_s21 }
 0x1fd   :  { %490 = vst.msk [vmem:[#allocation2] sm:$0x1] %vm489_vm0, %v488_v45 }
 0x1fe   :  { %544 = shalt.err (!%p541_p4)
}
 0x1ff   :  { %500 = dma.vmem_to_hbm [thread:$0]  %s498_s19, 16, %s987_s5, [#allocation3]  }
 0x200   :  { %553 = dma.done.wait [#allocation3], 16  }
 0x201   :  { %554 = vsyncadd [#allocation3], 4294967280 }
 0x202   :  { %504 = vsyncpa [#allocation3], 1 }

// kernel: vid_forward.11
= control target key start
LH: loop header
LB: loop body
LE: loop exit
PB: predicated region body
PF: predicated region fallthrough
CT: control target
= control target key end

     0   :  { %s3817_s1 = inlined_call_operand.vmem [shape: bf16[1152,256], index: 1, kind: input, shape index: {}]   ;;  %s3818_s0 = inlined_call_operand.vmem [shape: bf16[128,1152], index: 0, kind: input, shape index: {}]   ;;  %s3819_s2 = inlined_call_operand.vmem [shape: f32[1,256], index: 2, kind: input, shape index: {}]   ;;  %s3820_s3 = inlined_call_operand.vmem [shape: f32[128,256], index: 3, kind: output, shape index: {0}]   ;;  %s3821_s4 = inlined_call_operand.vmem [shape: bf16[128,256], index: 4, kind: output, shape index: {1}]  }
   0x1   :  { %v2419_v0 = vld [vmem:[%s3817_s1 + $0x74] ss:$8 sps:$4 sm:$0xff]   ;;  %v2423_v2 = vld [vmem:[%s3817_s1 + $0x70] ss:$8 sps:$4 sm:$0xff]   ;;  %v2425_v4 = vld [vmem:[%s3817_s1 + $0x64] ss:$8 sps:$4 sm:$0xff]  }
   0x2   :  { %v2421_v1 = vld [vmem:[%s3817_s1 + $0x174] ss:$8 sps:$4 sm:$0xff]   ;;  %1341 = vmatprep.subr.bf16.mxu0 %v2419_v0  ;;  %v2424_v3 = vld [vmem:[%s3817_s1 + $0x170] ss:$8 sps:$4 sm:$0xff]   ;;  %v2427_v5 = vld [vmem:[%s3817_s1 + $0x164] ss:$8 sps:$4 sm:$0xff]  }
   0x3   :  { %1454 = vmatprep.subr.bf16.mxu1 %v2421_v1  ;;  %1342 = vmatpush1.bf16.msra.mxu0 %v2423_v2  ;;  %v2429_v6 = vld [vmem:[%s3817_s1 + $0x60] ss:$8 sps:$4 sm:$0xff]   ;;  %v2431_v8 = vld [vmem:[%s3817_s1 + $0x54] ss:$8 sps:$4 sm:$0xff]   ;;  %v2435_v10 = vld [vmem:[%s3817_s1 + $0x50] ss:$8 sps:$4 sm:$0xff]  }
   0x4   :  { %1455 = vmatpush1.bf16.msra.mxu1 %v2424_v3  ;;  %1343 = vmatprep.subr.bf16.mxu0 %v2425_v4  ;;  %v2430_v7 = vld [vmem:[%s3817_s1 + $0x160] ss:$8 sps:$4 sm:$0xff]   ;;  %v2433_v9 = vld [vmem:[%s3817_s1 + $0x154] ss:$8 sps:$4 sm:$0xff]   ;;  %v2436_v11 = vld [vmem:[%s3817_s1 + $0x150] ss:$8 sps:$4 sm:$0xff]  }
   0x5   :  { %1456 = vmatprep.subr.bf16.mxu1 %v2427_v5  ;;  %v2437_v12 = vld [vmem:[%s3817_s1 + $0x44] ss:$8 sps:$4 sm:$0xff]   ;;  %v2441_v14 = vld [vmem:[%s3817_s1 + $0x40] ss:$8 sps:$4 sm:$0xff]   ;;  %v2443_v16 = vld [vmem:[%s3817_s1 + $0x34] ss:$8 sps:$4 sm:$0xff]  }
   0x6   :  { %v2439_v13 = vld [vmem:[%s3817_s1 + $0x144] ss:$8 sps:$4 sm:$0xff]   ;;  %v2442_v15 = vld [vmem:[%s3817_s1 + $0x140] ss:$8 sps:$4 sm:$0xff]   ;;  %v2445_v17 = vld [vmem:[%s3817_s1 + $0x134] ss:$8 sps:$4 sm:$0xff]  }
   0x7   :  { %1344 = vmatpush1.bf16.msra.mxu0 %v2429_v6  ;;  %v2447_v18 = vld [vmem:[%s3817_s1 + $0x30] ss:$8 sps:$4 sm:$0xff]   ;;  %v2449_v20 = vld [vmem:[%s3817_s1 + $0x24] ss:$8 sps:$4 sm:$0xff]   ;;  %v2453_v22 = vld [vmem:[%s3817_s1 + $0x20] ss:$8 sps:$4 sm:$0xff]  }
   0x8   :  { %1457 = vmatpush1.bf16.msra.mxu1 %v2430_v7  ;;  %1345 = vmatprep.subr.bf16.mxu0 %v2431_v8  ;;  %v2448_v19 = vld [vmem:[%s3817_s1 + $0x130] ss:$8 sps:$4 sm:$0xff]   ;;  %v2451_v21 = vld [vmem:[%s3817_s1 + $0x124] ss:$8 sps:$4 sm:$0xff]   ;;  %v2454_v23 = vld [vmem:[%s3817_s1 + $0x120] ss:$8 sps:$4 sm:$0xff]  }
   0x9   :  { %1458 = vmatprep.subr.bf16.mxu1 %v2433_v9  ;;  %v2455_v24 = vld [vmem:[%s3817_s1 + $0x14] ss:$8 sps:$4 sm:$0xff]   ;;  %v2459_v26 = vld [vmem:[%s3817_s1 + $0x10] ss:$8 sps:$4 sm:$0xff]   ;;  %v2461_v28 = vld [vmem:[%s3817_s1 + $0x4] ss:$8 sps:$4 sm:$0xff]  }
   0xa   :  { %v2457_v25 = vld [vmem:[%s3817_s1 + $0x114] ss:$8 sps:$4 sm:$0xff]   ;;  %v2460_v27 = vld [vmem:[%s3817_s1 + $0x110] ss:$8 sps:$4 sm:$0xff]   ;;  %v2463_v29 = vld [vmem:[%s3817_s1 + $0x104] ss:$8 sps:$4 sm:$0xff]  }
   0xb   :  { %1346 = vmatpush1.bf16.msra.mxu0 %v2435_v10  ;;  %v2465_v30 = vld [vmem:[%s3817_s1] ss:$8 sps:$4 sm:$0xff]   ;;  %v2467_v32 = vld [vmem:[%s3817_s1 + $0xf4] ss:$8 sps:$4 sm:$0xff]   ;;  %v2471_v34 = vld [vmem:[%s3817_s1 + $0xf0] ss:$8 sps:$4 sm:$0xff]  }
   0xc   :  { %1459 = vmatpush1.bf16.msra.mxu1 %v2436_v11  ;;  %1347 = vmatprep.subr.bf16.mxu0 %v2437_v12  ;;  %v2466_v31 = vld [vmem:[%s3817_s1 + $0x100] ss:$8 sps:$4 sm:$0xff]   ;;  %v2469_v33 = vld [vmem:[%s3817_s1 + $0x1f4] ss:$8 sps:$4 sm:$0xff]   ;;  %v2472_v35 = vld [vmem:[%s3817_s1 + $0x1f0] ss:$8 sps:$4 sm:$0xff]  }
   0xd   :  { %1460 = vmatprep.subr.bf16.mxu1 %v2439_v13  ;;  %v2473_v36 = vld [vmem:[%s3817_s1 + $0xe4] ss:$8 sps:$4 sm:$0xff]   ;;  %v2477_v38 = vld [vmem:[%s3817_s1 + $0xe0] ss:$8 sps:$4 sm:$0xff]   ;;  %v2479_v40 = vld [vmem:[%s3817_s1 + $0xd4] ss:$8 sps:$4 sm:$0xff]  }
   0xe   :  { %v2475_v37 = vld [vmem:[%s3817_s1 + $0x1e4] ss:$8 sps:$4 sm:$0xff]   ;;  %v2478_v39 = vld [vmem:[%s3817_s1 + $0x1e0] ss:$8 sps:$4 sm:$0xff]   ;;  %v2481_v41 = vld [vmem:[%s3817_s1 + $0x1d4] ss:$8 sps:$4 sm:$0xff]  }
   0xf   :  { %1348 = vmatpush1.bf16.msra.mxu0 %v2441_v14  ;;  %v2483_v42 = vld [vmem:[%s3817_s1 + $0xd0] ss:$8 sps:$4 sm:$0xff]   ;;  %v2485_v44 = vld [vmem:[%s3817_s1 + $0xc4] ss:$8 sps:$4 sm:$0xff]   ;;  %v2489_v46 = vld [vmem:[%s3817_s1 + $0xc0] ss:$8 sps:$4 sm:$0xff]  }
  0x10   :  { %1461 = vmatpush1.bf16.msra.mxu1 %v2442_v15  ;;  %1349 = vmatprep.subr.bf16.mxu0 %v2443_v16  ;;  %v2484_v43 = vld [vmem:[%s3817_s1 + $0x1d0] ss:$8 sps:$4 sm:$0xff]   ;;  %v2487_v45 = vld [vmem:[%s3817_s1 + $0x1c4] ss:$8 sps:$4 sm:$0xff]   ;;  %v2490_v47 = vld [vmem:[%s3817_s1 + $0x1c0] ss:$8 sps:$4 sm:$0xff]  }
  0x11   :  { %1462 = vmatprep.subr.bf16.mxu1 %v2445_v17  ;;  %v2491_v48 = vld [vmem:[%s3817_s1 + $0xb4] ss:$8 sps:$4 sm:$0xff]   ;;  %v2517_v49 = vld [vmem:[%s3818_s0 + $0x4] ss:$36 sps:$4 sm:$0xff]   ;;  %v2520_v51 = vld [vmem:[%s3818_s0 + $0xc] ss:$36 sps:$4 sm:$0xff]  }
  0x12   :  { %v2493_v50 = vld [vmem:[%s3817_s1 + $0x1b4] ss:$8 sps:$4 sm:$0xff]   ;;  %1373 = vmatprep.mubr.bf16.mxu0 %v2517_v49  ;;  %v2495_v52 = vld [vmem:[%s3817_s1 + $0xb0] ss:$8 sps:$4 sm:$0xff]   ;;  %1486 = vmatprep.mubr.bf16.mxu1 %v2520_v51  ;;  %v2497_v54 = vld [vmem:[%s3817_s1 + $0xa4] ss:$8 sps:$4 sm:$0xff]  }
  0x13   :  { %1350 = vmatpush1.bf16.msra.mxu0 %v2447_v18  ;;  %v2496_v53 = vld [vmem:[%s3817_s1 + $0x1b0] ss:$8 sps:$4 sm:$0xff]   ;;  %v2499_v55 = vld [vmem:[%s3817_s1 + $0x1a4] ss:$8 sps:$4 sm:$0xff]   ;;  %v2501_v56 = vld [vmem:[%s3817_s1 + $0xa0] ss:$8 sps:$4 sm:$0xff]  }
  0x14   :  { %1463 = vmatpush1.bf16.msra.mxu1 %v2448_v19  ;;  %1351 = vmatprep.subr.bf16.mxu0 %v2449_v20  ;;  %v2502_v57 = vld [vmem:[%s3817_s1 + $0x1a0] ss:$8 sps:$4 sm:$0xff]   ;;  %v2503_v58 = vld [vmem:[%s3817_s1 + $0x94] ss:$8 sps:$4 sm:$0xff]   ;;  %v2507_v60 = vld [vmem:[%s3817_s1 + $0x90] ss:$8 sps:$4 sm:$0xff]  }
  0x15   :  { %1464 = vmatprep.subr.bf16.mxu1 %v2451_v21  ;;  %v2505_v59 = vld [vmem:[%s3817_s1 + $0x194] ss:$8 sps:$4 sm:$0xff]   ;;  %v2508_v61 = vld [vmem:[%s3817_s1 + $0x190] ss:$8 sps:$4 sm:$0xff]   ;;  %v2509_v62 = vld [vmem:[%s3817_s1 + $0x84] ss:$8 sps:$4 sm:$0xff]  }
  0x16   :  { %v2511_v63 = vld [vmem:[%s3817_s1 + $0x184] ss:$8 sps:$4 sm:$0xff]   ;;  %v2513_v0 = vld [vmem:[%s3817_s1 + $0x80] ss:$8 sps:$4 sm:$0xff]   ;;  %v2523_v2 = vld [vmem:[%s3817_s1 + $0x274] ss:$8 sps:$4 sm:$0xff]  }
  0x17   :  { %1352 = vmatpush1.bf16.msra.mxu0 %v2453_v22  ;;  %v2514_v1 = vld [vmem:[%s3817_s1 + $0x180] ss:$8 sps:$4 sm:$0xff]   ;;  %v2526_v3 = vld [vmem:[%s3817_s1 + $0x374] ss:$8 sps:$4 sm:$0xff]   ;;  %v2521_v6 = vld [vmem:[%s3817_s1 + $0x270] ss:$8 sps:$4 sm:$0xff]  }
  0x18   :  { %1465 = vmatpush1.bf16.msra.mxu1 %v2454_v23  ;;  %1353 = vmatprep.subr.bf16.mxu0 %v2455_v24  ;;  %v2515_v4 = vld [vmem:[%s3818_s0] ss:$36 sps:$4 sm:$0xff]   ;;  %v2518_v5 = vld [vmem:[%s3818_s0 + $0x8] ss:$36 sps:$4 sm:$0xff]   ;;  %v2524_v7 = vld [vmem:[%s3817_s1 + $0x370] ss:$8 sps:$4 sm:$0xff]  }
  0x19   :  { %1466 = vmatprep.subr.bf16.mxu1 %v2457_v25  ;;  %v2529_v8 = vld [vmem:[%s3817_s1 + $0x264] ss:$8 sps:$4 sm:$0xff]   ;;  %v2535_v11 = vld [vmem:[%s3818_s0 + $0x54] ss:$36 sps:$4 sm:$0xff]   ;;  %v2527_v12 = vld [vmem:[%s3817_s1 + $0x260] ss:$8 sps:$4 sm:$0xff]  }
  0x1a   :  { %v2532_v9 = vld [vmem:[%s3817_s1 + $0x364] ss:$8 sps:$4 sm:$0xff]   ;;  %v2530_v13 = vld [vmem:[%s3817_s1 + $0x360] ss:$8 sps:$4 sm:$0xff]   ;;  %v2541_v14 = vld [vmem:[%s3817_s1 + $0x254] ss:$8 sps:$4 sm:$0xff]  }
  0x1b   :  { %1354 = vmatpush1.bf16.msra.mxu0 %v2459_v26  ;;  %v2533_v10 = vld [vmem:[%s3818_s0 + $0x4c] ss:$36 sps:$4 sm:$0xff]   ;;  %v2544_v15 = vld [vmem:[%s3817_s1 + $0x354] ss:$8 sps:$4 sm:$0xff]   ;;  %v2545_v24 = vld [vmem:[%s3817_s1 + $0x240] ss:$8 sps:$4 sm:$0xff]  }
  0x1c   :  { %1467 = vmatpush1.bf16.msra.mxu1 %v2460_v27  ;;  %1355 = vmatprep.subr.bf16.mxu0 %v2461_v28  ;;  %v2537_v16 = vld [vmem:[%s3818_s0 + $0x48] ss:$36 sps:$4 sm:$0xff]   ;;  %v2538_v17 = vld [vmem:[%s3818_s0 + $0x50] ss:$36 sps:$4 sm:$0xff]   ;;  %v2553_v23 = vld [vmem:[%s3818_s0 + $0x9c] ss:$36 sps:$4 sm:$0xff]  }
  0x1d   :  { %1468 = vmatprep.subr.bf16.mxu1 %v2463_v29  ;;  %v2539_v18 = vld [vmem:[%s3817_s1 + $0x250] ss:$8 sps:$4 sm:$0xff]   ;;  %v2547_v20 = vld [vmem:[%s3817_s1 + $0x244] ss:$8 sps:$4 sm:$0xff]   ;;  %v2548_v25 = vld [vmem:[%s3817_s1 + $0x340] ss:$8 sps:$4 sm:$0xff]  }
  0x1e   :  { %v2542_v19 = vld [vmem:[%s3817_s1 + $0x350] ss:$8 sps:$4 sm:$0xff]   ;;  %v2550_v21 = vld [vmem:[%s3817_s1 + $0x344] ss:$8 sps:$4 sm:$0xff]   ;;  %v2559_v26 = vld [vmem:[%s3817_s1 + $0x234] ss:$8 sps:$4 sm:$0xff]  }
  0x1f   :  { %1356 = vmatpush1.bf16.msra.mxu0 %v2465_v30  ;;  %v2551_v22 = vld [vmem:[%s3818_s0 + $0x94] ss:$36 sps:$4 sm:$0xff]   ;;  %v2584_v49 = vld [vmem:[%s3817_s1 + $0x300] ss:$8 sps:$4 sm:$0xff]  }
  0x20   :  { %1469 = vmatpush1.bf16.msra.mxu1 %v2466_v31  ;;  %1357 = vmatprep.subr.bf16.mxu0 %v2467_v32  ;;  %v2562_v27 = vld [vmem:[%s3817_s1 + $0x334] ss:$8 sps:$4 sm:$0xff]   ;;  %v2557_v30 = vld [vmem:[%s3817_s1 + $0x230] ss:$8 sps:$4 sm:$0xff]   ;;  %v2565_v32 = vld [vmem:[%s3817_s1 + $0x224] ss:$8 sps:$4 sm:$0xff]  }
  0x21   :  { %1470 = vmatprep.subr.bf16.mxu1 %v2469_v33  ;;  %v2555_v28 = vld [vmem:[%s3818_s0 + $0x90] ss:$36 sps:$4 sm:$0xff]   ;;  %v2556_v29 = vld [vmem:[%s3818_s0 + $0x98] ss:$36 sps:$4 sm:$0xff]   ;;  %v2568_v33 = vld [vmem:[%s3817_s1 + $0x324] ss:$8 sps:$4 sm:$0xff]  }
  0x22   :  { %v2560_v31 = vld [vmem:[%s3817_s1 + $0x330] ss:$8 sps:$4 sm:$0xff]   ;;  %v2598_v51 = vld [vmem:[%s3817_s1 + $0x3f4] ss:$8 sps:$4 sm:$0xff]  }
  0x23   :  { %1358 = vmatpush2.bf16.msra.mxu0 %v2471_v34  ;;  %v2569_v34 = vld [vmem:[%s3818_s0 + $0xdc] ss:$36 sps:$4 sm:$0xff]  }
  0x24   :  { %1471 = vmatpush2.bf16.msra.mxu1 %v2472_v35  ;;  %1359 = vmatprep.subr.bf16.mxu0 %v2473_v36  ;;  %v2571_v35 = vld [vmem:[%s3818_s0 + $0xe4] ss:$36 sps:$4 sm:$0xff]  }
  0x25   :  { %1472 = vmatprep.subr.bf16.mxu1 %v2475_v37  ;;  %v2563_v36 = vld [vmem:[%s3817_s1 + $0x220] ss:$8 sps:$4 sm:$0xff]  }
  0x26   :  { %v2566_v37 = vld [vmem:[%s3817_s1 + $0x320] ss:$8 sps:$4 sm:$0xff]  }
  0x27   :  { %1360 = vmatpush2.bf16.msra.mxu0 %v2477_v38  ;;  %v2577_v38 = vld [vmem:[%s3817_s1 + $0x214] ss:$8 sps:$4 sm:$0xff]  }
  0x28   :  { %1473 = vmatpush2.bf16.msra.mxu1 %v2478_v39  ;;  %1361 = vmatprep.subr.bf16.mxu0 %v2479_v40  ;;  %v2580_v39 = vld [vmem:[%s3817_s1 + $0x314] ss:$8 sps:$4 sm:$0xff]  }
  0x29   :  { %1474 = vmatprep.subr.bf16.mxu1 %v2481_v41  ;;  %v2573_v40 = vld [vmem:[%s3818_s0 + $0xd8] ss:$36 sps:$4 sm:$0xff]   ;;  %v2574_v41 = vld [vmem:[%s3818_s0 + $0xe0] ss:$36 sps:$4 sm:$0xff]  }
  0x2b   :  { %1362 = vmatpush2.bf16.msra.mxu0 %v2483_v42  ;;  %v2575_v42 = vld [vmem:[%s3817_s1 + $0x210] ss:$8 sps:$4 sm:$0xff]  }
  0x2c   :  { %1475 = vmatpush2.bf16.msra.mxu1 %v2484_v43  ;;  %1363 = vmatprep.subr.bf16.mxu0 %v2485_v44  ;;  %v2578_v43 = vld [vmem:[%s3817_s1 + $0x310] ss:$8 sps:$4 sm:$0xff]   ;;  %v2583_v44 = vld [vmem:[%s3817_s1 + $0x204] ss:$8 sps:$4 sm:$0xff]  }
  0x2d   :  { %1476 = vmatprep.subr.bf16.mxu1 %v2487_v45  ;;  %v2586_v45 = vld [vmem:[%s3817_s1 + $0x304] ss:$8 sps:$4 sm:$0xff]  }
  0x2f   :  { %1364 = vmatpush2.bf16.msra.mxu0 %v2489_v46  ;;  %v2587_v46 = vld [vmem:[%s3818_s0 + $0x124] ss:$36 sps:$4 sm:$0xff]  }
  0x30   :  { %1477 = vmatpush2.bf16.msra.mxu1 %v2490_v47  ;;  %1365 = vmatprep.subr.bf16.mxu0 %v2491_v48  ;;  %v2589_v47 = vld [vmem:[%s3818_s0 + $0x12c] ss:$36 sps:$4 sm:$0xff]   ;;  %v2581_v48 = vld [vmem:[%s3817_s1 + $0x200] ss:$8 sps:$4 sm:$0xff]  }
  0x31   :  { %1478 = vmatprep.subr.bf16.mxu1 %v2493_v50  ;;  %v2595_v50 = vld [vmem:[%s3817_s1 + $0x2f4] ss:$8 sps:$4 sm:$0xff]  }
  0x33   :  { %1366 = vmatpush2.bf16.msra.mxu0 %v2495_v52  ;;  %v2591_v52 = vld [vmem:[%s3818_s0 + $0x120] ss:$36 sps:$4 sm:$0xff]  }
  0x34   :  { %1479 = vmatpush2.bf16.msra.mxu1 %v2496_v53  ;;  %1367 = vmatprep.subr.bf16.mxu0 %v2497_v54  ;;  %v2592_v53 = vld [vmem:[%s3818_s0 + $0x128] ss:$36 sps:$4 sm:$0xff]   ;;  %v2593_v54 = vld [vmem:[%s3817_s1 + $0x2f0] ss:$8 sps:$4 sm:$0xff]  }
  0x35   :  { %1480 = vmatprep.subr.bf16.mxu1 %v2499_v55  ;;  %v2596_v55 = vld [vmem:[%s3817_s1 + $0x3f0] ss:$8 sps:$4 sm:$0xff]  }
  0x37   :  { %1368 = vmatpush2.bf16.msra.mxu0 %v2501_v56  ;;  %v2601_v56 = vld [vmem:[%s3817_s1 + $0x2e4] ss:$8 sps:$4 sm:$0xff]  }
  0x38   :  { %1481 = vmatpush2.bf16.msra.mxu1 %v2502_v57  ;;  %1369 = vmatprep.subr.bf16.mxu0 %v2503_v58  ;;  %v2604_v57 = vld [vmem:[%s3817_s1 + $0x3e4] ss:$8 sps:$4 sm:$0xff]  }
  0x39   :  { %1482 = vmatprep.subr.bf16.mxu1 %v2505_v59  ;;  %v2605_v58 = vld [vmem:[%s3818_s0 + $0x16c] ss:$36 sps:$4 sm:$0xff]   ;;  %v2607_v59 = vld [vmem:[%s3818_s0 + $0x174] ss:$36 sps:$4 sm:$0xff]  }
  0x3b   :  { %1370 = vmatpush2.bf16.msra.mxu0 %v2507_v60  ;;  %v2599_v60 = vld [vmem:[%s3817_s1 + $0x2e0] ss:$8 sps:$4 sm:$0xff]  }
  0x3c   :  { %1483 = vmatpush2.bf16.msra.mxu1 %v2508_v61  ;;  %1371 = vmatprep.subr.bf16.mxu0 %v2509_v62  ;;  %v2602_v61 = vld [vmem:[%s3817_s1 + $0x3e0] ss:$8 sps:$4 sm:$0xff]   ;;  %v2613_v62 = vld [vmem:[%s3817_s1 + $0x2d4] ss:$8 sps:$4 sm:$0xff]  }
  0x3d   :  { %1484 = vmatprep.subr.bf16.mxu1 %v2511_v63  ;;  %v2616_v63 = vld [vmem:[%s3817_s1 + $0x3d4] ss:$8 sps:$4 sm:$0xff]  }
  0x3f   :  { %1372 = vmatpush2.bf16.msra.mxu0 %v2513_v0  ;;  %v2609_v0 = vld [vmem:[%s3818_s0 + $0x168] ss:$36 sps:$4 sm:$0xff]  }
  0x40   :  { %1485 = vmatpush2.bf16.msra.mxu1 %v2514_v1  ;;  %1567 = vmatprep.subr.bf16.mxu0 %v2523_v2  ;;  %v2610_v1 = vld [vmem:[%s3818_s0 + $0x170] ss:$36 sps:$4 sm:$0xff]  }
  0x41   :  { %1680 = vmatprep.subr.bf16.mxu1 %v2526_v3  ;;  %v2611_v2 = vld [vmem:[%s3817_s1 + $0x2d0] ss:$8 sps:$4 sm:$0xff]  }
  0x42   :  { %1374 = vmatmul.mubr.bf16.vlgmr.msra.gmra.mxu0 %v2515_v4  ;;  %v2614_v3 = vld [vmem:[%s3817_s1 + $0x3d0] ss:$8 sps:$4 sm:$0xff]   ;;  %v2619_v4 = vld [vmem:[%s3817_s1 + $0x2c4] ss:$8 sps:$4 sm:$0xff]  }
  0x43   :  { %1487 = vmatmul.mubr.bf16.vlgmr.msra.gmra.mxu1 %v2518_v5  ;;  %1568 = vmatpush1.bf16.msra.mxu0 %v2521_v6  ;;  %v2622_v5 = vld [vmem:[%s3817_s1 + $0x3c4] ss:$8 sps:$4 sm:$0xff]   ;;  %v2623_v6 = vld [vmem:[%s3818_s0 + $0x1b4] ss:$36 sps:$4 sm:$0xff]  }
  0x44   :  { %1681 = vmatpush1.bf16.msra.mxu1 %v2524_v7  ;;  %1569 = vmatprep.subr.bf16.mxu0 %v2529_v8  ;;  %v2625_v7 = vld [vmem:[%s3818_s0 + $0x1bc] ss:$36 sps:$4 sm:$0xff]  }
  0x45   :  { %1682 = vmatprep.subr.bf16.mxu1 %v2532_v9  ;;  %1383 = vmatprep.mubr.bf16.mxu0 %v2533_v10  ;;  %v2617_v8 = vld [vmem:[%s3817_s1 + $0x2c0] ss:$8 sps:$4 sm:$0xff]   ;;  %v2631_v10 = vld [vmem:[%s3817_s1 + $0x2b4] ss:$8 sps:$4 sm:$0xff]  }
  0x46   :  { %1496 = vmatprep.mubr.bf16.mxu1 %v2535_v11  ;;  %v2620_v9 = vld [vmem:[%s3817_s1 + $0x3c0] ss:$8 sps:$4 sm:$0xff]   ;;  %v2634_v11 = vld [vmem:[%s3817_s1 + $0x3b4] ss:$8 sps:$4 sm:$0xff]  }
  0x47   :  { %1570 = vmatpush1.bf16.msra.mxu0 %v2527_v12  ;;  %v2627_v12 = vld [vmem:[%s3818_s0 + $0x1b0] ss:$36 sps:$4 sm:$0xff]  }
  0x48   :  { %1683 = vmatpush1.bf16.msra.mxu1 %v2530_v13  ;;  %1571 = vmatprep.subr.bf16.mxu0 %v2541_v14  ;;  %v2628_v13 = vld [vmem:[%s3818_s0 + $0x1b8] ss:$36 sps:$4 sm:$0xff]  }
  0x49   :  { %1684 = vmatprep.subr.bf16.mxu1 %v2544_v15  ;;  %v2629_v14 = vld [vmem:[%s3817_s1 + $0x2b0] ss:$8 sps:$4 sm:$0xff]  }
  0x4a   :  { %1384 = vmatmul.mubr.bf16.gmra.mxu0 %v2537_v16  ;;  %v2632_v15 = vld [vmem:[%s3817_s1 + $0x3b0] ss:$8 sps:$4 sm:$0xff]   ;;  %v2637_v16 = vld [vmem:[%s3817_s1 + $0x2a4] ss:$8 sps:$4 sm:$0xff]  }
  0x4b   :  { %1497 = vmatmul.mubr.bf16.gmra.mxu1 %v2538_v17  ;;  %1572 = vmatpush1.bf16.msra.mxu0 %v2539_v18  ;;  %v2640_v17 = vld [vmem:[%s3817_s1 + $0x3a4] ss:$8 sps:$4 sm:$0xff]   ;;  %v2641_v18 = vld [vmem:[%s3818_s0 + $0x1fc] ss:$36 sps:$4 sm:$0xff]  }
  0x4c   :  { %1685 = vmatpush1.bf16.msra.mxu1 %v2542_v19  ;;  %1573 = vmatprep.subr.bf16.mxu0 %v2547_v20  ;;  %v2643_v19 = vld [vmem:[%s3818_s0 + $0x204] ss:$36 sps:$4 sm:$0xff]  }
  0x4d   :  { %1686 = vmatprep.subr.bf16.mxu1 %v2550_v21  ;;  %1393 = vmatprep.mubr.bf16.mxu0 %v2551_v22  ;;  %v2635_v20 = vld [vmem:[%s3817_s1 + $0x2a0] ss:$8 sps:$4 sm:$0xff]   ;;  %v2649_v22 = vld [vmem:[%s3817_s1 + $0x294] ss:$8 sps:$4 sm:$0xff]  }
  0x4e   :  { %1506 = vmatprep.mubr.bf16.mxu1 %v2553_v23  ;;  %v2638_v21 = vld [vmem:[%s3817_s1 + $0x3a0] ss:$8 sps:$4 sm:$0xff]   ;;  %v2652_v23 = vld [vmem:[%s3817_s1 + $0x394] ss:$8 sps:$4 sm:$0xff]  }
  0x4f   :  { %1574 = vmatpush1.bf16.msra.mxu0 %v2545_v24  ;;  %v2645_v24 = vld [vmem:[%s3818_s0 + $0x1f8] ss:$36 sps:$4 sm:$0xff]  }
  0x50   :  { %1687 = vmatpush1.bf16.msra.mxu1 %v2548_v25  ;;  %1575 = vmatprep.subr.bf16.mxu0 %v2559_v26  ;;  %v2646_v25 = vld [vmem:[%s3818_s0 + $0x200] ss:$36 sps:$4 sm:$0xff]   ;;  %v2647_v26 = vld [vmem:[%s3817_s1 + $0x290] ss:$8 sps:$4 sm:$0xff]  }
  0x51   :  { %1688 = vmatprep.subr.bf16.mxu1 %v2562_v27  ;;  %v2650_v27 = vld [vmem:[%s3817_s1 + $0x390] ss:$8 sps:$4 sm:$0xff]  }
  0x52   :  { %1394 = vmatmul.mubr.bf16.gmra.mxu0 %v2555_v28  ;;  %v2655_v28 = vld [vmem:[%s3817_s1 + $0x284] ss:$8 sps:$4 sm:$0xff]  }
  0x53   :  { %1507 = vmatmul.mubr.bf16.gmra.mxu1 %v2556_v29  ;;  %1576 = vmatpush1.bf16.msra.mxu0 %v2557_v30  ;;  %v2658_v29 = vld [vmem:[%s3817_s1 + $0x384] ss:$8 sps:$4 sm:$0xff]   ;;  %v2661_v30 = vld [vmem:[%s3818_s0 + $0x14] ss:$36 sps:$4 sm:$0xff]  }
  0x54   :  { %1689 = vmatpush1.bf16.msra.mxu1 %v2560_v31  ;;  %1577 = vmatprep.subr.bf16.mxu0 %v2565_v32  ;;  %v2664_v31 = vld [vmem:[%s3818_s0 + $0x1c] ss:$36 sps:$4 sm:$0xff]  }
  0x55   :  { %1690 = vmatprep.subr.bf16.mxu1 %v2568_v33  ;;  %1403 = vmatprep.mubr.bf16.mxu0 %v2569_v34  ;;  %v2653_v32 = vld [vmem:[%s3817_s1 + $0x280] ss:$8 sps:$4 sm:$0xff]   ;;  %v2667_v34 = vld [vmem:[%s3817_s1 + $0x474] ss:$8 sps:$4 sm:$0xff]  }
  0x56   :  { %1516 = vmatprep.mubr.bf16.mxu1 %v2571_v35  ;;  %v2656_v33 = vld [vmem:[%s3817_s1 + $0x380] ss:$8 sps:$4 sm:$0xff]   ;;  %v2659_v35 = vld [vmem:[%s3818_s0 + $0x10] ss:$36 sps:$4 sm:$0xff]  }
  0x57   :  { %1578 = vmatpush1.bf16.msra.mxu0 %v2563_v36  ;;  %v2662_v36 = vld [vmem:[%s3818_s0 + $0x18] ss:$36 sps:$4 sm:$0xff]  }
  0x58   :  { %1691 = vmatpush1.bf16.msra.mxu1 %v2566_v37  ;;  %1579 = vmatprep.subr.bf16.mxu0 %v2577_v38  ;;  %v2665_v37 = vld [vmem:[%s3817_s1 + $0x470] ss:$8 sps:$4 sm:$0xff]   ;;  %v2668_v38 = vld [vmem:[%s3818_s0 + $0x5c] ss:$36 sps:$4 sm:$0xff]  }
  0x59   :  { %1692 = vmatprep.subr.bf16.mxu1 %v2580_v39  ;;  %v2670_v39 = vld [vmem:[%s3818_s0 + $0x64] ss:$36 sps:$4 sm:$0xff]  }
  0x5a   :  { %1404 = vmatmul.mubr.bf16.gmra.mxu0 %v2573_v40  ;;  %v2676_v40 = vld [vmem:[%s3817_s1 + $0x464] ss:$8 sps:$4 sm:$0xff]  }
  0x5b   :  { %1517 = vmatmul.mubr.bf16.gmra.mxu1 %v2574_v41  ;;  %1580 = vmatpush1.bf16.msra.mxu0 %v2575_v42  ;;  %v2674_v41 = vld [vmem:[%s3817_s1 + $0x460] ss:$8 sps:$4 sm:$0xff]   ;;  %v2685_v42 = vld [vmem:[%s3817_s1 + $0x454] ss:$8 sps:$4 sm:$0xff]  }
  0x5c   :  { %1693 = vmatpush1.bf16.msra.mxu1 %v2578_v43  ;;  %1581 = vmatprep.subr.bf16.mxu0 %v2583_v44  ;;  %v2672_v43 = vld [vmem:[%s3818_s0 + $0x58] ss:$36 sps:$4 sm:$0xff]   ;;  %v2673_v44 = vld [vmem:[%s3818_s0 + $0x60] ss:$36 sps:$4 sm:$0xff]  }
  0x5d   :  { %1694 = vmatprep.subr.bf16.mxu1 %v2586_v45  ;;  %1413 = vmatprep.mubr.bf16.mxu0 %v2587_v46  ;;  %v2677_v45 = vld [vmem:[%s3818_s0 + $0xa4] ss:$36 sps:$4 sm:$0xff]   ;;  %v2679_v46 = vld [vmem:[%s3818_s0 + $0xac] ss:$36 sps:$4 sm:$0xff]  }
  0x5e   :  { %1526 = vmatprep.mubr.bf16.mxu1 %v2589_v47  ;;  %v2683_v47 = vld [vmem:[%s3817_s1 + $0x450] ss:$8 sps:$4 sm:$0xff]  }
  0x5f   :  { %1582 = vmatpush1.bf16.msra.mxu0 %v2581_v48  ;;  %v2694_v48 = vld [vmem:[%s3817_s1 + $0x444] ss:$8 sps:$4 sm:$0xff]  }
  0x60   :  { %1695 = vmatpush1.bf16.msra.mxu1 %v2584_v49  ;;  %1583 = vmatprep.subr.bf16.mxu0 %v2595_v50  ;;  %v2681_v49 = vld [vmem:[%s3818_s0 + $0xa0] ss:$36 sps:$4 sm:$0xff]   ;;  %v2682_v50 = vld [vmem:[%s3818_s0 + $0xa8] ss:$36 sps:$4 sm:$0xff]  }
  0x61   :  { %1696 = vmatprep.subr.bf16.mxu1 %v2598_v51  ;;  %v2692_v51 = vld [vmem:[%s3817_s1 + $0x440] ss:$8 sps:$4 sm:$0xff]  }
  0x62   :  { %1414 = vmatmul.mubr.bf16.gmra.mxu0 %v2591_v52  ;;  %v2703_v52 = vld [vmem:[%s3817_s1 + $0x434] ss:$8 sps:$4 sm:$0xff]  }
  0x63   :  { %1527 = vmatmul.mubr.bf16.gmra.mxu1 %v2592_v53  ;;  %1584 = vmatpush2.bf16.msra.mxu0 %v2593_v54  ;;  %v2686_v53 = vld [vmem:[%s3818_s0 + $0xec] ss:$36 sps:$4 sm:$0xff]   ;;  %v2688_v54 = vld [vmem:[%s3818_s0 + $0xf4] ss:$36 sps:$4 sm:$0xff]  }
  0x64   :  { %1697 = vmatpush2.bf16.msra.mxu1 %v2596_v55  ;;  %1585 = vmatprep.subr.bf16.mxu0 %v2601_v56  ;;  %v2701_v55 = vld [vmem:[%s3817_s1 + $0x430] ss:$8 sps:$4 sm:$0xff]   ;;  %v2712_v56 = vld [vmem:[%s3817_s1 + $0x424] ss:$8 sps:$4 sm:$0xff]  }
  0x65   :  { %1698 = vmatprep.subr.bf16.mxu1 %v2604_v57  ;;  %1423 = vmatprep.mubr.bf16.mxu0 %v2605_v58  ;;  %v2710_v57 = vld [vmem:[%s3817_s1 + $0x420] ss:$8 sps:$4 sm:$0xff]   ;;  %v2721_v58 = vld [vmem:[%s3817_s1 + $0x414] ss:$8 sps:$4 sm:$0xff]  }
  0x66   :  { %1536 = vmatprep.mubr.bf16.mxu1 %v2607_v59  ;;  %v2690_v59 = vld [vmem:[%s3818_s0 + $0xe8] ss:$36 sps:$4 sm:$0xff]  }
  0x67   :  { %1586 = vmatpush2.bf16.msra.mxu0 %v2599_v60  ;;  %v2691_v60 = vld [vmem:[%s3818_s0 + $0xf0] ss:$36 sps:$4 sm:$0xff]  }
  0x68   :  { %1699 = vmatpush2.bf16.msra.mxu1 %v2602_v61  ;;  %1587 = vmatprep.subr.bf16.mxu0 %v2613_v62  ;;  %v2695_v61 = vld [vmem:[%s3818_s0 + $0x134] ss:$36 sps:$4 sm:$0xff]   ;;  %v2697_v62 = vld [vmem:[%s3818_s0 + $0x13c] ss:$36 sps:$4 sm:$0xff]  }
  0x69   :  { %1700 = vmatprep.subr.bf16.mxu1 %v2616_v63  ;;  %v2719_v63 = vld [vmem:[%s3817_s1 + $0x410] ss:$8 sps:$4 sm:$0xff]  }
  0x6a   :  { %1424 = vmatmul.mubr.bf16.gmra.mxu0 %v2609_v0  ;;  %v2730_v0 = vld [vmem:[%s3817_s1 + $0x404] ss:$8 sps:$4 sm:$0xff]  }
  0x6b   :  { %1537 = vmatmul.mubr.bf16.gmra.mxu1 %v2610_v1  ;;  %1588 = vmatpush2.bf16.msra.mxu0 %v2611_v2  ;;  %v2728_v1 = vld [vmem:[%s3817_s1 + $0x400] ss:$8 sps:$4 sm:$0xff]   ;;  %v2699_v2 = vld [vmem:[%s3818_s0 + $0x130] ss:$36 sps:$4 sm:$0xff]  }
  0x6c   :  { %1701 = vmatpush2.bf16.msra.mxu1 %v2614_v3  ;;  %1589 = vmatprep.subr.bf16.mxu0 %v2619_v4  ;;  %v2700_v3 = vld [vmem:[%s3818_s0 + $0x138] ss:$36 sps:$4 sm:$0xff]  }
  0x6d   :  { %1702 = vmatprep.subr.bf16.mxu1 %v2622_v5  ;;  %1433 = vmatprep.mubr.bf16.mxu0 %v2623_v6  ;;  %v2704_v4 = vld [vmem:[%s3818_s0 + $0x17c] ss:$36 sps:$4 sm:$0xff]   ;;  %v2706_v5 = vld [vmem:[%s3818_s0 + $0x184] ss:$36 sps:$4 sm:$0xff]  }
  0x6e   :  { %1546 = vmatprep.mubr.bf16.mxu1 %v2625_v7  ;;  %v2708_v6 = vld [vmem:[%s3818_s0 + $0x178] ss:$36 sps:$4 sm:$0xff]   ;;  %v2709_v7 = vld [vmem:[%s3818_s0 + $0x180] ss:$36 sps:$4 sm:$0xff]  }
  0x6f   :  { %1590 = vmatpush2.bf16.msra.mxu0 %v2617_v8  ;;  %v2713_v8 = vld [vmem:[%s3818_s0 + $0x1c4] ss:$36 sps:$4 sm:$0xff]  }
  0x70   :  { %1703 = vmatpush2.bf16.msra.mxu1 %v2620_v9  ;;  %1591 = vmatprep.subr.bf16.mxu0 %v2631_v10  ;;  %v2715_v9 = vld [vmem:[%s3818_s0 + $0x1cc] ss:$36 sps:$4 sm:$0xff]   ;;  %v2717_v10 = vld [vmem:[%s3818_s0 + $0x1c0] ss:$36 sps:$4 sm:$0xff]  }
  0x71   :  { %1704 = vmatprep.subr.bf16.mxu1 %v2634_v11  ;;  %v2718_v11 = vld [vmem:[%s3818_s0 + $0x1c8] ss:$36 sps:$4 sm:$0xff]  }
  0x72   :  { %1434 = vmatmul.mubr.bf16.gmra.mxu0 %v2627_v12  ;;  %v2722_v12 = vld [vmem:[%s3818_s0 + $0x20c] ss:$36 sps:$4 sm:$0xff]  }
  0x73   :  { %1547 = vmatmul.mubr.bf16.gmra.mxu1 %v2628_v13  ;;  %1592 = vmatpush2.bf16.msra.mxu0 %v2629_v14  ;;  %v2724_v13 = vld [vmem:[%s3818_s0 + $0x214] ss:$36 sps:$4 sm:$0xff]   ;;  %v2726_v14 = vld [vmem:[%s3818_s0 + $0x208] ss:$36 sps:$4 sm:$0xff]  }
  0x74   :  { %1705 = vmatpush2.bf16.msra.mxu1 %v2632_v15  ;;  %1593 = vmatprep.subr.bf16.mxu0 %v2637_v16  ;;  %v2727_v15 = vld [vmem:[%s3818_s0 + $0x210] ss:$36 sps:$4 sm:$0xff]   ;;  %v2739_v16 = vmov 0  }
  0x75   :  { %1706 = vmatprep.subr.bf16.mxu1 %v2640_v17  ;;  %1443 = vmatprep.mubr.bf16.mxu0 %v2641_v18  ;;  %v2731_v17 = vld [vmem:[%s3818_s0 + $0x20] ss:$36 sps:$4 sm:$0xff]  }
  0x76   :  { %1556 = vmatprep.mubr.bf16.mxu1 %v2643_v19  ;;  %v2732_v18 = vld [vmem:[%s3818_s0 + $0x140] ss:$36 sps:$4 sm:$0xff]   ;;  %v2733_v19 = vld [vmem:[%s3818_s0 + $0x68] ss:$36 sps:$4 sm:$0xff]  }
  0x77   :  { %1594 = vmatpush2.bf16.msra.mxu0 %v2635_v20  ;;  %v2734_v20 = vld [vmem:[%s3818_s0 + $0x188] ss:$36 sps:$4 sm:$0xff]  }
  0x78   :  { %1707 = vmatpush2.bf16.msra.mxu1 %v2638_v21  ;;  %1595 = vmatprep.subr.bf16.mxu0 %v2649_v22  ;;  %v2735_v21 = vld [vmem:[%s3818_s0 + $0xb0] ss:$36 sps:$4 sm:$0xff]  }
  0x79   :  { %1708 = vmatprep.subr.bf16.mxu1 %v2652_v23  ;;  %v2736_v22 = vld [vmem:[%s3818_s0 + $0x1d0] ss:$36 sps:$4 sm:$0xff]   ;;  %v2737_v23 = vld [vmem:[%s3818_s0 + $0xf8] ss:$36 sps:$4 sm:$0xff]  }
  0x7a   :  { %1444 = vmatmul.mubr.bf16.gmra.mxu0 %v2645_v24  ;;  %v2738_v24 = vld [vmem:[%s3818_s0 + $0x218] ss:$36 sps:$4 sm:$0xff]  }
  0x7b   :  { %1557 = vmatmul.mubr.bf16.gmra.mxu1 %v2646_v25  ;;  %1596 = vmatpush2.bf16.msra.mxu0 %v2647_v26  ;;  %v243_v25 = vlaneseq }
  0x7c   :  { %1709 = vmatpush2.bf16.msra.mxu1 %v2650_v27  ;;  %1597 = vmatprep.subr.bf16.mxu0 %v2655_v28  ;;  %v241_v28 = vld [vmem:[%s3819_s2] sm:$0x3] }
  0x7d   :  { %1710 = vmatprep.subr.bf16.mxu1 %v2658_v29  ;;  %1599 = vmatprep.mubr.bf16.mxu0 %v2661_v30  ;;  %v244_v26 = vshrl.u32 %v243_v25, 7 }
  0x7e   :  { %1712 = vmatprep.mubr.bf16.mxu1 %v2664_v31 }
  0x7f   :  { %1598 = vmatpush2.bf16.msra.mxu0 %v2653_v32  ;;  %v245_v27 = vsub.s32 0, %v244_v26  ;;  %v249_v29 = vsub.s32 1, %v244_v26 }
  0x80   :  { %1711 = vmatpush2.bf16.msra.mxu1 %v2656_v33  ;;  %1793 = vmatprep.subr.bf16.mxu0 %v2667_v34 }
  0x81   :  { %2402 = vmatprep.subr.bf16.mxu1 %v2667_v34  ;;  %v3416_v30 = vrot.slane %v241_v28, %v245_v27  ;;  %v3418_v31 = vrot.slane %v241_v28, %v249_v29 }
  0x82   :  { %1600 = vmatmul.mubr.bf16.vlgmr.msra.gmra.mxu0 %v2659_v35 }
  0x83   :  { %1713 = vmatmul.mubr.bf16.vlgmr.msra.gmra.mxu1 %v2662_v36  ;;  %1794 = vmatpush1.bf16.msra.mxu0 %v2665_v37 }
  0x84   :  { %2410 = vmatpush1.bf16.msra.mxu1 %v2665_v37  ;;  %1609 = vmatprep.mubr.bf16.mxu0 %v2668_v38 }
  0x85   :  { %1722 = vmatprep.mubr.bf16.mxu1 %v2670_v39  ;;  %1795 = vmatprep.subr.bf16.mxu0 %v2676_v40 }
  0x86   :  { %2403 = vmatprep.subr.bf16.mxu1 %v2676_v40 }
  0x87   :  { %1796 = vmatpush1.bf16.msra.mxu0 %v2674_v41 }
  0x88   :  { %2411 = vmatpush1.bf16.msra.mxu1 %v2674_v41  ;;  %1797 = vmatprep.subr.bf16.mxu0 %v2685_v42 }
  0x89   :  { %2404 = vmatprep.subr.bf16.mxu1 %v2685_v42 }
  0x8a   :  { %1610 = vmatmul.mubr.bf16.gmra.mxu0 %v2672_v43 }
  0x8b   :  { %1723 = vmatmul.mubr.bf16.gmra.mxu1 %v2673_v44  ;;  %1619 = vmatprep.mubr.bf16.mxu0 %v2677_v45 }
  0x8c   :  { %1732 = vmatprep.mubr.bf16.mxu1 %v2679_v46  ;;  %1798 = vmatpush1.bf16.msra.mxu0 %v2683_v47 }
  0x8d   :  { %2412 = vmatpush1.bf16.msra.mxu1 %v2683_v47  ;;  %1799 = vmatprep.subr.bf16.mxu0 %v2694_v48 }
  0x8e   :  { %2405 = vmatprep.subr.bf16.mxu1 %v2694_v48 }
  0x90   :  { %1800 = vmatpush1.bf16.msra.mxu0 %v2692_v51 }
  0x91   :  { %2413 = vmatpush1.bf16.msra.mxu1 %v2692_v51  ;;  %1801 = vmatprep.subr.bf16.mxu0 %v2703_v52 }
  0x92   :  { %2406 = vmatprep.subr.bf16.mxu1 %v2703_v52  ;;  %1620 = vmatmul.mubr.bf16.gmra.mxu0 %v2681_v49 }
  0x93   :  { %1733 = vmatmul.mubr.bf16.gmra.mxu1 %v2682_v50  ;;  %1629 = vmatprep.mubr.bf16.mxu0 %v2686_v53 }
  0x94   :  { %1742 = vmatprep.mubr.bf16.mxu1 %v2688_v54  ;;  %1802 = vmatpush1.bf16.msra.mxu0 %v2701_v55 }
  0x95   :  { %2414 = vmatpush1.bf16.msra.mxu1 %v2701_v55  ;;  %1803 = vmatprep.subr.bf16.mxu0 %v2712_v56 }
  0x96   :  { %2407 = vmatprep.subr.bf16.mxu1 %v2712_v56 }
  0x98   :  { %1804 = vmatpush1.bf16.msra.mxu0 %v2710_v57 }
  0x99   :  { %2415 = vmatpush1.bf16.msra.mxu1 %v2710_v57  ;;  %1805 = vmatprep.subr.bf16.mxu0 %v2721_v58 }
  0x9a   :  { %2408 = vmatprep.subr.bf16.mxu1 %v2721_v58  ;;  %1630 = vmatmul.mubr.bf16.gmra.mxu0 %v2690_v59 }
  0x9b   :  { %1743 = vmatmul.mubr.bf16.gmra.mxu1 %v2691_v60  ;;  %1639 = vmatprep.mubr.bf16.mxu0 %v2695_v61 }
  0x9c   :  { %1752 = vmatprep.mubr.bf16.mxu1 %v2697_v62  ;;  %1806 = vmatpush1.bf16.msra.mxu0 %v2719_v63 }
  0x9d   :  { %2416 = vmatpush1.bf16.msra.mxu1 %v2719_v63  ;;  %1807 = vmatprep.subr.bf16.mxu0 %v2730_v0 }
  0x9e   :  { %2409 = vmatprep.subr.bf16.mxu1 %v2730_v0 }
  0xa0   :  { %1808 = vmatpush1.bf16.msra.mxu0 %v2728_v1 }
  0xa1   :  { %2417 = vmatpush1.bf16.msra.mxu1 %v2728_v1 }
  0xa2   :  { %1640 = vmatmul.mubr.bf16.gmra.mxu0 %v2699_v2 }
  0xa3   :  { %1753 = vmatmul.mubr.bf16.gmra.mxu1 %v2700_v3  ;;  %1649 = vmatprep.mubr.bf16.mxu0 %v2704_v4 }
  0xa4   :  { %1762 = vmatprep.mubr.bf16.mxu1 %v2706_v5 }
  0xaa   :  { %1650 = vmatmul.mubr.bf16.gmra.mxu0 %v2708_v6 }
  0xab   :  { %1763 = vmatmul.mubr.bf16.gmra.mxu1 %v2709_v7  ;;  %1659 = vmatprep.mubr.bf16.mxu0 %v2713_v8 }
  0xac   :  { %1772 = vmatprep.mubr.bf16.mxu1 %v2715_v9 }
  0xb2   :  { %1660 = vmatmul.mubr.bf16.gmra.mxu0 %v2717_v10 }
  0xb3   :  { %1773 = vmatmul.mubr.bf16.gmra.mxu1 %v2718_v11  ;;  %1669 = vmatprep.mubr.bf16.mxu0 %v2722_v12 }
  0xb4   :  { %1782 = vmatprep.mubr.bf16.mxu1 %v2724_v13 }
  0xba   :  { %1670 = vmatmul.mubr.bf16.gmra.mxu0 %v2726_v14 }
  0xbb   :  { %1783 = vmatmul.mubr.bf16.gmra.mxu1 %v2727_v15  ;;  %1825 = vmatprep.mubr.bf16.mxu0 %v2739_v16 }
  0xbc   :  { %1865 = vmatprep.mubr.bf16.mxu1 %v2739_v16 }
  0xc2   :  { %1826 = vmatmul.mubr.bf16.vlgmr.msra.gmra.mxu0 %v2731_v17 }
  0xc3   :  { %1866 = vmatmul.mubr.bf16.vlgmr.msra.gmra.mxu1 %v2732_v18  ;;  %1835 = vmatprep.mubr.bf16.mxu0 %v2739_v16 }
  0xc4   :  { %1875 = vmatprep.mubr.bf16.mxu1 %v2739_v16 }
  0xca   :  { %1836 = vmatmul.mubr.bf16.gmra.mxu0 %v2733_v19 }
  0xcb   :  { %1876 = vmatmul.mubr.bf16.gmra.mxu1 %v2734_v20  ;;  %1845 = vmatprep.mubr.bf16.mxu0 %v2739_v16 }
  0xcc   :  { %1885 = vmatprep.mubr.bf16.mxu1 %v2739_v16 }
  0xd2   :  { %1846 = vmatmul.mubr.bf16.gmra.mxu0 %v2735_v21 }
  0xd3   :  { %1886 = vmatmul.mubr.bf16.gmra.mxu1 %v2736_v22  ;;  %1855 = vmatprep.mubr.bf16.mxu0 %v2739_v16 }
  0xd4   :  { %1895 = vmatprep.mubr.bf16.mxu1 %v2739_v16 }
  0xda   :  { %1856 = vmatmul.mubr.bf16.gmra.mxu0 %v2737_v23 }
  0xdb   :  { %1896 = vmatmul.mubr.bf16.gmra.mxu1 %v2738_v24 }
 0x102   :  { %v1375_v32 = vpop.f32.mrf.mxu0 }
 0x103   :  { %v1488_v33 = vpop.f32.mrf.mxu1  ;;  %v1376_v34 = vadd.f32 %v1375_v32, %v3416_v30 }
 0x104   :  { %v1377_v35 = vpop.f32.mrf.mxu0 }
 0x105   :  { %v1490_v36 = vpop.f32.mrf.mxu1  ;;  %v3421_v37 = vadd.f32 %v1488_v33, %v1376_v34  ;;  %v1378_v38 = vadd.f32 %v1377_v35, %v3418_v31 }
 0x106   :  { %v1379_v39 = vpop.f32.mrf.mxu0 }
 0x107   :  { %v1492_v40 = vpop.f32.mrf.mxu1  ;;  %v3424_v41 = vadd.f32 %v1490_v36, %v1378_v38  ;;  %v1380_v42 = vadd.f32 %v1379_v39, %v3416_v30 }
 0x108   :  { %v1381_v43 = vpop.f32.mrf.mxu0 }
 0x109   :  { %v1494_v44 = vpop.f32.mrf.mxu1  ;;  %v3427_v45 = vadd.f32 %v1492_v40, %v1380_v42  ;;  %v1382_v46 = vadd.f32 %v1381_v43, %v3418_v31 }
 0x10a   :  { %v1385_v47 = vpop.f32.mrf.mxu0 }
 0x10b   :  { %v1498_v48 = vpop.f32.mrf.mxu1  ;;  %v3430_v49 = vadd.f32 %v1494_v44, %v1382_v46  ;;  %v1386_v50 = vadd.f32 %v1385_v47, %v3416_v30 }
 0x10c   :  { %v1387_v51 = vpop.f32.mrf.mxu0 }
 0x10d   :  { %v1500_v52 = vpop.f32.mrf.mxu1  ;;  %v3433_v53 = vadd.f32 %v1498_v48, %v1386_v50  ;;  %v1388_v54 = vadd.f32 %v1387_v51, %v3418_v31 }
 0x10e   :  { %v1389_v55 = vpop.f32.mrf.mxu0 }
 0x10f   :  { %v1502_v56 = vpop.f32.mrf.mxu1  ;;  %v3436_v57 = vadd.f32 %v1500_v52, %v1388_v54  ;;  %v1390_v58 = vadd.f32 %v1389_v55, %v3416_v30 }
 0x110   :  { %v1391_v59 = vpop.f32.mrf.mxu0 }
 0x111   :  { %v1504_v60 = vpop.f32.mrf.mxu1  ;;  %v3439_v61 = vadd.f32 %v1502_v56, %v1390_v58  ;;  %v1392_v62 = vadd.f32 %v1391_v59, %v3418_v31 }
 0x112   :  { %v1395_v63 = vpop.f32.mrf.mxu0 }
 0x113   :  { %v1508_v0 = vpop.f32.mrf.mxu1  ;;  %v3442_v1 = vadd.f32 %v1504_v60, %v1392_v62  ;;  %v1396_v2 = vadd.f32 %v1395_v63, %v3416_v30 }
 0x114   :  { %v1397_v3 = vpop.f32.mrf.mxu0 }
 0x115   :  { %v1510_v4 = vpop.f32.mrf.mxu1  ;;  %v3445_v5 = vadd.f32 %v1508_v0, %v1396_v2  ;;  %v1398_v6 = vadd.f32 %v1397_v3, %v3418_v31 }
 0x116   :  { %v1399_v7 = vpop.f32.mrf.mxu0 }
 0x117   :  { %v1512_v8 = vpop.f32.mrf.mxu1  ;;  %v3448_v9 = vadd.f32 %v1510_v4, %v1398_v6  ;;  %v1400_v10 = vadd.f32 %v1399_v7, %v3416_v30 }
 0x118   :  { %v1401_v11 = vpop.f32.mrf.mxu0 }
 0x119   :  { %v1514_v12 = vpop.f32.mrf.mxu1  ;;  %v3451_v13 = vadd.f32 %v1512_v8, %v1400_v10  ;;  %v1402_v14 = vadd.f32 %v1401_v11, %v3418_v31 }
 0x11a   :  { %v1405_v15 = vpop.f32.mrf.mxu0 }
 0x11b   :  { %v1518_v16 = vpop.f32.mrf.mxu1  ;;  %v3454_v17 = vadd.f32 %v1514_v12, %v1402_v14  ;;  %v1406_v18 = vadd.f32 %v1405_v15, %v3416_v30 }
 0x11c   :  { %v1407_v19 = vpop.f32.mrf.mxu0 }
 0x11d   :  { %v1520_v20 = vpop.f32.mrf.mxu1  ;;  %v3457_v21 = vadd.f32 %v1518_v16, %v1406_v18  ;;  %v1408_v22 = vadd.f32 %v1407_v19, %v3418_v31 }
 0x11e   :  { %v1409_v23 = vpop.f32.mrf.mxu0 }
 0x11f   :  { %v1522_v24 = vpop.f32.mrf.mxu1  ;;  %v3460_v25 = vadd.f32 %v1520_v20, %v1408_v22  ;;  %v1410_v26 = vadd.f32 %v1409_v23, %v3416_v30 }
 0x120   :  { %v1411_v27 = vpop.f32.mrf.mxu0 }
 0x121   :  { %v1524_v28 = vpop.f32.mrf.mxu1  ;;  %v3463_v29 = vadd.f32 %v1522_v24, %v1410_v26  ;;  %v1412_v32 = vadd.f32 %v1411_v27, %v3418_v31 }
 0x122   :  { %v1415_v33 = vpop.f32.mrf.mxu0 }
 0x123   :  { %v1528_v34 = vpop.f32.mrf.mxu1  ;;  %v3466_v35 = vadd.f32 %v1524_v28, %v1412_v32  ;;  %v1416_v36 = vadd.f32 %v1415_v33, %v3416_v30 }
 0x124   :  { %v1417_v38 = vpop.f32.mrf.mxu0 }
 0x125   :  { %v1530_v39 = vpop.f32.mrf.mxu1  ;;  %v3469_v40 = vadd.f32 %v1528_v34, %v1416_v36  ;;  %v1418_v42 = vadd.f32 %v1417_v38, %v3418_v31 }
 0x126   :  { %v1419_v43 = vpop.f32.mrf.mxu0 }
 0x127   :  { %v1532_v44 = vpop.f32.mrf.mxu1  ;;  %v3472_v46 = vadd.f32 %v1530_v39, %v1418_v42  ;;  %v1420_v47 = vadd.f32 %v1419_v43, %v3416_v30 }
 0x128   :  { %v1421_v48 = vpop.f32.mrf.mxu0 }
 0x129   :  { %v1534_v50 = vpop.f32.mrf.mxu1  ;;  %v3475_v51 = vadd.f32 %v1532_v44, %v1420_v47  ;;  %v1422_v52 = vadd.f32 %v1421_v48, %v3418_v31 }
 0x12a   :  { %v1425_v54 = vpop.f32.mrf.mxu0 }
 0x12b   :  { %v1538_v55 = vpop.f32.mrf.mxu1  ;;  %v3478_v56 = vadd.f32 %v1534_v50, %v1422_v52  ;;  %v1426_v58 = vadd.f32 %v1425_v54, %v3416_v30 }
 0x12c   :  { %v1427_v59 = vpop.f32.mrf.mxu0 }
 0x12d   :  { %v1540_v60 = vpop.f32.mrf.mxu1  ;;  %v3481_v62 = vadd.f32 %v1538_v55, %v1426_v58  ;;  %v1428_v63 = vadd.f32 %v1427_v59, %v3418_v31 }
 0x12e   :  { %v1429_v0 = vpop.f32.mrf.mxu0 }
 0x12f   :  { %v1542_v2 = vpop.f32.mrf.mxu1  ;;  %v3484_v3 = vadd.f32 %v1540_v60, %v1428_v63  ;;  %v1430_v4 = vadd.f32 %v1429_v0, %v3416_v30 }
 0x130   :  { %v1431_v6 = vpop.f32.mrf.mxu0 }
 0x131   :  { %v1544_v7 = vpop.f32.mrf.mxu1  ;;  %v3487_v8 = vadd.f32 %v1542_v2, %v1430_v4  ;;  %v1432_v10 = vadd.f32 %v1431_v6, %v3418_v31 }
 0x132   :  { %v1435_v11 = vpop.f32.mrf.mxu0 }
 0x133   :  { %v1548_v12 = vpop.f32.mrf.mxu1  ;;  %v3490_v14 = vadd.f32 %v1544_v7, %v1432_v10  ;;  %v1436_v15 = vadd.f32 %v1435_v11, %v3416_v30 }
 0x134   :  { %v1437_v16 = vpop.f32.mrf.mxu0 }
 0x135   :  { %v1550_v18 = vpop.f32.mrf.mxu1  ;;  %v3493_v19 = vadd.f32 %v1548_v12, %v1436_v15  ;;  %v1438_v20 = vadd.f32 %v1437_v16, %v3418_v31 }
 0x136   :  { %v1439_v22 = vpop.f32.mrf.mxu0 }
 0x137   :  { %3822 = vst [vmem:[#allocation2_spill] sm:$0xff] %v3493_v19  ;;  %v1552_v23 = vpop.f32.mrf.mxu1  ;;  %v3496_v24 = vadd.f32 %v1550_v18, %v1438_v20  ;;  %v1440_v26 = vadd.f32 %v1439_v22, %v3416_v30 }
 0x138   :  { %v1441_v27 = vpop.f32.mrf.mxu0 }
 0x139   :  { %3823 = vst [vmem:[#allocation3_spill] sm:$0xff] %v3496_v24  ;;  %v1554_v28 = vpop.f32.mrf.mxu1  ;;  %v3499_v32 = vadd.f32 %v1552_v23, %v1440_v26  ;;  %v1442_v33 = vadd.f32 %v1441_v27, %v3418_v31 }
 0x13a   :  { %v1445_v34 = vpop.f32.mrf.mxu0 }
 0x13b   :  { %3824 = vst [vmem:[#allocation4_spill] sm:$0xff] %v3499_v32  ;;  %v1558_v36 = vpop.f32.mrf.mxu1  ;;  %v3502_v38 = vadd.f32 %v1554_v28, %v1442_v33  ;;  %v1446_v39 = vadd.f32 %v1445_v34, %v3416_v30 }
 0x13c   :  { %v1447_v42 = vpop.f32.mrf.mxu0 }
 0x13d   :  { %3825 = vst [vmem:[#allocation5_spill] sm:$0xff] %v3502_v38  ;;  %v1560_v43 = vpop.f32.mrf.mxu1  ;;  %v3505_v44 = vadd.f32 %v1558_v36, %v1446_v39  ;;  %v1448_v47 = vadd.f32 %v1447_v42, %v3418_v31 }
 0x13e   :  { %v1449_v48 = vpop.f32.mrf.mxu0 }
 0x13f   :  { %3826 = vst [vmem:[#allocation6_spill] sm:$0xff] %v3505_v44  ;;  %v1562_v50 = vpop.f32.mrf.mxu1  ;;  %v3508_v52 = vadd.f32 %v1560_v43, %v1448_v47  ;;  %v1450_v54 = vadd.f32 %v1449_v48, %v3416_v30 }
 0x140   :  { %v1451_v55 = vpop.f32.mrf.mxu0 }
 0x141   :  { %3827 = vst [vmem:[#allocation7_spill] sm:$0xff] %v3508_v52  ;;  %v1564_v58 = vpop.f32.mrf.mxu1  ;;  %v3511_v59 = vadd.f32 %v1562_v50, %v1450_v54  ;;  %v1452_v60 = vadd.f32 %v1451_v55, %v3418_v31 }
 0x142   :  { %v3514_v63 = vpop.f32.mrf.mxu0 }
 0x143   :  { %3828 = vst [vmem:[#allocation8_spill] sm:$0xff] %v3511_v59  ;;  %v3516_v0 = vpop.f32.mrf.mxu1  ;;  %v3518_v2 = vadd.f32 %v1564_v58, %v1452_v60 }
 0x144   :  { %v3520_v4 = vpop.f32.mrf.mxu0 }
 0x145   :  { %3829 = vst [vmem:[#allocation9_spill] sm:$0xff] %v3518_v2  ;;  %v3522_v6 = vpop.f32.mrf.mxu1 }
 0x146   :  { %v3524_v7 = vpop.f32.mrf.mxu0 }
 0x147   :  { %v3526_v10 = vpop.f32.mrf.mxu1  ;;  %v1606_v2 = vadd.f32 %v3524_v7, %v3427_v45 }
 0x148   :  { %v3528_v30 = vpop.f32.mrf.mxu0 }
 0x149   :  { %v3530_v11 = vpop.f32.mrf.mxu1  ;;  %v1608_v59 = vadd.f32 %v3528_v30, %v3430_v49  ;;  %v1719_v49 = vadd.f32 %v3526_v10, %v1606_v2 }
 0x14a   :  { %v1611_v12 = vpop.f32.mrf.mxu0 }
 0x14b   :  { %v1724_v31 = vpop.f32.mrf.mxu1  ;;  %v1612_v15 = vadd.f32 %v1611_v12, %v3433_v53  ;;  %v3584_v7 = vadd.f32 %v3530_v11, %v1608_v59 }
 0x14c   :  { %v3533_v16 = vpop.f32.mrf.mxu0 }
 0x14d   :  { %v3535_v18 = vpop.f32.mrf.mxu1  ;;  %v3537_v20 = vadd.f32 %v1724_v31, %v1612_v15  ;;  %v1614_v38 = vadd.f32 %v3533_v16, %v3436_v57 }
 0x14e   :  { %v1615_v22 = vpop.f32.mrf.mxu0 }
 0x14f   :  { %3830 = vst [vmem:[#allocation10_spill] sm:$0xff] %v3537_v20  ;;  %v1728_v23 = vpop.f32.mrf.mxu1  ;;  %v1616_v26 = vadd.f32 %v1615_v22, %v3439_v61  ;;  %v1604_v20 = vadd.f32 %v3520_v4, %v3424_v41 }
 0x150   :  { %v1617_v27 = vpop.f32.mrf.mxu0 }
 0x151   :  { %v3540_v28 = vpop.f32.mrf.mxu1  ;;  %v3542_v33 = vadd.f32 %v1728_v23, %v1616_v26  ;;  %v1618_v32 = vadd.f32 %v1617_v27, %v3442_v1  ;;  %v1717_v4 = vadd.f32 %v3522_v6, %v1604_v20  ;;  %v3587_v1 = vadd.f32 %v3535_v18, %v1614_v38 }
 0x152   :  { %v1621_v34 = vpop.f32.mrf.mxu0 }
 0x153   :  { %3831 = vst [vmem:[#allocation11_spill] sm:$0xff] %v3542_v33  ;;  %v1734_v36 = vpop.f32.mrf.mxu1  ;;  %v1622_v39 = vadd.f32 %v1621_v34, %v3445_v5 }
 0x154   :  { %v1623_v53 = vpop.f32.mrf.mxu0 }
 0x155   :  { %v3545_v42 = vpop.f32.mrf.mxu1  ;;  %v3547_v43 = vadd.f32 %v1734_v36, %v1622_v39 }
 0x156   :  { %v1625_v47 = vpop.f32.mrf.mxu0 }
 0x157   :  { %3832 = vst [vmem:[#allocation12_spill] sm:$0xff] %v3547_v43  ;;  %v1738_v48 = vpop.f32.mrf.mxu1  ;;  %v1626_v50 = vadd.f32 %v1625_v47, %v3451_v13 }
 0x158   :  { %v1627_v54 = vpop.f32.mrf.mxu0 }
 0x159   :  { %v1740_v61 = vpop.f32.mrf.mxu1  ;;  %v3550_v55 = vadd.f32 %v1738_v48, %v1626_v50  ;;  %v1628_v58 = vadd.f32 %v1627_v54, %v3454_v17 }
 0x15a   :  { %v1631_v60 = vpop.f32.mrf.mxu0 }
 0x15b   :  { %3833 = vst [vmem:[#allocation13_spill] sm:$0xff] %v3550_v55  ;;  %v3553_v12 = vpop.f32.mrf.mxu1  ;;  %v3555_v31 = vadd.f32 %v1740_v61, %v1628_v58 }
 0x15c   :  { %v1633_v5 = vpop.f32.mrf.mxu0 }
 0x15d   :  { %3834 = vst [vmem:[#allocation14_spill] sm:$0xff] %v3555_v31  ;;  %v1746_v15 = vpop.f32.mrf.mxu1  ;;  %v1634_v22 = vadd.f32 %v1633_v5, %v3460_v25 }
 0x15e   :  { %v1635_v23 = vpop.f32.mrf.mxu0 }
 0x15f   :  { %v1748_v26 = vpop.f32.mrf.mxu1  ;;  %v3558_v34 = vadd.f32 %v1746_v15, %v1634_v22  ;;  %v1636_v13 = vadd.f32 %v1635_v23, %v3463_v29 }
 0x160   :  { %v1637_v36 = vpop.f32.mrf.mxu0 }
 0x161   :  { %3835 = vst [vmem:[#allocation15_spill] sm:$0xff] %v3558_v34  ;;  %v1750_v39 = vpop.f32.mrf.mxu1  ;;  %v3561_v47 = vadd.f32 %v1748_v26, %v1636_v13  ;;  %v1638_v17 = vadd.f32 %v1637_v36, %v3466_v35 }
 0x162   :  { %v1641_v48 = vpop.f32.mrf.mxu0 }
 0x163   :  { %3836 = vst [vmem:[#allocation16_spill] sm:$0xff] %v3561_v47  ;;  %v1754_v50 = vpop.f32.mrf.mxu1  ;;  %v3564_v54 = vadd.f32 %v1750_v39, %v1638_v17  ;;  %v1642_v41 = vadd.f32 %v1641_v48, %v3469_v40 }
 0x164   :  { %v1643_v61 = vpop.f32.mrf.mxu0 }
 0x165   :  { %3837 = vst [vmem:[#allocation17_spill] sm:$0xff] %v3564_v54  ;;  %v1756_v58 = vpop.f32.mrf.mxu1  ;;  %v1602_v54 = vadd.f32 %v3514_v63, %v3421_v37  ;;  %v1624_v37 = vadd.f32 %v1623_v53, %v3448_v9  ;;  %v1632_v63 = vadd.f32 %v1631_v60, %v3457_v21  ;;  %v3590_v9 = vadd.f32 %v3540_v28, %v1618_v32 }
 0x166   :  { %v1645_v31 = vpop.f32.mrf.mxu0  ;;  %v1644_v21 = vadd.f32 %v1643_v61, %v3472_v46  ;;  %v1755_v16 = vadd.f32 %v1754_v50, %v1642_v41 }
 0x167   :  { %v1758_v25 = vpop.f32.mrf.mxu1  ;;  %v1715_v45 = vadd.f32 %v3516_v0, %v1602_v54  ;;  %v1646_v40 = vadd.f32 %v1645_v31, %v3475_v51  ;;  %v3599_v38 = vadd.f32 %v3545_v42, %v1624_v37  ;;  %v3602_v32 = vadd.f32 %v3553_v12, %v1632_v63  ;;  %v3838_v51 = vld [vmem:[#allocation2_spill] sm:$0xff]  ;;  %v3843_v12 = vld [vmem:[#allocation7_spill] sm:$0xff]  ;;  %v3845_v63 = vld [vmem:[#allocation9_spill] sm:$0xff] }
 0x168   :  { %v1647_v5 = vpop.f32.mrf.mxu0  ;;  %v1757_v60 = vadd.f32 %v1756_v58, %v1644_v21  ;;  %v3842_v31 = vld [vmem:[#allocation6_spill] sm:$0xff] }
 0x169   :  { %v1760_v55 = vpop.f32.mrf.mxu1  ;;  %v1648_v0 = vadd.f32 %v1647_v5, %v3478_v56  ;;  %v3839_v56 = vld [vmem:[#allocation3_spill] sm:$0xff]  ;;  %v1759_v42 = vadd.f32 %v1758_v25, %v1646_v40 }
 0x16a   :  { %v1651_v15 = vpop.f32.mrf.mxu0 }
 0x16b   :  { %v1764_v22 = vpop.f32.mrf.mxu1  ;;  %v1652_v6 = vadd.f32 %v1651_v15, %v3481_v62  ;;  %v3840_v62 = vld [vmem:[#allocation4_spill] sm:$0xff]  ;;  %v1761_v50 = vadd.f32 %v1760_v55, %v1648_v0 }
 0x16c   :  { %v1653_v34 = vpop.f32.mrf.mxu0 }
 0x16d   :  { %v1766_v29 = vpop.f32.mrf.mxu1  ;;  %v1654_v2 = vadd.f32 %v1653_v34, %v3484_v3  ;;  %v3841_v3 = vld [vmem:[#allocation5_spill] sm:$0xff]  ;;  %v3613_v54 = vadd.f32 %v1764_v22, %v1652_v6 }
 0x16e   :  { %v1655_v23 = vpop.f32.mrf.mxu0 }
 0x16f   :  { %v1768_v43 = vpop.f32.mrf.mxu1  ;;  %v1656_v59 = vadd.f32 %v1655_v23, %v3487_v8 }
 0x170   :  { %v1657_v26 = vpop.f32.mrf.mxu0 }
 0x171   :  { %v1770_v13 = vpop.f32.mrf.mxu1  ;;  %v1658_v46 = vadd.f32 %v1657_v26, %v3490_v14  ;;  %v3615_v14 = vadd.f32 %v1766_v29, %v1654_v2 }
 0x172   :  { %v1661_v47 = vpop.f32.mrf.mxu0 }
 0x173   :  { %v1774_v35 = vpop.f32.mrf.mxu1  ;;  %v1662_v18 = vadd.f32 %v1661_v47, %v3838_v51  ;;  %v3617_v47 = vadd.f32 %v1768_v43, %v1656_v59  ;;  %v3619_v15 = vadd.f32 %v1770_v13, %v1658_v46 }
 0x174   :  { %v1663_v36 = vpop.f32.mrf.mxu0 }
 0x175   :  { %v1776_v33 = vpop.f32.mrf.mxu1  ;;  %v1664_v20 = vadd.f32 %v1663_v36, %v3839_v56  ;;  %v3622_v25 = vadd.f32 %v1774_v35, %v1662_v18 }
 0x176   :  { %v1665_v39 = vpop.f32.mrf.mxu0 }
 0x177   :  { %v1778_v17 = vpop.f32.mrf.mxu1  ;;  %v1666_v27 = vadd.f32 %v1665_v39, %v3840_v62 }
 0x178   :  { %v1667_v52 = vpop.f32.mrf.mxu0 }
 0x179   :  { %v1780_v44 = vpop.f32.mrf.mxu1  ;;  %v1668_v28 = vadd.f32 %v1667_v52, %v3841_v3  ;;  %v3844_v52 = vld [vmem:[#allocation8_spill] sm:$0xff]  ;;  %v3626_v36 = vadd.f32 %v1778_v17, %v1666_v27  ;;  %v3846_v3 = vld [vmem:[#allocation10_spill] sm:$0xff] }
 0x17a   :  { %v1671_v24 = vpop.f32.mrf.mxu0 }
 0x17b   :  { %v1784_v19 = vpop.f32.mrf.mxu1  ;;  %v1672_v34 = vadd.f32 %v1671_v24, %v3842_v31  ;;  %v3624_v24 = vadd.f32 %v1776_v33, %v1664_v20  ;;  %v3628_v55 = vadd.f32 %v1780_v44, %v1668_v28 }
 0x17c   :  { %v1673_v57 = vpop.f32.mrf.mxu0 }
 0x17d   :  { %v1786_v30 = vpop.f32.mrf.mxu1  ;;  %v1674_v48 = vadd.f32 %v1673_v57, %v3843_v12  ;;  %v3630_v43 = vadd.f32 %v1784_v19, %v1672_v34 }
 0x17e   :  { %v1675_v10 = vpop.f32.mrf.mxu0 }
 0x17f   :  { %v1788_v11 = vpop.f32.mrf.mxu1  ;;  %v1676_v23 = vadd.f32 %v1675_v10, %v3844_v52  ;;  %v3632_v39 = vadd.f32 %v1786_v30, %v1674_v48 }
 0x180   :  { %v1677_v8 = vpop.f32.mrf.mxu0 }
 0x181   :  { %v3609_v53 = vpop.f32.mrf.mxu1  ;;  %v3640_v19 = vadd.f32 %v1788_v11, %v1676_v23  ;;  %v3643_v41 = vadd.f32 %v1677_v8, %v3845_v63 }
 0x182   :  { %v1827_v61 = vpop.f32.mrf.mxu0 }
 0x183   :  { %v1867_v5 = vpop.f32.mrf.mxu1  ;;  %v1828_v26 = vadd.f32 %v1827_v61, %v1715_v45 }
 0x184   :  { %v1868_v58 = vadd.f32 %v1867_v5, %v1755_v16  ;;  %v1829_v22 = vpop.f32.mrf.mxu0 }
 0x185   :  { %v1869_v29 = vpop.f32.mrf.mxu1  ;;  %1906 = vst [vmem:[%s3820_s3] sm:$0xff] %v1828_v26  ;;  %v1970_v13 = vmul.f32 0.01, %v1828_v26  ;;  %vm1938_vm0 = vcmp.ge.f32.partialorder %v1828_v26, 0.0  ;;  %v1830_v44 = vadd.f32 %v1829_v22, %v1717_v4 }
 0x186   :  { %1922 = vst [vmem:[%s3820_s3 + $0x80] sm:$0xff] %v1868_v58  ;;  %v1986_v33 = vmul.f32 0.01, %v1868_v58  ;;  %vm1954_vm1 = vcmp.ge.f32.partialorder %v1868_v58, 0.0  ;;  %v1870_v35 = vadd.f32 %v1869_v29, %v1757_v60  ;;  %v1831_v17 = vpop.f32.mrf.mxu0  ;;  %v3847_v29 = vld [vmem:[#allocation11_spill] sm:$0xff] }
 0x187   :  { %v1871_v37 = vpop.f32.mrf.mxu1  ;;  %v1832_v45 = vadd.f32 %v1831_v17, %v1719_v49  ;;  %1907 = vst [vmem:[%s3820_s3 + $0x8] sm:$0xff] %v1830_v44  ;;  %vm1939_vm2 = vcmp.ge.f32.partialorder %v1830_v44, 0.0  ;;  %v1971_v30 = vmul.f32 0.01, %v1830_v44  ;;  %v2002_v0 = vsel %vm1938_vm0, %v1828_v26, %v1970_v13 }
 0x188   :  { %v1872_v57 = vadd.f32 %v1871_v37, %v1759_v42  ;;  %1923 = vst [vmem:[%s3820_s3 + $0x88] sm:$0xff] %v1870_v35  ;;  %vm1955_vm3 = vcmp.ge.f32.partialorder %v1870_v35, 0.0  ;;  %v1987_v4 = vmul.f32 0.01, %v1870_v35  ;;  %v1833_v21 = vpop.f32.mrf.mxu0  ;;  %v2018_v6 = vsel %vm1954_vm1, %v1868_v58, %v1986_v33 }
 0x189   :  { %v1873_v40 = vpop.f32.mrf.mxu1  ;;  %1908 = vst [vmem:[%s3820_s3 + $0x10] sm:$0xff] %v1832_v45  ;;  %v1972_v49 = vmul.f32 0.01, %v1832_v45  ;;  %v2003_v59 = vsel %vm1939_vm2, %v1830_v44, %v1971_v30  ;;  %v1834_v11 = vadd.f32 %v1833_v21, %v3584_v7  ;;  %vm1940_vm4 = vcmp.ge.f32.partialorder %v1832_v45, 0.0 }
 0x18a   :  { %1924 = vst [vmem:[%s3820_s3 + $0x90] sm:$0xff] %v1872_v57  ;;  %v1988_v2 = vmul.f32 0.01, %v1872_v57  ;;  %v2019_v10 = vsel %vm1955_vm3, %v1870_v35, %v1987_v4  ;;  %v1874_v16 = vadd.f32 %v1873_v40, %v1761_v50  ;;  %v1837_v46 = vpop.f32.mrf.mxu0  ;;  %v2386_v18 = vpack.c.bf16 %v2003_v59, %v2002_v0 }
 0x18b   :  { %v1877_v51 = vpop.f32.mrf.mxu1  ;;  %v2394_v56 = vpack.c.bf16 %v2019_v10, %v2018_v6  ;;  %vm1956_vm5 = vcmp.ge.f32.partialorder %v1872_v57, 0.0  ;;  %1909 = vst [vmem:[%s3820_s3 + $0x18] sm:$0xff] %v1834_v11  ;;  %vm1941_vm6 = vcmp.ge.f32.partialorder %v1834_v11, 0.0  ;;  %v1973_v20 = vmul.f32 0.01, %v1834_v11 }
 0x18c   :  { %1925 = vst [vmem:[%s3820_s3 + $0x98] sm:$0xff] %v1874_v16  ;;  %vm1957_vm7 = vcmp.ge.f32.partialorder %v1874_v16, 0.0  ;;  %v1989_v62 = vmul.f32 0.01, %v1874_v16  ;;  %v1839_v7 = vpop.f32.mrf.mxu0  ;;  %2130 = vst [vmem:[%s3821_s4] sm:$0xff] %v2386_v18  ;;  %v1838_v28 = vadd.f32 %v1837_v46, %v3846_v3  ;;  %v1878_v8 = vadd.f32 %v1877_v51, %v3613_v54 }
 0x18d   :  { %v1879_v27 = vpop.f32.mrf.mxu1  ;;  %2138 = vst [vmem:[%s3821_s4 + $0x40] sm:$0xff] %v2394_v56  ;;  %v1840_v60 = vadd.f32 %v1839_v7, %v3587_v1  ;;  %v2004_v31 = vsel %vm1940_vm4, %v1832_v45, %v1972_v49  ;;  %v2020_v34 = vsel %vm1956_vm5, %v1872_v57, %v1988_v2  ;;  %v2005_v12 = vsel %vm1941_vm6, %v1834_v11, %v1973_v20  ;;  %v3848_v49 = vld [vmem:[#allocation12_spill] sm:$0xff] }
 0x18e   :  { %v1880_v42 = vadd.f32 %v1879_v27, %v3615_v14  ;;  %v2021_v48 = vsel %vm1957_vm7, %v1874_v16, %v1989_v62  ;;  %v1841_v50 = vpop.f32.mrf.mxu0  ;;  %v2387_v5 = vpack.c.bf16 %v2005_v12, %v2004_v31  ;;  %1910 = vst [vmem:[%s3820_s3 + $0x20] sm:$0xff] %v1838_v28  ;;  %vm1942_vm8 = vcmp.ge.f32.partialorder %v1838_v28, 0.0  ;;  %1926 = vst [vmem:[%s3820_s3 + $0xa0] sm:$0xff] %v1878_v8 }
 0x18f   :  { %v1881_v61 = vpop.f32.mrf.mxu1  ;;  %v2395_v52 = vpack.c.bf16 %v2021_v48, %v2020_v34  ;;  %v1974_v54 = vmul.f32 0.01, %v1838_v28  ;;  %1911 = vst [vmem:[%s3820_s3 + $0x28] sm:$0xff] %v1840_v60  ;;  %vm1958_vm9 = vcmp.ge.f32.partialorder %v1878_v8, 0.0  ;;  %v1990_v1 = vmul.f32 0.01, %v1878_v8 }
 0x190   :  { %1927 = vst [vmem:[%s3820_s3 + $0xa8] sm:$0xff] %v1880_v42  ;;  %vm1943_vm10 = vcmp.ge.f32.partialorder %v1840_v60, 0.0  ;;  %v1975_v14 = vmul.f32 0.01, %v1840_v60  ;;  %v1843_v23 = vpop.f32.mrf.mxu0  ;;  %2131 = vst [vmem:[%s3821_s4 + $0x8] sm:$0xff] %v2387_v5  ;;  %vm1959_vm11 = vcmp.ge.f32.partialorder %v1880_v42, 0.0  ;;  %v1842_v13 = vadd.f32 %v1841_v50, %v3847_v29 }
 0x191   :  { %v1883_v26 = vpop.f32.mrf.mxu1  ;;  %2139 = vst [vmem:[%s3821_s4 + $0x48] sm:$0xff] %v2395_v52  ;;  %v2006_v58 = vsel %vm1942_vm8, %v1838_v28, %v1974_v54  ;;  %v1991_v22 = vmul.f32 0.01, %v1880_v42  ;;  %v2022_v33 = vsel %vm1958_vm9, %v1878_v8, %v1990_v1  ;;  %v1882_v35 = vadd.f32 %v1881_v61, %v3617_v47  ;;  %v3849_v34 = vld [vmem:[#allocation13_spill] sm:$0xff]  ;;  %v3850_v50 = vld [vmem:[#allocation14_spill] sm:$0xff] }
 0x192   :  { %v2007_v44 = vsel %vm1943_vm10, %v1840_v60, %v1975_v14  ;;  %v1844_v17 = vadd.f32 %v1843_v23, %v3590_v9  ;;  %v1847_v37 = vpop.f32.mrf.mxu0  ;;  %1912 = vst [vmem:[%s3820_s3 + $0x30] sm:$0xff] %v1842_v13  ;;  %vm1944_vm12 = vcmp.ge.f32.partialorder %v1842_v13, 0.0  ;;  %v1976_v30 = vmul.f32 0.01, %v1842_v13 }
 0x193   :  { %v1887_v63 = vpop.f32.mrf.mxu1  ;;  %v2388_v45 = vpack.c.bf16 %v2007_v44, %v2006_v58  ;;  %v2023_v57 = vsel %vm1959_vm11, %v1880_v42, %v1991_v22  ;;  %1928 = vst [vmem:[%s3820_s3 + $0xb0] sm:$0xff] %v1882_v35  ;;  %vm1960_vm13 = vcmp.ge.f32.partialorder %v1882_v35, 0.0  ;;  %v1992_v21 = vmul.f32 0.01, %v1882_v35 }
 0x194   :  { %v2396_v4 = vpack.c.bf16 %v2023_v57, %v2022_v33  ;;  %1913 = vst [vmem:[%s3820_s3 + $0x38] sm:$0xff] %v1844_v17  ;;  %vm1945_vm14 = vcmp.ge.f32.partialorder %v1844_v17, 0.0  ;;  %v1849_v9 = vpop.f32.mrf.mxu0  ;;  %v2008_v40 = vsel %vm1944_vm12, %v1842_v13, %v1976_v30  ;;  %v1977_v0 = vmul.f32 0.01, %v1844_v17 }
 0x195   :  { %v1889_v47 = vpop.f32.mrf.mxu1  ;;  %2132 = vst [vmem:[%s3821_s4 + $0x10] sm:$0xff] %v2388_v45  ;;  %v1884_v6 = vadd.f32 %v1883_v26, %v3619_v15  ;;  %v1848_v2 = vadd.f32 %v1847_v37, %v3848_v49  ;;  %v2024_v59 = vsel %vm1960_vm13, %v1882_v35, %v1992_v21  ;;  %v1888_v10 = vadd.f32 %v1887_v63, %v3622_v25  ;;  %v3851_v37 = vld [vmem:[#allocation15_spill] sm:$0xff]  ;;  %v3853_v49 = vld [vmem:[#allocation17_spill] sm:$0xff] }
 0x196   :  { %2140 = vst [vmem:[%s3821_s4 + $0x50] sm:$0xff] %v2396_v4  ;;  %v1850_v11 = vadd.f32 %v1849_v9, %v3599_v38  ;;  %v1890_v16 = vadd.f32 %v1889_v47, %v3624_v24  ;;  %v1851_v46 = vpop.f32.mrf.mxu0  ;;  %v2009_v18 = vsel %vm1945_vm14, %v1844_v17, %v1977_v0  ;;  %v1791_v29 = vadd.f32 %v3609_v53, %v3643_v41  ;;  %v3852_v47 = vld [vmem:[#allocation16_spill] sm:$0xff] }
 0x197   :  { %v1891_v51 = vpop.f32.mrf.mxu1  ;;  %1929 = vst [vmem:[%s3820_s3 + $0xb8] sm:$0xff] %v1884_v6  ;;  %vm1961_vm15 = vcmp.ge.f32.partialorder %v1884_v6, 0.0  ;;  %v1993_v15 = vmul.f32 0.01, %v1884_v6  ;;  %1914 = vst [vmem:[%s3820_s3 + $0x40] sm:$0xff] %v1848_v2  ;;  %vm1946_vm0 = vcmp.ge.f32.partialorder %v1848_v2, 0.0  ;;  %v2389_v56 = vpack.c.bf16 %v2009_v18, %v2008_v40 }
 0x198   :  { %v1978_v25 = vmul.f32 0.01, %v1848_v2  ;;  %1930 = vst [vmem:[%s3820_s3 + $0xc0] sm:$0xff] %v1888_v10  ;;  %vm1962_vm1 = vcmp.ge.f32.partialorder %v1888_v10, 0.0  ;;  %v1994_v38 = vmul.f32 0.01, %v1888_v10  ;;  %v1853_v24 = vpop.f32.mrf.mxu0  ;;  %v1852_v12 = vadd.f32 %v1851_v46, %v3849_v34 }
 0x199   :  { %1915 = vst [vmem:[%s3820_s3 + $0x48] sm:$0xff] %v1850_v11  ;;  %1931 = vst [vmem:[%s3820_s3 + $0xc8] sm:$0xff] %v1890_v16  ;;  %v1893_v20 = vpop.f32.mrf.mxu1  ;;  %v2025_v62 = vsel %vm1961_vm15, %v1884_v6, %v1993_v15  ;;  %vm1947_vm2 = vcmp.ge.f32.partialorder %v1850_v11, 0.0  ;;  %v1979_v7 = vmul.f32 0.01, %v1850_v11  ;;  %vm1963_vm3 = vcmp.ge.f32.partialorder %v1890_v16, 0.0 }
 0x19a   :  { %2133 = vst [vmem:[%s3821_s4 + $0x18] sm:$0xff] %v2389_v56  ;;  %v2397_v27 = vpack.c.bf16 %v2025_v62, %v2024_v59  ;;  %v2010_v3 = vsel %vm1946_vm0, %v1848_v2, %v1978_v25  ;;  %v2026_v28 = vsel %vm1962_vm1, %v1888_v10, %v1994_v38  ;;  %v1995_v8 = vmul.f32 0.01, %v1890_v16  ;;  %v1857_v60 = vpop.f32.mrf.mxu0  ;;  %1916 = vst [vmem:[%s3820_s3 + $0x50] sm:$0xff] %v1852_v12 }
 0x19b   :  { %v1897_v42 = vpop.f32.mrf.mxu1  ;;  %v2011_v31 = vsel %vm1947_vm2, %v1850_v11, %v1979_v7  ;;  %v1892_v48 = vadd.f32 %v1891_v51, %v3626_v36  ;;  %v1854_v61 = vadd.f32 %v1853_v24, %v3850_v50  ;;  %v1894_v54 = vadd.f32 %v1893_v20, %v3628_v55 }
 0x19c   :  { %2141 = vst [vmem:[%s3821_s4 + $0x58] sm:$0xff] %v2397_v27  ;;  %v2390_v5 = vpack.c.bf16 %v2011_v31, %v2010_v3  ;;  %v2027_v52 = vsel %vm1963_vm3, %v1890_v16, %v1995_v8  ;;  %v1858_v1 = vadd.f32 %v1857_v60, %v3602_v32  ;;  %v1859_v14 = vpop.f32.mrf.mxu0  ;;  %vm1948_vm4 = vcmp.ge.f32.partialorder %v1852_v12, 0.0 }
 0x19d   :  { %v1899_v23 = vpop.f32.mrf.mxu1  ;;  %v2398_v26 = vpack.c.bf16 %v2027_v52, %v2026_v28  ;;  %v1980_v36 = vmul.f32 0.01, %v1852_v12  ;;  %1932 = vst [vmem:[%s3820_s3 + $0xd0] sm:$0xff] %v1892_v48  ;;  %vm1964_vm5 = vcmp.ge.f32.partialorder %v1892_v48, 0.0  ;;  %1917 = vst [vmem:[%s3820_s3 + $0x58] sm:$0xff] %v1854_v61  ;;  %vm1949_vm6 = vcmp.ge.f32.partialorder %v1854_v61, 0.0 }
 0x19e   :  { %2134 = vst [vmem:[%s3821_s4 + $0x20] sm:$0xff] %v2390_v5  ;;  %v1996_v32 = vmul.f32 0.01, %v1892_v48  ;;  %v1981_v55 = vmul.f32 0.01, %v1854_v61  ;;  %1933 = vst [vmem:[%s3820_s3 + $0xd8] sm:$0xff] %v1894_v54  ;;  %v1861_v58 = vpop.f32.mrf.mxu0  ;;  %v1898_v17 = vadd.f32 %v1897_v42, %v3630_v43  ;;  %v1860_v63 = vadd.f32 %v1859_v14, %v3851_v37 }
 0x19f   :  { %vm1965_vm7 = vcmp.ge.f32.partialorder %v1894_v54, 0.0  ;;  %1918 = vst [vmem:[%s3820_s3 + $0x60] sm:$0xff] %v1858_v1  ;;  %v1901_v22 = vpop.f32.mrf.mxu1  ;;  %2142 = vst [vmem:[%s3821_s4 + $0x60] sm:$0xff] %v2398_v26  ;;  %v2012_v13 = vsel %vm1948_vm4, %v1852_v12, %v1980_v36  ;;  %v1997_v33 = vmul.f32 0.01, %v1894_v54  ;;  %vm1950_vm8 = vcmp.ge.f32.partialorder %v1858_v1, 0.0 }
 0x1a0   :  { %v2013_v44 = vsel %vm1949_vm6, %v1854_v61, %v1981_v55  ;;  %v1982_v35 = vmul.f32 0.01, %v1858_v1  ;;  %v2028_v45 = vsel %vm1964_vm5, %v1892_v48, %v1996_v32  ;;  %v1900_v53 = vadd.f32 %v1899_v23, %v3632_v39  ;;  %v1863_v41 = vpop.f32.mrf.mxu0  ;;  %1934 = vst [vmem:[%s3820_s3 + $0xe0] sm:$0xff] %v1898_v17  ;;  %1919 = vst [vmem:[%s3820_s3 + $0x68] sm:$0xff] %v1860_v63 }
 0x1a1   :  { %v2391_v57 = vpack.c.bf16 %v2013_v44, %v2012_v13  ;;  %v2029_v30 = vsel %vm1965_vm7, %v1894_v54, %v1997_v33  ;;  %v1903_v4 = vpop.f32.mrf.mxu1  ;;  %vm1966_vm9 = vcmp.ge.f32.partialorder %v1898_v17, 0.0  ;;  %v1998_v9 = vmul.f32 0.01, %v1898_v17 }
 0x1a2   :  { %v2399_v21 = vpack.c.bf16 %v2029_v30, %v2028_v45  ;;  %vm1951_vm10 = vcmp.ge.f32.partialorder %v1860_v63, 0.0  ;;  %v1983_v43 = vmul.f32 0.01, %v1860_v63  ;;  %1935 = vst [vmem:[%s3820_s3 + $0xe8] sm:$0xff] %v1900_v53  ;;  %vm1967_vm11 = vcmp.ge.f32.partialorder %v1900_v53, 0.0 }
 0x1a3   :  { %2135 = vst [vmem:[%s3821_s4 + $0x28] sm:$0xff] %v2391_v57  ;;  %v1999_v39 = vmul.f32 0.01, %v1900_v53  ;;  %v1862_v40 = vadd.f32 %v1861_v58, %v3852_v47  ;;  %v2014_v0 = vsel %vm1950_vm8, %v1858_v1, %v1982_v35  ;;  %v1902_v6 = vadd.f32 %v1901_v22, %v3640_v19 }
 0x1a4   :  { %2143 = vst [vmem:[%s3821_s4 + $0x68] sm:$0xff] %v2399_v21  ;;  %v1864_v2 = vadd.f32 %v1863_v41, %v3853_v49  ;;  %v1904_v59 = vadd.f32 %v1903_v4, %v1791_v29  ;;  %v2030_v10 = vsel %vm1966_vm9, %v1898_v17, %v1998_v9  ;;  %v2015_v11 = vsel %vm1951_vm10, %v1860_v63, %v1983_v43 }
 0x1a5   :  { %v2031_v16 = vsel %vm1967_vm11, %v1900_v53, %v1999_v39  ;;  %1920 = vst [vmem:[%s3820_s3 + $0x70] sm:$0xff] %v1862_v40  ;;  %v1984_v46 = vmul.f32 0.01, %v1862_v40  ;;  %v2392_v51 = vpack.c.bf16 %v2015_v11, %v2014_v0  ;;  %vm1952_vm12 = vcmp.ge.f32.partialorder %v1862_v40, 0.0  ;;  %1936 = vst [vmem:[%s3820_s3 + $0xf0] sm:$0xff] %v1902_v6 }
 0x1a6   :  { %v2400_v18 = vpack.c.bf16 %v2031_v16, %v2030_v10  ;;  %v2000_v15 = vmul.f32 0.01, %v1902_v6  ;;  %1921 = vst [vmem:[%s3820_s3 + $0x78] sm:$0xff] %v1864_v2  ;;  %1937 = vst [vmem:[%s3820_s3 + $0xf8] sm:$0xff] %v1904_v59  ;;  %vm1968_vm13 = vcmp.ge.f32.partialorder %v1902_v6, 0.0  ;;  %vm1953_vm14 = vcmp.ge.f32.partialorder %v1864_v2, 0.0 }
 0x1a7   :  { %v1985_v19 = vmul.f32 0.01, %v1864_v2  ;;  %vm1969_vm15 = vcmp.ge.f32.partialorder %v1904_v59, 0.0  ;;  %2136 = vst [vmem:[%s3821_s4 + $0x30] sm:$0xff] %v2392_v51  ;;  %v2001_v56 = vmul.f32 0.01, %v1904_v59  ;;  %v2016_v25 = vsel %vm1952_vm12, %v1862_v40, %v1984_v46 }
 0x1a8   :  { %2144 = vst [vmem:[%s3821_s4 + $0x70] sm:$0xff] %v2400_v18  ;;  %v2032_v24 = vsel %vm1968_vm13, %v1902_v6, %v2000_v15 }
 0x1a9   :  { %v2017_v38 = vsel %vm1953_vm14, %v1864_v2, %v1985_v19  ;;  %v2033_v62 = vsel %vm1969_vm15, %v1904_v59, %v2001_v56 }
 0x1aa   :  { %v2393_v20 = vpack.c.bf16 %v2017_v38, %v2016_v25  ;;  %v2401_v7 = vpack.c.bf16 %v2033_v62, %v2032_v24 }
 0x1ac   :  { %2137 = vst [vmem:[%s3821_s4 + $0x38] sm:$0xff] %v2393_v20  ;;  %2145 = vst [vmem:[%s3821_s4 + $0x78] sm:$0xff] %v2401_v7 }

// kernel: vid_forward.17
= control target key start
LH: loop header
LB: loop body
LE: loop exit
PB: predicated region body
PF: predicated region fallthrough
CT: control target
= control target key end

     0   :  { %s1148_s0 = inlined_call_operand.vmem [shape: f32[32,256], index: 0, kind: input, shape index: {}]   ;;  %s1149_s1 = inlined_call_operand.vmem [shape: f32[32,512], index: 1, kind: input, shape index: {}]   ;;  %s1150_s2 = inlined_call_operand.vmem [shape: f32[256,512], index: 2, kind: input, shape index: {}]   ;;  %s1151_s3 = inlined_call_operand.vmem [shape: f32[1,512], index: 3, kind: input, shape index: {}]   ;;  %s1152_s4 = inlined_call_operand.vmem [shape: f32[1,512], index: 4, kind: input, shape index: {}]   ;;  %s1153_s5 = inlined_call_operand.hbm [shape: f32[1,1], index: 5, kind: output, shape index: {}]  }
   0x1   :  { %v90_v0 = vld [vmem:[%s1150_s2 + $0x1c8] sm:$0xff]  ;;  %v92_v2 = vld [vmem:[%s1150_s2 + $0x1d8] sm:$0xff]  ;;  %v89_v5 = vld [vmem:[%s1150_s2 + $0x1c0] sm:$0xff] }
   0x2   :  { %v94_v1 = vld [vmem:[%s1150_s2 + $0x1e8] sm:$0xff]  ;;  %v96_v4 = vld [vmem:[%s1150_s2 + $0x1f8] sm:$0xff]  ;;  %v93_v6 = vld [vmem:[%s1150_s2 + $0x1e0] sm:$0xff] }
   0x3   :  { %v190_v3 = vpack.c.bf16 %v94_v1, %v90_v0  ;;  %v192_v7 = vpack.c.bf16 %v96_v4, %v92_v2  ;;  %v189_v8 = vpack.c.bf16 %v93_v6, %v89_v5  ;;  %v91_v9 = vld [vmem:[%s1150_s2 + $0x1d0] sm:$0xff]  ;;  %v82_v11 = vld [vmem:[%s1150_s2 + $0x188] sm:$0xff]  ;;  %v84_v14 = vld [vmem:[%s1150_s2 + $0x198] sm:$0xff] }
   0x4   :  { %v95_v10 = vld [vmem:[%s1150_s2 + $0x1f0] sm:$0xff]  ;;  %v86_v13 = vld [vmem:[%s1150_s2 + $0x1a8] sm:$0xff]  ;;  %v88_v15 = vld [vmem:[%s1150_s2 + $0x1b8] sm:$0xff] }
   0x5   :  { %247 = vmatprep.subr.bf16.mxu0 %v190_v3  ;;  %v191_v12 = vpack.c.bf16 %v95_v10, %v91_v9  ;;  %300 = vmatprep.subr.bf16.mxu1 %v192_v7  ;;  %v186_v16 = vpack.c.bf16 %v86_v13, %v82_v11  ;;  %v188_v17 = vpack.c.bf16 %v88_v15, %v84_v14  ;;  %v81_v18 = vld [vmem:[%s1150_s2 + $0x180] sm:$0xff]  ;;  %v83_v20 = vld [vmem:[%s1150_s2 + $0x190] sm:$0xff]  ;;  %v74_v23 = vld [vmem:[%s1150_s2 + $0x148] sm:$0xff] }
   0x6   :  { %248 = vmatpush1.bf16.msra.mxu0 %v189_v8  ;;  %v85_v19 = vld [vmem:[%s1150_s2 + $0x1a0] sm:$0xff]  ;;  %v87_v22 = vld [vmem:[%s1150_s2 + $0x1b0] sm:$0xff]  ;;  %v78_v24 = vld [vmem:[%s1150_s2 + $0x168] sm:$0xff] }
   0x7   :  { %301 = vmatpush1.bf16.msra.mxu1 %v191_v12  ;;  %v185_v21 = vpack.c.bf16 %v85_v19, %v81_v18  ;;  %249 = vmatprep.subr.bf16.mxu0 %v186_v16  ;;  %v187_v25 = vpack.c.bf16 %v87_v22, %v83_v20  ;;  %v182_v26 = vpack.c.bf16 %v78_v24, %v74_v23  ;;  %v76_v27 = vld [vmem:[%s1150_s2 + $0x158] sm:$0xff]  ;;  %v73_v29 = vld [vmem:[%s1150_s2 + $0x140] sm:$0xff]  ;;  %v75_v32 = vld [vmem:[%s1150_s2 + $0x150] sm:$0xff] }
   0x8   :  { %302 = vmatprep.subr.bf16.mxu1 %v188_v17  ;;  %v80_v28 = vld [vmem:[%s1150_s2 + $0x178] sm:$0xff]  ;;  %v77_v31 = vld [vmem:[%s1150_s2 + $0x160] sm:$0xff]  ;;  %v79_v33 = vld [vmem:[%s1150_s2 + $0x170] sm:$0xff] }
   0x9   :  { %v184_v30 = vpack.c.bf16 %v80_v28, %v76_v27  ;;  %v181_v34 = vpack.c.bf16 %v77_v31, %v73_v29  ;;  %v66_v35 = vld [vmem:[%s1150_s2 + $0x108] sm:$0xff]  ;;  %v68_v37 = vld [vmem:[%s1150_s2 + $0x118] sm:$0xff]  ;;  %v183_v38 = vpack.c.bf16 %v79_v33, %v75_v32  ;;  %v65_v41 = vld [vmem:[%s1150_s2 + $0x100] sm:$0xff] }
   0xa   :  { %250 = vmatpush1.bf16.msra.mxu0 %v185_v21  ;;  %v70_v36 = vld [vmem:[%s1150_s2 + $0x128] sm:$0xff]  ;;  %v72_v40 = vld [vmem:[%s1150_s2 + $0x138] sm:$0xff]  ;;  %v69_v42 = vld [vmem:[%s1150_s2 + $0x120] sm:$0xff] }
   0xb   :  { %303 = vmatpush1.bf16.msra.mxu1 %v187_v25  ;;  %251 = vmatprep.subr.bf16.mxu0 %v182_v26  ;;  %v178_v39 = vpack.c.bf16 %v70_v36, %v66_v35  ;;  %v180_v43 = vpack.c.bf16 %v72_v40, %v68_v37  ;;  %v67_v44 = vld [vmem:[%s1150_s2 + $0x110] sm:$0xff]  ;;  %v58_v46 = vld [vmem:[%s1150_s2 + $0xc8] sm:$0xff]  ;;  %v60_v48 = vld [vmem:[%s1150_s2 + $0xd8] sm:$0xff]  ;;  %v177_v50 = vpack.c.bf16 %v69_v42, %v65_v41 }
   0xc   :  { %304 = vmatprep.subr.bf16.mxu1 %v184_v30  ;;  %v71_v45 = vld [vmem:[%s1150_s2 + $0x130] sm:$0xff]  ;;  %v62_v47 = vld [vmem:[%s1150_s2 + $0xe8] sm:$0xff]  ;;  %v64_v49 = vld [vmem:[%s1150_s2 + $0xf8] sm:$0xff] }
   0xd   :  { %v179_v51 = vpack.c.bf16 %v71_v45, %v67_v44  ;;  %v174_v52 = vpack.c.bf16 %v62_v47, %v58_v46  ;;  %v57_v53 = vld [vmem:[%s1150_s2 + $0xc0] sm:$0xff]  ;;  %v59_v55 = vld [vmem:[%s1150_s2 + $0xd0] sm:$0xff]  ;;  %v176_v56 = vpack.c.bf16 %v64_v49, %v60_v48  ;;  %v50_v58 = vld [vmem:[%s1150_s2 + $0x88] sm:$0xff] }
   0xe   :  { %252 = vmatpush1.bf16.msra.mxu0 %v181_v34  ;;  %v61_v54 = vld [vmem:[%s1150_s2 + $0xe0] sm:$0xff]  ;;  %v63_v57 = vld [vmem:[%s1150_s2 + $0xf0] sm:$0xff]  ;;  %v54_v59 = vld [vmem:[%s1150_s2 + $0xa8] sm:$0xff] }
   0xf   :  { %305 = vmatpush1.bf16.msra.mxu1 %v183_v38  ;;  %253 = vmatprep.subr.bf16.mxu0 %v178_v39  ;;  %v52_v60 = vld [vmem:[%s1150_s2 + $0x98] sm:$0xff]  ;;  %v173_v62 = vpack.c.bf16 %v61_v54, %v57_v53  ;;  %v175_v63 = vpack.c.bf16 %v63_v57, %v59_v55  ;;  %v170_v0 = vpack.c.bf16 %v54_v59, %v50_v58  ;;  %v49_v1 = vld [vmem:[%s1150_s2 + $0x80] sm:$0xff]  ;;  %v51_v3 = vld [vmem:[%s1150_s2 + $0x90] sm:$0xff] }
  0x10   :  { %306 = vmatprep.subr.bf16.mxu1 %v180_v43  ;;  %v56_v61 = vld [vmem:[%s1150_s2 + $0xb8] sm:$0xff]  ;;  %v53_v2 = vld [vmem:[%s1150_s2 + $0xa0] sm:$0xff]  ;;  %v55_v5 = vld [vmem:[%s1150_s2 + $0xb0] sm:$0xff] }
  0x11   :  { %v172_v4 = vpack.c.bf16 %v56_v61, %v52_v60  ;;  %v42_v6 = vld [vmem:[%s1150_s2 + $0x48] sm:$0xff]  ;;  %v44_v8 = vld [vmem:[%s1150_s2 + $0x58] sm:$0xff]  ;;  %v169_v10 = vpack.c.bf16 %v53_v2, %v49_v1  ;;  %v171_v11 = vpack.c.bf16 %v55_v5, %v51_v3  ;;  %v41_v13 = vld [vmem:[%s1150_s2 + $0x40] sm:$0xff] }
  0x12   :  { %254 = vmatpush1.bf16.msra.mxu0 %v177_v50  ;;  %v46_v7 = vld [vmem:[%s1150_s2 + $0x68] sm:$0xff]  ;;  %v48_v9 = vld [vmem:[%s1150_s2 + $0x78] sm:$0xff]  ;;  %v45_v14 = vld [vmem:[%s1150_s2 + $0x60] sm:$0xff] }
  0x13   :  { %307 = vmatpush1.bf16.msra.mxu1 %v179_v51  ;;  %255 = vmatprep.subr.bf16.mxu0 %v174_v52  ;;  %v166_v12 = vpack.c.bf16 %v46_v7, %v42_v6  ;;  %v43_v15 = vld [vmem:[%s1150_s2 + $0x50] sm:$0xff]  ;;  %v168_v16 = vpack.c.bf16 %v48_v9, %v44_v8  ;;  %v34_v18 = vld [vmem:[%s1150_s2 + $0x8] sm:$0xff]  ;;  %v36_v20 = vld [vmem:[%s1150_s2 + $0x18] sm:$0xff]  ;;  %v165_v22 = vpack.c.bf16 %v45_v14, %v41_v13 }
  0x14   :  { %308 = vmatprep.subr.bf16.mxu1 %v176_v56  ;;  %v47_v17 = vld [vmem:[%s1150_s2 + $0x70] sm:$0xff]  ;;  %v38_v19 = vld [vmem:[%s1150_s2 + $0x28] sm:$0xff]  ;;  %v40_v21 = vld [vmem:[%s1150_s2 + $0x38] sm:$0xff] }
  0x15   :  { %v167_v23 = vpack.c.bf16 %v47_v17, %v43_v15  ;;  %v162_v24 = vpack.c.bf16 %v38_v19, %v34_v18  ;;  %v33_v25 = vld [vmem:[%s1150_s2] sm:$0xff]  ;;  %v35_v27 = vld [vmem:[%s1150_s2 + $0x10] sm:$0xff]  ;;  %v164_v28 = vpack.c.bf16 %v40_v21, %v36_v20  ;;  %v154_v30 = vld [vmem:[%s1150_s2 + $0x3c8] sm:$0xff] }
  0x16   :  { %256 = vmatpush1.bf16.msra.mxu0 %v173_v62  ;;  %v37_v26 = vld [vmem:[%s1150_s2 + $0x20] sm:$0xff]  ;;  %v39_v29 = vld [vmem:[%s1150_s2 + $0x30] sm:$0xff]  ;;  %v158_v31 = vld [vmem:[%s1150_s2 + $0x3e8] sm:$0xff] }
  0x17   :  { %309 = vmatpush1.bf16.msra.mxu1 %v175_v63  ;;  %257 = vmatprep.subr.bf16.mxu0 %v170_v0  ;;  %v156_v32 = vld [vmem:[%s1150_s2 + $0x3d8] sm:$0xff]  ;;  %v161_v34 = vpack.c.bf16 %v37_v26, %v33_v25  ;;  %v163_v35 = vpack.c.bf16 %v39_v29, %v35_v27  ;;  %v222_v36 = vpack.c.bf16 %v158_v31, %v154_v30  ;;  %v153_v37 = vld [vmem:[%s1150_s2 + $0x3c0] sm:$0xff]  ;;  %v155_v39 = vld [vmem:[%s1150_s2 + $0x3d0] sm:$0xff] }
  0x18   :  { %310 = vmatprep.subr.bf16.mxu1 %v172_v4  ;;  %v160_v33 = vld [vmem:[%s1150_s2 + $0x3f8] sm:$0xff]  ;;  %v157_v38 = vld [vmem:[%s1150_s2 + $0x3e0] sm:$0xff]  ;;  %v159_v41 = vld [vmem:[%s1150_s2 + $0x3f0] sm:$0xff] }
  0x19   :  { %v224_v40 = vpack.c.bf16 %v160_v33, %v156_v32  ;;  %v146_v42 = vld [vmem:[%s1150_s2 + $0x388] sm:$0xff]  ;;  %v148_v44 = vld [vmem:[%s1150_s2 + $0x398] sm:$0xff]  ;;  %v221_v46 = vpack.c.bf16 %v157_v38, %v153_v37  ;;  %v223_v47 = vpack.c.bf16 %v159_v41, %v155_v39  ;;  %v145_v49 = vld [vmem:[%s1150_s2 + $0x380] sm:$0xff] }
  0x1a   :  { %258 = vmatpush1.bf16.msra.mxu0 %v169_v10  ;;  %v150_v43 = vld [vmem:[%s1150_s2 + $0x3a8] sm:$0xff]  ;;  %v152_v45 = vld [vmem:[%s1150_s2 + $0x3b8] sm:$0xff]  ;;  %v149_v50 = vld [vmem:[%s1150_s2 + $0x3a0] sm:$0xff] }
  0x1b   :  { %311 = vmatpush1.bf16.msra.mxu1 %v171_v11  ;;  %259 = vmatprep.subr.bf16.mxu0 %v166_v12  ;;  %v218_v48 = vpack.c.bf16 %v150_v43, %v146_v42  ;;  %v147_v51 = vld [vmem:[%s1150_s2 + $0x390] sm:$0xff]  ;;  %v220_v52 = vpack.c.bf16 %v152_v45, %v148_v44  ;;  %v138_v54 = vld [vmem:[%s1150_s2 + $0x348] sm:$0xff]  ;;  %v140_v56 = vld [vmem:[%s1150_s2 + $0x358] sm:$0xff]  ;;  %v217_v58 = vpack.c.bf16 %v149_v50, %v145_v49 }
  0x1c   :  { %312 = vmatprep.subr.bf16.mxu1 %v168_v16  ;;  %v151_v53 = vld [vmem:[%s1150_s2 + $0x3b0] sm:$0xff]  ;;  %v142_v55 = vld [vmem:[%s1150_s2 + $0x368] sm:$0xff]  ;;  %v144_v57 = vld [vmem:[%s1150_s2 + $0x378] sm:$0xff] }
  0x1d   :  { %v219_v59 = vpack.c.bf16 %v151_v53, %v147_v51  ;;  %v214_v60 = vpack.c.bf16 %v142_v55, %v138_v54  ;;  %v137_v61 = vld [vmem:[%s1150_s2 + $0x340] sm:$0xff]  ;;  %v139_v63 = vld [vmem:[%s1150_s2 + $0x350] sm:$0xff]  ;;  %v216_v0 = vpack.c.bf16 %v144_v57, %v140_v56  ;;  %v130_v2 = vld [vmem:[%s1150_s2 + $0x308] sm:$0xff] }
  0x1e   :  { %260 = vmatpush1.bf16.msra.mxu0 %v165_v22  ;;  %v141_v62 = vld [vmem:[%s1150_s2 + $0x360] sm:$0xff]  ;;  %v143_v1 = vld [vmem:[%s1150_s2 + $0x370] sm:$0xff]  ;;  %v134_v3 = vld [vmem:[%s1150_s2 + $0x328] sm:$0xff] }
  0x1f   :  { %313 = vmatpush1.bf16.msra.mxu1 %v167_v23  ;;  %261 = vmatprep.subr.bf16.mxu0 %v162_v24  ;;  %v132_v4 = vld [vmem:[%s1150_s2 + $0x318] sm:$0xff]  ;;  %v213_v6 = vpack.c.bf16 %v141_v62, %v137_v61  ;;  %v129_v7 = vld [vmem:[%s1150_s2 + $0x300] sm:$0xff]  ;;  %v215_v8 = vpack.c.bf16 %v143_v1, %v139_v63  ;;  %v210_v9 = vpack.c.bf16 %v134_v3, %v130_v2  ;;  %v131_v11 = vld [vmem:[%s1150_s2 + $0x310] sm:$0xff] }
  0x20   :  { %314 = vmatprep.subr.bf16.mxu1 %v164_v28  ;;  %v136_v5 = vld [vmem:[%s1150_s2 + $0x338] sm:$0xff]  ;;  %v133_v10 = vld [vmem:[%s1150_s2 + $0x320] sm:$0xff]  ;;  %v135_v12 = vld [vmem:[%s1150_s2 + $0x330] sm:$0xff] }
  0x21   :  { %v212_v13 = vpack.c.bf16 %v136_v5, %v132_v4  ;;  %v122_v14 = vld [vmem:[%s1150_s2 + $0x2c8] sm:$0xff]  ;;  %v124_v17 = vld [vmem:[%s1150_s2 + $0x2d8] sm:$0xff]  ;;  %v209_v20 = vpack.c.bf16 %v133_v10, %v129_v7  ;;  %v121_v21 = vld [vmem:[%s1150_s2 + $0x2c0] sm:$0xff]  ;;  %v211_v23 = vpack.c.bf16 %v135_v12, %v131_v11 }
  0x22   :  { %262 = vmatpush1.bf16.msra.mxu0 %v161_v34  ;;  %v126_v15 = vld [vmem:[%s1150_s2 + $0x2e8] sm:$0xff]  ;;  %v128_v18 = vld [vmem:[%s1150_s2 + $0x2f8] sm:$0xff]  ;;  %v125_v25 = vld [vmem:[%s1150_s2 + $0x2e0] sm:$0xff] }
  0x23   :  { %315 = vmatpush1.bf16.msra.mxu1 %v163_v35  ;;  %263 = vmatprep.subr.bf16.mxu0 %v222_v36  ;;  %v22_v16 = vld [vmem:[%s1148_s0 + $0x8] sm:$0xff]  ;;  %v24_v19 = vld [vmem:[%s1148_s0 + $0x18] sm:$0xff]  ;;  %v206_v24 = vpack.c.bf16 %v126_v15, %v122_v14  ;;  %v123_v26 = vld [vmem:[%s1150_s2 + $0x2d0] sm:$0xff] }
  0x24   :  { %316 = vmatprep.subr.bf16.mxu1 %v224_v40  ;;  %v30_v22 = vpack.c.bf16 %v24_v19, %v22_v16 }
  0x26   :  { %264 = vmatpush2.bf16.msra.mxu0 %v221_v46 }
  0x27   :  { %317 = vmatpush2.bf16.msra.mxu1 %v223_v47  ;;  %265 = vmatprep.subr.bf16.mxu0 %v218_v48 }
  0x28   :  { %318 = vmatprep.subr.bf16.mxu1 %v220_v52 }
  0x2a   :  { %266 = vmatpush2.bf16.msra.mxu0 %v217_v58 }
  0x2b   :  { %319 = vmatpush2.bf16.msra.mxu1 %v219_v59  ;;  %267 = vmatprep.subr.bf16.mxu0 %v214_v60 }
  0x2c   :  { %320 = vmatprep.subr.bf16.mxu1 %v216_v0 }
  0x2e   :  { %268 = vmatpush2.bf16.msra.mxu0 %v213_v6 }
  0x2f   :  { %321 = vmatpush2.bf16.msra.mxu1 %v215_v8  ;;  %269 = vmatprep.subr.bf16.mxu0 %v210_v9 }
  0x30   :  { %10 = vsyncpa [#allocation3], 0  ;;  %322 = vmatprep.subr.bf16.mxu1 %v212_v13  ;;  %v208_v27 = vpack.c.bf16 %v128_v18, %v124_v17  ;;  %v127_v28 = vld [vmem:[%s1150_s2 + $0x2f0] sm:$0xff]  ;;  %v114_v29 = vld [vmem:[%s1150_s2 + $0x288] sm:$0xff]  ;;  %279 = vmatprep.mubr.bf16.mxu0 %v30_v22  ;;  %v205_v33 = vpack.c.bf16 %v125_v25, %v121_v21  ;;  %vm531_vm0 = vcmask 0  }
  0x31   :  { %v118_v30 = vld [vmem:[%s1150_s2 + $0x2a8] sm:$0xff]  ;;  %v116_v31 = vld [vmem:[%s1150_s2 + $0x298] sm:$0xff]  ;;  %332 = vmatprep.mubr.bf16.mxu1 %v30_v22  ;;  %v207_v34 = vpack.c.bf16 %v127_v28, %v123_v26  ;;  %v113_v36 = vld [vmem:[%s1150_s2 + $0x280] sm:$0xff] }
  0x32   :  { %v120_v32 = vld [vmem:[%s1150_s2 + $0x2b8] sm:$0xff]  ;;  %270 = vmatpush2.bf16.msra.mxu0 %v209_v20  ;;  %v202_v35 = vpack.c.bf16 %v118_v30, %v114_v29  ;;  %v117_v37 = vld [vmem:[%s1150_s2 + $0x2a0] sm:$0xff]  ;;  %v115_v38 = vld [vmem:[%s1150_s2 + $0x290] sm:$0xff] }
  0x33   :  { %323 = vmatpush2.bf16.msra.mxu1 %v211_v23  ;;  %271 = vmatprep.subr.bf16.mxu0 %v206_v24  ;;  %v204_v39 = vpack.c.bf16 %v120_v32, %v116_v31  ;;  %v119_v40 = vld [vmem:[%s1150_s2 + $0x2b0] sm:$0xff]  ;;  %v106_v41 = vld [vmem:[%s1150_s2 + $0x248] sm:$0xff]  ;;  %v108_v43 = vld [vmem:[%s1150_s2 + $0x258] sm:$0xff]  ;;  %v201_v45 = vpack.c.bf16 %v117_v37, %v113_v36  ;;  %v227_v23 = vlaneseq }
  0x34   :  { %324 = vmatprep.subr.bf16.mxu1 %v208_v27  ;;  %v110_v42 = vld [vmem:[%s1150_s2 + $0x268] sm:$0xff]  ;;  %v112_v44 = vld [vmem:[%s1150_s2 + $0x278] sm:$0xff]  ;;  %v203_v46 = vpack.c.bf16 %v119_v40, %v115_v38  ;;  %v105_v48 = vld [vmem:[%s1150_s2 + $0x240] sm:$0xff] }
  0x35   :  { %v198_v47 = vpack.c.bf16 %v110_v42, %v106_v41  ;;  %v109_v49 = vld [vmem:[%s1150_s2 + $0x260] sm:$0xff]  ;;  %v107_v50 = vld [vmem:[%s1150_s2 + $0x250] sm:$0xff]  ;;  %v200_v51 = vpack.c.bf16 %v112_v44, %v108_v43  ;;  %v98_v53 = vld [vmem:[%s1150_s2 + $0x208] sm:$0xff]  ;;  %v228_v24 = vshrl.u32 %v227_v23, 7 }
  0x36   :  { %272 = vmatpush2.bf16.msra.mxu0 %v205_v33  ;;  %v111_v52 = vld [vmem:[%s1150_s2 + $0x270] sm:$0xff]  ;;  %v102_v54 = vld [vmem:[%s1150_s2 + $0x228] sm:$0xff]  ;;  %v100_v55 = vld [vmem:[%s1150_s2 + $0x218] sm:$0xff]  ;;  %v197_v57 = vpack.c.bf16 %v109_v49, %v105_v48 }
  0x37   :  { %325 = vmatpush2.bf16.msra.mxu1 %v207_v34  ;;  %273 = vmatprep.subr.bf16.mxu0 %v202_v35  ;;  %v104_v56 = vld [vmem:[%s1150_s2 + $0x238] sm:$0xff]  ;;  %v199_v58 = vpack.c.bf16 %v111_v52, %v107_v50  ;;  %v194_v59 = vpack.c.bf16 %v102_v54, %v98_v53  ;;  %v97_v60 = vld [vmem:[%s1150_s2 + $0x200] sm:$0xff]  ;;  %v99_v63 = vld [vmem:[%s1150_s2 + $0x210] sm:$0xff]  ;;  %v229_v25 = vsub.s32 0, %v228_v24  ;;  %v237_v27 = vsub.s32 2, %v228_v24 }
  0x38   :  { %326 = vmatprep.subr.bf16.mxu1 %v204_v39  ;;  %v101_v61 = vld [vmem:[%s1150_s2 + $0x220] sm:$0xff]  ;;  %v196_v62 = vpack.c.bf16 %v104_v56, %v100_v55  ;;  %v103_v0 = vld [vmem:[%s1150_s2 + $0x230] sm:$0xff]  ;;  %v26_v5 = vld [vmem:[%s1148_s0 + $0x28] sm:$0xff]  ;;  %v233_v28 = vsub.s32 1, %v228_v24  ;;  %v241_v30 = vsub.s32 3, %v228_v24 }
  0x39   :  { %v193_v1 = vpack.c.bf16 %v101_v61, %v97_v60  ;;  %v21_v2 = vld [vmem:[%s1148_s0] sm:$0xff]  ;;  %v23_v3 = vld [vmem:[%s1148_s0 + $0x10] sm:$0xff]  ;;  %v195_v4 = vpack.c.bf16 %v103_v0, %v99_v63  ;;  %v28_v6 = vld [vmem:[%s1148_s0 + $0x38] sm:$0xff] }
  0x3a   :  { %274 = vmatpush2.bf16.msra.mxu0 %v201_v45  ;;  %v29_v7 = vpack.c.bf16 %v23_v3, %v21_v2  ;;  %v32_v8 = vpack.c.bf16 %v28_v6, %v26_v5  ;;  %v25_v9 = vld [vmem:[%s1148_s0 + $0x20] sm:$0xff]  ;;  %v27_v10 = vld [vmem:[%s1148_s0 + $0x30] sm:$0xff]  ;;  %v368_v45 = vld [vmem:[%s1149_s1 + $0x8] sm:$0xff] }
  0x3b   :  { %327 = vmatpush2.bf16.msra.mxu1 %v203_v46  ;;  %275 = vmatprep.subr.bf16.mxu0 %v198_v47  ;;  %v31_v11 = vpack.c.bf16 %v27_v10, %v25_v9  ;;  %v353_v12 = vld [vmem:[%s1152_s4] sm:$0xf]  ;;  %v369_v41 = vld [vmem:[%s1149_s1 + $0x10] sm:$0xff]  ;;  %v370_v52 = vld [vmem:[%s1149_s1 + $0x18] sm:$0xff] }
  0x3c   :  { %328 = vmatprep.subr.bf16.mxu1 %v200_v51  ;;  %v355_v13 = vand.u32 2147483647, %v353_v12  ;;  %v354_v19 = vmax.f32 %v353_v12, 0.0  ;;  %v225_v26 = vld [vmem:[%s1151_s3] sm:$0xf]  ;;  %v373_v0 = vld [vmem:[%s1149_s1 + $0x30] sm:$0xff] }
  0x3d   :  { %v1025_v31 = vrot.slane %v225_v26, %v229_v25  ;;  %v1027_v32 = vrot.slane %v225_v26, %v237_v27  ;;  %v1029_v35 = vrot.slane %v225_v26, %v233_v28  ;;  %v367_v37 = vld [vmem:[%s1149_s1] sm:$0xff]  ;;  %v1034_v38 = vrot.slane %v225_v26, %v241_v30  ;;  %v372_v6 = vld [vmem:[%s1149_s1 + $0x28] sm:$0xff]  ;;  %v374_v12 = vld [vmem:[%s1149_s1 + $0x38] sm:$0xff] }
  0x3e   :  { %276 = vmatpush2.bf16.msra.mxu0 %v197_v57  ;;  %v356_v14 = vsub.f32 0.0, %v355_v13 }
  0x3f   :  { %329 = vmatpush2.bf16.msra.mxu1 %v199_v58  ;;  %277 = vmatprep.subr.bf16.mxu0 %v194_v59  ;;  %v371_v58 = vld [vmem:[%s1149_s1 + $0x20] sm:$0xff] }
  0x40   :  { %330 = vmatprep.subr.bf16.mxu1 %v196_v62  ;;  %v357_v15 = vmul.f32 1.442695, %v356_v14 }
  0x42   :  { %278 = vmatpush2.bf16.msra.mxu0 %v193_v1  ;;  %550 = vpow2.f32 %v357_v15 }
  0x43   :  { %331 = vmatpush2.bf16.msra.mxu1 %v195_v4 }
  0x45   :  { %280 = vmatmul.mubr.bf16.vlgmr.msra.gmra.mxu0 %v29_v7 }
  0x46   :  { %333 = vmatmul.mubr.bf16.vlgmr.msra.gmra.mxu1 %v29_v7  ;;  %289 = vmatprep.mubr.bf16.mxu0 %v32_v8 }
  0x47   :  { %342 = vmatprep.mubr.bf16.mxu1 %v32_v8 }
  0x4d   :  { %290 = vmatmul.mubr.bf16.gmra.mxu0 %v31_v11 }
  0x4e   :  { %343 = vmatmul.mubr.bf16.gmra.mxu1 %v31_v11 }
  0x4f   :  { %v551_v16 = vpop.eup %550 }
  0x50   :  { %v359_v17 = vadd.f32 1.0, %v551_v16 }
  0x52   :  { %552 = vlog2.f32 %v359_v17 }
  0x5f   :  { %v553_v18 = vpop.eup %552 }
  0x60   :  { %v361_v20 = vmul.f32 0.6931472, %v553_v18 }
  0x62   :  { %v362_v21 = vadd.f32 %v361_v20, %v354_v19 }
  0x64   :  { %v363_v22 = vadd.f32 1e-05, %v362_v21 }
  0x66   :  { %554 = vlog2.f32 %v363_v22 }
  0x67   :  { %556 = vrcp.f32 %v363_v22 }
  0x73   :  { %v555_v29 = vpop.eup %554 }
  0x74   :  { %v557_v33 = vpop.eup %556  ;;  %v366_v34 = vmul.f32 0.6931472, %v555_v29 }
  0x75   :  { %v1040_v42 = vrot.slane %v557_v33, %v229_v25  ;;  %v1046_v46 = vrot.slane %v557_v33, %v233_v28  ;;  %v1050_v49 = vrot.slane %v557_v33, %v237_v27  ;;  %v1059_v56 = vrot.slane %v557_v33, %v241_v30 }
  0x76   :  { %v1048_v48 = vrot.slane %v366_v34, %v229_v25  ;;  %v1056_v54 = vrot.slane %v366_v34, %v233_v28  ;;  %v1064_v60 = vrot.slane %v366_v34, %v237_v27  ;;  %v1070_v3 = vrot.slane %v366_v34, %v241_v30 }
 0x105   :  { %v281_v36 = vpop.f32.mrf.mxu0 }
 0x106   :  { %v282_v39 = vadd.f32 %v281_v36, %v1025_v31  ;;  %v334_v40 = vpop.f32.mrf.mxu1 }
 0x107   :  { %v335_v43 = vadd.f32 %v334_v40, %v1027_v32  ;;  %v283_v44 = vpop.f32.mrf.mxu0  ;;  %v375_v40 = vld [vmem:[%s1149_s1 + $0x40] sm:$0xff] }
 0x108   :  { %v383_v47 = vsub.f32 %v282_v39, %v367_v37  ;;  %v284_v50 = vadd.f32 %v283_v44, %v1029_v35  ;;  %v336_v51 = vpop.f32.mrf.mxu1 }
 0x109   :  { %v385_v53 = vsub.f32 %v335_v43, %v369_v41  ;;  %v337_v55 = vadd.f32 %v336_v51, %v1034_v38  ;;  %v285_v57 = vpop.f32.mrf.mxu0 }
 0x10a   :  { %v399_v59 = vmul.f32 %v383_v47, %v383_v47  ;;  %v384_v61 = vsub.f32 %v284_v50, %v368_v45  ;;  %v286_v62 = vadd.f32 %v285_v57, %v1025_v31  ;;  %v338_v63 = vpop.f32.mrf.mxu1  ;;  %v376_v50 = vld [vmem:[%s1149_s1 + $0x48] sm:$0xff] }
 0x10b   :  { %v401_v1 = vmul.f32 %v385_v53, %v385_v53  ;;  %v386_v2 = vsub.f32 %v337_v55, %v370_v52  ;;  %v339_v4 = vadd.f32 %v338_v63, %v1027_v32  ;;  %v287_v5 = vpop.f32.mrf.mxu0 }
 0x10c   :  { %v436_v7 = vmul.f32 %v1040_v42, %v399_v59  ;;  %v400_v8 = vmul.f32 %v384_v61, %v384_v61  ;;  %v387_v9 = vsub.f32 %v286_v62, %v371_v58  ;;  %v288_v10 = vadd.f32 %v287_v5, %v1029_v35  ;;  %v340_v11 = vpop.f32.mrf.mxu1  ;;  %v379_v59 = vld [vmem:[%s1149_s1 + $0x60] sm:$0xff] }
 0x10d   :  { %v438_v13 = vmul.f32 %v1050_v49, %v401_v1  ;;  %v402_v14 = vmul.f32 %v386_v2, %v386_v2  ;;  %v389_v15 = vsub.f32 %v339_v4, %v373_v0  ;;  %v341_v16 = vadd.f32 %v340_v11, %v1034_v38  ;;  %v291_v17 = vpop.f32.mrf.mxu0  ;;  %v377_v2 = vld [vmem:[%s1149_s1 + $0x50] sm:$0xff] }
 0x10e   :  { %v473_v18 = vadd.f32 %v1048_v48, %v436_v7  ;;  %v437_v19 = vmul.f32 %v1046_v46, %v400_v8  ;;  %v403_v20 = vmul.f32 %v387_v9, %v387_v9  ;;  %v388_v21 = vsub.f32 %v288_v10, %v372_v6  ;;  %v344_v27 = vpop.f32.mrf.mxu1  ;;  %v380_v8 = vld [vmem:[%s1149_s1 + $0x68] sm:$0xff] }
 0x10f   :  { %v475_v22 = vadd.f32 %v1064_v60, %v438_v13  ;;  %v439_v23 = vmul.f32 %v1059_v56, %v402_v14  ;;  %v405_v24 = vmul.f32 %v389_v15, %v389_v15  ;;  %v390_v25 = vsub.f32 %v341_v16, %v374_v12  ;;  %v293_v26 = vpop.f32.mrf.mxu0 }
 0x110   :  { %v489_v28 = vmul.f32 0.5, %v473_v18  ;;  %v474_v29 = vadd.f32 %v1056_v54, %v437_v19  ;;  %v440_v30 = vmul.f32 %v1040_v42, %v403_v20  ;;  %v404_v33 = vmul.f32 %v388_v21, %v388_v21  ;;  %v346_v53 = vpop.f32.mrf.mxu1 }
 0x111   :  { %v491_v34 = vmul.f32 0.5, %v475_v22  ;;  %v476_v36 = vadd.f32 %v1070_v3, %v439_v23  ;;  %v442_v37 = vmul.f32 %v1050_v49, %v405_v24  ;;  %v406_v39 = vmul.f32 %v390_v25, %v390_v25  ;;  %v295_v41 = vpop.f32.mrf.mxu0 }
 0x112   :  { %v490_v43 = vmul.f32 0.5, %v474_v29  ;;  %v477_v44 = vadd.f32 %v1048_v48, %v440_v30  ;;  %v441_v45 = vmul.f32 %v1046_v46, %v404_v33  ;;  %v292_v47 = vadd.f32 %v291_v17, %v1025_v31  ;;  %v348_v13 = vpop.f32.mrf.mxu1 }
 0x113   :  { %v443_v51 = vmul.f32 %v1059_v56, %v406_v39  ;;  %v294_v52 = vadd.f32 %v293_v26, %v1029_v35  ;;  %v492_v57 = vmul.f32 0.5, %v476_v36  ;;  %v297_v61 = vpop.f32.mrf.mxu0  ;;  %v479_v62 = vadd.f32 %v1064_v60, %v442_v37 }
 0x114   :  { %v505_v55 = vadd.f32 %v490_v43, %v489_v28  ;;  %v391_v58 = vsub.f32 %v292_v47, %v375_v40  ;;  %v478_v63 = vadd.f32 %v1056_v54, %v441_v45  ;;  %v296_v1 = vadd.f32 %v295_v41, %v1025_v31  ;;  %v378_v31 = vld [vmem:[%s1149_s1 + $0x58] sm:$0xff]  ;;  %v350_v28 = vpop.f32.mrf.mxu1 }
 0x115   :  { %v392_v0 = vsub.f32 %v294_v52, %v376_v50  ;;  %v493_v5 = vmul.f32 0.5, %v477_v44  ;;  %v345_v7 = vadd.f32 %v344_v27, %v1027_v32  ;;  %v480_v9 = vadd.f32 %v1070_v3, %v443_v51  ;;  %v382_v40 = vld [vmem:[%s1149_s1 + $0x78] sm:$0xff] }
 0x116   :  { %v506_v4 = vadd.f32 %v505_v55, %v491_v34  ;;  %v407_v6 = vmul.f32 %v391_v58, %v391_v58  ;;  %v395_v11 = vsub.f32 %v296_v1, %v379_v59  ;;  %v298_v12 = vadd.f32 %v297_v61, %v1029_v35  ;;  %v381_v35 = vld [vmem:[%s1149_s1 + $0x70] sm:$0xff]  ;;  %s580_s1 = smov [#allocation2]  }
 0x117   :  { %v408_v10 = vmul.f32 %v392_v0, %v392_v0  ;;  %v393_v16 = vsub.f32 %v345_v7, %v377_v2  ;;  %v347_v17 = vadd.f32 %v346_v53, %v1034_v38  ;;  %v494_v18 = vmul.f32 0.5, %v478_v63  ;;  %s539_s18 = sshll.u32 %s580_s1, 4  ;;  %s540_s18 = int_to_ptr.vmem [resolvable:$true] %s539_s18 }
 0x118   :  { %v507_v14 = vadd.f32 %v506_v4, %v492_v57  ;;  %v444_v15 = vmul.f32 %v1040_v42, %v407_v6  ;;  %v396_v20 = vsub.f32 %v298_v12, %v380_v8  ;;  %v349_v21 = vadd.f32 %v348_v13, %v1027_v32  ;;  %s558_s21 = scalar_lea.vmem %s540_s18, 16  ;;  %s562_s22 = scalar_lea.vmem %s540_s18, 32 }
 0x119   :  { %v445_v19 = vmul.f32 %v1046_v46, %v408_v10  ;;  %v409_v24 = vmul.f32 %v393_v16, %v393_v16  ;;  %v394_v25 = vsub.f32 %v347_v17, %v378_v31  ;;  %v495_v26 = vmul.f32 0.5, %v479_v62  ;;  %p559_p0 = scmp.ne.s32.totalorder %s540_s18, %s558_s21  ;;  %p563_p1 = scmp.lt.s32.totalorder %s540_s18, %s540_s18 }
 0x11a   :  { %v508_v22 = vadd.f32 %v507_v14, %v493_v5  ;;  %v481_v23 = vadd.f32 %v1048_v48, %v444_v15  ;;  %v411_v27 = vmul.f32 %v395_v11, %v395_v11  ;;  %v397_v34 = vsub.f32 %v349_v21, %v381_v35  ;;  %p564_p2 = scmp.lt.s32.totalorder %s562_s22, %s558_s21 }
 0x11b   :  { %v446_v30 = vmul.f32 %v1050_v49, %v409_v24  ;;  %v410_v33 = vmul.f32 %v394_v25, %v394_v25  ;;  %v496_v36 = vmul.f32 0.5, %v480_v9  ;;  %v482_v32 = vadd.f32 %v1056_v54, %v445_v19 }
 0x11c   :  { %v509_v29 = vadd.f32 %v508_v22, %v494_v18  ;;  %v497_v37 = vmul.f32 0.5, %v481_v23  ;;  %v412_v39 = vmul.f32 %v396_v20, %v396_v20  ;;  %v351_v45 = vadd.f32 %v350_v28, %v1034_v38  ;;  %p565_p3 = por %p564_p2, %p563_p1 }
 0x11d   :  { %v483_v43 = vadd.f32 %v1064_v60, %v446_v30  ;;  %v447_v44 = vmul.f32 %v1059_v56, %v410_v33  ;;  %v448_v50 = vmul.f32 %v1040_v42, %v411_v27  ;;  %v413_v51 = vmul.f32 %v397_v34, %v397_v34 }
 0x11e   :  { %v510_v41 = vadd.f32 %v509_v29, %v495_v26  ;;  %v398_v52 = vsub.f32 %v351_v45, %v382_v40  ;;  %v498_v53 = vmul.f32 0.5, %v482_v32  ;;  %v449_v55 = vmul.f32 %v1046_v46, %v412_v39  ;;  %p566_p4 = pnand %p565_p3, %p559_p0 }
 0x11f   :  { %v499_v58 = vmul.f32 0.5, %v483_v43  ;;  %v484_v59 = vadd.f32 %v1070_v3, %v447_v44  ;;  %v485_v63 = vadd.f32 %v1048_v48, %v448_v50  ;;  %v450_v0 = vmul.f32 %v1050_v49, %v413_v51 }
 0x120   :  { %v511_v47 = vadd.f32 %v510_v41, %v496_v36  ;;  %v414_v61 = vmul.f32 %v398_v52, %v398_v52  ;;  %v486_v42 = vadd.f32 %v1056_v54, %v449_v55 }
 0x121   :  { %v500_v38 = vmul.f32 0.5, %v484_v59  ;;  %v501_v4 = vmul.f32 0.5, %v485_v63  ;;  %v487_v5 = vadd.f32 %v1064_v60, %v450_v0 }
 0x122   :  { %v512_v57 = vadd.f32 %v511_v47, %v497_v37  ;;  %v451_v2 = vmul.f32 %v1059_v56, %v414_v61  ;;  %v502_v7 = vmul.f32 0.5, %v486_v42 }
 0x123   :  { %v503_v9 = vmul.f32 0.5, %v487_v5 }
 0x124   :  { %v513_v62 = vadd.f32 %v512_v57, %v498_v53  ;;  %v488_v6 = vadd.f32 %v1070_v3, %v451_v2 }
 0x126   :  { %v514_v1 = vadd.f32 %v513_v62, %v499_v58  ;;  %v504_v11 = vmul.f32 0.5, %v488_v6 }
 0x128   :  { %v515_v46 = vadd.f32 %v514_v1, %v500_v38 }
 0x12a   :  { %v516_v8 = vadd.f32 %v515_v46, %v501_v4 }
 0x12c   :  { %v517_v10 = vadd.f32 %v516_v8, %v502_v7 }
 0x12e   :  { %v518_v48 = vadd.f32 %v517_v10, %v503_v9 }
 0x130   :  { %v519_v12 = vadd.f32 %v518_v48, %v504_v11 }
 0x132   :  { %520 = vadd.xlane.f32.xlu0 %v519_v12 }
 0x1bb   :  { %v521_v49 = vpop.xlane.xlu0 %520 }
 0x1bc   :  { %v522_v31 = vrot.slane %v521_v49, 4 }
 0x1be   :  { %v523_v13 = vadd.f32 %v522_v31, %v521_v49 }
 0x1c0   :  { %v524_v56 = vrot.slane %v523_v13, 2 }
 0x1c2   :  { %v525_v14 = vadd.f32 %v524_v56, %v523_v13 }
 0x1c4   :  { %v526_v54 = vrot.slane %v525_v14, 1 }
 0x1c6   :  { %v527_v15 = vadd.f32 %v526_v54, %v525_v14 }
 0x1c8   :  { %547 = vpush %v527_v15 }
 0x1f9   :  { %s548_s19 = spop %547 }
 0x1fa   :  { %s529_s20 = smul.f32 6.1035156e-05, %s548_s19 }
 0x1fc   :  { %v530_v60 = vstv %s529_s20 }
 0x1fd   :  { %532 = vst.msk [vmem:[#allocation2] sm:$0x1] %vm531_vm0, %v530_v60 }
 0x1fe   :  { %569 = shalt.err (!%p566_p4)
}
 0x1ff   :  { %542 = dma.vmem_to_hbm [thread:$0]  %s540_s18, 16, %s1153_s5, [#allocation3]  }
 0x200   :  { %578 = dma.done.wait [#allocation3], 16  }
 0x201   :  { %579 = vsyncadd [#allocation3], 4294967280 }
 0x202   :  { %546 = vsyncpa [#allocation3], 1 }

// kernel: vid_forward.13
= control target key start
LH: loop header
LB: loop body
LE: loop exit
PB: predicated region body
PF: predicated region fallthrough
CT: control target
= control target key end

     0   :  { %s8685_s0 = inlined_call_operand.vmem [shape: bf16[32,2304], index: 0, kind: input, shape index: {}]   ;;  %s8686_s1 = inlined_call_operand.vmem [shape: bf16[2304,512], index: 1, kind: input, shape index: {}]   ;;  %s8687_s2 = inlined_call_operand.vmem [shape: f32[1,512], index: 2, kind: input, shape index: {}]   ;;  %s8688_s3 = inlined_call_operand.vmem [shape: f32[32,512], index: 3, kind: output, shape index: {0}]   ;;  %s8689_s4 = inlined_call_operand.hbm [shape: bf16[32,512], index: 4, kind: output, shape index: {1}]  }
   0x1   :  { %v5436_v0 = vld [vmem:[%s8686_s1 + $0xe4] ss:$16 sps:$4 sm:$0xff]   ;;  %v5440_v2 = vld [vmem:[%s8686_s1 + $0xe0] ss:$16 sps:$4 sm:$0xff]  }
   0x2   :  { %v5438_v1 = vld [vmem:[%s8686_s1 + $0x2e4] ss:$16 sps:$4 sm:$0xff]   ;;  %3711 = vmatprep.subr.bf16.mxu0 %v5436_v0  ;;  %v5441_v3 = vld [vmem:[%s8686_s1 + $0x2e0] ss:$16 sps:$4 sm:$0xff]  }
   0x3   :  { %3764 = vmatprep.subr.bf16.mxu1 %v5438_v1  ;;  %v5442_v4 = vld [vmem:[%s8686_s1 + $0xc4] ss:$16 sps:$4 sm:$0xff]   ;;  %3712 = vmatpush1.bf16.msra.mxu0 %v5440_v2  ;;  %v5446_v6 = vld [vmem:[%s8686_s1 + $0xc0] ss:$16 sps:$4 sm:$0xff]  }
   0x4   :  { %3765 = vmatpush1.bf16.msra.mxu1 %v5441_v3  ;;  %v5444_v5 = vld [vmem:[%s8686_s1 + $0x2c4] ss:$16 sps:$4 sm:$0xff]   ;;  %3713 = vmatprep.subr.bf16.mxu0 %v5442_v4  ;;  %v5447_v7 = vld [vmem:[%s8686_s1 + $0x2c0] ss:$16 sps:$4 sm:$0xff]  }
   0x5   :  { %3766 = vmatprep.subr.bf16.mxu1 %v5444_v5  ;;  %v5448_v8 = vld [vmem:[%s8686_s1 + $0xa4] ss:$16 sps:$4 sm:$0xff]   ;;  %v5452_v10 = vld [vmem:[%s8686_s1 + $0xa0] ss:$16 sps:$4 sm:$0xff]  }
   0x6   :  { %v5450_v9 = vld [vmem:[%s8686_s1 + $0x2a4] ss:$16 sps:$4 sm:$0xff]   ;;  %v5453_v11 = vld [vmem:[%s8686_s1 + $0x2a0] ss:$16 sps:$4 sm:$0xff]  }
   0x7   :  { %3714 = vmatpush1.bf16.msra.mxu0 %v5446_v6  ;;  %v5454_v12 = vld [vmem:[%s8686_s1 + $0x84] ss:$16 sps:$4 sm:$0xff]   ;;  %v5458_v14 = vld [vmem:[%s8686_s1 + $0x80] ss:$16 sps:$4 sm:$0xff]  }
   0x8   :  { %3767 = vmatpush1.bf16.msra.mxu1 %v5447_v7  ;;  %3715 = vmatprep.subr.bf16.mxu0 %v5448_v8  ;;  %v5456_v13 = vld [vmem:[%s8686_s1 + $0x284] ss:$16 sps:$4 sm:$0xff]   ;;  %v5459_v15 = vld [vmem:[%s8686_s1 + $0x280] ss:$16 sps:$4 sm:$0xff]  }
   0x9   :  { %3768 = vmatprep.subr.bf16.mxu1 %v5450_v9  ;;  %v5460_v16 = vld [vmem:[%s8686_s1 + $0x64] ss:$16 sps:$4 sm:$0xff]   ;;  %v5464_v18 = vld [vmem:[%s8686_s1 + $0x60] ss:$16 sps:$4 sm:$0xff]  }
   0xa   :  { %v5462_v17 = vld [vmem:[%s8686_s1 + $0x264] ss:$16 sps:$4 sm:$0xff]   ;;  %v5465_v19 = vld [vmem:[%s8686_s1 + $0x260] ss:$16 sps:$4 sm:$0xff]  }
   0xb   :  { %3716 = vmatpush1.bf16.msra.mxu0 %v5452_v10  ;;  %v5466_v20 = vld [vmem:[%s8686_s1 + $0x44] ss:$16 sps:$4 sm:$0xff]   ;;  %v5470_v22 = vld [vmem:[%s8686_s1 + $0x40] ss:$16 sps:$4 sm:$0xff]  }
   0xc   :  { %3769 = vmatpush1.bf16.msra.mxu1 %v5453_v11  ;;  %3717 = vmatprep.subr.bf16.mxu0 %v5454_v12  ;;  %v5468_v21 = vld [vmem:[%s8686_s1 + $0x244] ss:$16 sps:$4 sm:$0xff]   ;;  %v5471_v23 = vld [vmem:[%s8686_s1 + $0x240] ss:$16 sps:$4 sm:$0xff]  }
   0xd   :  { %3770 = vmatprep.subr.bf16.mxu1 %v5456_v13  ;;  %v5472_v24 = vld [vmem:[%s8686_s1 + $0x24] ss:$16 sps:$4 sm:$0xff]   ;;  %v5476_v26 = vld [vmem:[%s8686_s1 + $0x20] ss:$16 sps:$4 sm:$0xff]  }
   0xe   :  { %v5474_v25 = vld [vmem:[%s8686_s1 + $0x224] ss:$16 sps:$4 sm:$0xff]   ;;  %v5477_v27 = vld [vmem:[%s8686_s1 + $0x220] ss:$16 sps:$4 sm:$0xff]  }
   0xf   :  { %3718 = vmatpush1.bf16.msra.mxu0 %v5458_v14  ;;  %v5478_v28 = vld [vmem:[%s8686_s1 + $0x4] ss:$16 sps:$4 sm:$0xff]   ;;  %v5482_v30 = vld [vmem:[%s8686_s1] ss:$16 sps:$4 sm:$0xff]  }
  0x10   :  { %3771 = vmatpush1.bf16.msra.mxu1 %v5459_v15  ;;  %3719 = vmatprep.subr.bf16.mxu0 %v5460_v16  ;;  %v5480_v29 = vld [vmem:[%s8686_s1 + $0x204] ss:$16 sps:$4 sm:$0xff]   ;;  %v5483_v31 = vld [vmem:[%s8686_s1 + $0x200] ss:$16 sps:$4 sm:$0xff]  }
  0x11   :  { %3772 = vmatprep.subr.bf16.mxu1 %v5462_v17  ;;  %v5484_v32 = vld [vmem:[%s8686_s1 + $0x1e4] ss:$16 sps:$4 sm:$0xff]   ;;  %v5488_v34 = vld [vmem:[%s8686_s1 + $0x1e0] ss:$16 sps:$4 sm:$0xff]  }
  0x12   :  { %v5486_v33 = vld [vmem:[%s8686_s1 + $0x3e4] ss:$16 sps:$4 sm:$0xff]   ;;  %v5489_v35 = vld [vmem:[%s8686_s1 + $0x3e0] ss:$16 sps:$4 sm:$0xff]  }
  0x13   :  { %3720 = vmatpush1.bf16.msra.mxu0 %v5464_v18  ;;  %v5490_v36 = vld [vmem:[%s8686_s1 + $0x1c4] ss:$16 sps:$4 sm:$0xff]   ;;  %v5494_v38 = vld [vmem:[%s8686_s1 + $0x1c0] ss:$16 sps:$4 sm:$0xff]  }
  0x14   :  { %3773 = vmatpush1.bf16.msra.mxu1 %v5465_v19  ;;  %3721 = vmatprep.subr.bf16.mxu0 %v5466_v20  ;;  %v5492_v37 = vld [vmem:[%s8686_s1 + $0x3c4] ss:$16 sps:$4 sm:$0xff]   ;;  %v5495_v39 = vld [vmem:[%s8686_s1 + $0x3c0] ss:$16 sps:$4 sm:$0xff]  }
  0x15   :  { %3774 = vmatprep.subr.bf16.mxu1 %v5468_v21  ;;  %v5496_v40 = vld [vmem:[%s8686_s1 + $0x1a4] ss:$16 sps:$4 sm:$0xff]   ;;  %v5500_v42 = vld [vmem:[%s8686_s1 + $0x1a0] ss:$16 sps:$4 sm:$0xff]  }
  0x16   :  { %v5498_v41 = vld [vmem:[%s8686_s1 + $0x3a4] ss:$16 sps:$4 sm:$0xff]   ;;  %v5501_v43 = vld [vmem:[%s8686_s1 + $0x3a0] ss:$16 sps:$4 sm:$0xff]  }
  0x17   :  { %3722 = vmatpush1.bf16.msra.mxu0 %v5470_v22  ;;  %v5502_v44 = vld [vmem:[%s8686_s1 + $0x184] ss:$16 sps:$4 sm:$0xff]   ;;  %v5506_v46 = vld [vmem:[%s8686_s1 + $0x180] ss:$16 sps:$4 sm:$0xff]  }
  0x18   :  { %3775 = vmatpush1.bf16.msra.mxu1 %v5471_v23  ;;  %3723 = vmatprep.subr.bf16.mxu0 %v5472_v24  ;;  %v5504_v45 = vld [vmem:[%s8686_s1 + $0x384] ss:$16 sps:$4 sm:$0xff]   ;;  %v5507_v47 = vld [vmem:[%s8686_s1 + $0x380] ss:$16 sps:$4 sm:$0xff]  }
  0x19   :  { %3776 = vmatprep.subr.bf16.mxu1 %v5474_v25  ;;  %v5508_v48 = vld [vmem:[%s8686_s1 + $0x164] ss:$16 sps:$4 sm:$0xff]   ;;  %v5512_v52 = vld [vmem:[%s8686_s1 + $0x160] ss:$16 sps:$4 sm:$0xff]  }
  0x1a   :  { %v5534_v49 = vld [vmem:[%s8685_s0 + $0x4] ss:$72 sps:$4 sm:$0xff]   ;;  %v5513_v53 = vld [vmem:[%s8686_s1 + $0x360] ss:$16 sps:$4 sm:$0xff]  }
  0x1b   :  { %3724 = vmatpush1.bf16.msra.mxu0 %v5476_v26  ;;  %v5510_v50 = vld [vmem:[%s8686_s1 + $0x364] ss:$16 sps:$4 sm:$0xff]   ;;  %3743 = vmatprep.mubr.bf16.mxu0 %v5534_v49  ;;  %v5518_v56 = vld [vmem:[%s8686_s1 + $0x140] ss:$16 sps:$4 sm:$0xff]  }
  0x1c   :  { %3777 = vmatpush1.bf16.msra.mxu1 %v5477_v27  ;;  %3725 = vmatprep.subr.bf16.mxu0 %v5478_v28  ;;  %v5537_v51 = vld [vmem:[%s8685_s0 + $0xc] ss:$72 sps:$4 sm:$0xff]   ;;  %v5519_v57 = vld [vmem:[%s8686_s1 + $0x340] ss:$16 sps:$4 sm:$0xff]   ;;  %v5619_v28 = vld [vmem:[%s8685_s0 + $0x9c] ss:$72 sps:$4 sm:$0xff]  }
  0x1d   :  { %3778 = vmatprep.subr.bf16.mxu1 %v5480_v29  ;;  %3796 = vmatprep.mubr.bf16.mxu1 %v5537_v51  ;;  %v5514_v54 = vld [vmem:[%s8686_s1 + $0x144] ss:$16 sps:$4 sm:$0xff]   ;;  %v5524_v60 = vld [vmem:[%s8686_s1 + $0x120] ss:$16 sps:$4 sm:$0xff]  }
  0x1e   :  { %v5516_v55 = vld [vmem:[%s8686_s1 + $0x344] ss:$16 sps:$4 sm:$0xff]   ;;  %v5525_v61 = vld [vmem:[%s8686_s1 + $0x320] ss:$16 sps:$4 sm:$0xff]  }
  0x1f   :  { %3726 = vmatpush1.bf16.msra.mxu0 %v5482_v30  ;;  %v5520_v58 = vld [vmem:[%s8686_s1 + $0x124] ss:$16 sps:$4 sm:$0xff]   ;;  %v5530_v0 = vld [vmem:[%s8686_s1 + $0x100] ss:$16 sps:$4 sm:$0xff]  }
  0x20   :  { %3779 = vmatpush1.bf16.msra.mxu1 %v5483_v31  ;;  %3727 = vmatprep.subr.bf16.mxu0 %v5484_v32  ;;  %v5522_v59 = vld [vmem:[%s8686_s1 + $0x324] ss:$16 sps:$4 sm:$0xff]   ;;  %v5531_v1 = vld [vmem:[%s8686_s1 + $0x300] ss:$16 sps:$4 sm:$0xff]  }
  0x21   :  { %3780 = vmatprep.subr.bf16.mxu1 %v5486_v33  ;;  %v5526_v62 = vld [vmem:[%s8686_s1 + $0x104] ss:$16 sps:$4 sm:$0xff]   ;;  %v5532_v4 = vld [vmem:[%s8685_s0] ss:$72 sps:$4 sm:$0xff]   ;;  %v5618_v27 = vld [vmem:[%s8685_s0 + $0x90] ss:$72 sps:$4 sm:$0xff]  }
  0x22   :  { %v5528_v63 = vld [vmem:[%s8686_s1 + $0x304] ss:$16 sps:$4 sm:$0xff]   ;;  %v5535_v5 = vld [vmem:[%s8685_s0 + $0x8] ss:$72 sps:$4 sm:$0xff]   ;;  %v5627_v33 = vld [vmem:[%s8685_s0 + $0x98] ss:$72 sps:$4 sm:$0xff]  }
  0x23   :  { %3728 = vmatpush2.bf16.msra.mxu0 %v5488_v34  ;;  %v5540_v2 = vld [vmem:[%s8686_s1 + $0x4e4] ss:$16 sps:$4 sm:$0xff]   ;;  %v5538_v6 = vld [vmem:[%s8686_s1 + $0x4e0] ss:$16 sps:$4 sm:$0xff]  }
  0x24   :  { %3781 = vmatpush2.bf16.msra.mxu1 %v5489_v35  ;;  %3729 = vmatprep.subr.bf16.mxu0 %v5490_v36  ;;  %v5543_v3 = vld [vmem:[%s8686_s1 + $0x6e4] ss:$16 sps:$4 sm:$0xff]   ;;  %v5541_v7 = vld [vmem:[%s8686_s1 + $0x6e0] ss:$16 sps:$4 sm:$0xff]  }
  0x25   :  { %3782 = vmatprep.subr.bf16.mxu1 %v5492_v37  ;;  %v5546_v8 = vld [vmem:[%s8686_s1 + $0x4c4] ss:$16 sps:$4 sm:$0xff]   ;;  %v5544_v10 = vld [vmem:[%s8686_s1 + $0x4c0] ss:$16 sps:$4 sm:$0xff]  }
  0x26   :  { %v5549_v9 = vld [vmem:[%s8686_s1 + $0x6c4] ss:$16 sps:$4 sm:$0xff]   ;;  %v5547_v11 = vld [vmem:[%s8686_s1 + $0x6c0] ss:$16 sps:$4 sm:$0xff]  }
  0x27   :  { %3730 = vmatpush2.bf16.msra.mxu0 %v5494_v38  ;;  %v5552_v12 = vld [vmem:[%s8686_s1 + $0x4a4] ss:$16 sps:$4 sm:$0xff]   ;;  %v5550_v14 = vld [vmem:[%s8686_s1 + $0x4a0] ss:$16 sps:$4 sm:$0xff]  }
  0x28   :  { %3783 = vmatpush2.bf16.msra.mxu1 %v5495_v39  ;;  %3731 = vmatprep.subr.bf16.mxu0 %v5496_v40  ;;  %v5555_v13 = vld [vmem:[%s8686_s1 + $0x6a4] ss:$16 sps:$4 sm:$0xff]   ;;  %v5553_v15 = vld [vmem:[%s8686_s1 + $0x6a0] ss:$16 sps:$4 sm:$0xff]  }
  0x29   :  { %3784 = vmatprep.subr.bf16.mxu1 %v5498_v41  ;;  %v5558_v16 = vld [vmem:[%s8686_s1 + $0x484] ss:$16 sps:$4 sm:$0xff]   ;;  %v5556_v18 = vld [vmem:[%s8686_s1 + $0x480] ss:$16 sps:$4 sm:$0xff]  }
  0x2a   :  { %v5561_v17 = vld [vmem:[%s8686_s1 + $0x684] ss:$16 sps:$4 sm:$0xff]   ;;  %v5559_v19 = vld [vmem:[%s8686_s1 + $0x680] ss:$16 sps:$4 sm:$0xff]  }
  0x2b   :  { %3732 = vmatpush2.bf16.msra.mxu0 %v5500_v42  ;;  %v5564_v20 = vld [vmem:[%s8686_s1 + $0x464] ss:$16 sps:$4 sm:$0xff]   ;;  %v5562_v22 = vld [vmem:[%s8686_s1 + $0x460] ss:$16 sps:$4 sm:$0xff]  }
  0x2c   :  { %3785 = vmatpush2.bf16.msra.mxu1 %v5501_v43  ;;  %3733 = vmatprep.subr.bf16.mxu0 %v5502_v44  ;;  %v5567_v21 = vld [vmem:[%s8686_s1 + $0x664] ss:$16 sps:$4 sm:$0xff]   ;;  %v5565_v23 = vld [vmem:[%s8686_s1 + $0x660] ss:$16 sps:$4 sm:$0xff]  }
  0x2d   :  { %3786 = vmatprep.subr.bf16.mxu1 %v5504_v45  ;;  %v5570_v24 = vld [vmem:[%s8686_s1 + $0x444] ss:$16 sps:$4 sm:$0xff]   ;;  %v5568_v29 = vld [vmem:[%s8686_s1 + $0x440] ss:$16 sps:$4 sm:$0xff]  }
  0x2e   :  { %v5573_v25 = vld [vmem:[%s8686_s1 + $0x644] ss:$16 sps:$4 sm:$0xff]   ;;  %v5571_v30 = vld [vmem:[%s8686_s1 + $0x640] ss:$16 sps:$4 sm:$0xff]  }
  0x2f   :  { %3734 = vmatpush2.bf16.msra.mxu0 %v5506_v46  ;;  %v5616_v26 = vld [vmem:[%s8685_s0 + $0x94] ss:$72 sps:$4 sm:$0xff]   ;;  %v5574_v34 = vld [vmem:[%s8686_s1 + $0x420] ss:$16 sps:$4 sm:$0xff]  }
  0x30   :  { %3787 = vmatpush2.bf16.msra.mxu1 %v5507_v47  ;;  %3735 = vmatprep.subr.bf16.mxu0 %v5508_v48  ;;  %v5576_v31 = vld [vmem:[%s8686_s1 + $0x424] ss:$16 sps:$4 sm:$0xff]   ;;  %v5577_v35 = vld [vmem:[%s8686_s1 + $0x620] ss:$16 sps:$4 sm:$0xff]  }
  0x31   :  { %3788 = vmatprep.subr.bf16.mxu1 %v5510_v50  ;;  %v5579_v32 = vld [vmem:[%s8686_s1 + $0x624] ss:$16 sps:$4 sm:$0xff]   ;;  %v5580_v38 = vld [vmem:[%s8686_s1 + $0x400] ss:$16 sps:$4 sm:$0xff]  }
  0x32   :  { %v5582_v36 = vld [vmem:[%s8686_s1 + $0x404] ss:$16 sps:$4 sm:$0xff]   ;;  %v5583_v39 = vld [vmem:[%s8686_s1 + $0x600] ss:$16 sps:$4 sm:$0xff]  }
  0x33   :  { %3736 = vmatpush2.bf16.msra.mxu0 %v5512_v52  ;;  %v5585_v37 = vld [vmem:[%s8686_s1 + $0x604] ss:$16 sps:$4 sm:$0xff]   ;;  %v5586_v44 = vld [vmem:[%s8686_s1 + $0x5e0] ss:$16 sps:$4 sm:$0xff]  }
  0x34   :  { %3789 = vmatpush2.bf16.msra.mxu1 %v5513_v53  ;;  %3737 = vmatprep.subr.bf16.mxu0 %v5514_v54  ;;  %v5588_v40 = vld [vmem:[%s8686_s1 + $0x5e4] ss:$16 sps:$4 sm:$0xff]   ;;  %v5589_v45 = vld [vmem:[%s8686_s1 + $0x7e0] ss:$16 sps:$4 sm:$0xff]  }
  0x35   :  { %3790 = vmatprep.subr.bf16.mxu1 %v5516_v55  ;;  %v5642_v41 = vld [vmem:[%s8685_s0 + $0x14] ss:$72 sps:$4 sm:$0xff]   ;;  %v5592_v48 = vld [vmem:[%s8686_s1 + $0x5c0] ss:$16 sps:$4 sm:$0xff]  }
  0x36   :  { %v5591_v42 = vld [vmem:[%s8686_s1 + $0x7e4] ss:$16 sps:$4 sm:$0xff]   ;;  %v5595_v49 = vld [vmem:[%s8686_s1 + $0x7c0] ss:$16 sps:$4 sm:$0xff]  }
  0x37   :  { %3738 = vmatpush2.bf16.msra.mxu0 %v5518_v56  ;;  %v5645_v43 = vld [vmem:[%s8685_s0 + $0x1c] ss:$72 sps:$4 sm:$0xff]   ;;  %v5598_v52 = vld [vmem:[%s8686_s1 + $0x5a0] ss:$16 sps:$4 sm:$0xff]  }
  0x38   :  { %3791 = vmatpush2.bf16.msra.mxu1 %v5519_v57  ;;  %3739 = vmatprep.subr.bf16.mxu0 %v5520_v58  ;;  %v5594_v46 = vld [vmem:[%s8686_s1 + $0x5c4] ss:$16 sps:$4 sm:$0xff]   ;;  %v5601_v53 = vld [vmem:[%s8686_s1 + $0x7a0] ss:$16 sps:$4 sm:$0xff]  }
  0x39   :  { %3792 = vmatprep.subr.bf16.mxu1 %v5522_v59  ;;  %v5597_v47 = vld [vmem:[%s8686_s1 + $0x7c4] ss:$16 sps:$4 sm:$0xff]   ;;  %v5604_v56 = vld [vmem:[%s8686_s1 + $0x580] ss:$16 sps:$4 sm:$0xff]  }
  0x3a   :  { %v5600_v50 = vld [vmem:[%s8686_s1 + $0x5a4] ss:$16 sps:$4 sm:$0xff]   ;;  %v5607_v57 = vld [vmem:[%s8686_s1 + $0x780] ss:$16 sps:$4 sm:$0xff]  }
  0x3b   :  { %3740 = vmatpush2.bf16.msra.mxu0 %v5524_v60  ;;  %v5603_v51 = vld [vmem:[%s8686_s1 + $0x7a4] ss:$16 sps:$4 sm:$0xff]   ;;  %v5610_v60 = vld [vmem:[%s8686_s1 + $0x560] ss:$16 sps:$4 sm:$0xff]  }
  0x3c   :  { %3793 = vmatpush2.bf16.msra.mxu1 %v5525_v61  ;;  %3741 = vmatprep.subr.bf16.mxu0 %v5526_v62  ;;  %v5606_v54 = vld [vmem:[%s8686_s1 + $0x584] ss:$16 sps:$4 sm:$0xff]   ;;  %v5613_v61 = vld [vmem:[%s8686_s1 + $0x760] ss:$16 sps:$4 sm:$0xff]  }
  0x3d   :  { %3794 = vmatprep.subr.bf16.mxu1 %v5528_v63  ;;  %v5609_v55 = vld [vmem:[%s8686_s1 + $0x784] ss:$16 sps:$4 sm:$0xff]  }
  0x3e   :  { %v5612_v58 = vld [vmem:[%s8686_s1 + $0x564] ss:$16 sps:$4 sm:$0xff]  }
  0x3f   :  { %3742 = vmatpush2.bf16.msra.mxu0 %v5530_v0  ;;  %v5615_v59 = vld [vmem:[%s8686_s1 + $0x764] ss:$16 sps:$4 sm:$0xff]   ;;  %v5621_v0 = vld [vmem:[%s8686_s1 + $0x540] ss:$16 sps:$4 sm:$0xff]  }
  0x40   :  { %3795 = vmatpush2.bf16.msra.mxu1 %v5531_v1  ;;  %3817 = vmatprep.subr.bf16.mxu0 %v5540_v2  ;;  %v5623_v62 = vld [vmem:[%s8686_s1 + $0x544] ss:$16 sps:$4 sm:$0xff]   ;;  %v5624_v1 = vld [vmem:[%s8686_s1 + $0x740] ss:$16 sps:$4 sm:$0xff]  }
  0x41   :  { %3870 = vmatprep.subr.bf16.mxu1 %v5543_v3  ;;  %v5626_v63 = vld [vmem:[%s8686_s1 + $0x744] ss:$16 sps:$4 sm:$0xff]  }
  0x42   :  { %3744 = vmatmul.mubr.bf16.vlgmr.msra.gmra.mxu0 %v5532_v4  ;;  %v5630_v2 = vld [vmem:[%s8686_s1 + $0x524] ss:$16 sps:$4 sm:$0xff]   ;;  %v5628_v4 = vld [vmem:[%s8686_s1 + $0x520] ss:$16 sps:$4 sm:$0xff]  }
  0x43   :  { %3797 = vmatmul.mubr.bf16.vlgmr.msra.gmra.mxu1 %v5535_v5  ;;  %3818 = vmatpush1.bf16.msra.mxu0 %v5538_v6  ;;  %v5633_v3 = vld [vmem:[%s8686_s1 + $0x724] ss:$16 sps:$4 sm:$0xff]   ;;  %v5631_v5 = vld [vmem:[%s8686_s1 + $0x720] ss:$16 sps:$4 sm:$0xff]  }
  0x44   :  { %3871 = vmatpush1.bf16.msra.mxu1 %v5541_v7  ;;  %3819 = vmatprep.subr.bf16.mxu0 %v5546_v8  ;;  %v5636_v6 = vld [vmem:[%s8686_s1 + $0x504] ss:$16 sps:$4 sm:$0xff]   ;;  %v5634_v8 = vld [vmem:[%s8686_s1 + $0x500] ss:$16 sps:$4 sm:$0xff]  }
  0x45   :  { %3872 = vmatprep.subr.bf16.mxu1 %v5549_v9  ;;  %3753 = vmatprep.mubr.bf16.mxu0 %v5616_v26  ;;  %v5639_v7 = vld [vmem:[%s8686_s1 + $0x704] ss:$16 sps:$4 sm:$0xff]   ;;  %v5637_v9 = vld [vmem:[%s8686_s1 + $0x700] ss:$16 sps:$4 sm:$0xff]  }
  0x46   :  { %3806 = vmatprep.mubr.bf16.mxu1 %v5619_v28  ;;  %v5664_v26 = vld [vmem:[%s8686_s1 + $0xaa0] ss:$16 sps:$4 sm:$0xff]   ;;  %v5672_v28 = vld [vmem:[%s8686_s1 + $0x884] ss:$16 sps:$4 sm:$0xff]  }
  0x47   :  { %3820 = vmatpush1.bf16.msra.mxu0 %v5544_v10  ;;  %v5648_v10 = vld [vmem:[%s8686_s1 + $0x8e4] ss:$16 sps:$4 sm:$0xff]  }
  0x48   :  { %3873 = vmatpush1.bf16.msra.mxu1 %v5547_v11  ;;  %3821 = vmatprep.subr.bf16.mxu0 %v5552_v12  ;;  %v5651_v11 = vld [vmem:[%s8686_s1 + $0xae4] ss:$16 sps:$4 sm:$0xff]   ;;  %v5640_v12 = vld [vmem:[%s8685_s0 + $0x10] ss:$72 sps:$4 sm:$0xff]  }
  0x49   :  { %3874 = vmatprep.subr.bf16.mxu1 %v5555_v13  ;;  %v5643_v13 = vld [vmem:[%s8685_s0 + $0x18] ss:$72 sps:$4 sm:$0xff]  }
  0x4a   :  { %3754 = vmatmul.mubr.bf16.gmra.mxu0 %v5618_v27  ;;  %v5669_v27 = vld [vmem:[%s8685_s0 + $0xa8] ss:$72 sps:$4 sm:$0xff]  }
  0x4b   :  { %3822 = vmatpush1.bf16.msra.mxu0 %v5550_v14  ;;  %3807 = vmatmul.mubr.bf16.gmra.mxu1 %v5627_v33  ;;  %v5646_v14 = vld [vmem:[%s8686_s1 + $0x8e0] ss:$16 sps:$4 sm:$0xff]   ;;  %v5750_v33 = vld [vmem:[%s8685_s0 + $0x24] ss:$72 sps:$4 sm:$0xff]  }
  0x4c   :  { %3875 = vmatpush1.bf16.msra.mxu1 %v5553_v15  ;;  %3823 = vmatprep.subr.bf16.mxu0 %v5558_v16  ;;  %v5649_v15 = vld [vmem:[%s8686_s1 + $0xae0] ss:$16 sps:$4 sm:$0xff]   ;;  %v5654_v16 = vld [vmem:[%s8686_s1 + $0x8c4] ss:$16 sps:$4 sm:$0xff]  }
  0x4d   :  { %3876 = vmatprep.subr.bf16.mxu1 %v5561_v17  ;;  %3849 = vmatprep.mubr.bf16.mxu0 %v5642_v41  ;;  %v5657_v17 = vld [vmem:[%s8686_s1 + $0xac4] ss:$16 sps:$4 sm:$0xff]   ;;  %v5685_v41 = vld [vmem:[%s8686_s1 + $0xa40] ss:$16 sps:$4 sm:$0xff]  }
  0x4e   :  { %3902 = vmatprep.mubr.bf16.mxu1 %v5645_v43  ;;  %v5693_v43 = vld [vmem:[%s8686_s1 + $0xa24] ss:$16 sps:$4 sm:$0xff]  }
  0x4f   :  { %3824 = vmatpush1.bf16.msra.mxu0 %v5556_v18  ;;  %v5658_v18 = vld [vmem:[%s8685_s0 + $0xa4] ss:$72 sps:$4 sm:$0xff]  }
  0x50   :  { %3877 = vmatpush1.bf16.msra.mxu1 %v5559_v19  ;;  %3825 = vmatprep.subr.bf16.mxu0 %v5564_v20  ;;  %v5667_v19 = vld [vmem:[%s8685_s0 + $0xac] ss:$72 sps:$4 sm:$0xff]   ;;  %v5652_v20 = vld [vmem:[%s8686_s1 + $0x8c0] ss:$16 sps:$4 sm:$0xff]  }
  0x51   :  { %3878 = vmatprep.subr.bf16.mxu1 %v5567_v21  ;;  %v5655_v21 = vld [vmem:[%s8686_s1 + $0xac0] ss:$16 sps:$4 sm:$0xff]  }
  0x53   :  { %3826 = vmatpush1.bf16.msra.mxu0 %v5562_v22  ;;  %v5663_v22 = vld [vmem:[%s8686_s1 + $0x8a4] ss:$16 sps:$4 sm:$0xff]  }
  0x54   :  { %3879 = vmatpush1.bf16.msra.mxu1 %v5565_v23  ;;  %3827 = vmatprep.subr.bf16.mxu0 %v5570_v24  ;;  %v5666_v23 = vld [vmem:[%s8686_s1 + $0xaa4] ss:$16 sps:$4 sm:$0xff]   ;;  %v5660_v24 = vld [vmem:[%s8685_s0 + $0xa0] ss:$72 sps:$4 sm:$0xff]  }
  0x55   :  { %3880 = vmatprep.subr.bf16.mxu1 %v5573_v25  ;;  %v5661_v25 = vld [vmem:[%s8686_s1 + $0x8a0] ss:$16 sps:$4 sm:$0xff]  }
  0x57   :  { %3828 = vmatpush1.bf16.msra.mxu0 %v5568_v29  ;;  %v5675_v29 = vld [vmem:[%s8686_s1 + $0xa84] ss:$16 sps:$4 sm:$0xff]  }
  0x58   :  { %3881 = vmatpush1.bf16.msra.mxu1 %v5571_v30  ;;  %3829 = vmatprep.subr.bf16.mxu0 %v5576_v31  ;;  %v5670_v30 = vld [vmem:[%s8686_s1 + $0x880] ss:$16 sps:$4 sm:$0xff]  }
  0x59   :  { %3882 = vmatprep.subr.bf16.mxu1 %v5579_v32  ;;  %v5673_v31 = vld [vmem:[%s8686_s1 + $0xa80] ss:$16 sps:$4 sm:$0xff]   ;;  %v5678_v32 = vld [vmem:[%s8686_s1 + $0x864] ss:$16 sps:$4 sm:$0xff]  }
  0x5b   :  { %3830 = vmatpush1.bf16.msra.mxu0 %v5574_v34  ;;  %v5681_v34 = vld [vmem:[%s8686_s1 + $0xa64] ss:$16 sps:$4 sm:$0xff]  }
  0x5c   :  { %3883 = vmatpush1.bf16.msra.mxu1 %v5577_v35  ;;  %3831 = vmatprep.subr.bf16.mxu0 %v5582_v36  ;;  %v5753_v35 = vld [vmem:[%s8685_s0 + $0x2c] ss:$72 sps:$4 sm:$0xff]   ;;  %v5676_v36 = vld [vmem:[%s8686_s1 + $0x860] ss:$16 sps:$4 sm:$0xff]  }
  0x5d   :  { %3884 = vmatprep.subr.bf16.mxu1 %v5585_v37  ;;  %v5679_v37 = vld [vmem:[%s8686_s1 + $0xa60] ss:$16 sps:$4 sm:$0xff]  }
  0x5f   :  { %3832 = vmatpush1.bf16.msra.mxu0 %v5580_v38  ;;  %v5684_v38 = vld [vmem:[%s8686_s1 + $0x844] ss:$16 sps:$4 sm:$0xff]  }
  0x60   :  { %3885 = vmatpush1.bf16.msra.mxu1 %v5583_v39  ;;  %3833 = vmatprep.subr.bf16.mxu0 %v5588_v40  ;;  %v5687_v39 = vld [vmem:[%s8686_s1 + $0xa44] ss:$16 sps:$4 sm:$0xff]   ;;  %v5682_v40 = vld [vmem:[%s8686_s1 + $0x840] ss:$16 sps:$4 sm:$0xff]  }
  0x61   :  { %3886 = vmatprep.subr.bf16.mxu1 %v5591_v42  ;;  %v5690_v42 = vld [vmem:[%s8686_s1 + $0x824] ss:$16 sps:$4 sm:$0xff]  }
  0x63   :  { %3834 = vmatpush2.bf16.msra.mxu0 %v5586_v44  ;;  %v5688_v44 = vld [vmem:[%s8686_s1 + $0x820] ss:$16 sps:$4 sm:$0xff]  }
  0x64   :  { %3887 = vmatpush2.bf16.msra.mxu1 %v5589_v45  ;;  %3835 = vmatprep.subr.bf16.mxu0 %v5594_v46  ;;  %v5691_v45 = vld [vmem:[%s8686_s1 + $0xa20] ss:$16 sps:$4 sm:$0xff]   ;;  %v5696_v46 = vld [vmem:[%s8686_s1 + $0x804] ss:$16 sps:$4 sm:$0xff]  }
  0x65   :  { %3888 = vmatprep.subr.bf16.mxu1 %v5597_v47  ;;  %v5699_v47 = vld [vmem:[%s8686_s1 + $0xa04] ss:$16 sps:$4 sm:$0xff]  }
  0x67   :  { %3836 = vmatpush2.bf16.msra.mxu0 %v5592_v48  ;;  %v5694_v48 = vld [vmem:[%s8686_s1 + $0x800] ss:$16 sps:$4 sm:$0xff]  }
  0x68   :  { %3889 = vmatpush2.bf16.msra.mxu1 %v5595_v49  ;;  %3837 = vmatprep.subr.bf16.mxu0 %v5600_v50  ;;  %v5697_v49 = vld [vmem:[%s8686_s1 + $0xa00] ss:$16 sps:$4 sm:$0xff]   ;;  %v5702_v50 = vld [vmem:[%s8686_s1 + $0x9e4] ss:$16 sps:$4 sm:$0xff]  }
  0x69   :  { %3890 = vmatprep.subr.bf16.mxu1 %v5603_v51  ;;  %v5705_v51 = vld [vmem:[%s8686_s1 + $0xbe4] ss:$16 sps:$4 sm:$0xff]  }
  0x6b   :  { %3838 = vmatpush2.bf16.msra.mxu0 %v5598_v52  ;;  %v5700_v52 = vld [vmem:[%s8686_s1 + $0x9e0] ss:$16 sps:$4 sm:$0xff]  }
  0x6c   :  { %3891 = vmatpush2.bf16.msra.mxu1 %v5601_v53  ;;  %3839 = vmatprep.subr.bf16.mxu0 %v5606_v54  ;;  %v5703_v53 = vld [vmem:[%s8686_s1 + $0xbe0] ss:$16 sps:$4 sm:$0xff]   ;;  %v5708_v54 = vld [vmem:[%s8686_s1 + $0x9c4] ss:$16 sps:$4 sm:$0xff]  }
  0x6d   :  { %3892 = vmatprep.subr.bf16.mxu1 %v5609_v55  ;;  %v5711_v55 = vld [vmem:[%s8686_s1 + $0xbc4] ss:$16 sps:$4 sm:$0xff]  }
  0x6f   :  { %3840 = vmatpush2.bf16.msra.mxu0 %v5604_v56  ;;  %v5706_v56 = vld [vmem:[%s8686_s1 + $0x9c0] ss:$16 sps:$4 sm:$0xff]  }
  0x70   :  { %3893 = vmatpush2.bf16.msra.mxu1 %v5607_v57  ;;  %3841 = vmatprep.subr.bf16.mxu0 %v5612_v58  ;;  %v5709_v57 = vld [vmem:[%s8686_s1 + $0xbc0] ss:$16 sps:$4 sm:$0xff]   ;;  %v5714_v58 = vld [vmem:[%s8686_s1 + $0x9a4] ss:$16 sps:$4 sm:$0xff]  }
  0x71   :  { %3894 = vmatprep.subr.bf16.mxu1 %v5615_v59  ;;  %v5717_v59 = vld [vmem:[%s8686_s1 + $0xba4] ss:$16 sps:$4 sm:$0xff]  }
  0x73   :  { %3842 = vmatpush2.bf16.msra.mxu0 %v5610_v60  ;;  %v5712_v60 = vld [vmem:[%s8686_s1 + $0x9a0] ss:$16 sps:$4 sm:$0xff]  }
  0x74   :  { %3895 = vmatpush2.bf16.msra.mxu1 %v5613_v61  ;;  %3843 = vmatprep.subr.bf16.mxu0 %v5623_v62  ;;  %v5715_v61 = vld [vmem:[%s8686_s1 + $0xba0] ss:$16 sps:$4 sm:$0xff]   ;;  %v5720_v62 = vld [vmem:[%s8686_s1 + $0x984] ss:$16 sps:$4 sm:$0xff]  }
  0x75   :  { %3896 = vmatprep.subr.bf16.mxu1 %v5626_v63  ;;  %v5723_v63 = vld [vmem:[%s8686_s1 + $0xb84] ss:$16 sps:$4 sm:$0xff]  }
  0x77   :  { %3844 = vmatpush2.bf16.msra.mxu0 %v5621_v0  ;;  %v5718_v0 = vld [vmem:[%s8686_s1 + $0x980] ss:$16 sps:$4 sm:$0xff]  }
  0x78   :  { %3897 = vmatpush2.bf16.msra.mxu1 %v5624_v1  ;;  %3845 = vmatprep.subr.bf16.mxu0 %v5630_v2  ;;  %v5721_v1 = vld [vmem:[%s8686_s1 + $0xb80] ss:$16 sps:$4 sm:$0xff]   ;;  %v5726_v2 = vld [vmem:[%s8686_s1 + $0x964] ss:$16 sps:$4 sm:$0xff]  }
  0x79   :  { %3898 = vmatprep.subr.bf16.mxu1 %v5633_v3  ;;  %v5729_v3 = vld [vmem:[%s8686_s1 + $0xb64] ss:$16 sps:$4 sm:$0xff]  }
  0x7b   :  { %3846 = vmatpush2.bf16.msra.mxu0 %v5628_v4  ;;  %v5724_v4 = vld [vmem:[%s8686_s1 + $0x960] ss:$16 sps:$4 sm:$0xff]  }
  0x7c   :  { %3899 = vmatpush2.bf16.msra.mxu1 %v5631_v5  ;;  %3847 = vmatprep.subr.bf16.mxu0 %v5636_v6  ;;  %v5727_v5 = vld [vmem:[%s8686_s1 + $0xb60] ss:$16 sps:$4 sm:$0xff]   ;;  %v5732_v6 = vld [vmem:[%s8686_s1 + $0x944] ss:$16 sps:$4 sm:$0xff]  }
  0x7d   :  { %3900 = vmatprep.subr.bf16.mxu1 %v5639_v7  ;;  %v5735_v7 = vld [vmem:[%s8686_s1 + $0xb44] ss:$16 sps:$4 sm:$0xff]  }
  0x7f   :  { %3848 = vmatpush2.bf16.msra.mxu0 %v5634_v8  ;;  %v5730_v8 = vld [vmem:[%s8686_s1 + $0x940] ss:$16 sps:$4 sm:$0xff]  }
  0x80   :  { %3901 = vmatpush2.bf16.msra.mxu1 %v5637_v9  ;;  %3923 = vmatprep.subr.bf16.mxu0 %v5648_v10  ;;  %v5733_v9 = vld [vmem:[%s8686_s1 + $0xb40] ss:$16 sps:$4 sm:$0xff]   ;;  %v5738_v10 = vld [vmem:[%s8686_s1 + $0x924] ss:$16 sps:$4 sm:$0xff]  }
  0x81   :  { %3976 = vmatprep.subr.bf16.mxu1 %v5651_v11  ;;  %v5741_v11 = vld [vmem:[%s8686_s1 + $0xb24] ss:$16 sps:$4 sm:$0xff]  }
  0x82   :  { %3850 = vmatmul.mubr.bf16.vlgmr.msra.gmra.mxu0 %v5640_v12  ;;  %v5736_v12 = vld [vmem:[%s8686_s1 + $0x920] ss:$16 sps:$4 sm:$0xff]  }
  0x83   :  { %3903 = vmatmul.mubr.bf16.vlgmr.msra.gmra.mxu1 %v5643_v13  ;;  %3924 = vmatpush1.bf16.msra.mxu0 %v5646_v14  ;;  %v5739_v13 = vld [vmem:[%s8686_s1 + $0xb20] ss:$16 sps:$4 sm:$0xff]   ;;  %v5744_v14 = vld [vmem:[%s8686_s1 + $0x904] ss:$16 sps:$4 sm:$0xff]  }
  0x84   :  { %3977 = vmatpush1.bf16.msra.mxu1 %v5649_v15  ;;  %3925 = vmatprep.subr.bf16.mxu0 %v5654_v16  ;;  %v5747_v15 = vld [vmem:[%s8686_s1 + $0xb04] ss:$16 sps:$4 sm:$0xff]   ;;  %v5742_v16 = vld [vmem:[%s8686_s1 + $0x900] ss:$16 sps:$4 sm:$0xff]  }
  0x85   :  { %3978 = vmatprep.subr.bf16.mxu1 %v5657_v17  ;;  %3859 = vmatprep.mubr.bf16.mxu0 %v5658_v18  ;;  %v5745_v17 = vld [vmem:[%s8686_s1 + $0xb00] ss:$16 sps:$4 sm:$0xff]   ;;  %v5756_v18 = vld [vmem:[%s8686_s1 + $0xce4] ss:$16 sps:$4 sm:$0xff]  }
  0x86   :  { %3912 = vmatprep.mubr.bf16.mxu1 %v5667_v19  ;;  %v5759_v19 = vld [vmem:[%s8686_s1 + $0xee4] ss:$16 sps:$4 sm:$0xff]  }
  0x87   :  { %3926 = vmatpush1.bf16.msra.mxu0 %v5652_v20  ;;  %v5748_v20 = vld [vmem:[%s8685_s0 + $0x20] ss:$72 sps:$4 sm:$0xff]  }
  0x88   :  { %3979 = vmatpush1.bf16.msra.mxu1 %v5655_v21  ;;  %3927 = vmatprep.subr.bf16.mxu0 %v5663_v22  ;;  %v5751_v21 = vld [vmem:[%s8685_s0 + $0x28] ss:$72 sps:$4 sm:$0xff]  }
  0x89   :  { %3980 = vmatprep.subr.bf16.mxu1 %v5666_v23  ;;  %v5754_v22 = vld [vmem:[%s8686_s1 + $0xce0] ss:$16 sps:$4 sm:$0xff]  }
  0x8a   :  { %3860 = vmatmul.mubr.bf16.gmra.mxu0 %v5660_v24  ;;  %v5757_v23 = vld [vmem:[%s8686_s1 + $0xee0] ss:$16 sps:$4 sm:$0xff]   ;;  %v5762_v24 = vld [vmem:[%s8686_s1 + $0xcc4] ss:$16 sps:$4 sm:$0xff]  }
  0x8b   :  { %3913 = vmatmul.mubr.bf16.gmra.mxu1 %v5669_v27  ;;  %3928 = vmatpush1.bf16.msra.mxu0 %v5661_v25  ;;  %v5765_v25 = vld [vmem:[%s8686_s1 + $0xec4] ss:$16 sps:$4 sm:$0xff]  }
  0x8c   :  { %3981 = vmatpush1.bf16.msra.mxu1 %v5664_v26  ;;  %3929 = vmatprep.subr.bf16.mxu0 %v5672_v28  ;;  %v5766_v26 = vld [vmem:[%s8685_s0 + $0xb4] ss:$72 sps:$4 sm:$0xff]   ;;  %v5760_v28 = vld [vmem:[%s8686_s1 + $0xcc0] ss:$16 sps:$4 sm:$0xff]  }
  0x8d   :  { %3982 = vmatprep.subr.bf16.mxu1 %v5675_v29  ;;  %3955 = vmatprep.mubr.bf16.mxu0 %v5750_v33  ;;  %v5775_v27 = vld [vmem:[%s8685_s0 + $0xbc] ss:$72 sps:$4 sm:$0xff]   ;;  %v5763_v29 = vld [vmem:[%s8686_s1 + $0xec0] ss:$16 sps:$4 sm:$0xff]  }
  0x8e   :  { %4008 = vmatprep.mubr.bf16.mxu1 %v5753_v35  ;;  %v5769_v33 = vld [vmem:[%s8686_s1 + $0xca0] ss:$16 sps:$4 sm:$0xff]  }
  0x8f   :  { %3930 = vmatpush1.bf16.msra.mxu0 %v5670_v30  ;;  %v5771_v30 = vld [vmem:[%s8686_s1 + $0xca4] ss:$16 sps:$4 sm:$0xff]   ;;  %v5772_v35 = vld [vmem:[%s8686_s1 + $0xea0] ss:$16 sps:$4 sm:$0xff]  }
  0x90   :  { %3983 = vmatpush1.bf16.msra.mxu1 %v5673_v31  ;;  %3931 = vmatprep.subr.bf16.mxu0 %v5678_v32  ;;  %v5774_v31 = vld [vmem:[%s8686_s1 + $0xea4] ss:$16 sps:$4 sm:$0xff]   ;;  %v5768_v32 = vld [vmem:[%s8685_s0 + $0xb0] ss:$72 sps:$4 sm:$0xff]  }
  0x91   :  { %3984 = vmatprep.subr.bf16.mxu1 %v5681_v34  ;;  %v5777_v34 = vld [vmem:[%s8685_s0 + $0xb8] ss:$72 sps:$4 sm:$0xff]  }
  0x93   :  { %3932 = vmatpush1.bf16.msra.mxu0 %v5676_v36  ;;  %v5780_v36 = vld [vmem:[%s8686_s1 + $0xc84] ss:$16 sps:$4 sm:$0xff]  }
  0x94   :  { %3985 = vmatpush1.bf16.msra.mxu1 %v5679_v37  ;;  %3933 = vmatprep.subr.bf16.mxu0 %v5684_v38  ;;  %v5783_v37 = vld [vmem:[%s8686_s1 + $0xe84] ss:$16 sps:$4 sm:$0xff]  }
  0x95   :  { %3986 = vmatprep.subr.bf16.mxu1 %v5687_v39  ;;  %v5858_v38 = vld [vmem:[%s8685_s0 + $0x34] ss:$72 sps:$4 sm:$0xff]  }
  0x96   :  { %v5861_v39 = vld [vmem:[%s8685_s0 + $0x3c] ss:$72 sps:$4 sm:$0xff]  }
  0x97   :  { %3934 = vmatpush1.bf16.msra.mxu0 %v5682_v40  ;;  %v5778_v40 = vld [vmem:[%s8686_s1 + $0xc80] ss:$16 sps:$4 sm:$0xff]  }
  0x98   :  { %3987 = vmatpush1.bf16.msra.mxu1 %v5685_v41  ;;  %3935 = vmatprep.subr.bf16.mxu0 %v5690_v42  ;;  %v5781_v41 = vld [vmem:[%s8686_s1 + $0xe80] ss:$16 sps:$4 sm:$0xff]   ;;  %v5786_v42 = vld [vmem:[%s8686_s1 + $0xc64] ss:$16 sps:$4 sm:$0xff]  }
  0x99   :  { %3988 = vmatprep.subr.bf16.mxu1 %v5693_v43  ;;  %v5789_v43 = vld [vmem:[%s8686_s1 + $0xe64] ss:$16 sps:$4 sm:$0xff]  }
  0x9b   :  { %3936 = vmatpush1.bf16.msra.mxu0 %v5688_v44  ;;  %v5784_v44 = vld [vmem:[%s8686_s1 + $0xc60] ss:$16 sps:$4 sm:$0xff]  }
  0x9c   :  { %3989 = vmatpush1.bf16.msra.mxu1 %v5691_v45  ;;  %3937 = vmatprep.subr.bf16.mxu0 %v5696_v46  ;;  %v5787_v45 = vld [vmem:[%s8686_s1 + $0xe60] ss:$16 sps:$4 sm:$0xff]   ;;  %v5792_v46 = vld [vmem:[%s8686_s1 + $0xc44] ss:$16 sps:$4 sm:$0xff]  }
  0x9d   :  { %3990 = vmatprep.subr.bf16.mxu1 %v5699_v47  ;;  %v5795_v47 = vld [vmem:[%s8686_s1 + $0xe44] ss:$16 sps:$4 sm:$0xff]  }
  0x9f   :  { %3938 = vmatpush1.bf16.msra.mxu0 %v5694_v48  ;;  %v5790_v48 = vld [vmem:[%s8686_s1 + $0xc40] ss:$16 sps:$4 sm:$0xff]  }
  0xa0   :  { %3991 = vmatpush1.bf16.msra.mxu1 %v5697_v49  ;;  %3939 = vmatprep.subr.bf16.mxu0 %v5702_v50  ;;  %v5793_v49 = vld [vmem:[%s8686_s1 + $0xe40] ss:$16 sps:$4 sm:$0xff]   ;;  %v5798_v50 = vld [vmem:[%s8686_s1 + $0xc24] ss:$16 sps:$4 sm:$0xff]  }
  0xa1   :  { %3992 = vmatprep.subr.bf16.mxu1 %v5705_v51  ;;  %v5801_v51 = vld [vmem:[%s8686_s1 + $0xe24] ss:$16 sps:$4 sm:$0xff]  }
  0xa3   :  { %3940 = vmatpush2.bf16.msra.mxu0 %v5700_v52  ;;  %v5796_v52 = vld [vmem:[%s8686_s1 + $0xc20] ss:$16 sps:$4 sm:$0xff]  }
  0xa4   :  { %3993 = vmatpush2.bf16.msra.mxu1 %v5703_v53  ;;  %3941 = vmatprep.subr.bf16.mxu0 %v5708_v54  ;;  %v5799_v53 = vld [vmem:[%s8686_s1 + $0xe20] ss:$16 sps:$4 sm:$0xff]   ;;  %v5804_v54 = vld [vmem:[%s8686_s1 + $0xc04] ss:$16 sps:$4 sm:$0xff]  }
  0xa5   :  { %3994 = vmatprep.subr.bf16.mxu1 %v5711_v55  ;;  %v5807_v55 = vld [vmem:[%s8686_s1 + $0xe04] ss:$16 sps:$4 sm:$0xff]  }
  0xa7   :  { %3942 = vmatpush2.bf16.msra.mxu0 %v5706_v56  ;;  %v5802_v56 = vld [vmem:[%s8686_s1 + $0xc00] ss:$16 sps:$4 sm:$0xff]  }
  0xa8   :  { %3995 = vmatpush2.bf16.msra.mxu1 %v5709_v57  ;;  %3943 = vmatprep.subr.bf16.mxu0 %v5714_v58  ;;  %v5805_v57 = vld [vmem:[%s8686_s1 + $0xe00] ss:$16 sps:$4 sm:$0xff]   ;;  %v5810_v58 = vld [vmem:[%s8686_s1 + $0xde4] ss:$16 sps:$4 sm:$0xff]  }
  0xa9   :  { %3996 = vmatprep.subr.bf16.mxu1 %v5717_v59  ;;  %v5813_v59 = vld [vmem:[%s8686_s1 + $0xfe4] ss:$16 sps:$4 sm:$0xff]  }
  0xab   :  { %3944 = vmatpush2.bf16.msra.mxu0 %v5712_v60  ;;  %v5808_v60 = vld [vmem:[%s8686_s1 + $0xde0] ss:$16 sps:$4 sm:$0xff]  }
  0xac   :  { %3997 = vmatpush2.bf16.msra.mxu1 %v5715_v61  ;;  %3945 = vmatprep.subr.bf16.mxu0 %v5720_v62  ;;  %v5811_v61 = vld [vmem:[%s8686_s1 + $0xfe0] ss:$16 sps:$4 sm:$0xff]   ;;  %v5816_v62 = vld [vmem:[%s8686_s1 + $0xdc4] ss:$16 sps:$4 sm:$0xff]  }
  0xad   :  { %3998 = vmatprep.subr.bf16.mxu1 %v5723_v63  ;;  %v5819_v63 = vld [vmem:[%s8686_s1 + $0xfc4] ss:$16 sps:$4 sm:$0xff]  }
  0xaf   :  { %3946 = vmatpush2.bf16.msra.mxu0 %v5718_v0  ;;  %v5814_v0 = vld [vmem:[%s8686_s1 + $0xdc0] ss:$16 sps:$4 sm:$0xff]  }
  0xb0   :  { %3999 = vmatpush2.bf16.msra.mxu1 %v5721_v1  ;;  %3947 = vmatprep.subr.bf16.mxu0 %v5726_v2  ;;  %v5817_v1 = vld [vmem:[%s8686_s1 + $0xfc0] ss:$16 sps:$4 sm:$0xff]   ;;  %v5822_v2 = vld [vmem:[%s8686_s1 + $0xda4] ss:$16 sps:$4 sm:$0xff]  }
  0xb1   :  { %4000 = vmatprep.subr.bf16.mxu1 %v5729_v3  ;;  %v5825_v3 = vld [vmem:[%s8686_s1 + $0xfa4] ss:$16 sps:$4 sm:$0xff]  }
  0xb3   :  { %3948 = vmatpush2.bf16.msra.mxu0 %v5724_v4  ;;  %v5820_v4 = vld [vmem:[%s8686_s1 + $0xda0] ss:$16 sps:$4 sm:$0xff]  }
  0xb4   :  { %4001 = vmatpush2.bf16.msra.mxu1 %v5727_v5  ;;  %3949 = vmatprep.subr.bf16.mxu0 %v5732_v6  ;;  %v5823_v5 = vld [vmem:[%s8686_s1 + $0xfa0] ss:$16 sps:$4 sm:$0xff]   ;;  %v5828_v6 = vld [vmem:[%s8686_s1 + $0xd84] ss:$16 sps:$4 sm:$0xff]  }
  0xb5   :  { %4002 = vmatprep.subr.bf16.mxu1 %v5735_v7  ;;  %v5831_v7 = vld [vmem:[%s8686_s1 + $0xf84] ss:$16 sps:$4 sm:$0xff]  }
  0xb7   :  { %3950 = vmatpush2.bf16.msra.mxu0 %v5730_v8  ;;  %v5826_v8 = vld [vmem:[%s8686_s1 + $0xd80] ss:$16 sps:$4 sm:$0xff]  }
  0xb8   :  { %4003 = vmatpush2.bf16.msra.mxu1 %v5733_v9  ;;  %3951 = vmatprep.subr.bf16.mxu0 %v5738_v10  ;;  %v5829_v9 = vld [vmem:[%s8686_s1 + $0xf80] ss:$16 sps:$4 sm:$0xff]   ;;  %v5834_v10 = vld [vmem:[%s8686_s1 + $0xd64] ss:$16 sps:$4 sm:$0xff]  }
  0xb9   :  { %4004 = vmatprep.subr.bf16.mxu1 %v5741_v11  ;;  %v5837_v11 = vld [vmem:[%s8686_s1 + $0xf64] ss:$16 sps:$4 sm:$0xff]  }
  0xbb   :  { %3952 = vmatpush2.bf16.msra.mxu0 %v5736_v12  ;;  %v5832_v12 = vld [vmem:[%s8686_s1 + $0xd60] ss:$16 sps:$4 sm:$0xff]  }
  0xbc   :  { %4005 = vmatpush2.bf16.msra.mxu1 %v5739_v13  ;;  %3953 = vmatprep.subr.bf16.mxu0 %v5744_v14  ;;  %v5835_v13 = vld [vmem:[%s8686_s1 + $0xf60] ss:$16 sps:$4 sm:$0xff]   ;;  %v5840_v14 = vld [vmem:[%s8686_s1 + $0xd44] ss:$16 sps:$4 sm:$0xff]  }
  0xbd   :  { %4006 = vmatprep.subr.bf16.mxu1 %v5747_v15  ;;  %v5843_v15 = vld [vmem:[%s8686_s1 + $0xf44] ss:$16 sps:$4 sm:$0xff]  }
  0xbf   :  { %3954 = vmatpush2.bf16.msra.mxu0 %v5742_v16  ;;  %v5838_v16 = vld [vmem:[%s8686_s1 + $0xd40] ss:$16 sps:$4 sm:$0xff]  }
  0xc0   :  { %4007 = vmatpush2.bf16.msra.mxu1 %v5745_v17  ;;  %4029 = vmatprep.subr.bf16.mxu0 %v5756_v18  ;;  %v5841_v17 = vld [vmem:[%s8686_s1 + $0xf40] ss:$16 sps:$4 sm:$0xff]   ;;  %v5846_v18 = vld [vmem:[%s8686_s1 + $0xd24] ss:$16 sps:$4 sm:$0xff]  }
  0xc1   :  { %4082 = vmatprep.subr.bf16.mxu1 %v5759_v19  ;;  %v5849_v19 = vld [vmem:[%s8686_s1 + $0xf24] ss:$16 sps:$4 sm:$0xff]  }
  0xc2   :  { %3956 = vmatmul.mubr.bf16.vlgmr.msra.gmra.mxu0 %v5748_v20  ;;  %v5844_v20 = vld [vmem:[%s8686_s1 + $0xd20] ss:$16 sps:$4 sm:$0xff]  }
  0xc3   :  { %4009 = vmatmul.mubr.bf16.vlgmr.msra.gmra.mxu1 %v5751_v21  ;;  %4030 = vmatpush1.bf16.msra.mxu0 %v5754_v22  ;;  %v5847_v21 = vld [vmem:[%s8686_s1 + $0xf20] ss:$16 sps:$4 sm:$0xff]   ;;  %v5852_v22 = vld [vmem:[%s8686_s1 + $0xd04] ss:$16 sps:$4 sm:$0xff]  }
  0xc4   :  { %4083 = vmatpush1.bf16.msra.mxu1 %v5757_v23  ;;  %4031 = vmatprep.subr.bf16.mxu0 %v5762_v24  ;;  %v5855_v23 = vld [vmem:[%s8686_s1 + $0xf04] ss:$16 sps:$4 sm:$0xff]   ;;  %v5850_v24 = vld [vmem:[%s8686_s1 + $0xd00] ss:$16 sps:$4 sm:$0xff]  }
  0xc5   :  { %4084 = vmatprep.subr.bf16.mxu1 %v5765_v25  ;;  %3965 = vmatprep.mubr.bf16.mxu0 %v5766_v26  ;;  %v5853_v25 = vld [vmem:[%s8686_s1 + $0xf00] ss:$16 sps:$4 sm:$0xff]   ;;  %v5864_v26 = vld [vmem:[%s8686_s1 + $0x10e4] ss:$16 sps:$4 sm:$0xff]  }
  0xc6   :  { %4018 = vmatprep.mubr.bf16.mxu1 %v5775_v27  ;;  %v5867_v27 = vld [vmem:[%s8686_s1 + $0xec] ss:$16 sps:$4 sm:$0xff]  }
  0xc7   :  { %4032 = vmatpush1.bf16.msra.mxu0 %v5760_v28  ;;  %v5856_v28 = vld [vmem:[%s8685_s0 + $0x30] ss:$72 sps:$4 sm:$0xff]  }
  0xc8   :  { %4085 = vmatpush1.bf16.msra.mxu1 %v5763_v29  ;;  %4033 = vmatprep.subr.bf16.mxu0 %v5771_v30  ;;  %v5859_v29 = vld [vmem:[%s8685_s0 + $0x38] ss:$72 sps:$4 sm:$0xff]  }
  0xc9   :  { %4086 = vmatprep.subr.bf16.mxu1 %v5774_v31  ;;  %v5862_v30 = vld [vmem:[%s8686_s1 + $0x10e0] ss:$16 sps:$4 sm:$0xff]   ;;  %v5865_v31 = vld [vmem:[%s8686_s1 + $0xe8] ss:$16 sps:$4 sm:$0xff]  }
  0xca   :  { %3966 = vmatmul.mubr.bf16.gmra.mxu0 %v5768_v32  ;;  %v5870_v32 = vld [vmem:[%s8686_s1 + $0x10c4] ss:$16 sps:$4 sm:$0xff]  }
  0xcb   :  { %4019 = vmatmul.mubr.bf16.gmra.mxu1 %v5777_v34  ;;  %4034 = vmatpush1.bf16.msra.mxu0 %v5769_v33  ;;  %v5873_v33 = vld [vmem:[%s8686_s1 + $0xcc] ss:$16 sps:$4 sm:$0xff]  }
  0xcc   :  { %4087 = vmatpush1.bf16.msra.mxu1 %v5772_v35  ;;  %4035 = vmatprep.subr.bf16.mxu0 %v5780_v36  ;;  %v5874_v34 = vld [vmem:[%s8685_s0 + $0xc4] ss:$72 sps:$4 sm:$0xff]   ;;  %v5868_v36 = vld [vmem:[%s8686_s1 + $0x10c0] ss:$16 sps:$4 sm:$0xff]  }
  0xcd   :  { %4088 = vmatprep.subr.bf16.mxu1 %v5783_v37  ;;  %4061 = vmatprep.mubr.bf16.mxu0 %v5858_v38  ;;  %v5883_v35 = vld [vmem:[%s8685_s0 + $0xcc] ss:$72 sps:$4 sm:$0xff]   ;;  %v5871_v37 = vld [vmem:[%s8686_s1 + $0xc8] ss:$16 sps:$4 sm:$0xff]  }
  0xce   :  { %4114 = vmatprep.mubr.bf16.mxu1 %v5861_v39  ;;  %v5879_v38 = vld [vmem:[%s8686_s1 + $0x10a4] ss:$16 sps:$4 sm:$0xff]   ;;  %v5882_v39 = vld [vmem:[%s8686_s1 + $0xac] ss:$16 sps:$4 sm:$0xff]  }
  0xcf   :  { %4036 = vmatpush1.bf16.msra.mxu0 %v5778_v40  ;;  %v5876_v40 = vld [vmem:[%s8685_s0 + $0xc0] ss:$72 sps:$4 sm:$0xff]  }
  0xd0   :  { %4089 = vmatpush1.bf16.msra.mxu1 %v5781_v41  ;;  %4037 = vmatprep.subr.bf16.mxu0 %v5786_v42  ;;  %v5877_v41 = vld [vmem:[%s8686_s1 + $0x10a0] ss:$16 sps:$4 sm:$0xff]  }
  0xd1   :  { %4090 = vmatprep.subr.bf16.mxu1 %v5789_v43  ;;  %v5885_v42 = vld [vmem:[%s8685_s0 + $0xc8] ss:$72 sps:$4 sm:$0xff]  }
  0xd2   :  { %v5880_v43 = vld [vmem:[%s8686_s1 + $0xa8] ss:$16 sps:$4 sm:$0xff]  }
  0xd3   :  { %4038 = vmatpush1.bf16.msra.mxu0 %v5784_v44  ;;  %v5888_v44 = vld [vmem:[%s8686_s1 + $0x1084] ss:$16 sps:$4 sm:$0xff]  }
  0xd4   :  { %4091 = vmatpush1.bf16.msra.mxu1 %v5787_v45  ;;  %4039 = vmatprep.subr.bf16.mxu0 %v5792_v46  ;;  %v5891_v45 = vld [vmem:[%s8686_s1 + $0x8c] ss:$16 sps:$4 sm:$0xff]  }
  0xd5   :  { %4092 = vmatprep.subr.bf16.mxu1 %v5795_v47  ;;  %v5966_v46 = vld [vmem:[%s8685_s0 + $0x44] ss:$72 sps:$4 sm:$0xff]   ;;  %v5886_v47 = vld [vmem:[%s8686_s1 + $0x1080] ss:$16 sps:$4 sm:$0xff]  }
  0xd7   :  { %4040 = vmatpush1.bf16.msra.mxu0 %v5790_v48  ;;  %v5889_v48 = vld [vmem:[%s8686_s1 + $0x88] ss:$16 sps:$4 sm:$0xff]  }
  0xd8   :  { %4093 = vmatpush1.bf16.msra.mxu1 %v5793_v49  ;;  %4041 = vmatprep.subr.bf16.mxu0 %v5798_v50  ;;  %v5894_v49 = vld [vmem:[%s8686_s1 + $0x1064] ss:$16 sps:$4 sm:$0xff]   ;;  %v5897_v50 = vld [vmem:[%s8686_s1 + $0x6c] ss:$16 sps:$4 sm:$0xff]  }
  0xd9   :  { %4094 = vmatprep.subr.bf16.mxu1 %v5801_v51  ;;  %v6354_v51 = vld [vmem:[%s8685_s0 + $0x4] ss:$72 sps:$4 sm:$0xff]  }
  0xdb   :  { %4042 = vmatpush1.bf16.msra.mxu0 %v5796_v52  ;;  %v5892_v52 = vld [vmem:[%s8686_s1 + $0x1060] ss:$16 sps:$4 sm:$0xff]  }
  0xdc   :  { %4095 = vmatpush1.bf16.msra.mxu1 %v5799_v53  ;;  %4043 = vmatprep.subr.bf16.mxu0 %v5804_v54  ;;  %v5895_v53 = vld [vmem:[%s8686_s1 + $0x68] ss:$16 sps:$4 sm:$0xff]   ;;  %v5900_v54 = vld [vmem:[%s8686_s1 + $0x1044] ss:$16 sps:$4 sm:$0xff]  }
  0xdd   :  { %4096 = vmatprep.subr.bf16.mxu1 %v5807_v55  ;;  %v5903_v55 = vld [vmem:[%s8686_s1 + $0x4c] ss:$16 sps:$4 sm:$0xff]  }
  0xdf   :  { %4044 = vmatpush1.bf16.msra.mxu0 %v5802_v56  ;;  %v5898_v56 = vld [vmem:[%s8686_s1 + $0x1040] ss:$16 sps:$4 sm:$0xff]  }
  0xe0   :  { %4097 = vmatpush1.bf16.msra.mxu1 %v5805_v57  ;;  %4045 = vmatprep.subr.bf16.mxu0 %v5810_v58  ;;  %v5901_v57 = vld [vmem:[%s8686_s1 + $0x48] ss:$16 sps:$4 sm:$0xff]   ;;  %v5906_v58 = vld [vmem:[%s8686_s1 + $0x1024] ss:$16 sps:$4 sm:$0xff]  }
  0xe1   :  { %4098 = vmatprep.subr.bf16.mxu1 %v5813_v59  ;;  %v5909_v59 = vld [vmem:[%s8686_s1 + $0x2c] ss:$16 sps:$4 sm:$0xff]  }
  0xe3   :  { %4046 = vmatpush2.bf16.msra.mxu0 %v5808_v60  ;;  %v5904_v60 = vld [vmem:[%s8686_s1 + $0x1020] ss:$16 sps:$4 sm:$0xff]  }
  0xe4   :  { %4099 = vmatpush2.bf16.msra.mxu1 %v5811_v61  ;;  %4047 = vmatprep.subr.bf16.mxu0 %v5816_v62  ;;  %v5907_v61 = vld [vmem:[%s8686_s1 + $0x28] ss:$16 sps:$4 sm:$0xff]   ;;  %v5912_v62 = vld [vmem:[%s8686_s1 + $0x1004] ss:$16 sps:$4 sm:$0xff]  }
  0xe5   :  { %4100 = vmatprep.subr.bf16.mxu1 %v5819_v63  ;;  %v5915_v63 = vld [vmem:[%s8686_s1 + $0xc] ss:$16 sps:$4 sm:$0xff]  }
  0xe7   :  { %4048 = vmatpush2.bf16.msra.mxu0 %v5814_v0  ;;  %v5910_v0 = vld [vmem:[%s8686_s1 + $0x1000] ss:$16 sps:$4 sm:$0xff]  }
  0xe8   :  { %4101 = vmatpush2.bf16.msra.mxu1 %v5817_v1  ;;  %4049 = vmatprep.subr.bf16.mxu0 %v5822_v2  ;;  %v5913_v1 = vld [vmem:[%s8686_s1 + $0x8] ss:$16 sps:$4 sm:$0xff]   ;;  %v5918_v2 = vld [vmem:[%s8686_s1 + $0x11e4] ss:$16 sps:$4 sm:$0xff]  }
  0xe9   :  { %4102 = vmatprep.subr.bf16.mxu1 %v5825_v3  ;;  %v5921_v3 = vld [vmem:[%s8686_s1 + $0x1ec] ss:$16 sps:$4 sm:$0xff]  }
  0xeb   :  { %4050 = vmatpush2.bf16.msra.mxu0 %v5820_v4  ;;  %v5916_v4 = vld [vmem:[%s8686_s1 + $0x11e0] ss:$16 sps:$4 sm:$0xff]  }
  0xec   :  { %4103 = vmatpush2.bf16.msra.mxu1 %v5823_v5  ;;  %4051 = vmatprep.subr.bf16.mxu0 %v5828_v6  ;;  %v5919_v5 = vld [vmem:[%s8686_s1 + $0x1e8] ss:$16 sps:$4 sm:$0xff]   ;;  %v5924_v6 = vld [vmem:[%s8686_s1 + $0x11c4] ss:$16 sps:$4 sm:$0xff]  }
  0xed   :  { %4104 = vmatprep.subr.bf16.mxu1 %v5831_v7  ;;  %v5927_v7 = vld [vmem:[%s8686_s1 + $0x1cc] ss:$16 sps:$4 sm:$0xff]  }
  0xef   :  { %4052 = vmatpush2.bf16.msra.mxu0 %v5826_v8  ;;  %v5922_v8 = vld [vmem:[%s8686_s1 + $0x11c0] ss:$16 sps:$4 sm:$0xff]  }
  0xf0   :  { %4105 = vmatpush2.bf16.msra.mxu1 %v5829_v9  ;;  %4053 = vmatprep.subr.bf16.mxu0 %v5834_v10  ;;  %v5925_v9 = vld [vmem:[%s8686_s1 + $0x1c8] ss:$16 sps:$4 sm:$0xff]   ;;  %v5930_v10 = vld [vmem:[%s8686_s1 + $0x11a4] ss:$16 sps:$4 sm:$0xff]  }
  0xf1   :  { %4106 = vmatprep.subr.bf16.mxu1 %v5837_v11  ;;  %v5933_v11 = vld [vmem:[%s8686_s1 + $0x1ac] ss:$16 sps:$4 sm:$0xff]  }
  0xf3   :  { %4054 = vmatpush2.bf16.msra.mxu0 %v5832_v12  ;;  %v5928_v12 = vld [vmem:[%s8686_s1 + $0x11a0] ss:$16 sps:$4 sm:$0xff]  }
  0xf4   :  { %4107 = vmatpush2.bf16.msra.mxu1 %v5835_v13  ;;  %4055 = vmatprep.subr.bf16.mxu0 %v5840_v14  ;;  %v5931_v13 = vld [vmem:[%s8686_s1 + $0x1a8] ss:$16 sps:$4 sm:$0xff]   ;;  %v5936_v14 = vld [vmem:[%s8686_s1 + $0x1184] ss:$16 sps:$4 sm:$0xff]  }
  0xf5   :  { %4108 = vmatprep.subr.bf16.mxu1 %v5843_v15  ;;  %v5939_v15 = vld [vmem:[%s8686_s1 + $0x18c] ss:$16 sps:$4 sm:$0xff]  }
  0xf7   :  { %4056 = vmatpush2.bf16.msra.mxu0 %v5838_v16  ;;  %v5934_v16 = vld [vmem:[%s8686_s1 + $0x1180] ss:$16 sps:$4 sm:$0xff]  }
  0xf8   :  { %4109 = vmatpush2.bf16.msra.mxu1 %v5841_v17  ;;  %4057 = vmatprep.subr.bf16.mxu0 %v5846_v18  ;;  %v5937_v17 = vld [vmem:[%s8686_s1 + $0x188] ss:$16 sps:$4 sm:$0xff]   ;;  %v5942_v18 = vld [vmem:[%s8686_s1 + $0x1164] ss:$16 sps:$4 sm:$0xff]  }
  0xf9   :  { %4110 = vmatprep.subr.bf16.mxu1 %v5849_v19  ;;  %v5945_v19 = vld [vmem:[%s8686_s1 + $0x16c] ss:$16 sps:$4 sm:$0xff]  }
  0xfb   :  { %4058 = vmatpush2.bf16.msra.mxu0 %v5844_v20  ;;  %v5940_v20 = vld [vmem:[%s8686_s1 + $0x1160] ss:$16 sps:$4 sm:$0xff]  }
  0xfc   :  { %4111 = vmatpush2.bf16.msra.mxu1 %v5847_v21  ;;  %4059 = vmatprep.subr.bf16.mxu0 %v5852_v22  ;;  %v5943_v21 = vld [vmem:[%s8686_s1 + $0x168] ss:$16 sps:$4 sm:$0xff]   ;;  %v5948_v22 = vld [vmem:[%s8686_s1 + $0x1144] ss:$16 sps:$4 sm:$0xff]  }
  0xfd   :  { %4112 = vmatprep.subr.bf16.mxu1 %v5855_v23  ;;  %v5951_v23 = vld [vmem:[%s8686_s1 + $0x14c] ss:$16 sps:$4 sm:$0xff]  }
  0xff   :  { %4060 = vmatpush2.bf16.msra.mxu0 %v5850_v24  ;;  %v5946_v24 = vld [vmem:[%s8686_s1 + $0x1140] ss:$16 sps:$4 sm:$0xff]  }
 0x100   :  { %4113 = vmatpush2.bf16.msra.mxu1 %v5853_v25  ;;  %4135 = vmatprep.subr.bf16.mxu0 %v5864_v26  ;;  %v5949_v25 = vld [vmem:[%s8686_s1 + $0x148] ss:$16 sps:$4 sm:$0xff]   ;;  %v5954_v26 = vld [vmem:[%s8686_s1 + $0x1124] ss:$16 sps:$4 sm:$0xff]  }
 0x101   :  { %4188 = vmatprep.subr.bf16.mxu1 %v5867_v27  ;;  %v5957_v27 = vld [vmem:[%s8686_s1 + $0x12c] ss:$16 sps:$4 sm:$0xff]  }
 0x102   :  { %4062 = vmatmul.mubr.bf16.vlgmr.msra.gmra.mxu0 %v5856_v28  ;;  %v5952_v28 = vld [vmem:[%s8686_s1 + $0x1120] ss:$16 sps:$4 sm:$0xff]  }
 0x103   :  { %4115 = vmatmul.mubr.bf16.vlgmr.msra.gmra.mxu1 %v5859_v29  ;;  %4136 = vmatpush1.bf16.msra.mxu0 %v5862_v30  ;;  %v5955_v29 = vld [vmem:[%s8686_s1 + $0x128] ss:$16 sps:$4 sm:$0xff]   ;;  %v5960_v30 = vld [vmem:[%s8686_s1 + $0x1104] ss:$16 sps:$4 sm:$0xff]  }
 0x104   :  { %4189 = vmatpush1.bf16.msra.mxu1 %v5865_v31  ;;  %4137 = vmatprep.subr.bf16.mxu0 %v5870_v32  ;;  %v5963_v31 = vld [vmem:[%s8686_s1 + $0x10c] ss:$16 sps:$4 sm:$0xff]   ;;  %v5958_v32 = vld [vmem:[%s8686_s1 + $0x1100] ss:$16 sps:$4 sm:$0xff]  }
 0x105   :  { %4190 = vmatprep.subr.bf16.mxu1 %v5873_v33  ;;  %4071 = vmatprep.mubr.bf16.mxu0 %v5874_v34  ;;  %v5961_v33 = vld [vmem:[%s8686_s1 + $0x108] ss:$16 sps:$4 sm:$0xff]   ;;  %v5969_v34 = vld [vmem:[%s8686_s1 + $0x2ec] ss:$16 sps:$4 sm:$0xff]  }
 0x106   :  { %4124 = vmatprep.mubr.bf16.mxu1 %v5883_v35  ;;  %v5972_v35 = vld [vmem:[%s8686_s1 + $0x4ec] ss:$16 sps:$4 sm:$0xff]  }
 0x107   :  { %4138 = vmatpush1.bf16.msra.mxu0 %v5868_v36  ;;  %v5964_v36 = vld [vmem:[%s8685_s0 + $0x40] ss:$72 sps:$4 sm:$0xff]  }
 0x108   :  { %4191 = vmatpush1.bf16.msra.mxu1 %v5871_v37  ;;  %4139 = vmatprep.subr.bf16.mxu0 %v5879_v38  ;;  %v5967_v37 = vld [vmem:[%s8686_s1 + $0x2e8] ss:$16 sps:$4 sm:$0xff]  }
 0x109   :  { %4192 = vmatprep.subr.bf16.mxu1 %v5882_v39  ;;  %v5970_v38 = vld [vmem:[%s8686_s1 + $0x4e8] ss:$16 sps:$4 sm:$0xff]   ;;  %v5975_v39 = vld [vmem:[%s8686_s1 + $0x2cc] ss:$16 sps:$4 sm:$0xff]  }
 0x10a   :  { %4072 = vmatmul.mubr.bf16.gmra.mxu0 %v5876_v40  ;;  %v5978_v40 = vld [vmem:[%s8686_s1 + $0x4cc] ss:$16 sps:$4 sm:$0xff]  }
 0x10b   :  { %4125 = vmatmul.mubr.bf16.gmra.mxu1 %v5885_v42  ;;  %4140 = vmatpush1.bf16.msra.mxu0 %v5877_v41  ;;  %v5979_v41 = vld [vmem:[%s8685_s0 + $0xd4] ss:$72 sps:$4 sm:$0xff]   ;;  %v6355_v42 = vld [vmem:[%s8685_s0] ss:$72 sps:$4 sm:$0xff]  }
 0x10c   :  { %4193 = vmatpush1.bf16.msra.mxu1 %v5880_v43  ;;  %4141 = vmatprep.subr.bf16.mxu0 %v5888_v44  ;;  %v5973_v43 = vld [vmem:[%s8686_s1 + $0x2c8] ss:$16 sps:$4 sm:$0xff]  }
 0x10d   :  { %4194 = vmatprep.subr.bf16.mxu1 %v5891_v45  ;;  %4167 = vmatprep.mubr.bf16.mxu0 %v5966_v46  ;;  %v5976_v44 = vld [vmem:[%s8686_s1 + $0x4c8] ss:$16 sps:$4 sm:$0xff]   ;;  %v5984_v45 = vld [vmem:[%s8686_s1 + $0x2ac] ss:$16 sps:$4 sm:$0xff]  }
 0x10e   :  { %4220 = vmatprep.mubr.bf16.mxu1 %v6354_v51  ;;  %v5987_v46 = vld [vmem:[%s8686_s1 + $0x4ac] ss:$16 sps:$4 sm:$0xff]  }
 0x10f   :  { %4142 = vmatpush1.bf16.msra.mxu0 %v5886_v47  ;;  %v5981_v47 = vld [vmem:[%s8685_s0 + $0xd0] ss:$72 sps:$4 sm:$0xff]   ;;  %v5990_v51 = vld [vmem:[%s8686_s1 + $0x28c] ss:$16 sps:$4 sm:$0xff]  }
 0x110   :  { %4195 = vmatpush1.bf16.msra.mxu1 %v5889_v48  ;;  %4143 = vmatprep.subr.bf16.mxu0 %v5894_v49  ;;  %v5982_v48 = vld [vmem:[%s8686_s1 + $0x2a8] ss:$16 sps:$4 sm:$0xff]   ;;  %v6356_v49 = vld [vmem:[%s8685_s0 + $0x94] ss:$72 sps:$4 sm:$0xff]  }
 0x111   :  { %4196 = vmatprep.subr.bf16.mxu1 %v5897_v50  ;;  %v5985_v50 = vld [vmem:[%s8686_s1 + $0x4a8] ss:$16 sps:$4 sm:$0xff]  }
 0x113   :  { %4144 = vmatpush1.bf16.msra.mxu0 %v5892_v52  ;;  %v5993_v52 = vld [vmem:[%s8686_s1 + $0x48c] ss:$16 sps:$4 sm:$0xff]  }
 0x114   :  { %4197 = vmatpush1.bf16.msra.mxu1 %v5895_v53  ;;  %4145 = vmatprep.subr.bf16.mxu0 %v5900_v54  ;;  %v5988_v53 = vld [vmem:[%s8686_s1 + $0x288] ss:$16 sps:$4 sm:$0xff]  }
 0x115   :  { %4198 = vmatprep.subr.bf16.mxu1 %v5903_v55  ;;  %v5991_v54 = vld [vmem:[%s8686_s1 + $0x488] ss:$16 sps:$4 sm:$0xff]  }
 0x116   :  { %v6357_v55 = vld [vmem:[%s8685_s0 + $0x90] ss:$72 sps:$4 sm:$0xff]  }
 0x117   :  { %4146 = vmatpush1.bf16.msra.mxu0 %v5898_v56  ;;  %v5996_v56 = vld [vmem:[%s8686_s1 + $0x26c] ss:$16 sps:$4 sm:$0xff]  }
 0x118   :  { %4199 = vmatpush1.bf16.msra.mxu1 %v5901_v57  ;;  %4147 = vmatprep.subr.bf16.mxu0 %v5906_v58  ;;  %v5999_v57 = vld [vmem:[%s8686_s1 + $0x46c] ss:$16 sps:$4 sm:$0xff]   ;;  %v5994_v58 = vld [vmem:[%s8686_s1 + $0x268] ss:$16 sps:$4 sm:$0xff]  }
 0x119   :  { %4200 = vmatprep.subr.bf16.mxu1 %v5909_v59  ;;  %v5997_v59 = vld [vmem:[%s8686_s1 + $0x468] ss:$16 sps:$4 sm:$0xff]  }
 0x11b   :  { %4148 = vmatpush1.bf16.msra.mxu0 %v5904_v60  ;;  %v6358_v60 = vld [vmem:[%s8685_s0 + $0xc] ss:$72 sps:$4 sm:$0xff]  }
 0x11c   :  { %4201 = vmatpush1.bf16.msra.mxu1 %v5907_v61  ;;  %4149 = vmatprep.subr.bf16.mxu0 %v5912_v62  ;;  %v6359_v61 = vld [vmem:[%s8685_s0 + $0x14] ss:$72 sps:$4 sm:$0xff]  }
 0x11d   :  { %4202 = vmatprep.subr.bf16.mxu1 %v5915_v63  ;;  %v6002_v62 = vld [vmem:[%s8686_s1 + $0x24c] ss:$16 sps:$4 sm:$0xff]  }
 0x11e   :  { %v6005_v63 = vld [vmem:[%s8686_s1 + $0x44c] ss:$16 sps:$4 sm:$0xff]  }
 0x11f   :  { %4150 = vmatpush1.bf16.msra.mxu0 %v5910_v0  ;;  %v6000_v0 = vld [vmem:[%s8686_s1 + $0x248] ss:$16 sps:$4 sm:$0xff]  }
 0x120   :  { %4203 = vmatpush1.bf16.msra.mxu1 %v5913_v1  ;;  %4151 = vmatprep.subr.bf16.mxu0 %v5918_v2  ;;  %v6003_v1 = vld [vmem:[%s8686_s1 + $0x448] ss:$16 sps:$4 sm:$0xff]   ;;  %v6008_v2 = vld [vmem:[%s8686_s1 + $0x22c] ss:$16 sps:$4 sm:$0xff]  }
 0x121   :  { %4204 = vmatprep.subr.bf16.mxu1 %v5921_v3  ;;  %v6011_v3 = vld [vmem:[%s8686_s1 + $0x42c] ss:$16 sps:$4 sm:$0xff]  }
 0x123   :  { %4152 = vmatpush2.bf16.msra.mxu0 %v5916_v4  ;;  %v6006_v4 = vld [vmem:[%s8686_s1 + $0x228] ss:$16 sps:$4 sm:$0xff]  }
 0x124   :  { %4205 = vmatpush2.bf16.msra.mxu1 %v5919_v5  ;;  %4153 = vmatprep.subr.bf16.mxu0 %v5924_v6  ;;  %v6009_v5 = vld [vmem:[%s8686_s1 + $0x428] ss:$16 sps:$4 sm:$0xff]   ;;  %v6014_v6 = vld [vmem:[%s8686_s1 + $0x20c] ss:$16 sps:$4 sm:$0xff]  }
 0x125   :  { %4206 = vmatprep.subr.bf16.mxu1 %v5927_v7  ;;  %v6017_v7 = vld [vmem:[%s8686_s1 + $0x40c] ss:$16 sps:$4 sm:$0xff]  }
 0x127   :  { %4154 = vmatpush2.bf16.msra.mxu0 %v5922_v8  ;;  %v6012_v8 = vld [vmem:[%s8686_s1 + $0x208] ss:$16 sps:$4 sm:$0xff]  }
 0x128   :  { %4207 = vmatpush2.bf16.msra.mxu1 %v5925_v9  ;;  %4155 = vmatprep.subr.bf16.mxu0 %v5930_v10  ;;  %v6015_v9 = vld [vmem:[%s8686_s1 + $0x408] ss:$16 sps:$4 sm:$0xff]   ;;  %v6020_v10 = vld [vmem:[%s8686_s1 + $0x3ec] ss:$16 sps:$4 sm:$0xff]  }
 0x129   :  { %4208 = vmatprep.subr.bf16.mxu1 %v5933_v11  ;;  %v6023_v11 = vld [vmem:[%s8686_s1 + $0x5ec] ss:$16 sps:$4 sm:$0xff]  }
 0x12b   :  { %4156 = vmatpush2.bf16.msra.mxu0 %v5928_v12  ;;  %v6018_v12 = vld [vmem:[%s8686_s1 + $0x3e8] ss:$16 sps:$4 sm:$0xff]  }
 0x12c   :  { %4209 = vmatpush2.bf16.msra.mxu1 %v5931_v13  ;;  %4157 = vmatprep.subr.bf16.mxu0 %v5936_v14  ;;  %v6021_v13 = vld [vmem:[%s8686_s1 + $0x5e8] ss:$16 sps:$4 sm:$0xff]   ;;  %v6026_v14 = vld [vmem:[%s8686_s1 + $0x3cc] ss:$16 sps:$4 sm:$0xff]  }
 0x12d   :  { %4210 = vmatprep.subr.bf16.mxu1 %v5939_v15  ;;  %v6029_v15 = vld [vmem:[%s8686_s1 + $0x5cc] ss:$16 sps:$4 sm:$0xff]  }
 0x12f   :  { %4158 = vmatpush2.bf16.msra.mxu0 %v5934_v16  ;;  %v6024_v16 = vld [vmem:[%s8686_s1 + $0x3c8] ss:$16 sps:$4 sm:$0xff]  }
 0x130   :  { %4211 = vmatpush2.bf16.msra.mxu1 %v5937_v17  ;;  %4159 = vmatprep.subr.bf16.mxu0 %v5942_v18  ;;  %v6027_v17 = vld [vmem:[%s8686_s1 + $0x5c8] ss:$16 sps:$4 sm:$0xff]   ;;  %v6032_v18 = vld [vmem:[%s8686_s1 + $0x3ac] ss:$16 sps:$4 sm:$0xff]  }
 0x131   :  { %4212 = vmatprep.subr.bf16.mxu1 %v5945_v19  ;;  %v6035_v19 = vld [vmem:[%s8686_s1 + $0x5ac] ss:$16 sps:$4 sm:$0xff]  }
 0x133   :  { %4160 = vmatpush2.bf16.msra.mxu0 %v5940_v20  ;;  %v6030_v20 = vld [vmem:[%s8686_s1 + $0x3a8] ss:$16 sps:$4 sm:$0xff]  }
 0x134   :  { %4213 = vmatpush2.bf16.msra.mxu1 %v5943_v21  ;;  %4161 = vmatprep.subr.bf16.mxu0 %v5948_v22  ;;  %v6033_v21 = vld [vmem:[%s8686_s1 + $0x5a8] ss:$16 sps:$4 sm:$0xff]   ;;  %v6038_v22 = vld [vmem:[%s8686_s1 + $0x38c] ss:$16 sps:$4 sm:$0xff]  }
 0x135   :  { %4214 = vmatprep.subr.bf16.mxu1 %v5951_v23  ;;  %v6041_v23 = vld [vmem:[%s8686_s1 + $0x58c] ss:$16 sps:$4 sm:$0xff]  }
 0x137   :  { %4162 = vmatpush2.bf16.msra.mxu0 %v5946_v24  ;;  %v6036_v24 = vld [vmem:[%s8686_s1 + $0x388] ss:$16 sps:$4 sm:$0xff]  }
 0x138   :  { %4215 = vmatpush2.bf16.msra.mxu1 %v5949_v25  ;;  %4163 = vmatprep.subr.bf16.mxu0 %v5954_v26  ;;  %v6039_v25 = vld [vmem:[%s8686_s1 + $0x588] ss:$16 sps:$4 sm:$0xff]   ;;  %v6044_v26 = vld [vmem:[%s8686_s1 + $0x36c] ss:$16 sps:$4 sm:$0xff]  }
 0x139   :  { %4216 = vmatprep.subr.bf16.mxu1 %v5957_v27  ;;  %v6047_v27 = vld [vmem:[%s8686_s1 + $0x56c] ss:$16 sps:$4 sm:$0xff]  }
 0x13b   :  { %4164 = vmatpush2.bf16.msra.mxu0 %v5952_v28  ;;  %v6042_v28 = vld [vmem:[%s8686_s1 + $0x368] ss:$16 sps:$4 sm:$0xff]  }
 0x13c   :  { %4217 = vmatpush2.bf16.msra.mxu1 %v5955_v29  ;;  %4165 = vmatprep.subr.bf16.mxu0 %v5960_v30  ;;  %v6045_v29 = vld [vmem:[%s8686_s1 + $0x568] ss:$16 sps:$4 sm:$0xff]   ;;  %v6050_v30 = vld [vmem:[%s8686_s1 + $0x34c] ss:$16 sps:$4 sm:$0xff]  }
 0x13d   :  { %4218 = vmatprep.subr.bf16.mxu1 %v5963_v31  ;;  %v6053_v31 = vld [vmem:[%s8686_s1 + $0x54c] ss:$16 sps:$4 sm:$0xff]  }
 0x13f   :  { %4166 = vmatpush2.bf16.msra.mxu0 %v5958_v32  ;;  %v6048_v32 = vld [vmem:[%s8686_s1 + $0x348] ss:$16 sps:$4 sm:$0xff]  }
 0x140   :  { %4219 = vmatpush2.bf16.msra.mxu1 %v5961_v33  ;;  %4241 = vmatprep.subr.bf16.mxu0 %v5969_v34  ;;  %v6051_v33 = vld [vmem:[%s8686_s1 + $0x548] ss:$16 sps:$4 sm:$0xff]   ;;  %v6056_v34 = vld [vmem:[%s8686_s1 + $0x32c] ss:$16 sps:$4 sm:$0xff]  }
 0x141   :  { %4294 = vmatprep.subr.bf16.mxu1 %v5972_v35  ;;  %v6059_v35 = vld [vmem:[%s8686_s1 + $0x52c] ss:$16 sps:$4 sm:$0xff]  }
 0x142   :  { %4168 = vmatmul.mubr.bf16.vlgmr.msra.gmra.mxu0 %v5964_v36  ;;  %v6054_v36 = vld [vmem:[%s8686_s1 + $0x328] ss:$16 sps:$4 sm:$0xff]  }
 0x143   :  { %4221 = vmatmul.mubr.bf16.vlgmr.msra.gmra.mxu1 %v6355_v42  ;;  %4242 = vmatpush1.bf16.msra.mxu0 %v5967_v37  ;;  %v6057_v37 = vld [vmem:[%s8686_s1 + $0x528] ss:$16 sps:$4 sm:$0xff]   ;;  %v6068_v42 = vld [vmem:[%s8686_s1 + $0x6ec] ss:$16 sps:$4 sm:$0xff]  }
 0x144   :  { %4295 = vmatpush1.bf16.msra.mxu1 %v5970_v38  ;;  %4243 = vmatprep.subr.bf16.mxu0 %v5975_v39  ;;  %v6062_v38 = vld [vmem:[%s8686_s1 + $0x30c] ss:$16 sps:$4 sm:$0xff]  }
 0x145   :  { %4296 = vmatprep.subr.bf16.mxu1 %v5978_v40  ;;  %4177 = vmatprep.mubr.bf16.mxu0 %v5979_v41  ;;  %v6065_v39 = vld [vmem:[%s8686_s1 + $0x50c] ss:$16 sps:$4 sm:$0xff]   ;;  %v6060_v40 = vld [vmem:[%s8686_s1 + $0x308] ss:$16 sps:$4 sm:$0xff]  }
 0x146   :  { %4230 = vmatprep.mubr.bf16.mxu1 %v6356_v49  ;;  %v6063_v41 = vld [vmem:[%s8686_s1 + $0x508] ss:$16 sps:$4 sm:$0xff]  }
 0x147   :  { %4244 = vmatpush1.bf16.msra.mxu0 %v5973_v43  ;;  %v6071_v43 = vld [vmem:[%s8686_s1 + $0x8ec] ss:$16 sps:$4 sm:$0xff]   ;;  %v6360_v49 = vld [vmem:[%s8685_s0 + $0x8] ss:$72 sps:$4 sm:$0xff]  }
 0x148   :  { %4297 = vmatpush1.bf16.msra.mxu1 %v5976_v44  ;;  %4245 = vmatprep.subr.bf16.mxu0 %v5984_v45  ;;  %v6066_v44 = vld [vmem:[%s8686_s1 + $0x6e8] ss:$16 sps:$4 sm:$0xff]  }
 0x149   :  { %4298 = vmatprep.subr.bf16.mxu1 %v5987_v46  ;;  %v6069_v45 = vld [vmem:[%s8686_s1 + $0x8e8] ss:$16 sps:$4 sm:$0xff]   ;;  %v6074_v46 = vld [vmem:[%s8686_s1 + $0x6cc] ss:$16 sps:$4 sm:$0xff]  }
 0x14a   :  { %4178 = vmatmul.mubr.bf16.gmra.mxu0 %v5981_v47  ;;  %v6077_v47 = vld [vmem:[%s8686_s1 + $0x8cc] ss:$16 sps:$4 sm:$0xff]  }
 0x14b   :  { %4231 = vmatmul.mubr.bf16.gmra.mxu1 %v6357_v55  ;;  %4246 = vmatpush1.bf16.msra.mxu0 %v5982_v48  ;;  %v6072_v48 = vld [vmem:[%s8686_s1 + $0x6c8] ss:$16 sps:$4 sm:$0xff]  }
 0x14c   :  { %4299 = vmatpush1.bf16.msra.mxu1 %v5985_v50  ;;  %4247 = vmatprep.subr.bf16.mxu0 %v5990_v51  ;;  %v6361_v50 = vld [vmem:[%s8685_s0 + $0x10] ss:$72 sps:$4 sm:$0xff]  }
 0x14d   :  { %4300 = vmatprep.subr.bf16.mxu1 %v5993_v52  ;;  %4273 = vmatprep.mubr.bf16.mxu0 %v6358_v60  ;;  %v6075_v51 = vld [vmem:[%s8686_s1 + $0x8c8] ss:$16 sps:$4 sm:$0xff]  }
 0x14e   :  { %4326 = vmatprep.mubr.bf16.mxu1 %v6359_v61 }
 0x14f   :  { %4248 = vmatpush1.bf16.msra.mxu0 %v5988_v53 }
 0x150   :  { %4301 = vmatpush1.bf16.msra.mxu1 %v5991_v54  ;;  %4249 = vmatprep.subr.bf16.mxu0 %v5996_v56 }
 0x151   :  { %4302 = vmatprep.subr.bf16.mxu1 %v5999_v57 }
 0x153   :  { %4250 = vmatpush1.bf16.msra.mxu0 %v5994_v58 }
 0x154   :  { %4303 = vmatpush1.bf16.msra.mxu1 %v5997_v59  ;;  %4251 = vmatprep.subr.bf16.mxu0 %v6002_v62 }
 0x155   :  { %4304 = vmatprep.subr.bf16.mxu1 %v6005_v63 }
 0x157   :  { %4252 = vmatpush1.bf16.msra.mxu0 %v6000_v0 }
 0x158   :  { %4305 = vmatpush1.bf16.msra.mxu1 %v6003_v1  ;;  %4253 = vmatprep.subr.bf16.mxu0 %v6008_v2 }
 0x159   :  { %4306 = vmatprep.subr.bf16.mxu1 %v6011_v3 }
 0x15b   :  { %4254 = vmatpush1.bf16.msra.mxu0 %v6006_v4 }
 0x15c   :  { %4307 = vmatpush1.bf16.msra.mxu1 %v6009_v5  ;;  %4255 = vmatprep.subr.bf16.mxu0 %v6014_v6 }
 0x15d   :  { %4308 = vmatprep.subr.bf16.mxu1 %v6017_v7 }
 0x15f   :  { %4256 = vmatpush1.bf16.msra.mxu0 %v6012_v8 }
 0x160   :  { %4309 = vmatpush1.bf16.msra.mxu1 %v6015_v9  ;;  %4257 = vmatprep.subr.bf16.mxu0 %v6020_v10 }
 0x161   :  { %4310 = vmatprep.subr.bf16.mxu1 %v6023_v11 }
 0x163   :  { %4258 = vmatpush2.bf16.msra.mxu0 %v6018_v12 }
 0x164   :  { %4311 = vmatpush2.bf16.msra.mxu1 %v6021_v13  ;;  %4259 = vmatprep.subr.bf16.mxu0 %v6026_v14 }
 0x165   :  { %4312 = vmatprep.subr.bf16.mxu1 %v6029_v15 }
 0x167   :  { %4260 = vmatpush2.bf16.msra.mxu0 %v6024_v16 }
 0x168   :  { %4313 = vmatpush2.bf16.msra.mxu1 %v6027_v17  ;;  %4261 = vmatprep.subr.bf16.mxu0 %v6032_v18 }
 0x169   :  { %4314 = vmatprep.subr.bf16.mxu1 %v6035_v19 }
 0x16b   :  { %4262 = vmatpush2.bf16.msra.mxu0 %v6030_v20 }
 0x16c   :  { %4315 = vmatpush2.bf16.msra.mxu1 %v6033_v21  ;;  %4263 = vmatprep.subr.bf16.mxu0 %v6038_v22 }
 0x16d   :  { %4316 = vmatprep.subr.bf16.mxu1 %v6041_v23 }
 0x16f   :  { %4264 = vmatpush2.bf16.msra.mxu0 %v6036_v24 }
 0x170   :  { %4317 = vmatpush2.bf16.msra.mxu1 %v6039_v25  ;;  %4265 = vmatprep.subr.bf16.mxu0 %v6044_v26 }
 0x171   :  { %4318 = vmatprep.subr.bf16.mxu1 %v6047_v27 }
 0x173   :  { %4266 = vmatpush2.bf16.msra.mxu0 %v6042_v28 }
 0x174   :  { %4319 = vmatpush2.bf16.msra.mxu1 %v6045_v29  ;;  %4267 = vmatprep.subr.bf16.mxu0 %v6050_v30 }
 0x175   :  { %4320 = vmatprep.subr.bf16.mxu1 %v6053_v31 }
 0x177   :  { %4268 = vmatpush2.bf16.msra.mxu0 %v6048_v32 }
 0x178   :  { %4321 = vmatpush2.bf16.msra.mxu1 %v6051_v33  ;;  %4269 = vmatprep.subr.bf16.mxu0 %v6056_v34 }
 0x179   :  { %4322 = vmatprep.subr.bf16.mxu1 %v6059_v35 }
 0x17b   :  { %4270 = vmatpush2.bf16.msra.mxu0 %v6054_v36 }
 0x17c   :  { %4323 = vmatpush2.bf16.msra.mxu1 %v6057_v37  ;;  %4271 = vmatprep.subr.bf16.mxu0 %v6062_v38 }
 0x17d   :  { %4324 = vmatprep.subr.bf16.mxu1 %v6065_v39 }
 0x17f   :  { %4272 = vmatpush2.bf16.msra.mxu0 %v6060_v40 }
 0x180   :  { %4325 = vmatpush2.bf16.msra.mxu1 %v6063_v41  ;;  %4347 = vmatprep.subr.bf16.mxu0 %v6068_v42 }
 0x181   :  { %4400 = vmatprep.subr.bf16.mxu1 %v6071_v43 }
 0x182   :  { %4274 = vmatmul.mubr.bf16.vlgmr.msra.gmra.mxu0 %v6360_v49 }
 0x183   :  { %4327 = vmatmul.mubr.bf16.vlgmr.msra.gmra.mxu1 %v6361_v50  ;;  %4348 = vmatpush1.bf16.msra.mxu0 %v6066_v44 }
 0x184   :  { %4401 = vmatpush1.bf16.msra.mxu1 %v6069_v45 }
 0x185   :  { %10 = vsyncpa [#allocation3], 0  ;;  %4349 = vmatprep.subr.bf16.mxu0 %v6074_v46  ;;  %4402 = vmatprep.subr.bf16.mxu1 %v6077_v47  ;;  %v6080_v52 = vld [vmem:[%s8686_s1 + $0x6ac] ss:$16 sps:$4 sm:$0xff]   ;;  %v6078_v56 = vld [vmem:[%s8686_s1 + $0x6a8] ss:$16 sps:$4 sm:$0xff]   ;;  %v7784_v0 = vpop.f32.mrf.mxu0  ;;  %v7854_v25 = vpop.f32.mrf.mxu1 }
 0x186   :  { %v6083_v53 = vld [vmem:[%s8686_s1 + $0x8ac] ss:$16 sps:$4 sm:$0xff]   ;;  %v6081_v57 = vld [vmem:[%s8686_s1 + $0x8a8] ss:$16 sps:$4 sm:$0xff]   ;;  %s6412_s6 = smov [#allocation2]  }
 0x187   :  { %v6362_v54 = vld [vmem:[%s8685_s0 + $0x9c] ss:$72 sps:$4 sm:$0xff]   ;;  %4350 = vmatpush1.bf16.msra.mxu0 %v6072_v48  ;;  %v6364_v60 = vld [vmem:[%s8685_s0 + $0x98] ss:$72 sps:$4 sm:$0xff]   ;;  %v7804_v7 = vpop.f32.mrf.mxu0  ;;  %v7870_v31 = vpop.f32.mrf.mxu1  ;;  %s4792_s7 = sshll.u32 %s6412_s6, 4  ;;  %s4793_s7 = int_to_ptr.vmem [resolvable:$true] %s4792_s7 }
 0x188   :  { %4283 = vmatprep.mubr.bf16.mxu0 %v6362_v54  ;;  %v6363_v55 = vld [vmem:[%s8685_s0 + $0xa4] ss:$72 sps:$4 sm:$0xff]   ;;  %4403 = vmatpush1.bf16.msra.mxu1 %v6075_v51  ;;  %v6365_v61 = vld [vmem:[%s8685_s0 + $0xa0] ss:$72 sps:$4 sm:$0xff]   ;;  %s6390_s10 = scalar_lea.vmem %s4793_s7, 1024  ;;  %p6395_p1 = scmp.lt.s32.totalorder %s4793_s7, %s4793_s7 }
 0x189   :  { %4336 = vmatprep.mubr.bf16.mxu1 %v6363_v55  ;;  %4351 = vmatprep.subr.bf16.mxu0 %v6080_v52  ;;  %v6086_v58 = vld [vmem:[%s8686_s1 + $0x68c] ss:$16 sps:$4 sm:$0xff]   ;;  %v6084_v62 = vld [vmem:[%s8686_s1 + $0x688] ss:$16 sps:$4 sm:$0xff]   ;;  %v7818_v12 = vpop.f32.mrf.mxu0  ;;  %v7886_v37 = vpop.f32.mrf.mxu1  ;;  %p6391_p0 = scmp.ne.s32.totalorder %s4793_s7, %s6390_s10  ;;  %p6396_p2 = scmp.lt.s32.totalorder %s6390_s10, %s6390_s10 }
 0x18a   :  { %4404 = vmatprep.subr.bf16.mxu1 %v6083_v53  ;;  %v6089_v59 = vld [vmem:[%s8686_s1 + $0x88c] ss:$16 sps:$4 sm:$0xff]   ;;  %4284 = vmatmul.mubr.bf16.gmra.mxu0 %v6364_v60  ;;  %v6087_v63 = vld [vmem:[%s8686_s1 + $0x888] ss:$16 sps:$4 sm:$0xff]  }
 0x18b   :  { %4337 = vmatmul.mubr.bf16.gmra.mxu1 %v6365_v61  ;;  %4352 = vmatpush1.bf16.msra.mxu0 %v6078_v56  ;;  %v6092_v1 = vld [vmem:[%s8686_s1 + $0x66c] ss:$16 sps:$4 sm:$0xff]   ;;  %v6090_v5 = vld [vmem:[%s8686_s1 + $0x668] ss:$16 sps:$4 sm:$0xff]   ;;  %v7832_v17 = vpop.f32.mrf.mxu0  ;;  %v7904_v44 = vpop.f32.mrf.mxu1  ;;  %p6397_p3 = por %p6396_p2, %p6395_p1 }
 0x18c   :  { %4405 = vmatpush1.bf16.msra.mxu1 %v6081_v57  ;;  %4353 = vmatprep.subr.bf16.mxu0 %v6086_v58  ;;  %v6095_v2 = vld [vmem:[%s8686_s1 + $0x86c] ss:$16 sps:$4 sm:$0xff]   ;;  %v6093_v6 = vld [vmem:[%s8686_s1 + $0x868] ss:$16 sps:$4 sm:$0xff]  }
 0x18d   :  { %4406 = vmatprep.subr.bf16.mxu1 %v6089_v59  ;;  %v6366_v3 = vld [vmem:[%s8685_s0 + $0x1c] ss:$72 sps:$4 sm:$0xff]   ;;  %v6096_v10 = vld [vmem:[%s8686_s1 + $0x648] ss:$16 sps:$4 sm:$0xff]   ;;  %v7840_v20 = vpop.f32.mrf.mxu0  ;;  %v7912_v47 = vpop.f32.mrf.mxu1  ;;  %p6398_p4 = pnand %p6397_p3, %p6391_p0 }
 0x18e   :  { %4379 = vmatprep.mubr.bf16.mxu0 %v6366_v3  ;;  %v6367_v4 = vld [vmem:[%s8685_s0 + $0x24] ss:$72 sps:$4 sm:$0xff]   ;;  %v6099_v11 = vld [vmem:[%s8686_s1 + $0x848] ss:$16 sps:$4 sm:$0xff]  }
 0x18f   :  { %4432 = vmatprep.mubr.bf16.mxu1 %v6367_v4  ;;  %4354 = vmatpush1.bf16.msra.mxu0 %v6084_v62  ;;  %v6098_v8 = vld [vmem:[%s8686_s1 + $0x64c] ss:$16 sps:$4 sm:$0xff]   ;;  %v6102_v15 = vld [vmem:[%s8686_s1 + $0x628] ss:$16 sps:$4 sm:$0xff]   ;;  %v7856_v26 = vpop.f32.mrf.mxu0  ;;  %v7928_v53 = vpop.f32.mrf.mxu1 }
 0x190   :  { %4407 = vmatpush1.bf16.msra.mxu1 %v6087_v63  ;;  %4355 = vmatprep.subr.bf16.mxu0 %v6092_v1  ;;  %v6101_v9 = vld [vmem:[%s8686_s1 + $0x84c] ss:$16 sps:$4 sm:$0xff]   ;;  %v6105_v16 = vld [vmem:[%s8686_s1 + $0x828] ss:$16 sps:$4 sm:$0xff]  }
 0x191   :  { %4408 = vmatprep.subr.bf16.mxu1 %v6095_v2  ;;  %v6104_v13 = vld [vmem:[%s8686_s1 + $0x62c] ss:$16 sps:$4 sm:$0xff]   ;;  %v6108_v21 = vld [vmem:[%s8686_s1 + $0x608] ss:$16 sps:$4 sm:$0xff]   ;;  %v7872_v32 = vpop.f32.mrf.mxu0  ;;  %v7944_v59 = vpop.f32.mrf.mxu1 }
 0x192   :  { %v6107_v14 = vld [vmem:[%s8686_s1 + $0x82c] ss:$16 sps:$4 sm:$0xff]   ;;  %v6111_v22 = vld [vmem:[%s8686_s1 + $0x808] ss:$16 sps:$4 sm:$0xff]  }
 0x193   :  { %4356 = vmatpush1.bf16.msra.mxu0 %v6090_v5  ;;  %v6110_v18 = vld [vmem:[%s8686_s1 + $0x60c] ss:$16 sps:$4 sm:$0xff]   ;;  %v6114_v27 = vld [vmem:[%s8686_s1 + $0x7e8] ss:$16 sps:$4 sm:$0xff]   ;;  %v7888_v38 = vpop.f32.mrf.mxu0  ;;  %v7960_v2 = vpop.f32.mrf.mxu1 }
 0x194   :  { %4409 = vmatpush1.bf16.msra.mxu1 %v6093_v6  ;;  %4357 = vmatprep.subr.bf16.mxu0 %v6098_v8  ;;  %v6113_v19 = vld [vmem:[%s8686_s1 + $0x80c] ss:$16 sps:$4 sm:$0xff]   ;;  %v6117_v28 = vld [vmem:[%s8686_s1 + $0x9e8] ss:$16 sps:$4 sm:$0xff]  }
 0x195   :  { %4410 = vmatprep.subr.bf16.mxu1 %v6101_v9  ;;  %v6116_v23 = vld [vmem:[%s8686_s1 + $0x7ec] ss:$16 sps:$4 sm:$0xff]   ;;  %v6120_v33 = vld [vmem:[%s8686_s1 + $0x7c8] ss:$16 sps:$4 sm:$0xff]   ;;  %v7896_v41 = vpop.f32.mrf.mxu0  ;;  %v7970_v6 = vpop.f32.mrf.mxu1 }
 0x196   :  { %v6119_v24 = vld [vmem:[%s8686_s1 + $0x9ec] ss:$16 sps:$4 sm:$0xff]   ;;  %v6123_v34 = vld [vmem:[%s8686_s1 + $0x9c8] ss:$16 sps:$4 sm:$0xff]  }
 0x197   :  { %4358 = vmatpush1.bf16.msra.mxu0 %v6096_v10  ;;  %v6122_v29 = vld [vmem:[%s8686_s1 + $0x7cc] ss:$16 sps:$4 sm:$0xff]   ;;  %v6126_v39 = vld [vmem:[%s8686_s1 + $0x7a8] ss:$16 sps:$4 sm:$0xff]   ;;  %v7914_v48 = vpop.f32.mrf.mxu0 }
 0x198   :  { %4411 = vmatpush1.bf16.msra.mxu1 %v6099_v11  ;;  %4359 = vmatprep.subr.bf16.mxu0 %v6104_v13  ;;  %v6125_v30 = vld [vmem:[%s8686_s1 + $0x9cc] ss:$16 sps:$4 sm:$0xff]   ;;  %v6129_v40 = vld [vmem:[%s8686_s1 + $0x9a8] ss:$16 sps:$4 sm:$0xff]  }
 0x199   :  { %4412 = vmatprep.subr.bf16.mxu1 %v6107_v14  ;;  %v6128_v35 = vld [vmem:[%s8686_s1 + $0x7ac] ss:$16 sps:$4 sm:$0xff]   ;;  %v6132_v45 = vld [vmem:[%s8686_s1 + $0x788] ss:$16 sps:$4 sm:$0xff]   ;;  %v7930_v54 = vpop.f32.mrf.mxu0  ;;  %v7986_v14 = vpop.f32.mrf.mxu1 }
 0x19a   :  { %v6131_v36 = vld [vmem:[%s8686_s1 + $0x9ac] ss:$16 sps:$4 sm:$0xff]   ;;  %v6135_v46 = vld [vmem:[%s8686_s1 + $0x988] ss:$16 sps:$4 sm:$0xff]  }
 0x19b   :  { %4360 = vmatpush1.bf16.msra.mxu0 %v6102_v15  ;;  %v6134_v42 = vld [vmem:[%s8686_s1 + $0x78c] ss:$16 sps:$4 sm:$0xff]   ;;  %v6138_v51 = vld [vmem:[%s8686_s1 + $0x768] ss:$16 sps:$4 sm:$0xff]   ;;  %v7946_v60 = vpop.f32.mrf.mxu0 }
 0x19c   :  { %4413 = vmatpush1.bf16.msra.mxu1 %v6105_v16  ;;  %4361 = vmatprep.subr.bf16.mxu0 %v6110_v18  ;;  %v6137_v43 = vld [vmem:[%s8686_s1 + $0x98c] ss:$16 sps:$4 sm:$0xff]   ;;  %v6141_v52 = vld [vmem:[%s8686_s1 + $0x968] ss:$16 sps:$4 sm:$0xff]  }
 0x19d   :  { %4414 = vmatprep.subr.bf16.mxu1 %v6113_v19  ;;  %v6140_v49 = vld [vmem:[%s8686_s1 + $0x76c] ss:$16 sps:$4 sm:$0xff]   ;;  %v6144_v57 = vld [vmem:[%s8686_s1 + $0x748] ss:$16 sps:$4 sm:$0xff]   ;;  %v7962_v3 = vpop.f32.mrf.mxu0 }
 0x19e   :  { %v6143_v50 = vld [vmem:[%s8686_s1 + $0x96c] ss:$16 sps:$4 sm:$0xff]   ;;  %v6147_v58 = vld [vmem:[%s8686_s1 + $0x948] ss:$16 sps:$4 sm:$0xff]  }
 0x19f   :  { %4362 = vmatpush1.bf16.msra.mxu0 %v6108_v21  ;;  %v6146_v55 = vld [vmem:[%s8686_s1 + $0x74c] ss:$16 sps:$4 sm:$0xff]   ;;  %v6150_v63 = vld [vmem:[%s8686_s1 + $0x728] ss:$16 sps:$4 sm:$0xff]   ;;  %v7978_v10 = vpop.f32.mrf.mxu0 }
 0x1a0   :  { %4415 = vmatpush1.bf16.msra.mxu1 %v6111_v22  ;;  %4363 = vmatprep.subr.bf16.mxu0 %v6116_v23  ;;  %v6149_v56 = vld [vmem:[%s8686_s1 + $0x94c] ss:$16 sps:$4 sm:$0xff]   ;;  %v6153_v1 = vld [vmem:[%s8686_s1 + $0x928] ss:$16 sps:$4 sm:$0xff]   ;;  %v8002_v22 = vpop.f32.mrf.mxu1 }
 0x1a1   :  { %4416 = vmatprep.subr.bf16.mxu1 %v6119_v24  ;;  %v6152_v61 = vld [vmem:[%s8686_s1 + $0x72c] ss:$16 sps:$4 sm:$0xff]   ;;  %v6156_v8 = vld [vmem:[%s8686_s1 + $0x708] ss:$16 sps:$4 sm:$0xff]   ;;  %v7994_v18 = vpop.f32.mrf.mxu0 }
 0x1a2   :  { %v6155_v62 = vld [vmem:[%s8686_s1 + $0x92c] ss:$16 sps:$4 sm:$0xff]   ;;  %v6159_v9 = vld [vmem:[%s8686_s1 + $0x908] ss:$16 sps:$4 sm:$0xff]  }
 0x1a3   :  { %4364 = vmatpush2.bf16.msra.mxu0 %v6114_v27  ;;  %v6158_v4 = vld [vmem:[%s8686_s1 + $0x70c] ss:$16 sps:$4 sm:$0xff]   ;;  %v6162_v15 = vld [vmem:[%s8686_s1 + $0xae8] ss:$16 sps:$4 sm:$0xff]  }
 0x1a4   :  { %4417 = vmatpush2.bf16.msra.mxu1 %v6117_v28  ;;  %4365 = vmatprep.subr.bf16.mxu0 %v6122_v29  ;;  %v6161_v5 = vld [vmem:[%s8686_s1 + $0x90c] ss:$16 sps:$4 sm:$0xff]   ;;  %v6165_v16 = vld [vmem:[%s8686_s1 + $0xce8] ss:$16 sps:$4 sm:$0xff]   ;;  %v8016_v29 = vpop.f32.mrf.mxu0 }
 0x1a5   :  { %4418 = vmatprep.subr.bf16.mxu1 %v6125_v30  ;;  %v6164_v11 = vld [vmem:[%s8686_s1 + $0xaec] ss:$16 sps:$4 sm:$0xff]   ;;  %v6368_v23 = vld [vmem:[%s8685_s0 + $0x18] ss:$72 sps:$4 sm:$0xff]  }
 0x1a6   :  { %v6167_v13 = vld [vmem:[%s8686_s1 + $0xcec] ss:$16 sps:$4 sm:$0xff]   ;;  %v6369_v24 = vld [vmem:[%s8685_s0 + $0x20] ss:$72 sps:$4 sm:$0xff]  }
 0x1a7   :  { %4366 = vmatpush2.bf16.msra.mxu0 %v6120_v33  ;;  %v6170_v19 = vld [vmem:[%s8686_s1 + $0xacc] ss:$16 sps:$4 sm:$0xff]   ;;  %v6168_v27 = vld [vmem:[%s8686_s1 + $0xac8] ss:$16 sps:$4 sm:$0xff]  }
 0x1a8   :  { %4419 = vmatpush2.bf16.msra.mxu1 %v6123_v34  ;;  %4367 = vmatprep.subr.bf16.mxu0 %v6128_v35  ;;  %v6173_v21 = vld [vmem:[%s8686_s1 + $0xccc] ss:$16 sps:$4 sm:$0xff]   ;;  %v6171_v28 = vld [vmem:[%s8686_s1 + $0xcc8] ss:$16 sps:$4 sm:$0xff]  }
 0x1a9   :  { %4420 = vmatprep.subr.bf16.mxu1 %v6131_v36  ;;  %v6176_v30 = vld [vmem:[%s8686_s1 + $0xaac] ss:$16 sps:$4 sm:$0xff]   ;;  %v8030_v36 = vpop.f32.mrf.mxu1 }
 0x1aa   :  { %v6179_v33 = vld [vmem:[%s8686_s1 + $0xcac] ss:$16 sps:$4 sm:$0xff]  }
 0x1ab   :  { %4368 = vmatpush2.bf16.msra.mxu0 %v6126_v39  ;;  %v6370_v34 = vld [vmem:[%s8685_s0 + $0xac] ss:$72 sps:$4 sm:$0xff]   ;;  %v8032_v39 = vpop.f32.mrf.mxu0 }
 0x1ac   :  { %4421 = vmatpush2.bf16.msra.mxu1 %v6129_v40  ;;  %4369 = vmatprep.subr.bf16.mxu0 %v6134_v42  ;;  %v6371_v35 = vld [vmem:[%s8685_s0 + $0xb4] ss:$72 sps:$4 sm:$0xff]   ;;  %v6174_v40 = vld [vmem:[%s8686_s1 + $0xaa8] ss:$16 sps:$4 sm:$0xff]  }
 0x1ad   :  { %4422 = vmatprep.subr.bf16.mxu1 %v6137_v43  ;;  %v6177_v42 = vld [vmem:[%s8686_s1 + $0xca8] ss:$16 sps:$4 sm:$0xff]   ;;  %v8040_v43 = vpop.f32.mrf.mxu1 }
 0x1af   :  { %4370 = vmatpush2.bf16.msra.mxu0 %v6132_v45  ;;  %v6182_v45 = vld [vmem:[%s8686_s1 + $0xa8c] ss:$16 sps:$4 sm:$0xff]  }
 0x1b0   :  { %4423 = vmatpush2.bf16.msra.mxu1 %v6135_v46  ;;  %4371 = vmatprep.subr.bf16.mxu0 %v6140_v49  ;;  %v6185_v46 = vld [vmem:[%s8686_s1 + $0xc8c] ss:$16 sps:$4 sm:$0xff]   ;;  %v8048_v49 = vpop.f32.mrf.mxu0 }
 0x1b1   :  { %4424 = vmatprep.subr.bf16.mxu1 %v6143_v50  ;;  %v6372_v50 = vld [vmem:[%s8685_s0 + $0xa8] ss:$72 sps:$4 sm:$0xff]  }
 0x1b3   :  { %4372 = vmatpush2.bf16.msra.mxu0 %v6138_v51  ;;  %v6373_v51 = vld [vmem:[%s8685_s0 + $0xb0] ss:$72 sps:$4 sm:$0xff]  }
 0x1b4   :  { %4425 = vmatpush2.bf16.msra.mxu1 %v6141_v52  ;;  %4373 = vmatprep.subr.bf16.mxu0 %v6146_v55  ;;  %v6180_v52 = vld [vmem:[%s8686_s1 + $0xa88] ss:$16 sps:$4 sm:$0xff]  }
 0x1b5   :  { %4426 = vmatprep.subr.bf16.mxu1 %v6149_v56  ;;  %v6183_v55 = vld [vmem:[%s8686_s1 + $0xc88] ss:$16 sps:$4 sm:$0xff]   ;;  %v8062_v56 = vpop.f32.mrf.mxu1 }
 0x1b7   :  { %4374 = vmatpush2.bf16.msra.mxu0 %v6144_v57  ;;  %v6188_v57 = vld [vmem:[%s8686_s1 + $0xa6c] ss:$16 sps:$4 sm:$0xff]  }
 0x1b8   :  { %4427 = vmatpush2.bf16.msra.mxu1 %v6147_v58  ;;  %4375 = vmatprep.subr.bf16.mxu0 %v6152_v61  ;;  %v6191_v58 = vld [vmem:[%s8686_s1 + $0xc6c] ss:$16 sps:$4 sm:$0xff]  }
 0x1b9   :  { %4428 = vmatprep.subr.bf16.mxu1 %v6155_v62  ;;  %v6374_v61 = vld [vmem:[%s8685_s0 + $0x2c] ss:$72 sps:$4 sm:$0xff]  }
 0x1ba   :  { %v6375_v62 = vld [vmem:[%s8685_s0 + $0x34] ss:$72 sps:$4 sm:$0xff]  }
 0x1bb   :  { %4376 = vmatpush2.bf16.msra.mxu0 %v6150_v63  ;;  %v8076_v63 = vpop.f32.mrf.mxu0 }
 0x1bc   :  { %4429 = vmatpush2.bf16.msra.mxu1 %v6153_v1  ;;  %4377 = vmatprep.subr.bf16.mxu0 %v6158_v4  ;;  %v6186_v1 = vld [vmem:[%s8686_s1 + $0xa68] ss:$16 sps:$4 sm:$0xff]  }
 0x1bd   :  { %4430 = vmatprep.subr.bf16.mxu1 %v6161_v5  ;;  %v6189_v4 = vld [vmem:[%s8686_s1 + $0xc68] ss:$16 sps:$4 sm:$0xff]   ;;  %v8084_v5 = vpop.f32.mrf.mxu1 }
 0x1bf   :  { %4378 = vmatpush2.bf16.msra.mxu0 %v6156_v8  ;;  %v6194_v8 = vld [vmem:[%s8686_s1 + $0xa4c] ss:$16 sps:$4 sm:$0xff]  }
 0x1c0   :  { %4431 = vmatpush2.bf16.msra.mxu1 %v6159_v9  ;;  %4453 = vmatprep.subr.bf16.mxu0 %v6164_v11  ;;  %v6197_v9 = vld [vmem:[%s8686_s1 + $0xc4c] ss:$16 sps:$4 sm:$0xff]   ;;  %v8092_v11 = vpop.f32.mrf.mxu0 }
 0x1c1   :  { %4506 = vmatprep.subr.bf16.mxu1 %v6167_v13  ;;  %v6192_v13 = vld [vmem:[%s8686_s1 + $0xa48] ss:$16 sps:$4 sm:$0xff]  }
 0x1c2   :  { %4380 = vmatmul.mubr.bf16.vlgmr.msra.gmra.mxu0 %v6368_v23 }
 0x1c3   :  { %4433 = vmatmul.mubr.bf16.vlgmr.msra.gmra.mxu1 %v6369_v24  ;;  %4454 = vmatpush1.bf16.msra.mxu0 %v6162_v15  ;;  %v6195_v15 = vld [vmem:[%s8686_s1 + $0xc48] ss:$16 sps:$4 sm:$0xff]   ;;  %v8110_v24 = vpop.f32.mrf.mxu0 }
 0x1c4   :  { %4507 = vmatpush1.bf16.msra.mxu1 %v6165_v16  ;;  %4455 = vmatprep.subr.bf16.mxu0 %v6170_v19  ;;  %v8100_v16 = vpop.f32.mrf.mxu1  ;;  %v6200_v19 = vld [vmem:[%s8686_s1 + $0xa2c] ss:$16 sps:$4 sm:$0xff]  }
 0x1c5   :  { %4508 = vmatprep.subr.bf16.mxu1 %v6173_v21  ;;  %4389 = vmatprep.mubr.bf16.mxu0 %v6370_v34  ;;  %v6203_v21 = vld [vmem:[%s8686_s1 + $0xc2c] ss:$16 sps:$4 sm:$0xff]  }
 0x1c6   :  { %4442 = vmatprep.mubr.bf16.mxu1 %v6371_v35  ;;  %v8108_v23 = vpop.f32.mrf.mxu1  ;;  %v8126_v35 = vpop.f32.mrf.mxu0 }
 0x1c7   :  { %4456 = vmatpush1.bf16.msra.mxu0 %v6168_v27  ;;  %v6198_v27 = vld [vmem:[%s8686_s1 + $0xa28] ss:$16 sps:$4 sm:$0xff]  }
 0x1c8   :  { %4509 = vmatpush1.bf16.msra.mxu1 %v6171_v28  ;;  %4457 = vmatprep.subr.bf16.mxu0 %v6176_v30  ;;  %v6201_v28 = vld [vmem:[%s8686_s1 + $0xc28] ss:$16 sps:$4 sm:$0xff]   ;;  %v6206_v30 = vld [vmem:[%s8686_s1 + $0xa0c] ss:$16 sps:$4 sm:$0xff]   ;;  %v8124_v34 = vpop.f32.mrf.mxu1 }
 0x1c9   :  { %4510 = vmatprep.subr.bf16.mxu1 %v6179_v33  ;;  %v6209_v33 = vld [vmem:[%s8686_s1 + $0xc0c] ss:$16 sps:$4 sm:$0xff]  }
 0x1ca   :  { %4390 = vmatmul.mubr.bf16.gmra.mxu0 %v6372_v50  ;;  %v6215_v50 = vld [vmem:[%s8686_s1 + $0xdec] ss:$16 sps:$4 sm:$0xff]  }
 0x1cb   :  { %4443 = vmatmul.mubr.bf16.gmra.mxu1 %v6373_v51  ;;  %4458 = vmatpush1.bf16.msra.mxu0 %v6174_v40  ;;  %v631_v40 = vlaneseq  ;;  %v8140_v51 = vpop.f32.mrf.mxu1 }
 0x1cc   :  { %4511 = vmatpush1.bf16.msra.mxu1 %v6177_v42  ;;  %4459 = vmatprep.subr.bf16.mxu0 %v6182_v45  ;;  %v6204_v42 = vld [vmem:[%s8686_s1 + $0xa08] ss:$16 sps:$4 sm:$0xff]  }
 0x1cd   :  { %4512 = vmatprep.subr.bf16.mxu1 %v6185_v46  ;;  %4485 = vmatprep.mubr.bf16.mxu0 %v6374_v61  ;;  %v6207_v45 = vld [vmem:[%s8686_s1 + $0xc08] ss:$16 sps:$4 sm:$0xff]   ;;  %v6212_v46 = vld [vmem:[%s8686_s1 + $0xbec] ss:$16 sps:$4 sm:$0xff]  }
 0x1ce   :  { %4538 = vmatprep.mubr.bf16.mxu1 %v6375_v62  ;;  %v6218_v61 = vld [vmem:[%s8686_s1 + $0xbcc] ss:$16 sps:$4 sm:$0xff]  }
 0x1cf   :  { %4460 = vmatpush1.bf16.msra.mxu0 %v6180_v52  ;;  %v8142_v52 = vpop.f32.mrf.mxu0  ;;  %v6221_v62 = vld [vmem:[%s8686_s1 + $0xdcc] ss:$16 sps:$4 sm:$0xff]  }
 0x1d0   :  { %4513 = vmatpush1.bf16.msra.mxu1 %v6183_v55  ;;  %4461 = vmatprep.subr.bf16.mxu0 %v6188_v57  ;;  %v8144_v55 = vshrl.u32 %v631_v40, 7  ;;  %v6210_v57 = vld [vmem:[%s8686_s1 + $0xbe8] ss:$16 sps:$4 sm:$0xff]  }
 0x1d1   :  { %4514 = vmatprep.subr.bf16.mxu1 %v6191_v58  ;;  %v6213_v58 = vld [vmem:[%s8686_s1 + $0xde8] ss:$16 sps:$4 sm:$0xff]  }
 0x1d2   :  { %8694 = vst [vmem:[#allocation5_spill] sm:$0xff] %v8144_v55  ;;  %v6222_v40 = vld [vmem:[%s8686_s1 + $0xba8] ss:$16 sps:$4 sm:$0xff]  }
 0x1d3   :  { %4462 = vmatpush1.bf16.msra.mxu0 %v6186_v1  ;;  %v8158_v1 = vpop.f32.mrf.mxu1 }
 0x1d4   :  { %4515 = vmatpush1.bf16.msra.mxu1 %v6189_v4  ;;  %4463 = vmatprep.subr.bf16.mxu0 %v6194_v8  ;;  %v8160_v4 = vpop.f32.mrf.mxu0  ;;  %v633_v8 = vsub.s32 0, %v8144_v55 }
 0x1d5   :  { %4516 = vmatprep.subr.bf16.mxu1 %v6197_v9  ;;  %v6216_v9 = vld [vmem:[%s8686_s1 + $0xbc8] ss:$16 sps:$4 sm:$0xff]  }
 0x1d7   :  { %4464 = vmatpush1.bf16.msra.mxu0 %v6192_v13  ;;  %v6219_v13 = vld [vmem:[%s8686_s1 + $0xdc8] ss:$16 sps:$4 sm:$0xff]  }
 0x1d8   :  { %4517 = vmatpush1.bf16.msra.mxu1 %v6195_v15  ;;  %4465 = vmatprep.subr.bf16.mxu0 %v6200_v19  ;;  %v8172_v15 = vld [vmem:[%s8687_s2] sm:$0xf]  ;;  %v8174_v19 = vpop.f32.mrf.mxu1 }
 0x1d9   :  { %4518 = vmatprep.subr.bf16.mxu1 %v6203_v21  ;;  %8695 = vst [vmem:[#allocation6_spill] sm:$0xff] %v8172_v15  ;;  %v8176_v21 = vpop.f32.mrf.mxu0 }
 0x1db   :  { %4466 = vmatpush1.bf16.msra.mxu0 %v6198_v27  ;;  %v6224_v27 = vld [vmem:[%s8686_s1 + $0xbac] ss:$16 sps:$4 sm:$0xff]  }
 0x1dc   :  { %4519 = vmatpush1.bf16.msra.mxu1 %v6201_v28  ;;  %4467 = vmatprep.subr.bf16.mxu0 %v6206_v30  ;;  %v6227_v28 = vld [vmem:[%s8686_s1 + $0xdac] ss:$16 sps:$4 sm:$0xff]   ;;  %v637_v30 = vsub.s32 1, %v8144_v55 }
 0x1dd   :  { %4520 = vmatprep.subr.bf16.mxu1 %v6209_v33  ;;  %v634_v33 = vrot.slane %v8172_v15, %v633_v8  ;;  %v6231_v8 = vld [vmem:[%s8686_s1 + $0xd88] ss:$16 sps:$4 sm:$0xff]  }
 0x1df   :  { %4468 = vmatpush1.bf16.msra.mxu0 %v6204_v42  ;;  %v6225_v42 = vld [vmem:[%s8686_s1 + $0xda8] ss:$16 sps:$4 sm:$0xff]  }
 0x1e0   :  { %4521 = vmatpush1.bf16.msra.mxu1 %v6207_v45  ;;  %4469 = vmatprep.subr.bf16.mxu0 %v6212_v46  ;;  %v8192_v45 = vpop.f32.mrf.mxu1  ;;  %v8194_v46 = vpop.f32.mrf.mxu0 }
 0x1e1   :  { %4522 = vmatprep.subr.bf16.mxu1 %v6215_v50  ;;  %v6230_v50 = vld [vmem:[%s8686_s1 + $0xb8c] ss:$16 sps:$4 sm:$0xff]  }
 0x1e3   :  { %4470 = vmatpush2.bf16.msra.mxu0 %v6210_v57  ;;  %v6233_v57 = vld [vmem:[%s8686_s1 + $0xd8c] ss:$16 sps:$4 sm:$0xff]  }
 0x1e4   :  { %4523 = vmatpush2.bf16.msra.mxu1 %v6213_v58  ;;  %4471 = vmatprep.subr.bf16.mxu0 %v6218_v61  ;;  %v638_v58 = vrot.slane %v8172_v15, %v637_v30  ;;  %v3746_v61 = vadd.f32 %v7784_v0, %v634_v33  ;;  %v6236_v0 = vld [vmem:[%s8686_s1 + $0xb6c] ss:$16 sps:$4 sm:$0xff]  }
 0x1e5   :  { %4524 = vmatprep.subr.bf16.mxu1 %v6221_v62  ;;  %v6228_v62 = vld [vmem:[%s8686_s1 + $0xb88] ss:$16 sps:$4 sm:$0xff]  }
 0x1e6   :  { %v3799_v30 = vadd.f32 %v7854_v25, %v3746_v61  ;;  %v3752_v61 = vadd.f32 %v7832_v17, %v638_v58  ;;  %v6243_v17 = vld [vmem:[%s8686_s1 + $0xd48] ss:$16 sps:$4 sm:$0xff]  }
 0x1e7   :  { %4472 = vmatpush2.bf16.msra.mxu0 %v6216_v9  ;;  %v8210_v9 = vpop.f32.mrf.mxu1 }
 0x1e8   :  { %4525 = vmatpush2.bf16.msra.mxu1 %v6219_v13  ;;  %4473 = vmatprep.subr.bf16.mxu0 %v6224_v27  ;;  %v8212_v13 = vpop.f32.mrf.mxu0  ;;  %v6239_v27 = vld [vmem:[%s8686_s1 + $0xd6c] ss:$16 sps:$4 sm:$0xff]  }
 0x1e9   :  { %4526 = vmatprep.subr.bf16.mxu1 %v6227_v28  ;;  %v3748_v28 = vadd.f32 %v7804_v7, %v638_v58  ;;  %v6242_v7 = vld [vmem:[%s8686_s1 + $0xb4c] ss:$16 sps:$4 sm:$0xff]  }
 0x1ea   :  { %v8231_v15 = vpop.f32.mrf.mxu0 }
 0x1eb   :  { %4474 = vmatpush2.bf16.msra.mxu0 %v6222_v40  ;;  %v3750_v40 = vadd.f32 %v7818_v12, %v634_v33  ;;  %v6245_v12 = vld [vmem:[%s8686_s1 + $0xd4c] ss:$16 sps:$4 sm:$0xff]   ;;  %v3801_v25 = vadd.f32 %v7870_v31, %v3748_v28  ;;  %v3758_v31 = vadd.f32 %v7856_v26, %v638_v58 }
 0x1ec   :  { %4527 = vmatpush2.bf16.msra.mxu1 %v6225_v42  ;;  %4475 = vmatprep.subr.bf16.mxu0 %v6230_v50  ;;  %v6234_v42 = vld [vmem:[%s8686_s1 + $0xb68] ss:$16 sps:$4 sm:$0xff]  }
 0x1ed   :  { %4528 = vmatprep.subr.bf16.mxu1 %v6233_v57  ;;  %v6237_v50 = vld [vmem:[%s8686_s1 + $0xd68] ss:$16 sps:$4 sm:$0xff]   ;;  %v8229_v57 = vpop.f32.mrf.mxu1 }
 0x1ee   :  { %8696 = vst [vmem:[#allocation7_spill] sm:$0xff] %v8229_v57  ;;  %v6240_v57 = vld [vmem:[%s8686_s1 + $0xb48] ss:$16 sps:$4 sm:$0xff]  }
 0x1ef   :  { %4476 = vmatpush2.bf16.msra.mxu0 %v6228_v62  ;;  %v3852_v62 = vadd.f32 %v7896_v41, %v3799_v30  ;;  %v8243_v55 = vpop.f32.mrf.mxu1  ;;  %v8254_v41 = vpop.f32.mrf.mxu0 }
 0x1f0   :  { %4529 = vmatpush2.bf16.msra.mxu1 %v6231_v8  ;;  %4477 = vmatprep.subr.bf16.mxu0 %v6236_v0  ;;  %v3756_v8 = vadd.f32 %v7840_v20, %v634_v33  ;;  %v3803_v0 = vadd.f32 %v7886_v37, %v3750_v40  ;;  %v6248_v20 = vld [vmem:[%s8686_s1 + $0xb2c] ss:$16 sps:$4 sm:$0xff]   ;;  %v3760_v40 = vadd.f32 %v7872_v32, %v634_v33 }
 0x1f1   :  { %4530 = vmatprep.subr.bf16.mxu1 %v6239_v27  ;;  %v3854_v27 = vadd.f32 %v7914_v48, %v3801_v25  ;;  %v6251_v37 = vld [vmem:[%s8686_s1 + $0xd2c] ss:$16 sps:$4 sm:$0xff]   ;;  %v3805_v48 = vadd.f32 %v7904_v44, %v3752_v61  ;;  %v3905_v28 = vadd.f32 %v7970_v6, %v3852_v62  ;;  %v6246_v44 = vld [vmem:[%s8686_s1 + $0xb28] ss:$16 sps:$4 sm:$0xff]   ;;  %v3811_v32 = vadd.f32 %v7928_v53, %v3758_v31 }
 0x1f2   :  { %v3856_v30 = vadd.f32 %v7930_v54, %v3803_v0  ;;  %v3809_v26 = vadd.f32 %v7912_v47, %v3756_v8  ;;  %v6249_v47 = vld [vmem:[%s8686_s1 + $0xd28] ss:$16 sps:$4 sm:$0xff]   ;;  %v3762_v54 = vadd.f32 %v7888_v38, %v638_v58  ;;  %v3813_v38 = vadd.f32 %v7944_v59, %v3760_v40 }
 0x1f3   :  { %4478 = vmatpush2.bf16.msra.mxu0 %v6234_v42  ;;  %v8267_v42 = vpop.f32.mrf.mxu1  ;;  %v6255_v59 = vld [vmem:[%s8686_s1 + $0xd08] ss:$16 sps:$4 sm:$0xff]  }
 0x1f4   :  { %4531 = vmatpush2.bf16.msra.mxu1 %v6237_v50  ;;  %4479 = vmatprep.subr.bf16.mxu0 %v6242_v7  ;;  %v3907_v50 = vadd.f32 %v7986_v14, %v3854_v27  ;;  %v3858_v7 = vadd.f32 %v7946_v60, %v3805_v48  ;;  %v3862_v6 = vadd.f32 %v7962_v3, %v3809_v26  ;;  %v8281_v14 = vpop.f32.mrf.mxu0  ;;  %v6254_v60 = vld [vmem:[%s8686_s1 + $0xb0c] ss:$16 sps:$4 sm:$0xff]   ;;  %v6376_v40 = vld [vmem:[%s8685_s0 + $0x28] ss:$72 sps:$4 sm:$0xff]  }
 0x1f5   :  { %4532 = vmatprep.subr.bf16.mxu1 %v6245_v12  ;;  %v3958_v12 = vadd.f32 %v8032_v39, %v3905_v28  ;;  %v6257_v39 = vld [vmem:[%s8686_s1 + $0xd0c] ss:$16 sps:$4 sm:$0xff]   ;;  %v3909_v33 = vadd.f32 %v8002_v22, %v3856_v30  ;;  %v3864_v3 = vadd.f32 %v7978_v10, %v3811_v32  ;;  %v8293_v58 = vpop.f32.mrf.mxu1  ;;  %v6252_v22 = vld [vmem:[%s8686_s1 + $0xb08] ss:$16 sps:$4 sm:$0xff]   ;;  %v3815_v10 = vadd.f32 %v7960_v2, %v3762_v54 }
 0x1f6   :  { %v3960_v53 = vadd.f32 %v8048_v49, %v3907_v50  ;;  %v3915_v49 = vadd.f32 %v8040_v43, %v3862_v6  ;;  %v8307_v62 = vpop.f32.mrf.mxu0  ;;  %v6379_v54 = vld [vmem:[%s8685_s0 + $0xc4] ss:$72 sps:$4 sm:$0xff]  }
 0x1f7   :  { %4480 = vmatpush2.bf16.msra.mxu0 %v6240_v57  ;;  %v3911_v57 = vadd.f32 %v8030_v36, %v3858_v7  ;;  %v4011_v25 = vadd.f32 %v8108_v23, %v3958_v12  ;;  %v3962_v61 = vadd.f32 %v8076_v63, %v3909_v33  ;;  %v3866_v36 = vadd.f32 %v7994_v18, %v3813_v38  ;;  %v6260_v63 = vld [vmem:[%s8686_s1 + $0xeec] ss:$16 sps:$4 sm:$0xff]   ;;  %v6270_v33 = vld [vmem:[%s8686_s1 + $0xea8] ss:$16 sps:$4 sm:$0xff]  }
 0x1f8   :  { %4533 = vmatpush2.bf16.msra.mxu1 %v6243_v17  ;;  %4481 = vmatprep.subr.bf16.mxu0 %v6248_v20  ;;  %v6263_v23 = vld [vmem:[%s8686_s1 + $0x10ec] ss:$16 sps:$4 sm:$0xff]   ;;  %v4013_v8 = vadd.f32 %v8124_v34, %v3960_v53  ;;  %v3917_v18 = vadd.f32 %v8062_v56, %v3864_v3  ;;  %v3868_v0 = vadd.f32 %v8016_v29, %v3815_v10  ;;  %v4122_v17 = vpop.f32.mrf.mxu1  ;;  %v6258_v34 = vld [vmem:[%s8686_s1 + $0xee8] ss:$16 sps:$4 sm:$0xff]  }
 0x1f9   :  { %4534 = vmatprep.subr.bf16.mxu1 %v6251_v37  ;;  %v3964_v2 = vadd.f32 %v8092_v11, %v3911_v57  ;;  %v4064_v43 = vadd.f32 %v8176_v21, %v4011_v25  ;;  %v3968_v27 = vadd.f32 %v8110_v24, %v3915_v49  ;;  %v4015_v31 = vadd.f32 %v8140_v51, %v3962_v61  ;;  %v6261_v11 = vld [vmem:[%s8686_s1 + $0x10e8] ss:$16 sps:$4 sm:$0xff]   ;;  %v8331_v21 = vpop.f32.mrf.mxu0  ;;  %v6266_v51 = vld [vmem:[%s8686_s1 + $0xecc] ss:$16 sps:$4 sm:$0xff]  }
 0x1fa   :  { %v4066_v20 = vadd.f32 %v8194_v46, %v4013_v8  ;;  %v3919_v56 = vadd.f32 %v8084_v5, %v3866_v36  ;;  %v3970_v29 = vadd.f32 %v8126_v35, %v3917_v18  ;;  %v4126_v24 = vpop.f32.mrf.mxu1  ;;  %v6269_v46 = vld [vmem:[%s8686_s1 + $0x10cc] ss:$16 sps:$4 sm:$0xff]   ;;  %v3921_v35 = vadd.f32 %v8100_v16, %v3868_v0  ;;  %v6381_v18 = vld [vmem:[%s8685_s0 + $0xc0] ss:$72 sps:$4 sm:$0xff]  }
 0x1fb   :  { %4482 = vmatpush2.bf16.msra.mxu0 %v6246_v44  ;;  %v4017_v37 = vadd.f32 %v8158_v1, %v3964_v2  ;;  %v4117_v48 = vadd.f32 %v8243_v55, %v4064_v43  ;;  %v4068_v5 = vadd.f32 %v8212_v13, %v4015_v31  ;;  %v4021_v28 = vadd.f32 %v8174_v19, %v3968_v27  ;;  %v6377_v1 = vld [vmem:[%s8685_s0 + $0x30] ss:$72 sps:$4 sm:$0xff]   ;;  %v6281_v10 = vld [vmem:[%s8686_s1 + $0x108c] ss:$16 sps:$4 sm:$0xff]  }
 0x1fc   :  { %4535 = vmatpush2.bf16.msra.mxu1 %v6249_v47  ;;  %4483 = vmatprep.subr.bf16.mxu0 %v6254_v60  ;;  %v3972_v30 = vadd.f32 %v8142_v52, %v3919_v56  ;;  %v4119_v55 = vadd.f32 %v8267_v42, %v4066_v20  ;;  %v6264_v52 = vld [vmem:[%s8686_s1 + $0xec8] ss:$16 sps:$4 sm:$0xff]   ;;  %v4023_v50 = vadd.f32 %v8192_v45, %v3970_v29  ;;  %v4128_v42 = vpop.f32.mrf.mxu1  ;;  %v6275_v47 = vld [vmem:[%s8686_s1 + $0x10ac] ss:$16 sps:$4 sm:$0xff]  }
 0x1fd   :  { %4536 = vmatprep.subr.bf16.mxu1 %v6257_v39  ;;  %v4070_v13 = vadd.f32 %v8231_v15, %v4017_v37  ;;  %v6267_v19 = vld [vmem:[%s8686_s1 + $0x10c8] ss:$16 sps:$4 sm:$0xff]   ;;  %v3974_v7 = vadd.f32 %v8160_v4, %v3921_v35  ;;  %v4074_v12 = vadd.f32 %v8254_v41, %v4021_v28  ;;  %v6272_v15 = vld [vmem:[%s8686_s1 + $0xeac] ss:$16 sps:$4 sm:$0xff]   ;;  %v4121_v32 = vadd.f32 %v8293_v58, %v4068_v5 }
 0x1fe   :  { %v6378_v41 = vld [vmem:[%s8685_s0 + $0xbc] ss:$72 sps:$4 sm:$0xff]   ;;  %v4025_v6 = vadd.f32 %v8210_v9, %v3972_v30  ;;  %v4076_v60 = vadd.f32 %v8281_v14, %v4023_v50  ;;  %v6273_v9 = vld [vmem:[%s8686_s1 + $0x10a8] ss:$16 sps:$4 sm:$0xff]   ;;  %v8697_v14 = vld [vmem:[#allocation7_spill] sm:$0xff]  ;;  %v4130_v61 = vpop.f32.mrf.mxu1 }
 0x1ff   :  { %4484 = vmatpush2.bf16.msra.mxu0 %v6252_v22  ;;  %v4123_v53 = vadd.f32 %v4122_v17, %v4070_v13  ;;  %v4027_v58 = vadd.f32 %v8697_v14, %v3974_v7  ;;  %v4127_v57 = vadd.f32 %v4126_v24, %v4074_v12  ;;  %v6380_v43 = vld [vmem:[%s8685_s0 + $0xb8] ss:$72 sps:$4 sm:$0xff]   ;;  %v6284_v29 = vld [vmem:[%s8686_s1 + $0xe6c] ss:$16 sps:$4 sm:$0xff]  }
 0x200   :  { %4537 = vmatpush2.bf16.msra.mxu1 %v6255_v59  ;;  %4559 = vmatprep.subr.bf16.mxu0 %v6260_v63  ;;  %v4078_v25 = vadd.f32 %v8307_v62, %v4025_v6  ;;  %v6278_v59 = vld [vmem:[%s8686_s1 + $0xe8c] ss:$16 sps:$4 sm:$0xff]   ;;  %v6276_v0 = vld [vmem:[%s8686_s1 + $0xe88] ss:$16 sps:$4 sm:$0xff]  }
 0x201   :  { %4612 = vmatprep.subr.bf16.mxu1 %v6263_v23  ;;  %v4129_v23 = vadd.f32 %v4128_v42, %v4076_v60  ;;  %v4080_v27 = vadd.f32 %v8331_v21, %v4027_v58  ;;  %v6279_v20 = vld [vmem:[%s8686_s1 + $0x1088] ss:$16 sps:$4 sm:$0xff]   ;;  %v6287_v24 = vld [vmem:[%s8686_s1 + $0x106c] ss:$16 sps:$4 sm:$0xff]  }
 0x202   :  { %v4169_v26 = vpop.f32.mrf.mxu0  ;;  %4486 = vmatmul.mubr.bf16.vlgmr.msra.gmra.mxu0 %v6376_v40  ;;  %v6383_v5 = vld [vmem:[%s8685_s0 + $0x44] ss:$72 sps:$4 sm:$0xff]   ;;  %v6282_v30 = vld [vmem:[%s8686_s1 + $0xe68] ss:$16 sps:$4 sm:$0xff]  }
 0x203   :  { %4539 = vmatmul.mubr.bf16.vlgmr.msra.gmra.mxu1 %v6377_v1  ;;  %v4170_v16 = vadd.f32 %v4169_v26, %v4117_v48  ;;  %4560 = vmatpush1.bf16.msra.mxu0 %v6258_v34  ;;  %v4131_v34 = vadd.f32 %v4130_v61, %v4078_v25  ;;  %v6382_v48 = vld [vmem:[%s8685_s0 + $0x3c] ss:$72 sps:$4 sm:$0xff]   ;;  %v6294_v6 = vld [vmem:[%s8686_s1 + $0xe28] ss:$16 sps:$4 sm:$0xff]  }
 0x204   :  { %4613 = vmatpush1.bf16.msra.mxu1 %v6261_v11  ;;  %v4171_v44 = vpop.f32.mrf.mxu0  ;;  %4561 = vmatprep.subr.bf16.mxu0 %v6266_v51  ;;  %v4132_v11 = vpop.f32.mrf.mxu1  ;;  %v6297_v60 = vld [vmem:[%s8686_s1 + $0x1028] ss:$16 sps:$4 sm:$0xff]   ;;  %v6317_v25 = vld [vmem:[%s8686_s1 + $0x11cc] ss:$16 sps:$4 sm:$0xff]  }
 0x205   :  { %4614 = vmatprep.subr.bf16.mxu1 %v6269_v46  ;;  %4665 = vst [vmem:[%s8688_s3] sm:$0xff] %v4170_v16  ;;  %v4697_v4 = vmul.f32 0.01, %v4170_v16  ;;  %v4172_v45 = vadd.f32 %v4171_v44, %v4119_v55  ;;  %4495 = vmatprep.mubr.bf16.mxu0 %v6378_v41  ;;  %vm4681_vm0 = vcmp.ge.f32.partialorder %v4170_v16, 0.0  ;;  %v4133_v26 = vadd.f32 %v4132_v11, %v4080_v27  ;;  %v6285_v55 = vld [vmem:[%s8686_s1 + $0x1068] ss:$16 sps:$4 sm:$0xff]  }
 0x206   :  { %4548 = vmatprep.mubr.bf16.mxu1 %v6379_v54  ;;  %v4173_v39 = vpop.f32.mrf.mxu0  ;;  %v6288_v44 = vld [vmem:[%s8686_s1 + $0xe48] ss:$16 sps:$4 sm:$0xff]   ;;  %v6338_v27 = vld [vmem:[%s8686_s1 + $0xf4c] ss:$16 sps:$4 sm:$0xff]  }
 0x207   :  { %4666 = vst [vmem:[%s8688_s3 + $0x8] sm:$0xff] %v4172_v45  ;;  %vm4682_vm1 = vcmp.ge.f32.partialorder %v4172_v45, 0.0  ;;  %v4698_v38 = vmul.f32 0.01, %v4172_v45  ;;  %v4174_v3 = vadd.f32 %v4173_v39, %v4121_v32  ;;  %4562 = vmatpush1.bf16.msra.mxu0 %v6264_v52  ;;  %v4713_v49 = vsel %vm4681_vm0, %v4170_v16, %v4697_v4  ;;  %v6290_v16 = vld [vmem:[%s8686_s1 + $0xe4c] ss:$16 sps:$4 sm:$0xff]  }
 0x208   :  { %4615 = vmatpush1.bf16.msra.mxu1 %v6267_v19  ;;  %v4175_v22 = vpop.f32.mrf.mxu0  ;;  %4563 = vmatprep.subr.bf16.mxu0 %v6272_v15  ;;  %v6293_v52 = vld [vmem:[%s8686_s1 + $0x104c] ss:$16 sps:$4 sm:$0xff]   ;;  %v6306_v14 = vld [vmem:[%s8686_s1 + $0xfe8] ss:$16 sps:$4 sm:$0xff]  }
 0x209   :  { %4616 = vmatprep.subr.bf16.mxu1 %v6275_v47  ;;  %v4714_v36 = vsel %vm4682_vm1, %v4172_v45, %v4698_v38  ;;  %4669 = vst [vmem:[%s8688_s3 + $0x20] sm:$0xff] %v4174_v3  ;;  %v4701_v62 = vmul.f32 0.01, %v4174_v3  ;;  %v4176_v63 = vadd.f32 %v4175_v22, %v4123_v53  ;;  %vm4685_vm2 = vcmp.ge.f32.partialorder %v4174_v3, 0.0  ;;  %v6291_v47 = vld [vmem:[%s8686_s1 + $0x1048] ss:$16 sps:$4 sm:$0xff]  }
 0x20a   :  { %v5425_v8 = vpack.c.bf16 %v4714_v36, %v4713_v49  ;;  %v4179_v2 = vpop.f32.mrf.mxu0  ;;  %4496 = vmatmul.mubr.bf16.gmra.mxu0 %v6380_v43  ;;  %v6296_v32 = vld [vmem:[%s8686_s1 + $0xe2c] ss:$16 sps:$4 sm:$0xff]   ;;  %v6300_v53 = vld [vmem:[%s8686_s1 + $0xe08] ss:$16 sps:$4 sm:$0xff]  }
 0x20b   :  { %4549 = vmatmul.mubr.bf16.gmra.mxu1 %v6381_v18  ;;  %4670 = vst [vmem:[%s8688_s3 + $0x28] sm:$0xff] %v4176_v63  ;;  %vm4686_vm3 = vcmp.ge.f32.partialorder %v4176_v63, 0.0  ;;  %v4702_v17 = vmul.f32 0.01, %v4176_v63  ;;  %v4180_v31 = vadd.f32 %v4179_v2, %v4127_v57  ;;  %4564 = vmatpush1.bf16.msra.mxu0 %v6270_v33  ;;  %v4717_v21 = vsel %vm4685_vm2, %v4174_v3, %v4701_v62  ;;  %v6299_v4 = vld [vmem:[%s8686_s1 + $0x102c] ss:$16 sps:$4 sm:$0xff]  }
 0x20c   :  { %4617 = vmatpush1.bf16.msra.mxu1 %v6273_v9  ;;  %4777 = vst [vmem:[#allocation2] sm:$0xff] %v5425_v8  ;;  %v4181_v56 = vpop.f32.mrf.mxu0  ;;  %4565 = vmatprep.subr.bf16.mxu0 %v6278_v59  ;;  %v6302_v39 = vld [vmem:[%s8686_s1 + $0xe0c] ss:$16 sps:$4 sm:$0xff]   ;;  %v6303_v38 = vld [vmem:[%s8686_s1 + $0x1008] ss:$16 sps:$4 sm:$0xff]  }
 0x20d   :  { %4618 = vmatprep.subr.bf16.mxu1 %v6281_v10  ;;  %v4718_v51 = vsel %vm4686_vm3, %v4176_v63, %v4702_v17  ;;  %4673 = vst [vmem:[%s8688_s3 + $0x40] sm:$0xff] %v4180_v31  ;;  %v4705_v46 = vmul.f32 0.01, %v4180_v31  ;;  %v4182_v37 = vadd.f32 %v4181_v56, %v4129_v23  ;;  %4591 = vmatprep.mubr.bf16.mxu0 %v6382_v48  ;;  %vm4689_vm4 = vcmp.ge.f32.partialorder %v4180_v31, 0.0  ;;  %v6305_v33 = vld [vmem:[%s8686_s1 + $0x100c] ss:$16 sps:$4 sm:$0xff]  }
 0x20e   :  { %4644 = vmatprep.mubr.bf16.mxu1 %v6383_v5  ;;  %v5427_v35 = vpack.c.bf16 %v4718_v51, %v4717_v21  ;;  %v4183_v28 = vpop.f32.mrf.mxu0  ;;  %v6308_v3 = vld [vmem:[%s8686_s1 + $0xfec] ss:$16 sps:$4 sm:$0xff]   ;;  %v6309_v58 = vld [vmem:[%s8686_s1 + $0x11e8] ss:$16 sps:$4 sm:$0xff]  }
 0x20f   :  { %4674 = vst [vmem:[%s8688_s3 + $0x48] sm:$0xff] %v4182_v37  ;;  %vm4690_vm5 = vcmp.ge.f32.partialorder %v4182_v37, 0.0  ;;  %v4706_v40 = vmul.f32 0.01, %v4182_v37  ;;  %v4184_v1 = vadd.f32 %v4183_v28, %v4131_v34  ;;  %4566 = vmatpush1.bf16.msra.mxu0 %v6276_v0  ;;  %v4721_v19 = vsel %vm4689_vm4, %v4180_v31, %v4705_v46  ;;  %v6311_v9 = vld [vmem:[%s8686_s1 + $0x11ec] ss:$16 sps:$4 sm:$0xff]  }
 0x210   :  { %4619 = vmatpush1.bf16.msra.mxu1 %v6279_v20  ;;  %4779 = vst [vmem:[#allocation2 + $0x10] sm:$0xff] %v5427_v35  ;;  %v4185_v13 = vpop.f32.mrf.mxu0  ;;  %4567 = vmatprep.subr.bf16.mxu0 %v6284_v29  ;;  %v6314_v57 = vld [vmem:[%s8686_s1 + $0xfcc] ss:$16 sps:$4 sm:$0xff]   ;;  %v6312_v61 = vld [vmem:[%s8686_s1 + $0xfc8] ss:$16 sps:$4 sm:$0xff]  }
 0x211   :  { %4620 = vmatprep.subr.bf16.mxu1 %v6287_v24  ;;  %v4722_v50 = vsel %vm4690_vm5, %v4182_v37, %v4706_v40  ;;  %4677 = vst [vmem:[%s8688_s3 + $0x60] sm:$0xff] %v4184_v1  ;;  %v4709_v7 = vmul.f32 0.01, %v4184_v1  ;;  %v4186_v12 = vadd.f32 %v4185_v13, %v4133_v26  ;;  %vm4693_vm6 = vcmp.ge.f32.partialorder %v4184_v1, 0.0  ;;  %v6315_v22 = vld [vmem:[%s8686_s1 + $0x11c8] ss:$16 sps:$4 sm:$0xff]   ;;  %v4222_v26 = vpop.f32.mrf.mxu1 }
 0x212   :  { %v5429_v42 = vpack.c.bf16 %v4722_v50, %v4721_v19  ;;  %v6320_v59 = vld [vmem:[%s8686_s1 + $0xfac] ss:$16 sps:$4 sm:$0xff]   ;;  %v6318_v49 = vld [vmem:[%s8686_s1 + $0xfa8] ss:$16 sps:$4 sm:$0xff]  }
 0x213   :  { %4678 = vst [vmem:[%s8688_s3 + $0x68] sm:$0xff] %v4186_v12  ;;  %vm4694_vm7 = vcmp.ge.f32.partialorder %v4186_v12, 0.0  ;;  %v4710_v15 = vmul.f32 0.01, %v4186_v12  ;;  %4568 = vmatpush1.bf16.msra.mxu0 %v6282_v30  ;;  %v4725_v45 = vsel %vm4693_vm6, %v4184_v1, %v4709_v7  ;;  %v6323_v10 = vld [vmem:[%s8686_s1 + $0x11ac] ss:$16 sps:$4 sm:$0xff]   ;;  %v4224_v40 = vpop.f32.mrf.mxu1 }
 0x214   :  { %4621 = vmatpush1.bf16.msra.mxu1 %v6285_v55  ;;  %4781 = vst [vmem:[#allocation2 + $0x20] sm:$0xff] %v5429_v42  ;;  %4569 = vmatprep.subr.bf16.mxu0 %v6290_v16  ;;  %v6321_v36 = vld [vmem:[%s8686_s1 + $0x11a8] ss:$16 sps:$4 sm:$0xff]   ;;  %v6326_v62 = vld [vmem:[%s8686_s1 + $0xf8c] ss:$16 sps:$4 sm:$0xff]  }
 0x215   :  { %4622 = vmatprep.subr.bf16.mxu1 %v6293_v52  ;;  %v4726_v41 = vsel %vm4694_vm7, %v4186_v12, %v4710_v15  ;;  %v6329_v63 = vld [vmem:[%s8686_s1 + $0x118c] ss:$16 sps:$4 sm:$0xff]   ;;  %v6324_v23 = vld [vmem:[%s8686_s1 + $0xf88] ss:$16 sps:$4 sm:$0xff]   ;;  %v4226_v1 = vpop.f32.mrf.mxu1 }
 0x216   :  { %v5431_v54 = vpack.c.bf16 %v4726_v41, %v4725_v45  ;;  %v6327_v8 = vld [vmem:[%s8686_s1 + $0x1188] ss:$16 sps:$4 sm:$0xff]   ;;  %v6332_v2 = vld [vmem:[%s8686_s1 + $0xf6c] ss:$16 sps:$4 sm:$0xff]  }
 0x217   :  { %4570 = vmatpush1.bf16.msra.mxu0 %v6288_v44  ;;  %v6335_v43 = vld [vmem:[%s8686_s1 + $0x116c] ss:$16 sps:$4 sm:$0xff]   ;;  %v6330_v18 = vld [vmem:[%s8686_s1 + $0xf68] ss:$16 sps:$4 sm:$0xff]   ;;  %v4228_v55 = vpop.f32.mrf.mxu1 }
 0x218   :  { %4623 = vmatpush1.bf16.msra.mxu1 %v6291_v47  ;;  %4783 = vst [vmem:[#allocation2 + $0x30] sm:$0xff] %v5431_v54  ;;  %4571 = vmatprep.subr.bf16.mxu0 %v6296_v32  ;;  %v6333_v0 = vld [vmem:[%s8686_s1 + $0x1168] ss:$16 sps:$4 sm:$0xff]   ;;  %v6341_v17 = vld [vmem:[%s8686_s1 + $0x114c] ss:$16 sps:$4 sm:$0xff]  }
 0x219   :  { %4624 = vmatprep.subr.bf16.mxu1 %v6299_v4  ;;  %v6336_v31 = vld [vmem:[%s8686_s1 + $0xf48] ss:$16 sps:$4 sm:$0xff]   ;;  %v6344_v34 = vld [vmem:[%s8686_s1 + $0xf2c] ss:$16 sps:$4 sm:$0xff]   ;;  %v4232_v13 = vpop.f32.mrf.mxu1 }
 0x21a   :  { %v6339_v20 = vld [vmem:[%s8686_s1 + $0x1148] ss:$16 sps:$4 sm:$0xff]   ;;  %v6347_v11 = vld [vmem:[%s8686_s1 + $0x112c] ss:$16 sps:$4 sm:$0xff]  }
 0x21b   :  { %4572 = vmatpush1.bf16.msra.mxu0 %v6294_v6  ;;  %v6342_v56 = vld [vmem:[%s8686_s1 + $0xf28] ss:$16 sps:$4 sm:$0xff]   ;;  %v6350_v24 = vld [vmem:[%s8686_s1 + $0xf0c] ss:$16 sps:$4 sm:$0xff]   ;;  %v8600_v16 = vpop.f32.mrf.mxu1 }
 0x21c   :  { %4625 = vmatpush1.bf16.msra.mxu1 %v6297_v60  ;;  %4573 = vmatprep.subr.bf16.mxu0 %v6302_v39  ;;  %v6345_v29 = vld [vmem:[%s8686_s1 + $0x1128] ss:$16 sps:$4 sm:$0xff]   ;;  %v6353_v21 = vld [vmem:[%s8686_s1 + $0x110c] ss:$16 sps:$4 sm:$0xff]  }
 0x21d   :  { %4626 = vmatprep.subr.bf16.mxu1 %v6305_v33  ;;  %v6348_v51 = vld [vmem:[%s8686_s1 + $0xf08] ss:$16 sps:$4 sm:$0xff]   ;;  %v6386_v5 = vld [vmem:[%s8685_s0 + $0xcc] ss:$72 sps:$4 sm:$0xff]   ;;  %v8602_v52 = vpop.f32.mrf.mxu1 }
 0x21e   :  { %v6351_v46 = vld [vmem:[%s8686_s1 + $0x1108] ss:$16 sps:$4 sm:$0xff]   ;;  %v6387_v35 = vld [vmem:[%s8685_s0 + $0xd4] ss:$72 sps:$4 sm:$0xff]  }
 0x21f   :  { %4574 = vmatpush1.bf16.msra.mxu0 %v6300_v53  ;;  %v6384_v37 = vld [vmem:[%s8685_s0 + $0x38] ss:$72 sps:$4 sm:$0xff]   ;;  %v6388_v28 = vld [vmem:[%s8685_s0 + $0xc8] ss:$72 sps:$4 sm:$0xff]   ;;  %v8604_v50 = vpop.f32.mrf.mxu1 }
 0x220   :  { %4627 = vmatpush1.bf16.msra.mxu1 %v6303_v38  ;;  %4575 = vmatprep.subr.bf16.mxu0 %v6308_v3  ;;  %v6385_v48 = vld [vmem:[%s8685_s0 + $0x40] ss:$72 sps:$4 sm:$0xff]   ;;  %v6389_v30 = vld [vmem:[%s8685_s0 + $0xd0] ss:$72 sps:$4 sm:$0xff]  }
 0x221   :  { %4628 = vmatprep.subr.bf16.mxu1 %v6311_v9 }
 0x223   :  { %4576 = vmatpush2.bf16.msra.mxu0 %v6306_v14 }
 0x224   :  { %4629 = vmatpush2.bf16.msra.mxu1 %v6309_v58  ;;  %4577 = vmatprep.subr.bf16.mxu0 %v6314_v57 }
 0x225   :  { %4630 = vmatprep.subr.bf16.mxu1 %v6317_v25 }
 0x227   :  { %4578 = vmatpush2.bf16.msra.mxu0 %v6312_v61 }
 0x228   :  { %4631 = vmatpush2.bf16.msra.mxu1 %v6315_v22  ;;  %4579 = vmatprep.subr.bf16.mxu0 %v6320_v59 }
 0x229   :  { %4632 = vmatprep.subr.bf16.mxu1 %v6323_v10 }
 0x22b   :  { %4580 = vmatpush2.bf16.msra.mxu0 %v6318_v49 }
 0x22c   :  { %4633 = vmatpush2.bf16.msra.mxu1 %v6321_v36  ;;  %4581 = vmatprep.subr.bf16.mxu0 %v6326_v62 }
 0x22d   :  { %4634 = vmatprep.subr.bf16.mxu1 %v6329_v63 }
 0x22f   :  { %4582 = vmatpush2.bf16.msra.mxu0 %v6324_v23 }
 0x230   :  { %4635 = vmatpush2.bf16.msra.mxu1 %v6327_v8  ;;  %4583 = vmatprep.subr.bf16.mxu0 %v6332_v2  ;;  %v8700_v2 = vld [vmem:[#allocation5_spill] sm:$0xff] }
 0x231   :  { %4636 = vmatprep.subr.bf16.mxu1 %v6335_v43  ;;  %v641_v43 = vsub.s32 2, %v8700_v2 }
 0x233   :  { %4584 = vmatpush2.bf16.msra.mxu0 %v6330_v18 }
 0x234   :  { %4637 = vmatpush2.bf16.msra.mxu1 %v6333_v0  ;;  %4585 = vmatprep.subr.bf16.mxu0 %v6338_v27  ;;  %v645_v0 = vsub.s32 3, %v8700_v2 }
 0x235   :  { %4638 = vmatprep.subr.bf16.mxu1 %v6341_v17  ;;  %v8701_v17 = vld [vmem:[#allocation6_spill] sm:$0xff] }
 0x237   :  { %4586 = vmatpush2.bf16.msra.mxu0 %v6336_v31  ;;  %v642_v31 = vrot.slane %v8701_v17, %v641_v43 }
 0x238   :  { %4639 = vmatpush2.bf16.msra.mxu1 %v6339_v20  ;;  %4587 = vmatprep.subr.bf16.mxu0 %v6344_v34  ;;  %v646_v34 = vrot.slane %v8701_v17, %v645_v0 }
 0x239   :  { %4640 = vmatprep.subr.bf16.mxu1 %v6347_v11  ;;  %v4233_v2 = vadd.f32 %v4232_v13, %v642_v31 }
 0x23b   :  { %4588 = vmatpush2.bf16.msra.mxu0 %v6342_v56  ;;  %v4223_v56 = vadd.f32 %v4222_v26, %v642_v31 }
 0x23c   :  { %4641 = vmatpush2.bf16.msra.mxu1 %v6345_v29  ;;  %4589 = vmatprep.subr.bf16.mxu0 %v6350_v24  ;;  %v4225_v24 = vadd.f32 %v4224_v40, %v646_v34  ;;  %v4235_v40 = vadd.f32 %v8600_v16, %v646_v34 }
 0x23d   :  { %4642 = vmatprep.subr.bf16.mxu1 %v6353_v21 }
 0x23f   :  { %4590 = vmatpush2.bf16.msra.mxu0 %v6348_v51 }
 0x240   :  { %4643 = vmatpush2.bf16.msra.mxu1 %v6351_v46  ;;  %v4227_v46 = vadd.f32 %v4226_v1, %v642_v31  ;;  %v4237_v1 = vadd.f32 %v8602_v52, %v642_v31 }
 0x242   :  { %4592 = vmatmul.mubr.bf16.vlgmr.msra.gmra.mxu0 %v6384_v37  ;;  %v4275_v19 = vpop.f32.mrf.mxu0 }
 0x243   :  { %4645 = vmatmul.mubr.bf16.vlgmr.msra.gmra.mxu1 %v6385_v48  ;;  %4601 = vmatprep.mubr.bf16.mxu0 %v6386_v5  ;;  %v4328_v12 = vpop.f32.mrf.mxu1  ;;  %v4276_v21 = vadd.f32 %v4275_v19, %v4223_v56 }
 0x244   :  { %4654 = vmatprep.mubr.bf16.mxu1 %v6387_v35  ;;  %v4277_v7 = vpop.f32.mrf.mxu0 }
 0x245   :  { %v4330_v44 = vpop.f32.mrf.mxu1  ;;  %v4278_v37 = vadd.f32 %v4277_v7, %v4225_v24  ;;  %v4329_v35 = vadd.f32 %v4328_v12, %v4276_v21 }
 0x246   :  { %v4279_v42 = vpop.f32.mrf.mxu0 }
 0x247   :  { %v4332_v47 = vpop.f32.mrf.mxu1  ;;  %v4331_v43 = vadd.f32 %v4330_v44, %v4278_v37 }
 0x248   :  { %v4281_v15 = vpop.f32.mrf.mxu0 }
 0x249   :  { %v4334_v4 = vpop.f32.mrf.mxu1 }
 0x24a   :  { %4602 = vmatmul.mubr.bf16.gmra.mxu0 %v6388_v28  ;;  %v4285_v32 = vpop.f32.mrf.mxu0  ;;  %v4280_v28 = vadd.f32 %v4279_v42, %v4227_v46 }
 0x24b   :  { %4655 = vmatmul.mubr.bf16.gmra.mxu1 %v6389_v30  ;;  %v4338_v41 = vpop.f32.mrf.mxu1  ;;  %v4229_v30 = vadd.f32 %v4228_v55, %v646_v34  ;;  %v4286_v0 = vadd.f32 %v4285_v32, %v4233_v2 }
 0x24c   :  { %v4287_v45 = vpop.f32.mrf.mxu0  ;;  %v4333_v19 = vadd.f32 %v4332_v47, %v4280_v28 }
 0x24d   :  { %v8606_v6 = vpop.f32.mrf.mxu1  ;;  %v4288_v7 = vadd.f32 %v4287_v45, %v4235_v40  ;;  %v4339_v42 = vadd.f32 %v4338_v41, %v4286_v0 }
 0x24e   :  { %v4289_v54 = vpop.f32.mrf.mxu0 }
 0x24f   :  { %v8610_v39 = vpop.f32.mrf.mxu1  ;;  %v4290_v55 = vadd.f32 %v4289_v54, %v4237_v1  ;;  %v4341_v16 = vadd.f32 %v8606_v6, %v4288_v7 }
 0x250   :  { %v8608_v60 = vpop.f32.mrf.mxu0 }
 0x251   :  { %v8612_v53 = vpop.f32.mrf.mxu1  ;;  %v4343_v45 = vadd.f32 %v8610_v39, %v4290_v55 }
 0x282   :  { %v4381_v33 = vpop.f32.mrf.mxu0 }
 0x283   :  { %v4434_v38 = vpop.f32.mrf.mxu1 }
 0x284   :  { %v4383_v3 = vpop.f32.mrf.mxu0 }
 0x285   :  { %v4436_v9 = vpop.f32.mrf.mxu1  ;;  %v4384_v56 = vadd.f32 %v4383_v3, %v4331_v43 }
 0x286   :  { %v4385_v14 = vpop.f32.mrf.mxu0 }
 0x287   :  { %v4438_v58 = vpop.f32.mrf.mxu1 }
 0x288   :  { %v4387_v57 = vpop.f32.mrf.mxu0 }
 0x289   :  { %v8614_v25 = vpop.f32.mrf.mxu1 }
 0x28a   :  { %v4391_v61 = vpop.f32.mrf.mxu0 }
 0x28b   :  { %v8616_v22 = vpop.f32.mrf.mxu1  ;;  %v4392_v46 = vadd.f32 %v4391_v61, %v4339_v42 }
 0x28c   :  { %v4393_v59 = vpop.f32.mrf.mxu0 }
 0x28d   :  { %v8618_v10 = vpop.f32.mrf.mxu1  ;;  %v4394_v54 = vadd.f32 %v4393_v59, %v4341_v16 }
 0x28e   :  { %v4395_v49 = vpop.f32.mrf.mxu0 }
 0x28f   :  { %v8620_v36 = vpop.f32.mrf.mxu1  ;;  %v4447_v31 = vadd.f32 %v8618_v10, %v4394_v54 }
 0x290   :  { %8698 = vst [vmem:[#allocation7_spill] sm:$0xff] %v8620_v36  ;;  %v8622_v62 = vpop.f32.mrf.mxu0  ;;  %v4282_v36 = vadd.f32 %v4281_v15, %v4229_v30  ;;  %v4437_v15 = vadd.f32 %v4436_v9, %v4384_v56 }
 0x291   :  { %v8624_v63 = vpop.f32.mrf.mxu1 }
 0x292   :  { %8699 = vst [vmem:[#allocation8_spill] sm:$0xff] %v8624_v63  ;;  %v4382_v63 = vadd.f32 %v4381_v33, %v4329_v35  ;;  %v4335_v12 = vadd.f32 %v4334_v4, %v4282_v36  ;;  %v4239_v33 = vadd.f32 %v8604_v50, %v646_v34  ;;  %v4445_v50 = vadd.f32 %v8616_v22, %v4392_v46 }
 0x294   :  { %v4435_v24 = vadd.f32 %v4434_v38, %v4382_v63  ;;  %v4388_v21 = vadd.f32 %v4387_v57, %v4335_v12  ;;  %v4292_v52 = vadd.f32 %v8608_v60, %v4239_v33  ;;  %v4396_v57 = vadd.f32 %v4395_v49, %v4343_v45 }
 0x296   :  { %v4441_v9 = vadd.f32 %v8614_v25, %v4388_v21  ;;  %v4345_v63 = vadd.f32 %v8612_v53, %v4292_v52 }
 0x297   :  { %v8703_v34 = vld [vmem:[#allocation7_spill] sm:$0xff] }
 0x298   :  { %v4398_v25 = vadd.f32 %v8622_v62, %v4345_v63  ;;  %v4449_v22 = vadd.f32 %v8703_v34, %v4396_v57 }
 0x299   :  { %v8705_v43 = vld [vmem:[#allocation8_spill] sm:$0xff] }
 0x29a   :  { %v4451_v0 = vadd.f32 %v8705_v43, %v4398_v25 }
 0x2c2   :  { %v4487_v23 = vpop.f32.mrf.mxu0 }
 0x2c3   :  { %v4540_v8 = vpop.f32.mrf.mxu1  ;;  %v4488_v32 = vadd.f32 %v4487_v23, %v4435_v24 }
 0x2c4   :  { %v4489_v18 = vpop.f32.mrf.mxu0 }
 0x2c5   :  { %v4542_v27 = vpop.f32.mrf.mxu1  ;;  %v4490_v3 = vadd.f32 %v4489_v18, %v4437_v15  ;;  %v4541_v38 = vadd.f32 %v4540_v8, %v4488_v32 }
 0x2c6   :  { %v4491_v20 = vpop.f32.mrf.mxu0 }
 0x2c7   :  { %v4544_v11 = vpop.f32.mrf.mxu1  ;;  %v4543_v6 = vadd.f32 %v4542_v27, %v4490_v3 }
 0x2c8   :  { %v4493_v29 = vpop.f32.mrf.mxu0 }
 0x2c9   :  { %v8630_v51 = vpop.f32.mrf.mxu1  ;;  %v4494_v60 = vadd.f32 %v4493_v29, %v4441_v9 }
 0x2ca   :  { %v4497_v48 = vpop.f32.mrf.mxu0 }
 0x2cb   :  { %v8632_v5 = vpop.f32.mrf.mxu1  ;;  %v4498_v23 = vadd.f32 %v4497_v48, %v4445_v50  ;;  %v4547_v48 = vadd.f32 %v8630_v51, %v4494_v60 }
 0x2cc   :  { %8702 = vst [vmem:[#allocation5_spill] sm:$0xff] %v8632_v5  ;;  %v4499_v17 = vpop.f32.mrf.mxu0  ;;  %v4386_v5 = vadd.f32 %v4385_v14, %v4333_v19 }
 0x2cd   :  { %v8634_v26 = vpop.f32.mrf.mxu1 }
 0x2ce   :  { %v4501_v13 = vpop.f32.mrf.mxu0  ;;  %v4439_v47 = vadd.f32 %v4438_v58, %v4386_v5  ;;  %v4500_v5 = vadd.f32 %v4499_v17, %v4447_v31 }
 0x2cf   :  { %v8638_v44 = vpop.f32.mrf.mxu1  ;;  %v4502_v62 = vadd.f32 %v4501_v13, %v4449_v22 }
 0x2d0   :  { %v4503_v4 = vpop.f32.mrf.mxu0  ;;  %v4492_v14 = vadd.f32 %v4491_v20, %v4439_v47  ;;  %v4553_v51 = vadd.f32 %v8634_v26, %v4500_v5 }
 0x2d1   :  { %v8644_v41 = vpop.f32.mrf.mxu1  ;;  %v4504_v24 = vadd.f32 %v4503_v4, %v4451_v0  ;;  %v4555_v32 = vadd.f32 %v8638_v44, %v4502_v62 }
 0x2d2   :  { %v4545_v59 = vadd.f32 %v4544_v11, %v4492_v14 }
 0x2d3   :  { %v8704_v10 = vld [vmem:[#allocation5_spill] sm:$0xff]  ;;  %v4557_v44 = vadd.f32 %v8644_v41, %v4504_v24 }
 0x2d4   :  { %v4551_v11 = vadd.f32 %v8704_v10, %v4498_v23 }
 0x302   :  { %v4593_v61 = vpop.f32.mrf.mxu0 }
 0x303   :  { %v4646_v36 = vpop.f32.mrf.mxu1  ;;  %v4594_v58 = vadd.f32 %v4593_v61, %v4541_v38 }
 0x304   :  { %v4595_v39 = vpop.f32.mrf.mxu0 }
 0x305   :  { %v4648_v18 = vpop.f32.mrf.mxu1  ;;  %v4647_v8 = vadd.f32 %v4646_v36, %v4594_v58  ;;  %v4596_v20 = vadd.f32 %v4595_v39, %v4543_v6 }
 0x306   :  { %v4597_v49 = vpop.f32.mrf.mxu0 }
 0x307   :  { %v4650_v37 = vpop.f32.mrf.mxu1  ;;  %4667 = vst [vmem:[%s8688_s3 + $0x10] sm:$0xff] %v4647_v8  ;;  %v4699_v53 = vmul.f32 0.01, %v4647_v8  ;;  %v4649_v27 = vadd.f32 %v4648_v18, %v4596_v20  ;;  %v4598_v29 = vadd.f32 %v4597_v49, %v4545_v59  ;;  %vm4683_vm8 = vcmp.ge.f32.partialorder %v4647_v8, 0.0 }
 0x308   :  { %v4599_v35 = vpop.f32.mrf.mxu0 }
 0x309   :  { %v4652_v28 = vpop.f32.mrf.mxu1  ;;  %4668 = vst [vmem:[%s8688_s3 + $0x18] sm:$0xff] %v4649_v27  ;;  %vm4684_vm9 = vcmp.ge.f32.partialorder %v4649_v27, 0.0  ;;  %v4700_v30 = vmul.f32 0.01, %v4649_v27  ;;  %v4651_v2 = vadd.f32 %v4650_v37, %v4598_v29  ;;  %v4600_v17 = vadd.f32 %v4599_v35, %v4547_v48 }
 0x30a   :  { %v4603_v40 = vpop.f32.mrf.mxu0  ;;  %v4715_v56 = vsel %vm4683_vm8, %v4647_v8, %v4699_v53 }
 0x30b   :  { %v4656_v19 = vpop.f32.mrf.mxu1  ;;  %v4716_v1 = vsel %vm4684_vm9, %v4649_v27, %v4700_v30  ;;  %4671 = vst [vmem:[%s8688_s3 + $0x30] sm:$0xff] %v4651_v2  ;;  %v4604_v7 = vadd.f32 %v4603_v40, %v4551_v11  ;;  %v4703_v42 = vmul.f32 0.01, %v4651_v2  ;;  %v4653_v55 = vadd.f32 %v4652_v28, %v4600_v17 }
 0x30c   :  { %v5426_v12 = vpack.c.bf16 %v4716_v1, %v4715_v56  ;;  %v4605_v13 = vpop.f32.mrf.mxu0  ;;  %vm4687_vm10 = vcmp.ge.f32.partialorder %v4651_v2, 0.0 }
 0x30d   :  { %v4658_v15 = vpop.f32.mrf.mxu1  ;;  %v4657_v33 = vadd.f32 %v4656_v19, %v4604_v7  ;;  %v4606_v21 = vadd.f32 %v4605_v13, %v4553_v51  ;;  %4672 = vst [vmem:[%s8688_s3 + $0x38] sm:$0xff] %v4653_v55  ;;  %vm4688_vm11 = vcmp.ge.f32.partialorder %v4653_v55, 0.0  ;;  %v4704_v26 = vmul.f32 0.01, %v4653_v55 }
 0x30e   :  { %4778 = vst [vmem:[#allocation2 + $0x8] sm:$0xff] %v5426_v12  ;;  %v4607_v46 = vpop.f32.mrf.mxu0  ;;  %v4719_v45 = vsel %vm4687_vm10, %v4651_v2, %v4703_v42 }
 0x30f   :  { %4675 = vst [vmem:[%s8688_s3 + $0x50] sm:$0xff] %v4657_v33  ;;  %v4707_v16 = vmul.f32 0.01, %v4657_v33  ;;  %v4659_v47 = vadd.f32 %v4658_v15, %v4606_v21  ;;  %v4608_v3 = vadd.f32 %v4607_v46, %v4555_v32  ;;  %v4660_v52 = vpop.f32.mrf.mxu1  ;;  %v4720_v4 = vsel %vm4688_vm11, %v4653_v55, %v4704_v26 }
 0x310   :  { %vm4691_vm12 = vcmp.ge.f32.partialorder %v4657_v33, 0.0  ;;  %v4609_v54 = vpop.f32.mrf.mxu0  ;;  %v5428_v38 = vpack.c.bf16 %v4720_v4, %v4719_v45 }
 0x311   :  { %4676 = vst [vmem:[%s8688_s3 + $0x58] sm:$0xff] %v4659_v47  ;;  %vm4692_vm13 = vcmp.ge.f32.partialorder %v4659_v47, 0.0  ;;  %v4708_v14 = vmul.f32 0.01, %v4659_v47  ;;  %v4661_v9 = vadd.f32 %v4660_v52, %v4608_v3  ;;  %v4610_v50 = vadd.f32 %v4609_v54, %v4557_v44  ;;  %v4662_v36 = vpop.f32.mrf.mxu1 }
 0x312   :  { %4780 = vst [vmem:[#allocation2 + $0x18] sm:$0xff] %v5428_v38  ;;  %v4723_v57 = vsel %vm4691_vm12, %v4657_v33, %v4707_v16 }
 0x313   :  { %v4724_v61 = vsel %vm4692_vm13, %v4659_v47, %v4708_v14  ;;  %4679 = vst [vmem:[%s8688_s3 + $0x70] sm:$0xff] %v4661_v9  ;;  %v4711_v41 = vmul.f32 0.01, %v4661_v9  ;;  %v4663_v58 = vadd.f32 %v4662_v36, %v4610_v50  ;;  %vm4695_vm14 = vcmp.ge.f32.partialorder %v4661_v9, 0.0 }
 0x314   :  { %v5430_v6 = vpack.c.bf16 %v4724_v61, %v4723_v57 }
 0x315   :  { %4680 = vst [vmem:[%s8688_s3 + $0x78] sm:$0xff] %v4663_v58  ;;  %vm4696_vm15 = vcmp.ge.f32.partialorder %v4663_v58, 0.0  ;;  %v4712_v63 = vmul.f32 0.01, %v4663_v58  ;;  %v4727_v60 = vsel %vm4695_vm14, %v4661_v9, %v4711_v41 }
 0x316   :  { %4782 = vst [vmem:[#allocation2 + $0x28] sm:$0xff] %v5430_v6 }
 0x317   :  { %v4728_v23 = vsel %vm4696_vm15, %v4663_v58, %v4712_v63 }
 0x318   :  { %v5432_v39 = vpack.c.bf16 %v4728_v23, %v4727_v60 }
 0x31a   :  { %4784 = vst [vmem:[#allocation2 + $0x38] sm:$0xff] %v5432_v39 }
 0x31b   :  { %6401 = shalt.err (!%p6398_p4)
}
 0x31c   :  { %s6413_s11 = smov 256   ;;  %s6414_s12 = smov 16  }
 0x31d   :  { %4798 = dma.vmem_to_hbm [thread:$0]  %s4793_s7, 1024, %s8689_s4, [#allocation3], %s6413_s11, %s6413_s11, %s6414_s12  }
 0x31e   :  { %6410 = dma.done.wait [#allocation3], 1024  }
 0x31f   :  { %6411 = vsyncadd [#allocation3], 4294966272 }
 0x320   :  { %4804 = vsyncpa [#allocation3], 1 }

</bundles_post_ra>
